<compile_context>
chip_gen: v5e
topology: v5e:2x2
jax: 0.10.0
libtpu: 0.0.40
codegen_flags: <defaults>
</compile_context>

<pallas_src>
import functools
import math

import jax
import jax.numpy as jnp
from jax import lax
from jax.experimental import pallas as pl
from jax.experimental.pallas import tpu as pltpu


_LN_EPS = 1e-5
_NEG_BIG = -1e30


# ----------------------------------------------------------------------------
# In-kernel helpers
# ----------------------------------------------------------------------------
def _ln(x, g, b):
    mu = jnp.mean(x, axis=-1, keepdims=True)
    xc = x - mu
    var = jnp.mean(xc * xc, axis=-1, keepdims=True)
    return xc * lax.rsqrt(var + _LN_EPS) * g + b


# ----------------------------------------------------------------------------
# Fused encoder layer kernel (pre-LN -> attention -> out_proj+res -> FFN+res)
# One grid step == one independent stack (batched over G stacks).
# ----------------------------------------------------------------------------
def _encoder_layer_kernel(*refs, self_attn, H, scale):
    if self_attn:
        (x_ref, bias_ref, ln0g_ref, ln0b_ref, wq_ref, bq_ref, wkv_ref,
         bkv_ref, wo_ref, bo_ref, ln1g_ref, ln1b_ref, w1_ref, b1_ref,
         w2_ref, b2_ref, o_ref) = refs
        kv_ref = None
    else:
        (x_ref, kv_ref, bias_ref, ln0g_ref, ln0b_ref, wq_ref, bq_ref, wkv_ref,
         bkv_ref, wo_ref, bo_ref, ln1g_ref, ln1b_ref, w1_ref, b1_ref,
         w2_ref, b2_ref, o_ref) = refs

    x2d = x_ref[0]                           # (Nq, D), rows ordered (t, b)
    D = x2d.shape[-1]
    Dh = D // H

    ln0g = ln0g_ref[0]
    ln0b = ln0b_ref[0]
    xq = _ln(x2d, ln0g, ln0b)
    xkv = xq if self_attn else _ln(kv_ref[0], ln0g, ln0b)

    # fused projections: Q from the query side, [K|V] from the key/value side
    q = (jnp.dot(xq, wq_ref[0], preferred_element_type=jnp.float32)
         + bq_ref[0]) * scale                # (Nq, D)
    kvp = (jnp.dot(xkv, wkv_ref[0], preferred_element_type=jnp.float32)
           + bkv_ref[0])                     # (Nk, 2D)

    bias = bias_ref[...]                     # (Nq, Nk): 0 same-batch, -1e30 otherwise
    wo = wo_ref[0]                           # (D, D)

    # residual + out_proj bias once; per-head outputs accumulate through
    # out_proj row-slices (sum_h o_h @ Wo[h*Dh:(h+1)*Dh, :] == attn @ Wo).
    x1 = x2d + bo_ref[0]
    for h in range(H):
        lo, hi = h * Dh, (h + 1) * Dh
        qh = q[:, lo:hi]                     # (Nq, Dh)
        kh = kvp[:, lo:hi]                   # (Nk, Dh)
        vh = kvp[:, D + lo:D + hi]           # (Nk, Dh)
        s = lax.dot_general(qh, kh, (((1,), (1,)), ((), ())),
                            preferred_element_type=jnp.float32) + bias
        m = jnp.max(s, axis=-1, keepdims=True)
        p = jnp.exp(s - m)
        p = p * pl.reciprocal(jnp.sum(p, axis=-1, keepdims=True), approx=True)
        oh = jnp.dot(p, vh, preferred_element_type=jnp.float32)          # (Nq, Dh)
        x1 = x1 + jnp.dot(oh, wo[lo:hi, :], preferred_element_type=jnp.float32)

    # pre-LN FFN block with residual
    y = _ln(x1, ln1g_ref[0], ln1b_ref[0])
    hid = jnp.maximum(
        jnp.dot(y, w1_ref[0], preferred_element_type=jnp.float32) + b1_ref[0],
        0.0)
    o_ref[0] = (x1
                + jnp.dot(hid, w2_ref[0], preferred_element_type=jnp.float32)
                + b2_ref[0])


def _g_spec(shape):
    # (G, A, B) stacked array -> one (1, A, B) slice per grid step
    return pl.BlockSpec((1,) + tuple(shape[1:]), lambda g: (g, 0, 0))


def _batch_bias(nq, nk, batch):
    # additive mask: rows/cols are ordered (t, b) / (s, b'); keep only b == b'
    rb = jnp.arange(nq, dtype=jnp.int32) % batch
    cb = jnp.arange(nk, dtype=jnp.int32) % batch
    return jnp.where(rb[:, None] == cb[None, :], 0.0, _NEG_BIG).astype(jnp.float32)


_PARAM_ORDER = ("ln0_g", "ln0_b", "Wq_t", "bq", "Wkv_t", "bkv", "Wo_t", "bo",
                "ln1_g", "ln1_b", "W1_t", "b1", "W2_t", "b2")


def pallas_encoder_layer(p, x, kv, *, num_heads, batch):
    """Apply one MultimodalTransformerEncoderLayer to G independent stacks.

    x:  (G, T*B, D) query-side activations.
    kv: (G, S*B, D) key/value-side activations, or None for self-attention.
    p:  dict of parameters, each with leading stack axis G.
    """
    G, Nq, D = x.shape
    self_attn = kv is None
    Nk = Nq if self_attn else kv.shape[1]
    scale = float(D // num_heads) ** -0.5
    bias = _batch_bias(Nq, Nk, batch)

    kern = functools.partial(_encoder_layer_kernel, self_attn=self_attn,
                             H=num_heads, scale=scale)

    stacked = [x] + ([] if self_attn else [kv])
    args = stacked + [bias] + [p[k] for k in _PARAM_ORDER]
    in_specs = ([_g_spec(a.shape) for a in stacked]
                + [pl.BlockSpec((Nq, Nk), lambda g: (0, 0))]
                + [_g_spec(p[k].shape) for k in _PARAM_ORDER])

    return pl.pallas_call(
        kern,
        out_shape=jax.ShapeDtypeStruct((G, Nq, D), jnp.float32),
        grid=(G,),
        in_specs=in_specs,
        out_specs=_g_spec((G, Nq, D)),
        compiler_params=pltpu.CompilerParams(
            dimension_semantics=("parallel",)),
    )(*args)


# ----------------------------------------------------------------------------
# Standalone LayerNorm kernel (cross_modal_norm over all 6 stacks at once)
# ----------------------------------------------------------------------------
def _full_spec(shape):
    return pl.BlockSpec(shape, lambda i: (0,) * len(shape))


def _layernorm_kernel(x_ref, g_ref, b_ref, o_ref):
    o_ref[...] = _ln(x_ref[...], g_ref[...], b_ref[...])


def pallas_layernorm(x2d, g, b):
    N, D = x2d.shape
    return pl.pallas_call(
        _layernorm_kernel,
        out_shape=jax.ShapeDtypeStruct((N, D), jnp.float32),
        grid=(1,),
        in_specs=[_full_spec((N, D)), _full_spec((1, D)), _full_spec((1, D))],
        out_specs=_full_spec((N, D)),
    )(x2d, g.reshape(1, D), b.reshape(1, D))


# ----------------------------------------------------------------------------
# Fused head kernel: atten_norm x3 -> concat -> proj1/relu/proj2 + residual
#                    -> classifier LayerNorm -> classifier Linear
# ----------------------------------------------------------------------------
def _head_kernel(hl_ref, ha_ref, hv_ref, ang_ref, anb_ref,
                 w1_ref, b1_ref, w2_ref, b2_ref, clng_ref, clnb_ref,
                 wc_ref, bc_ref, o_ref):
    ang = ang_ref[...]
    anb = anb_ref[...]
    last = jnp.concatenate([_ln(hl_ref[...], ang, anb),
                            _ln(ha_ref[...], ang, anb),
                            _ln(hv_ref[...], ang, anb)], axis=-1)   # (B, 6E)
    h = jnp.maximum(
        jnp.dot(last, w1_ref[...], preferred_element_type=jnp.float32) + b1_ref[...],
        0.0)
    y = last + jnp.dot(h, w2_ref[...], preferred_element_type=jnp.float32) + b2_ref[...]
    z = _ln(y, clng_ref[...], clnb_ref[...])
    o_ref[...] = jnp.dot(z, wc_ref[...], preferred_element_type=jnp.float32) + bc_ref[...]


def pallas_head(hl, ha, hv, ang, anb, w1t, b1, w2t, b2, clng, clnb, wct, bc):
    B, twoE = hl.shape
    C = w1t.shape[0]
    nC = wct.shape[1]
    args = [hl, ha, hv, ang.reshape(1, twoE), anb.reshape(1, twoE),
            w1t, b1.reshape(1, C), w2t, b2.reshape(1, C),
            clng.reshape(1, C), clnb.reshape(1, C), wct, bc.reshape(1, nC)]
    return pl.pallas_call(
        _head_kernel,
        out_shape=jax.ShapeDtypeStruct((B, nC), jnp.float32),
        grid=(1,),
        in_specs=[_full_spec(a.shape) for a in args],
        out_specs=_full_spec((B, nC)),
    )(*args)


# ----------------------------------------------------------------------------
# Pure-JAX reference ops (numerical verification of the fused kernels)
# ----------------------------------------------------------------------------
def ref_layernorm(x, g, b):
    mu = jnp.mean(x, axis=-1, keepdims=True)
    var = jnp.mean((x - mu) ** 2, axis=-1, keepdims=True)
    return (x - mu) / jnp.sqrt(var + _LN_EPS) * g + b


def ref_encoder_layer(p, x, kv, *, num_heads, batch):
    self_attn = kv is None
    kv_in = x if self_attn else kv

    def single(pp, x2d, kv2d):
        D = x2d.shape[-1]
        H, B = num_heads, batch
        Dh = D // H
        T = x2d.shape[0] // B
        S = kv2d.shape[0] // B
        scale = float(Dh) ** -0.5

        g0, b0 = pp["ln0_g"][0], pp["ln0_b"][0]
        xq = ref_layernorm(x2d, g0, b0)
        xkv = xq if self_attn else ref_layernorm(kv2d, g0, b0)
        q = (xq @ pp["Wq_t"] + pp["bq"][0]) * scale
        kvp = xkv @ pp["Wkv_t"] + pp["bkv"][0]
        k, v = kvp[:, :D], kvp[:, D:]

        qh = q.reshape(T, B * H, Dh).transpose(1, 0, 2)   # (B*H, T, Dh)
        kh = k.reshape(S, B * H, Dh).transpose(1, 0, 2)
        vh = v.reshape(S, B * H, Dh).transpose(1, 0, 2)
        s = jnp.einsum("btd,bsd->bts", qh, kh)
        pr = jax.nn.softmax(s, axis=-1)
        a = jnp.einsum("bts,bsd->btd", pr, vh)
        attn = a.transpose(1, 0, 2).reshape(T * B, D)
        x1 = x2d + attn @ pp["Wo_t"] + pp["bo"][0]
        y = ref_layernorm(x1, pp["ln1_g"][0], pp["ln1_b"][0])
        h = jax.nn.relu(y @ pp["W1_t"] + pp["b1"][0])
        return x1 + h @ pp["W2_t"] + pp["b2"][0]

    return jax.vmap(single)(p, x, kv_in)


def ref_head(hl, ha, hv, ang, anb, w1t, b1, w2t, b2, clng, clnb, wct, bc):
    last = jnp.concatenate([ref_layernorm(hl, ang, anb),
                            ref_layernorm(ha, ang, anb),
                            ref_layernorm(hv, ang, anb)], axis=-1)
    h = jax.nn.relu(last @ w1t + b1)
    y = last + h @ w2t + b2
    z = ref_layernorm(y, clng, clnb)
    return z @ wct + bc


def make_ops(use_pallas):
    if use_pallas:
        return dict(layer=pallas_encoder_layer, ln=pallas_layernorm, head=pallas_head)
    return dict(layer=ref_encoder_layer, ln=ref_layernorm, head=ref_head)


# ----------------------------------------------------------------------------
# Model forward (XLA glue: stacking the independent stacks / concatenations)
# ----------------------------------------------------------------------------
def mult_forward(ops, params, proj_x_v, proj_x_a, proj_x_l, num_heads):
    T, B, E = proj_x_l.shape

    def flat(t):
        return t.reshape(t.shape[0] * t.shape[1], t.shape[2])

    xl, xa, xv = flat(proj_x_l), flat(proj_x_a), flat(proj_x_v)

    # stack order: [l_with_a, l_with_v, a_with_l, a_with_v, v_with_l, v_with_a]
    h = jnp.stack([xl, xl, xa, xa, xv, xv], axis=0)          # (6, T*B, E)
    kv = jnp.stack([xa, xv, xl, xv, xl, xa], axis=0)         # (6, S*B, E)

    for layer_p in params["pre_fusion"]:
        h = ops["layer"](layer_p, h, kv, num_heads=num_heads, batch=B)

    cm = params["cross_modal_norm"]
    h = ops["ln"](h.reshape(6 * T * B, E), cm["g"], cm["b"]).reshape(6, T, B, E)

    h_l = jnp.concatenate([h[0], h[1]], axis=2)              # (T, B, 2E)
    h_a = jnp.concatenate([h[2], h[3]], axis=2)
    h_v = jnp.concatenate([h[4], h[5]], axis=2)

    mem = jnp.stack([flat(h_l), flat(h_a), flat(h_v)], axis=0)   # (3, T*B, 2E)
    for layer_p in params["post_fusion"]:
        mem = ops["layer"](layer_p, mem, None, num_heads=num_heads, batch=B)

    mem = mem.reshape(3, T, B, 2 * E)
    last_l, last_a, last_v = mem[0, 0], mem[1, 0], mem[2, 0]     # (B, 2E) each

    an = params["atten_norm"]
    return ops["head"](last_l, last_a, last_v, an["g"], an["b"],
                       params["proj1_Wt"], params["proj1_b"],
                       params["proj2_Wt"], params["proj2_b"],
                       params["cls_ln_g"], params["cls_ln_b"],
                       params["cls_Wt"], params["cls_b"])


@functools.partial(jax.jit, static_argnames=("num_heads", "use_pallas"))
def forward(params, proj_x_v, proj_x_a, proj_x_l, num_heads, use_pallas):
    ops = make_ops(use_pallas)
    return mult_forward(ops, params, proj_x_v, proj_x_a, proj_x_l, num_heads)


# ----------------------------------------------------------------------------
# Deterministic parameter initialization (shapes per MulT.__init__)
# ----------------------------------------------------------------------------
def _xavier(key, fan_out, fan_in):
    bound = math.sqrt(6.0 / (fan_in + fan_out))
    return jax.random.uniform(key, (fan_out, fan_in), jnp.float32, -bound, bound)


def init_encoder_layer(key, D):
    ks = jax.random.split(key, 4)
    in_proj = _xavier(ks[0], 3 * D, D)          # in_proj_weight (3D, D): [q; k; v]
    Wq, Wk, Wv = in_proj[:D], in_proj[D:2 * D], in_proj[2 * D:]
    Wo = _xavier(ks[1], D, D)
    W1 = _xavier(ks[2], 4 * D, D)
    W2 = _xavier(ks[3], D, 4 * D)
    z = lambda *s: jnp.zeros(s, jnp.float32)
    one = lambda *s: jnp.ones(s, jnp.float32)
    return dict(
        ln0_g=one(1, D), ln0_b=z(1, D),
        Wq_t=Wq.T, bq=z(1, D),
        Wkv_t=jnp.concatenate([Wk.T, Wv.T], axis=1), bkv=z(1, 2 * D),
        Wo_t=Wo.T, bo=z(1, D),
        ln1_g=one(1, D), ln1_b=z(1, D),
        W1_t=W1.T, b1=z(1, 4 * D),
        W2_t=W2.T, b2=z(1, D),
    )


def init_layer_group(key, D, G):
    """Params for one layer index across G parallel stacks, stacked on axis 0."""
    per = [init_encoder_layer(k, D) for k in jax.random.split(key, G)]
    return {k: jnp.stack([p[k] for p in per], axis=0) for k in per[0]}


def init_mult_params(key, E, n_pre, n_post, n_classes):
    C = 6 * E   # combined_dim = 2 * embed_dim * n_modalities (n_modalities = 3)
    keys = iter(jax.random.split(key, 16 + n_pre + n_post))
    z = lambda *s: jnp.zeros(s, jnp.float32)
    one = lambda *s: jnp.ones(s, jnp.float32)
    return dict(
        pre_fusion=[init_layer_group(next(keys), E, 6) for _ in range(n_pre)],
        cross_modal_norm=dict(g=one(E), b=z(E)),
        post_fusion=[init_layer_group(next(keys), 2 * E, 3) for _ in range(n_post)],
        atten_norm=dict(g=one(2 * E), b=z(2 * E)),
        proj1_Wt=_xavier(next(keys), C, C).T, proj1_b=z(C),
        proj2_Wt=_xavier(next(keys), C, C).T, proj2_b=z(C),
        cls_ln_g=one(C), cls_ln_b=z(C),
        cls_Wt=_xavier(next(keys), n_classes, C).T, cls_b=z(n_classes),
    )


# ----------------------------------------------------------------------------
if __name__ == "__main__":
    SEQ, BATCH, EMBED = 8, 2, 32
    N_HEADS, N_PRE, N_POST, N_CLASSES = 4, 2, 2, 4

    key = jax.random.PRNGKey(0)
    kp, kvid, kaud, ktxt = jax.random.split(key, 4)
    params = init_mult_params(kp, EMBED, N_PRE, N_POST, N_CLASSES)

    proj_x_v = jax.random.normal(kvid, (SEQ, BATCH, EMBED), jnp.float32)
    proj_x_a = jax.random.normal(kaud, (SEQ, BATCH, EMBED), jnp.float32)
    proj_x_l = jax.random.normal(ktxt, (SEQ, BATCH, EMBED), jnp.float32)

    logits = jax.block_until_ready(
        forward(params, proj_x_v, proj_x_a, proj_x_l, N_HEADS, True))
    assert logits.shape == (BATCH, N_CLASSES), logits.shape

    ref = jax.block_until_ready(
        forward(params, proj_x_v, proj_x_a, proj_x_l, N_HEADS, False))
    err = float(jnp.max(jnp.abs(logits - ref)))
    scale_ref = float(jnp.max(jnp.abs(ref)))
    # Tolerance accounts for default (bf16-pass) MXU matmul precision and the
    # approximate-reciprocal softmax normalization in the fused kernel.
    tol = max(7.5e-2, 5e-2 * scale_ref)
    assert err <= tol, f"Pallas vs reference mismatch: max abs err = {err} (tol {tol})"

    print("KERNEL_OK")
</pallas_src>

<mosaic_0001>
module attributes {stable_mosaic.version = 11 : i64} {
  func.func @_encoder_layer_kernel(%arg0: i32, %arg1: memref<1x16x32xf32, #tpu.memory_space<vmem>>, %arg2: memref<1x16x32xf32, #tpu.memory_space<vmem>>, %arg3: memref<16x16xf32, #tpu.memory_space<vmem>>, %arg4: memref<1x1x32xf32, #tpu.memory_space<vmem>>, %arg5: memref<1x1x32xf32, #tpu.memory_space<vmem>>, %arg6: memref<1x32x32xf32, #tpu.memory_space<vmem>>, %arg7: memref<1x1x32xf32, #tpu.memory_space<vmem>>, %arg8: memref<1x32x64xf32, #tpu.memory_space<vmem>>, %arg9: memref<1x1x64xf32, #tpu.memory_space<vmem>>, %arg10: memref<1x32x32xf32, #tpu.memory_space<vmem>>, %arg11: memref<1x1x32xf32, #tpu.memory_space<vmem>>, %arg12: memref<1x1x32xf32, #tpu.memory_space<vmem>>, %arg13: memref<1x1x32xf32, #tpu.memory_space<vmem>>, %arg14: memref<1x32x128xf32, #tpu.memory_space<vmem>>, %arg15: memref<1x1x128xf32, #tpu.memory_space<vmem>>, %arg16: memref<1x128x32xf32, #tpu.memory_space<vmem>>, %arg17: memref<1x1x32xf32, #tpu.memory_space<vmem>>, %arg18: memref<1x16x32xf32, #tpu.memory_space<vmem>>) attributes {dimension_semantics = [#tpu.dimension_semantics<parallel>], iteration_bounds = array<i64: 6>, scalar_prefetch = 0 : i64, scratch_operands = 0 : i64, tpu.core_type = #tpu.core_type<tc>, window_params = [{transform_indices = @transform_0, window_bounds = array<i64: 1, 16, 32>}, {transform_indices = @transform_1, window_bounds = array<i64: 1, 16, 32>}, {pipeline_mode = #tpu.pipeline_mode<synchronous>, transform_indices = @transform_2, window_bounds = array<i64: 16, 16>}, {transform_indices = @transform_3, window_bounds = array<i64: 1, 1, 32>}, {transform_indices = @transform_4, window_bounds = array<i64: 1, 1, 32>}, {transform_indices = @transform_5, window_bounds = array<i64: 1, 32, 32>}, {transform_indices = @transform_6, window_bounds = array<i64: 1, 1, 32>}, {transform_indices = @transform_7, window_bounds = array<i64: 1, 32, 64>}, {transform_indices = @transform_8, window_bounds = array<i64: 1, 1, 64>}, {transform_indices = @transform_9, window_bounds = array<i64: 1, 32, 32>}, {transform_indices = @transform_10, window_bounds = array<i64: 1, 1, 32>}, {transform_indices = @transform_11, window_bounds = array<i64: 1, 1, 32>}, {transform_indices = @transform_12, window_bounds = array<i64: 1, 1, 32>}, {transform_indices = @transform_13, window_bounds = array<i64: 1, 32, 128>}, {transform_indices = @transform_14, window_bounds = array<i64: 1, 1, 128>}, {transform_indices = @transform_15, window_bounds = array<i64: 1, 128, 32>}, {transform_indices = @transform_16, window_bounds = array<i64: 1, 1, 32>}, {transform_indices = @transform_17, window_bounds = array<i64: 1, 16, 32>}]} {
    %c0 = arith.constant 0 : index
    %c0_0 = arith.constant 0 : index
    %c0_1 = arith.constant 0 : index
    %0 = vector.load %arg1[%c0, %c0_0, %c0_1] : memref<1x16x32xf32, #tpu.memory_space<vmem>>, vector<1x16x32xf32>
    %1 = vector.shape_cast %0 : vector<1x16x32xf32> to vector<16x32xf32>
    %c0_2 = arith.constant 0 : index
    %c0_3 = arith.constant 0 : index
    %c0_4 = arith.constant 0 : index
    %2 = vector.load %arg4[%c0_2, %c0_3, %c0_4] : memref<1x1x32xf32, #tpu.memory_space<vmem>>, vector<1x1x32xf32>
    %3 = vector.shape_cast %2 : vector<1x1x32xf32> to vector<1x32xf32>
    %c0_5 = arith.constant 0 : index
    %c0_6 = arith.constant 0 : index
    %c0_7 = arith.constant 0 : index
    %4 = vector.load %arg5[%c0_5, %c0_6, %c0_7] : memref<1x1x32xf32, #tpu.memory_space<vmem>>, vector<1x1x32xf32>
    %5 = vector.shape_cast %4 : vector<1x1x32xf32> to vector<1x32xf32>
    %cst = arith.constant dense<0.000000e+00> : vector<16xf32>
    %6 = vector.multi_reduction <add>, %1, %cst [1] : vector<16x32xf32> to vector<16xf32>
    %7 = vector.shape_cast %6 : vector<16xf32> to vector<16x1xf32>
    %cst_8 = arith.constant 3.200000e+01 : f32
    %8 = vector.broadcast %cst_8 : f32 to vector<16x1xf32>
    %9 = arith.divf %7, %8 : vector<16x1xf32>
    %10 = vector.broadcast %9 : vector<16x1xf32> to vector<16x32xf32>
    %11 = arith.subf %1, %10 : vector<16x32xf32>
    %12 = arith.mulf %11, %11 : vector<16x32xf32>
    %cst_9 = arith.constant dense<0.000000e+00> : vector<16xf32>
    %13 = vector.multi_reduction <add>, %12, %cst_9 [1] : vector<16x32xf32> to vector<16xf32>
    %14 = vector.shape_cast %13 : vector<16xf32> to vector<16x1xf32>
    %cst_10 = arith.constant 3.200000e+01 : f32
    %15 = vector.broadcast %cst_10 : f32 to vector<16x1xf32>
    %16 = arith.divf %14, %15 : vector<16x1xf32>
    %cst_11 = arith.constant 9.99999974E-6 : f32
    %17 = vector.broadcast %cst_11 : f32 to vector<16x1xf32>
    %18 = arith.addf %16, %17 : vector<16x1xf32>
    %19 = math.rsqrt %18 : vector<16x1xf32>
    %20 = vector.broadcast %19 : vector<16x1xf32> to vector<16x32xf32>
    %21 = arith.mulf %11, %20 : vector<16x32xf32>
    %22 = vector.broadcast %3 : vector<1x32xf32> to vector<16x32xf32>
    %23 = arith.mulf %21, %22 : vector<16x32xf32>
    %24 = vector.broadcast %5 : vector<1x32xf32> to vector<16x32xf32>
    %25 = arith.addf %23, %24 : vector<16x32xf32>
    %c0_12 = arith.constant 0 : index
    %c0_13 = arith.constant 0 : index
    %c0_14 = arith.constant 0 : index
    %26 = vector.load %arg2[%c0_12, %c0_13, %c0_14] : memref<1x16x32xf32, #tpu.memory_space<vmem>>, vector<1x16x32xf32>
    %27 = vector.shape_cast %26 : vector<1x16x32xf32> to vector<16x32xf32>
    %cst_15 = arith.constant dense<0.000000e+00> : vector<16xf32>
    %28 = vector.multi_reduction <add>, %27, %cst_15 [1] : vector<16x32xf32> to vector<16xf32>
    %29 = vector.shape_cast %28 : vector<16xf32> to vector<16x1xf32>
    %cst_16 = arith.constant 3.200000e+01 : f32
    %30 = vector.broadcast %cst_16 : f32 to vector<16x1xf32>
    %31 = arith.divf %29, %30 : vector<16x1xf32>
    %32 = vector.broadcast %31 : vector<16x1xf32> to vector<16x32xf32>
    %33 = arith.subf %27, %32 : vector<16x32xf32>
    %34 = arith.mulf %33, %33 : vector<16x32xf32>
    %cst_17 = arith.constant dense<0.000000e+00> : vector<16xf32>
    %35 = vector.multi_reduction <add>, %34, %cst_17 [1] : vector<16x32xf32> to vector<16xf32>
    %36 = vector.shape_cast %35 : vector<16xf32> to vector<16x1xf32>
    %cst_18 = arith.constant 3.200000e+01 : f32
    %37 = vector.broadcast %cst_18 : f32 to vector<16x1xf32>
    %38 = arith.divf %36, %37 : vector<16x1xf32>
    %cst_19 = arith.constant 9.99999974E-6 : f32
    %39 = vector.broadcast %cst_19 : f32 to vector<16x1xf32>
    %40 = arith.addf %38, %39 : vector<16x1xf32>
    %41 = math.rsqrt %40 : vector<16x1xf32>
    %42 = vector.broadcast %41 : vector<16x1xf32> to vector<16x32xf32>
    %43 = arith.mulf %33, %42 : vector<16x32xf32>
    %44 = vector.broadcast %3 : vector<1x32xf32> to vector<16x32xf32>
    %45 = arith.mulf %43, %44 : vector<16x32xf32>
    %46 = vector.broadcast %5 : vector<1x32xf32> to vector<16x32xf32>
    %47 = arith.addf %45, %46 : vector<16x32xf32>
    %c0_20 = arith.constant 0 : index
    %c0_21 = arith.constant 0 : index
    %c0_22 = arith.constant 0 : index
    %48 = vector.load %arg6[%c0_20, %c0_21, %c0_22] : memref<1x32x32xf32, #tpu.memory_space<vmem>>, vector<1x32x32xf32>
    %49 = vector.shape_cast %48 : vector<1x32x32xf32> to vector<32x32xf32>
    %cst_23 = arith.constant dense<0.000000e+00> : vector<16x32xf32>
    %50 = tpu.matmul %25, %49, %cst_23 {dimension_numbers = #tpu.dot_dimension_numbers<[1], [0], [0], [1], [0, 0, 1, 1], [], []>} : vector<16x32xf32>, vector<32x32xf32>, vector<16x32xf32> -> vector<16x32xf32>
    %c0_24 = arith.constant 0 : index
    %c0_25 = arith.constant 0 : index
    %c0_26 = arith.constant 0 : index
    %51 = vector.load %arg7[%c0_24, %c0_25, %c0_26] : memref<1x1x32xf32, #tpu.memory_space<vmem>>, vector<1x1x32xf32>
    %52 = vector.shape_cast %51 : vector<1x1x32xf32> to vector<1x32xf32>
    %53 = vector.broadcast %52 : vector<1x32xf32> to vector<16x32xf32>
    %54 = arith.addf %50, %53 : vector<16x32xf32>
    %cst_27 = arith.constant 0.353553385 : f32
    %55 = vector.broadcast %cst_27 : f32 to vector<16x32xf32>
    %56 = arith.mulf %54, %55 : vector<16x32xf32>
    %c0_28 = arith.constant 0 : index
    %c0_29 = arith.constant 0 : index
    %c0_30 = arith.constant 0 : index
    %57 = vector.load %arg8[%c0_28, %c0_29, %c0_30] : memref<1x32x64xf32, #tpu.memory_space<vmem>>, vector<1x32x64xf32>
    %58 = vector.shape_cast %57 : vector<1x32x64xf32> to vector<32x64xf32>
    %cst_31 = arith.constant dense<0.000000e+00> : vector<16x64xf32>
    %59 = tpu.matmul %47, %58, %cst_31 {dimension_numbers = #tpu.dot_dimension_numbers<[1], [0], [0], [1], [0, 0, 1, 1], [], []>} : vector<16x32xf32>, vector<32x64xf32>, vector<16x64xf32> -> vector<16x64xf32>
    %c0_32 = arith.constant 0 : index
    %c0_33 = arith.constant 0 : index
    %c0_34 = arith.constant 0 : index
    %60 = vector.load %arg9[%c0_32, %c0_33, %c0_34] : memref<1x1x64xf32, #tpu.memory_space<vmem>>, vector<1x1x64xf32>
    %61 = vector.shape_cast %60 : vector<1x1x64xf32> to vector<1x64xf32>
    %62 = vector.broadcast %61 : vector<1x64xf32> to vector<16x64xf32>
    %63 = arith.addf %59, %62 : vector<16x64xf32>
    %c0_35 = arith.constant 0 : index
    %c0_36 = arith.constant 0 : index
    %64 = vector.load %arg3[%c0_35, %c0_36] : memref<16x16xf32, #tpu.memory_space<vmem>>, vector<16x16xf32>
    %c0_37 = arith.constant 0 : index
    %c0_38 = arith.constant 0 : index
    %c0_39 = arith.constant 0 : index
    %65 = vector.load %arg10[%c0_37, %c0_38, %c0_39] : memref<1x32x32xf32, #tpu.memory_space<vmem>>, vector<1x32x32xf32>
    %66 = vector.shape_cast %65 : vector<1x32x32xf32> to vector<32x32xf32>
    %c0_40 = arith.constant 0 : index
    %c0_41 = arith.constant 0 : index
    %c0_42 = arith.constant 0 : index
    %67 = vector.load %arg11[%c0_40, %c0_41, %c0_42] : memref<1x1x32xf32, #tpu.memory_space<vmem>>, vector<1x1x32xf32>
    %68 = vector.shape_cast %67 : vector<1x1x32xf32> to vector<1x32xf32>
    %69 = vector.broadcast %68 : vector<1x32xf32> to vector<16x32xf32>
    %70 = arith.addf %1, %69 : vector<16x32xf32>
    %71 = vector.extract_strided_slice %56 {offsets = [0, 0], sizes = [16, 8], strides = [1, 1]} : vector<16x32xf32> to vector<16x8xf32>
    %72 = vector.extract_strided_slice %63 {offsets = [0, 0], sizes = [16, 8], strides = [1, 1]} : vector<16x64xf32> to vector<16x8xf32>
    %73 = vector.extract_strided_slice %63 {offsets = [0, 32], sizes = [16, 8], strides = [1, 1]} : vector<16x64xf32> to vector<16x8xf32>
    %cst_43 = arith.constant dense<0.000000e+00> : vector<16x16xf32>
    %74 = tpu.matmul %71, %72, %cst_43 {dimension_numbers = #tpu.dot_dimension_numbers<[1], [1], [0], [0], [0, 0, 1, 0], [], []>} : vector<16x8xf32>, vector<16x8xf32>, vector<16x16xf32> -> vector<16x16xf32>
    %75 = arith.addf %74, %64 : vector<16x16xf32>
    %cst_44 = arith.constant dense<0xFF800000> : vector<16xf32>
    %76 = vector.multi_reduction <maximumf>, %75, %cst_44 [1] : vector<16x16xf32> to vector<16xf32>
    %77 = vector.shape_cast %76 : vector<16xf32> to vector<16x1xf32>
    %78 = vector.broadcast %77 : vector<16x1xf32> to vector<16x16xf32>
    %79 = arith.subf %75, %78 : vector<16x16xf32>
    %80 = math.exp %79 : vector<16x16xf32>
    %cst_45 = arith.constant dense<0.000000e+00> : vector<16xf32>
    %81 = vector.multi_reduction <add>, %80, %cst_45 [1] : vector<16x16xf32> to vector<16xf32>
    %82 = vector.shape_cast %81 : vector<16xf32> to vector<16x1xf32>
    %83 = tpu.reciprocal %82 {approx = true} : vector<16x1xf32> -> vector<16x1xf32>
    %84 = vector.broadcast %83 : vector<16x1xf32> to vector<16x16xf32>
    %85 = arith.mulf %80, %84 : vector<16x16xf32>
    %cst_46 = arith.constant dense<0.000000e+00> : vector<16x8xf32>
    %86 = tpu.matmul %85, %73, %cst_46 {dimension_numbers = #tpu.dot_dimension_numbers<[1], [0], [0], [1], [0, 0, 1, 1], [], []>} : vector<16x16xf32>, vector<16x8xf32>, vector<16x8xf32> -> vector<16x8xf32>
    %87 = vector.extract_strided_slice %66 {offsets = [0, 0], sizes = [8, 32], strides = [1, 1]} : vector<32x32xf32> to vector<8x32xf32>
    %cst_47 = arith.constant dense<0.000000e+00> : vector<16x32xf32>
    %88 = tpu.matmul %86, %87, %cst_47 {dimension_numbers = #tpu.dot_dimension_numbers<[1], [0], [0], [1], [0, 0, 1, 1], [], []>} : vector<16x8xf32>, vector<8x32xf32>, vector<16x32xf32> -> vector<16x32xf32>
    %89 = arith.addf %70, %88 : vector<16x32xf32>
    %90 = vector.extract_strided_slice %56 {offsets = [0, 8], sizes = [16, 8], strides = [1, 1]} : vector<16x32xf32> to vector<16x8xf32>
    %91 = vector.extract_strided_slice %63 {offsets = [0, 8], sizes = [16, 8], strides = [1, 1]} : vector<16x64xf32> to vector<16x8xf32>
    %92 = vector.extract_strided_slice %63 {offsets = [0, 40], sizes = [16, 8], strides = [1, 1]} : vector<16x64xf32> to vector<16x8xf32>
    %cst_48 = arith.constant dense<0.000000e+00> : vector<16x16xf32>
    %93 = tpu.matmul %90, %91, %cst_48 {dimension_numbers = #tpu.dot_dimension_numbers<[1], [1], [0], [0], [0, 0, 1, 0], [], []>} : vector<16x8xf32>, vector<16x8xf32>, vector<16x16xf32> -> vector<16x16xf32>
    %94 = arith.addf %93, %64 : vector<16x16xf32>
    %cst_49 = arith.constant dense<0xFF800000> : vector<16xf32>
    %95 = vector.multi_reduction <maximumf>, %94, %cst_49 [1] : vector<16x16xf32> to vector<16xf32>
    %96 = vector.shape_cast %95 : vector<16xf32> to vector<16x1xf32>
    %97 = vector.broadcast %96 : vector<16x1xf32> to vector<16x16xf32>
    %98 = arith.subf %94, %97 : vector<16x16xf32>
    %99 = math.exp %98 : vector<16x16xf32>
    %cst_50 = arith.constant dense<0.000000e+00> : vector<16xf32>
    %100 = vector.multi_reduction <add>, %99, %cst_50 [1] : vector<16x16xf32> to vector<16xf32>
    %101 = vector.shape_cast %100 : vector<16xf32> to vector<16x1xf32>
    %102 = tpu.reciprocal %101 {approx = true} : vector<16x1xf32> -> vector<16x1xf32>
    %103 = vector.broadcast %102 : vector<16x1xf32> to vector<16x16xf32>
    %104 = arith.mulf %99, %103 : vector<16x16xf32>
    %cst_51 = arith.constant dense<0.000000e+00> : vector<16x8xf32>
    %105 = tpu.matmul %104, %92, %cst_51 {dimension_numbers = #tpu.dot_dimension_numbers<[1], [0], [0], [1], [0, 0, 1, 1], [], []>} : vector<16x16xf32>, vector<16x8xf32>, vector<16x8xf32> -> vector<16x8xf32>
    %106 = vector.extract_strided_slice %66 {offsets = [8, 0], sizes = [8, 32], strides = [1, 1]} : vector<32x32xf32> to vector<8x32xf32>
    %cst_52 = arith.constant dense<0.000000e+00> : vector<16x32xf32>
    %107 = tpu.matmul %105, %106, %cst_52 {dimension_numbers = #tpu.dot_dimension_numbers<[1], [0], [0], [1], [0, 0, 1, 1], [], []>} : vector<16x8xf32>, vector<8x32xf32>, vector<16x32xf32> -> vector<16x32xf32>
    %108 = arith.addf %89, %107 : vector<16x32xf32>
    %109 = vector.extract_strided_slice %56 {offsets = [0, 16], sizes = [16, 8], strides = [1, 1]} : vector<16x32xf32> to vector<16x8xf32>
    %110 = vector.extract_strided_slice %63 {offsets = [0, 16], sizes = [16, 8], strides = [1, 1]} : vector<16x64xf32> to vector<16x8xf32>
    %111 = vector.extract_strided_slice %63 {offsets = [0, 48], sizes = [16, 8], strides = [1, 1]} : vector<16x64xf32> to vector<16x8xf32>
    %cst_53 = arith.constant dense<0.000000e+00> : vector<16x16xf32>
    %112 = tpu.matmul %109, %110, %cst_53 {dimension_numbers = #tpu.dot_dimension_numbers<[1], [1], [0], [0], [0, 0, 1, 0], [], []>} : vector<16x8xf32>, vector<16x8xf32>, vector<16x16xf32> -> vector<16x16xf32>
    %113 = arith.addf %112, %64 : vector<16x16xf32>
    %cst_54 = arith.constant dense<0xFF800000> : vector<16xf32>
    %114 = vector.multi_reduction <maximumf>, %113, %cst_54 [1] : vector<16x16xf32> to vector<16xf32>
    %115 = vector.shape_cast %114 : vector<16xf32> to vector<16x1xf32>
    %116 = vector.broadcast %115 : vector<16x1xf32> to vector<16x16xf32>
    %117 = arith.subf %113, %116 : vector<16x16xf32>
    %118 = math.exp %117 : vector<16x16xf32>
    %cst_55 = arith.constant dense<0.000000e+00> : vector<16xf32>
    %119 = vector.multi_reduction <add>, %118, %cst_55 [1] : vector<16x16xf32> to vector<16xf32>
    %120 = vector.shape_cast %119 : vector<16xf32> to vector<16x1xf32>
    %121 = tpu.reciprocal %120 {approx = true} : vector<16x1xf32> -> vector<16x1xf32>
    %122 = vector.broadcast %121 : vector<16x1xf32> to vector<16x16xf32>
    %123 = arith.mulf %118, %122 : vector<16x16xf32>
    %cst_56 = arith.constant dense<0.000000e+00> : vector<16x8xf32>
    %124 = tpu.matmul %123, %111, %cst_56 {dimension_numbers = #tpu.dot_dimension_numbers<[1], [0], [0], [1], [0, 0, 1, 1], [], []>} : vector<16x16xf32>, vector<16x8xf32>, vector<16x8xf32> -> vector<16x8xf32>
    %125 = vector.extract_strided_slice %66 {offsets = [16, 0], sizes = [8, 32], strides = [1, 1]} : vector<32x32xf32> to vector<8x32xf32>
    %cst_57 = arith.constant dense<0.000000e+00> : vector<16x32xf32>
    %126 = tpu.matmul %124, %125, %cst_57 {dimension_numbers = #tpu.dot_dimension_numbers<[1], [0], [0], [1], [0, 0, 1, 1], [], []>} : vector<16x8xf32>, vector<8x32xf32>, vector<16x32xf32> -> vector<16x32xf32>
    %127 = arith.addf %108, %126 : vector<16x32xf32>
    %128 = vector.extract_strided_slice %56 {offsets = [0, 24], sizes = [16, 8], strides = [1, 1]} : vector<16x32xf32> to vector<16x8xf32>
    %129 = vector.extract_strided_slice %63 {offsets = [0, 24], sizes = [16, 8], strides = [1, 1]} : vector<16x64xf32> to vector<16x8xf32>
    %130 = vector.extract_strided_slice %63 {offsets = [0, 56], sizes = [16, 8], strides = [1, 1]} : vector<16x64xf32> to vector<16x8xf32>
    %cst_58 = arith.constant dense<0.000000e+00> : vector<16x16xf32>
    %131 = tpu.matmul %128, %129, %cst_58 {dimension_numbers = #tpu.dot_dimension_numbers<[1], [1], [0], [0], [0, 0, 1, 0], [], []>} : vector<16x8xf32>, vector<16x8xf32>, vector<16x16xf32> -> vector<16x16xf32>
    %132 = arith.addf %131, %64 : vector<16x16xf32>
    %cst_59 = arith.constant dense<0xFF800000> : vector<16xf32>
    %133 = vector.multi_reduction <maximumf>, %132, %cst_59 [1] : vector<16x16xf32> to vector<16xf32>
    %134 = vector.shape_cast %133 : vector<16xf32> to vector<16x1xf32>
    %135 = vector.broadcast %134 : vector<16x1xf32> to vector<16x16xf32>
    %136 = arith.subf %132, %135 : vector<16x16xf32>
    %137 = math.exp %136 : vector<16x16xf32>
    %cst_60 = arith.constant dense<0.000000e+00> : vector<16xf32>
    %138 = vector.multi_reduction <add>, %137, %cst_60 [1] : vector<16x16xf32> to vector<16xf32>
    %139 = vector.shape_cast %138 : vector<16xf32> to vector<16x1xf32>
    %140 = tpu.reciprocal %139 {approx = true} : vector<16x1xf32> -> vector<16x1xf32>
    %141 = vector.broadcast %140 : vector<16x1xf32> to vector<16x16xf32>
    %142 = arith.mulf %137, %141 : vector<16x16xf32>
    %cst_61 = arith.constant dense<0.000000e+00> : vector<16x8xf32>
    %143 = tpu.matmul %142, %130, %cst_61 {dimension_numbers = #tpu.dot_dimension_numbers<[1], [0], [0], [1], [0, 0, 1, 1], [], []>} : vector<16x16xf32>, vector<16x8xf32>, vector<16x8xf32> -> vector<16x8xf32>
    %144 = vector.extract_strided_slice %66 {offsets = [24, 0], sizes = [8, 32], strides = [1, 1]} : vector<32x32xf32> to vector<8x32xf32>
    %cst_62 = arith.constant dense<0.000000e+00> : vector<16x32xf32>
    %145 = tpu.matmul %143, %144, %cst_62 {dimension_numbers = #tpu.dot_dimension_numbers<[1], [0], [0], [1], [0, 0, 1, 1], [], []>} : vector<16x8xf32>, vector<8x32xf32>, vector<16x32xf32> -> vector<16x32xf32>
    %146 = arith.addf %127, %145 : vector<16x32xf32>
    %c0_63 = arith.constant 0 : index
    %c0_64 = arith.constant 0 : index
    %c0_65 = arith.constant 0 : index
    %147 = vector.load %arg12[%c0_63, %c0_64, %c0_65] : memref<1x1x32xf32, #tpu.memory_space<vmem>>, vector<1x1x32xf32>
    %148 = vector.shape_cast %147 : vector<1x1x32xf32> to vector<1x32xf32>
    %c0_66 = arith.constant 0 : index
    %c0_67 = arith.constant 0 : index
    %c0_68 = arith.constant 0 : index
    %149 = vector.load %arg13[%c0_66, %c0_67, %c0_68] : memref<1x1x32xf32, #tpu.memory_space<vmem>>, vector<1x1x32xf32>
    %150 = vector.shape_cast %149 : vector<1x1x32xf32> to vector<1x32xf32>
    %cst_69 = arith.constant dense<0.000000e+00> : vector<16xf32>
    %151 = vector.multi_reduction <add>, %146, %cst_69 [1] : vector<16x32xf32> to vector<16xf32>
    %152 = vector.shape_cast %151 : vector<16xf32> to vector<16x1xf32>
    %cst_70 = arith.constant 3.200000e+01 : f32
    %153 = vector.broadcast %cst_70 : f32 to vector<16x1xf32>
    %154 = arith.divf %152, %153 : vector<16x1xf32>
    %155 = vector.broadcast %154 : vector<16x1xf32> to vector<16x32xf32>
    %156 = arith.subf %146, %155 : vector<16x32xf32>
    %157 = arith.mulf %156, %156 : vector<16x32xf32>
    %cst_71 = arith.constant dense<0.000000e+00> : vector<16xf32>
    %158 = vector.multi_reduction <add>, %157, %cst_71 [1] : vector<16x32xf32> to vector<16xf32>
    %159 = vector.shape_cast %158 : vector<16xf32> to vector<16x1xf32>
    %cst_72 = arith.constant 3.200000e+01 : f32
    %160 = vector.broadcast %cst_72 : f32 to vector<16x1xf32>
    %161 = arith.divf %159, %160 : vector<16x1xf32>
    %cst_73 = arith.constant 9.99999974E-6 : f32
    %162 = vector.broadcast %cst_73 : f32 to vector<16x1xf32>
    %163 = arith.addf %161, %162 : vector<16x1xf32>
    %164 = math.rsqrt %163 : vector<16x1xf32>
    %165 = vector.broadcast %164 : vector<16x1xf32> to vector<16x32xf32>
    %166 = arith.mulf %156, %165 : vector<16x32xf32>
    %167 = vector.broadcast %148 : vector<1x32xf32> to vector<16x32xf32>
    %168 = arith.mulf %166, %167 : vector<16x32xf32>
    %169 = vector.broadcast %150 : vector<1x32xf32> to vector<16x32xf32>
    %170 = arith.addf %168, %169 : vector<16x32xf32>
    %c0_74 = arith.constant 0 : index
    %c0_75 = arith.constant 0 : index
    %c0_76 = arith.constant 0 : index
    %171 = vector.load %arg14[%c0_74, %c0_75, %c0_76] : memref<1x32x128xf32, #tpu.memory_space<vmem>>, vector<1x32x128xf32>
    %172 = vector.shape_cast %171 : vector<1x32x128xf32> to vector<32x128xf32>
    %cst_77 = arith.constant dense<0.000000e+00> : vector<16x128xf32>
    %173 = tpu.matmul %170, %172, %cst_77 {dimension_numbers = #tpu.dot_dimension_numbers<[1], [0], [0], [1], [0, 0, 1, 1], [], []>} : vector<16x32xf32>, vector<32x128xf32>, vector<16x128xf32> -> vector<16x128xf32>
    %c0_78 = arith.constant 0 : index
    %c0_79 = arith.constant 0 : index
    %c0_80 = arith.constant 0 : index
    %174 = vector.load %arg15[%c0_78, %c0_79, %c0_80] : memref<1x1x128xf32, #tpu.memory_space<vmem>>, vector<1x1x128xf32>
    %175 = vector.shape_cast %174 : vector<1x1x128xf32> to vector<1x128xf32>
    %176 = vector.broadcast %175 : vector<1x128xf32> to vector<16x128xf32>
    %177 = arith.addf %173, %176 : vector<16x128xf32>
    %cst_81 = arith.constant 0.000000e+00 : f32
    %178 = vector.broadcast %cst_81 : f32 to vector<16x128xf32>
    %179 = arith.maximumf %177, %178 : vector<16x128xf32>
    %c0_82 = arith.constant 0 : index
    %c0_83 = arith.constant 0 : index
    %c0_84 = arith.constant 0 : index
    %180 = vector.load %arg16[%c0_82, %c0_83, %c0_84] : memref<1x128x32xf32, #tpu.memory_space<vmem>>, vector<1x128x32xf32>
    %181 = vector.shape_cast %180 : vector<1x128x32xf32> to vector<128x32xf32>
    %cst_85 = arith.constant dense<0.000000e+00> : vector<16x32xf32>
    %182 = tpu.matmul %179, %181, %cst_85 {dimension_numbers = #tpu.dot_dimension_numbers<[1], [0], [0], [1], [0, 0, 1, 1], [], []>} : vector<16x128xf32>, vector<128x32xf32>, vector<16x32xf32> -> vector<16x32xf32>
    %183 = arith.addf %146, %182 : vector<16x32xf32>
    %c0_86 = arith.constant 0 : index
    %c0_87 = arith.constant 0 : index
    %c0_88 = arith.constant 0 : index
    %184 = vector.load %arg17[%c0_86, %c0_87, %c0_88] : memref<1x1x32xf32, #tpu.memory_space<vmem>>, vector<1x1x32xf32>
    %185 = vector.shape_cast %184 : vector<1x1x32xf32> to vector<1x32xf32>
    %186 = vector.broadcast %185 : vector<1x32xf32> to vector<16x32xf32>
    %187 = arith.addf %183, %186 : vector<16x32xf32>
    %c0_89 = arith.constant 0 : index
    %c0_90 = arith.constant 0 : index
    %c0_91 = arith.constant 0 : index
    %188 = vector.load %arg18[%c0_89, %c0_90, %c0_91] : memref<1x16x32xf32, #tpu.memory_space<vmem>>, vector<1x16x32xf32>
    %189 = vector.shape_cast %188 : vector<1x16x32xf32> to vector<16x32xf32>
    %190 = vector.shape_cast %187 : vector<16x32xf32> to vector<1x16x32xf32>
    tpu.vector_store %arg18[%c0_89, %c0_90, %c0_91], %190 {strides = array<i32>} : memref<1x16x32xf32, #tpu.memory_space<vmem>>, vector<1x16x32xf32>,
    return
  }
  func.func @transform_0(%arg0: i32) -> (i32, i32, i32) {
    %c0_i32 = arith.constant 0 : i32
    %c0_i32_0 = arith.constant 0 : i32
    %c0_i32_1 = arith.constant 0 : i32
    return %arg0, %c0_i32, %c0_i32_0 : i32, i32, i32
  }
  func.func @transform_1(%arg0: i32) -> (i32, i32, i32) {
    %c0_i32 = arith.constant 0 : i32
    %c0_i32_0 = arith.constant 0 : i32
    %c0_i32_1 = arith.constant 0 : i32
    return %arg0, %c0_i32, %c0_i32_0 : i32, i32, i32
  }
  func.func @transform_2(%arg0: i32) -> (i32, i32) {
    %c0_i32 = arith.constant 0 : i32
    %c0_i32_0 = arith.constant 0 : i32
    %c0_i32_1 = arith.constant 0 : i32
    return %c0_i32, %c0_i32_0 : i32, i32
  }
  func.func @transform_3(%arg0: i32) -> (i32, i32, i32) {
    %c0_i32 = arith.constant 0 : i32
    %c0_i32_0 = arith.constant 0 : i32
    %c0_i32_1 = arith.constant 0 : i32
    return %arg0, %c0_i32, %c0_i32_0 : i32, i32, i32
  }
  func.func @transform_4(%arg0: i32) -> (i32, i32, i32) {
    %c0_i32 = arith.constant 0 : i32
    %c0_i32_0 = arith.constant 0 : i32
    %c0_i32_1 = arith.constant 0 : i32
    return %arg0, %c0_i32, %c0_i32_0 : i32, i32, i32
  }
  func.func @transform_5(%arg0: i32) -> (i32, i32, i32) {
    %c0_i32 = arith.constant 0 : i32
    %c0_i32_0 = arith.constant 0 : i32
    %c0_i32_1 = arith.constant 0 : i32
    return %arg0, %c0_i32, %c0_i32_0 : i32, i32, i32
  }
  func.func @transform_6(%arg0: i32) -> (i32, i32, i32) {
    %c0_i32 = arith.constant 0 : i32
    %c0_i32_0 = arith.constant 0 : i32
    %c0_i32_1 = arith.constant 0 : i32
    return %arg0, %c0_i32, %c0_i32_0 : i32, i32, i32
  }
  func.func @transform_7(%arg0: i32) -> (i32, i32, i32) {
    %c0_i32 = arith.constant 0 : i32
    %c0_i32_0 = arith.constant 0 : i32
    %c0_i32_1 = arith.constant 0 : i32
    return %arg0, %c0_i32, %c0_i32_0 : i32, i32, i32
  }
  func.func @transform_8(%arg0: i32) -> (i32, i32, i32) {
    %c0_i32 = arith.constant 0 : i32
    %c0_i32_0 = arith.constant 0 : i32
    %c0_i32_1 = arith.constant 0 : i32
    return %arg0, %c0_i32, %c0_i32_0 : i32, i32, i32
  }
  func.func @transform_9(%arg0: i32) -> (i32, i32, i32) {
    %c0_i32 = arith.constant 0 : i32
    %c0_i32_0 = arith.constant 0 : i32
    %c0_i32_1 = arith.constant 0 : i32
    return %arg0, %c0_i32, %c0_i32_0 : i32, i32, i32
  }
  func.func @transform_10(%arg0: i32) -> (i32, i32, i32) {
    %c0_i32 = arith.constant 0 : i32
    %c0_i32_0 = arith.constant 0 : i32
    %c0_i32_1 = arith.constant 0 : i32
    return %arg0, %c0_i32, %c0_i32_0 : i32, i32, i32
  }
  func.func @transform_11(%arg0: i32) -> (i32, i32, i32) {
    %c0_i32 = arith.constant 0 : i32
    %c0_i32_0 = arith.constant 0 : i32
    %c0_i32_1 = arith.constant 0 : i32
    return %arg0, %c0_i32, %c0_i32_0 : i32, i32, i32
  }
  func.func @transform_12(%arg0: i32) -> (i32, i32, i32) {
    %c0_i32 = arith.constant 0 : i32
    %c0_i32_0 = arith.constant 0 : i32
    %c0_i32_1 = arith.constant 0 : i32
    return %arg0, %c0_i32, %c0_i32_0 : i32, i32, i32
  }
  func.func @transform_13(%arg0: i32) -> (i32, i32, i32) {
    %c0_i32 = arith.constant 0 : i32
    %c0_i32_0 = arith.constant 0 : i32
    %c0_i32_1 = arith.constant 0 : i32
    return %arg0, %c0_i32, %c0_i32_0 : i32, i32, i32
  }
  func.func @transform_14(%arg0: i32) -> (i32, i32, i32) {
    %c0_i32 = arith.constant 0 : i32
    %c0_i32_0 = arith.constant 0 : i32
    %c0_i32_1 = arith.constant 0 : i32
    return %arg0, %c0_i32, %c0_i32_0 : i32, i32, i32
  }
  func.func @transform_15(%arg0: i32) -> (i32, i32, i32) {
    %c0_i32 = arith.constant 0 : i32
    %c0_i32_0 = arith.constant 0 : i32
    %c0_i32_1 = arith.constant 0 : i32
    return %arg0, %c0_i32, %c0_i32_0 : i32, i32, i32
  }
  func.func @transform_16(%arg0: i32) -> (i32, i32, i32) {
    %c0_i32 = arith.constant 0 : i32
    %c0_i32_0 = arith.constant 0 : i32
    %c0_i32_1 = arith.constant 0 : i32
    return %arg0, %c0_i32, %c0_i32_0 : i32, i32, i32
  }
  func.func @transform_17(%arg0: i32) -> (i32, i32, i32) {
    %c0_i32 = arith.constant 0 : i32
    %c0_i32_0 = arith.constant 0 : i32
    %c0_i32_1 = arith.constant 0 : i32
    return %arg0, %c0_i32, %c0_i32_0 : i32, i32, i32
  }
}

module attributes {stable_mosaic.version = 11 : i64} {
  func.func @_encoder_layer_kernel(%arg0: i32, %arg1: memref<1x16x32xf32, #tpu.memory_space<vmem>>, %arg2: memref<1x16x32xf32, #tpu.memory_space<vmem>>, %arg3: memref<16x16xf32, #tpu.memory_space<vmem>>, %arg4: memref<1x1x32xf32, #tpu.memory_space<vmem>>, %arg5: memref<1x1x32xf32, #tpu.memory_space<vmem>>, %arg6: memref<1x32x32xf32, #tpu.memory_space<vmem>>, %arg7: memref<1x1x32xf32, #tpu.memory_space<vmem>>, %arg8: memref<1x32x64xf32, #tpu.memory_space<vmem>>, %arg9: memref<1x1x64xf32, #tpu.memory_space<vmem>>, %arg10: memref<1x32x32xf32, #tpu.memory_space<vmem>>, %arg11: memref<1x1x32xf32, #tpu.memory_space<vmem>>, %arg12: memref<1x1x32xf32, #tpu.memory_space<vmem>>, %arg13: memref<1x1x32xf32, #tpu.memory_space<vmem>>, %arg14: memref<1x32x128xf32, #tpu.memory_space<vmem>>, %arg15: memref<1x1x128xf32, #tpu.memory_space<vmem>>, %arg16: memref<1x128x32xf32, #tpu.memory_space<vmem>>, %arg17: memref<1x1x32xf32, #tpu.memory_space<vmem>>, %arg18: memref<1x16x32xf32, #tpu.memory_space<vmem>>) attributes {dimension_semantics = [#tpu.dimension_semantics<parallel>], iteration_bounds = array<i64: 6>, scalar_prefetch = 0 : i64, scratch_operands = 0 : i64, tpu.core_type = #tpu.core_type<tc>, window_params = [{transform_indices = @transform_0, window_bounds = array<i64: 1, 16, 32>}, {transform_indices = @transform_1, window_bounds = array<i64: 1, 16, 32>}, {pipeline_mode = #tpu.pipeline_mode<synchronous>, transform_indices = @transform_2, window_bounds = array<i64: 16, 16>}, {transform_indices = @transform_3, window_bounds = array<i64: 1, 1, 32>}, {transform_indices = @transform_4, window_bounds = array<i64: 1, 1, 32>}, {transform_indices = @transform_5, window_bounds = array<i64: 1, 32, 32>}, {transform_indices = @transform_6, window_bounds = array<i64: 1, 1, 32>}, {transform_indices = @transform_7, window_bounds = array<i64: 1, 32, 64>}, {transform_indices = @transform_8, window_bounds = array<i64: 1, 1, 64>}, {transform_indices = @transform_9, window_bounds = array<i64: 1, 32, 32>}, {transform_indices = @transform_10, window_bounds = array<i64: 1, 1, 32>}, {transform_indices = @transform_11, window_bounds = array<i64: 1, 1, 32>}, {transform_indices = @transform_12, window_bounds = array<i64: 1, 1, 32>}, {transform_indices = @transform_13, window_bounds = array<i64: 1, 32, 128>}, {transform_indices = @transform_14, window_bounds = array<i64: 1, 1, 128>}, {transform_indices = @transform_15, window_bounds = array<i64: 1, 128, 32>}, {transform_indices = @transform_16, window_bounds = array<i64: 1, 1, 32>}, {transform_indices = @transform_17, window_bounds = array<i64: 1, 16, 32>}]} {
    %c0 = arith.constant 0 : index
    %c0_0 = arith.constant 0 : index
    %c0_1 = arith.constant 0 : index
    %0 = vector.load %arg1[%c0, %c0_0, %c0_1] : memref<1x16x32xf32, #tpu.memory_space<vmem>>, vector<1x16x32xf32>
    %1 = vector.shape_cast %0 : vector<1x16x32xf32> to vector<16x32xf32>
    %c0_2 = arith.constant 0 : index
    %c0_3 = arith.constant 0 : index
    %c0_4 = arith.constant 0 : index
    %2 = vector.load %arg4[%c0_2, %c0_3, %c0_4] : memref<1x1x32xf32, #tpu.memory_space<vmem>>, vector<1x1x32xf32>
    %3 = vector.shape_cast %2 : vector<1x1x32xf32> to vector<1x32xf32>
    %c0_5 = arith.constant 0 : index
    %c0_6 = arith.constant 0 : index
    %c0_7 = arith.constant 0 : index
    %4 = vector.load %arg5[%c0_5, %c0_6, %c0_7] : memref<1x1x32xf32, #tpu.memory_space<vmem>>, vector<1x1x32xf32>
    %5 = vector.shape_cast %4 : vector<1x1x32xf32> to vector<1x32xf32>
    %cst = arith.constant dense<0.000000e+00> : vector<16xf32>
    %6 = vector.multi_reduction <add>, %1, %cst [1] : vector<16x32xf32> to vector<16xf32>
    %7 = vector.shape_cast %6 : vector<16xf32> to vector<16x1xf32>
    %cst_8 = arith.constant 3.200000e+01 : f32
    %8 = vector.broadcast %cst_8 : f32 to vector<16x1xf32>
    %9 = arith.divf %7, %8 : vector<16x1xf32>
    %10 = vector.broadcast %9 : vector<16x1xf32> to vector<16x32xf32>
    %11 = arith.subf %1, %10 : vector<16x32xf32>
    %12 = arith.mulf %11, %11 : vector<16x32xf32>
    %cst_9 = arith.constant dense<0.000000e+00> : vector<16xf32>
    %13 = vector.multi_reduction <add>, %12, %cst_9 [1] : vector<16x32xf32> to vector<16xf32>
    %14 = vector.shape_cast %13 : vector<16xf32> to vector<16x1xf32>
    %cst_10 = arith.constant 3.200000e+01 : f32
    %15 = vector.broadcast %cst_10 : f32 to vector<16x1xf32>
    %16 = arith.divf %14, %15 : vector<16x1xf32>
    %cst_11 = arith.constant 9.99999974E-6 : f32
    %17 = vector.broadcast %cst_11 : f32 to vector<16x1xf32>
    %18 = arith.addf %16, %17 : vector<16x1xf32>
    %19 = math.rsqrt %18 : vector<16x1xf32>
    %20 = vector.broadcast %19 : vector<16x1xf32> to vector<16x32xf32>
    %21 = arith.mulf %11, %20 : vector<16x32xf32>
    %22 = vector.broadcast %3 : vector<1x32xf32> to vector<16x32xf32>
    %23 = arith.mulf %21, %22 : vector<16x32xf32>
    %24 = vector.broadcast %5 : vector<1x32xf32> to vector<16x32xf32>
    %25 = arith.addf %23, %24 : vector<16x32xf32>
    %c0_12 = arith.constant 0 : index
    %c0_13 = arith.constant 0 : index
    %c0_14 = arith.constant 0 : index
    %26 = vector.load %arg2[%c0_12, %c0_13, %c0_14] : memref<1x16x32xf32, #tpu.memory_space<vmem>>, vector<1x16x32xf32>
    %27 = vector.shape_cast %26 : vector<1x16x32xf32> to vector<16x32xf32>
    %cst_15 = arith.constant dense<0.000000e+00> : vector<16xf32>
    %28 = vector.multi_reduction <add>, %27, %cst_15 [1] : vector<16x32xf32> to vector<16xf32>
    %29 = vector.shape_cast %28 : vector<16xf32> to vector<16x1xf32>
    %cst_16 = arith.constant 3.200000e+01 : f32
    %30 = vector.broadcast %cst_16 : f32 to vector<16x1xf32>
    %31 = arith.divf %29, %30 : vector<16x1xf32>
    %32 = vector.broadcast %31 : vector<16x1xf32> to vector<16x32xf32>
    %33 = arith.subf %27, %32 : vector<16x32xf32>
    %34 = arith.mulf %33, %33 : vector<16x32xf32>
    %cst_17 = arith.constant dense<0.000000e+00> : vector<16xf32>
    %35 = vector.multi_reduction <add>, %34, %cst_17 [1] : vector<16x32xf32> to vector<16xf32>
    %36 = vector.shape_cast %35 : vector<16xf32> to vector<16x1xf32>
    %cst_18 = arith.constant 3.200000e+01 : f32
    %37 = vector.broadcast %cst_18 : f32 to vector<16x1xf32>
    %38 = arith.divf %36, %37 : vector<16x1xf32>
    %cst_19 = arith.constant 9.99999974E-6 : f32
    %39 = vector.broadcast %cst_19 : f32 to vector<16x1xf32>
    %40 = arith.addf %38, %39 : vector<16x1xf32>
    %41 = math.rsqrt %40 : vector<16x1xf32>
    %42 = vector.broadcast %41 : vector<16x1xf32> to vector<16x32xf32>
    %43 = arith.mulf %33, %42 : vector<16x32xf32>
    %44 = vector.broadcast %3 : vector<1x32xf32> to vector<16x32xf32>
    %45 = arith.mulf %43, %44 : vector<16x32xf32>
    %46 = vector.broadcast %5 : vector<1x32xf32> to vector<16x32xf32>
    %47 = arith.addf %45, %46 : vector<16x32xf32>
    %c0_20 = arith.constant 0 : index
    %c0_21 = arith.constant 0 : index
    %c0_22 = arith.constant 0 : index
    %48 = vector.load %arg6[%c0_20, %c0_21, %c0_22] : memref<1x32x32xf32, #tpu.memory_space<vmem>>, vector<1x32x32xf32>
    %49 = vector.shape_cast %48 : vector<1x32x32xf32> to vector<32x32xf32>
    %cst_23 = arith.constant dense<0.000000e+00> : vector<16x32xf32>
    %50 = tpu.matmul %25, %49, %cst_23 {dimension_numbers = #tpu.dot_dimension_numbers<[1], [0], [0], [1], [0, 0, 1, 1], [], []>} : vector<16x32xf32>, vector<32x32xf32>, vector<16x32xf32> -> vector<16x32xf32>
    %c0_24 = arith.constant 0 : index
    %c0_25 = arith.constant 0 : index
    %c0_26 = arith.constant 0 : index
    %51 = vector.load %arg7[%c0_24, %c0_25, %c0_26] : memref<1x1x32xf32, #tpu.memory_space<vmem>>, vector<1x1x32xf32>
    %52 = vector.shape_cast %51 : vector<1x1x32xf32> to vector<1x32xf32>
    %53 = vector.broadcast %52 : vector<1x32xf32> to vector<16x32xf32>
    %54 = arith.addf %50, %53 : vector<16x32xf32>
    %cst_27 = arith.constant 0.353553385 : f32
    %55 = vector.broadcast %cst_27 : f32 to vector<16x32xf32>
    %56 = arith.mulf %54, %55 : vector<16x32xf32>
    %c0_28 = arith.constant 0 : index
    %c0_29 = arith.constant 0 : index
    %c0_30 = arith.constant 0 : index
    %57 = vector.load %arg8[%c0_28, %c0_29, %c0_30] : memref<1x32x64xf32, #tpu.memory_space<vmem>>, vector<1x32x64xf32>
    %58 = vector.shape_cast %57 : vector<1x32x64xf32> to vector<32x64xf32>
    %cst_31 = arith.constant dense<0.000000e+00> : vector<16x64xf32>
    %59 = tpu.matmul %47, %58, %cst_31 {dimension_numbers = #tpu.dot_dimension_numbers<[1], [0], [0], [1], [0, 0, 1, 1], [], []>} : vector<16x32xf32>, vector<32x64xf32>, vector<16x64xf32> -> vector<16x64xf32>
    %c0_32 = arith.constant 0 : index
    %c0_33 = arith.constant 0 : index
    %c0_34 = arith.constant 0 : index
    %60 = vector.load %arg9[%c0_32, %c0_33, %c0_34] : memref<1x1x64xf32, #tpu.memory_space<vmem>>, vector<1x1x64xf32>
    %61 = vector.shape_cast %60 : vector<1x1x64xf32> to vector<1x64xf32>
    %62 = vector.broadcast %61 : vector<1x64xf32> to vector<16x64xf32>
    %63 = arith.addf %59, %62 : vector<16x64xf32>
    %c0_35 = arith.constant 0 : index
    %c0_36 = arith.constant 0 : index
    %64 = vector.load %arg3[%c0_35, %c0_36] : memref<16x16xf32, #tpu.memory_space<vmem>>, vector<16x16xf32>
    %c0_37 = arith.constant 0 : index
    %c0_38 = arith.constant 0 : index
    %c0_39 = arith.constant 0 : index
    %65 = vector.load %arg10[%c0_37, %c0_38, %c0_39] : memref<1x32x32xf32, #tpu.memory_space<vmem>>, vector<1x32x32xf32>
    %66 = vector.shape_cast %65 : vector<1x32x32xf32> to vector<32x32xf32>
    %c0_40 = arith.constant 0 : index
    %c0_41 = arith.constant 0 : index
    %c0_42 = arith.constant 0 : index
    %67 = vector.load %arg11[%c0_40, %c0_41, %c0_42] : memref<1x1x32xf32, #tpu.memory_space<vmem>>, vector<1x1x32xf32>
    %68 = vector.shape_cast %67 : vector<1x1x32xf32> to vector<1x32xf32>
    %69 = vector.broadcast %68 : vector<1x32xf32> to vector<16x32xf32>
    %70 = arith.addf %1, %69 : vector<16x32xf32>
    %71 = vector.extract_strided_slice %56 {offsets = [0, 0], sizes = [16, 8], strides = [1, 1]} : vector<16x32xf32> to vector<16x8xf32>
    %72 = vector.extract_strided_slice %63 {offsets = [0, 0], sizes = [16, 8], strides = [1, 1]} : vector<16x64xf32> to vector<16x8xf32>
    %73 = vector.extract_strided_slice %63 {offsets = [0, 32], sizes = [16, 8], strides = [1, 1]} : vector<16x64xf32> to vector<16x8xf32>
    %cst_43 = arith.constant dense<0.000000e+00> : vector<16x16xf32>
    %74 = tpu.matmul %71, %72, %cst_43 {dimension_numbers = #tpu.dot_dimension_numbers<[1], [1], [0], [0], [0, 0, 1, 0], [], []>} : vector<16x8xf32>, vector<16x8xf32>, vector<16x16xf32> -> vector<16x16xf32>
    %75 = arith.addf %74, %64 : vector<16x16xf32>
    %cst_44 = arith.constant dense<0xFF800000> : vector<16xf32>
    %76 = vector.multi_reduction <maximumf>, %75, %cst_44 [1] : vector<16x16xf32> to vector<16xf32>
    %77 = vector.shape_cast %76 : vector<16xf32> to vector<16x1xf32>
    %78 = vector.broadcast %77 : vector<16x1xf32> to vector<16x16xf32>
    %79 = arith.subf %75, %78 : vector<16x16xf32>
    %80 = math.exp %79 : vector<16x16xf32>
    %cst_45 = arith.constant dense<0.000000e+00> : vector<16xf32>
    %81 = vector.multi_reduction <add>, %80, %cst_45 [1] : vector<16x16xf32> to vector<16xf32>
    %82 = vector.shape_cast %81 : vector<16xf32> to vector<16x1xf32>
    %83 = tpu.reciprocal %82 {approx = true} : vector<16x1xf32> -> vector<16x1xf32>
    %84 = vector.broadcast %83 : vector<16x1xf32> to vector<16x16xf32>
    %85 = arith.mulf %80, %84 : vector<16x16xf32>
    %cst_46 = arith.constant dense<0.000000e+00> : vector<16x8xf32>
    %86 = tpu.matmul %85, %73, %cst_46 {dimension_numbers = #tpu.dot_dimension_numbers<[1], [0], [0], [1], [0, 0, 1, 1], [], []>} : vector<16x16xf32>, vector<16x8xf32>, vector<16x8xf32> -> vector<16x8xf32>
    %87 = vector.extract_strided_slice %66 {offsets = [0, 0], sizes = [8, 32], strides = [1, 1]} : vector<32x32xf32> to vector<8x32xf32>
    %cst_47 = arith.constant dense<0.000000e+00> : vector<16x32xf32>
    %88 = tpu.matmul %86, %87, %cst_47 {dimension_numbers = #tpu.dot_dimension_numbers<[1], [0], [0], [1], [0, 0, 1, 1], [], []>} : vector<16x8xf32>, vector<8x32xf32>, vector<16x32xf32> -> vector<16x32xf32>
    %89 = arith.addf %70, %88 : vector<16x32xf32>
    %90 = vector.extract_strided_slice %56 {offsets = [0, 8], sizes = [16, 8], strides = [1, 1]} : vector<16x32xf32> to vector<16x8xf32>
    %91 = vector.extract_strided_slice %63 {offsets = [0, 8], sizes = [16, 8], strides = [1, 1]} : vector<16x64xf32> to vector<16x8xf32>
    %92 = vector.extract_strided_slice %63 {offsets = [0, 40], sizes = [16, 8], strides = [1, 1]} : vector<16x64xf32> to vector<16x8xf32>
    %cst_48 = arith.constant dense<0.000000e+00> : vector<16x16xf32>
    %93 = tpu.matmul %90, %91, %cst_48 {dimension_numbers = #tpu.dot_dimension_numbers<[1], [1], [0], [0], [0, 0, 1, 0], [], []>} : vector<16x8xf32>, vector<16x8xf32>, vector<16x16xf32> -> vector<16x16xf32>
    %94 = arith.addf %93, %64 : vector<16x16xf32>
    %cst_49 = arith.constant dense<0xFF800000> : vector<16xf32>
    %95 = vector.multi_reduction <maximumf>, %94, %cst_49 [1] : vector<16x16xf32> to vector<16xf32>
    %96 = vector.shape_cast %95 : vector<16xf32> to vector<16x1xf32>
    %97 = vector.broadcast %96 : vector<16x1xf32> to vector<16x16xf32>
    %98 = arith.subf %94, %97 : vector<16x16xf32>
    %99 = math.exp %98 : vector<16x16xf32>
    %cst_50 = arith.constant dense<0.000000e+00> : vector<16xf32>
    %100 = vector.multi_reduction <add>, %99, %cst_50 [1] : vector<16x16xf32> to vector<16xf32>
    %101 = vector.shape_cast %100 : vector<16xf32> to vector<16x1xf32>
    %102 = tpu.reciprocal %101 {approx = true} : vector<16x1xf32> -> vector<16x1xf32>
    %103 = vector.broadcast %102 : vector<16x1xf32> to vector<16x16xf32>
    %104 = arith.mulf %99, %103 : vector<16x16xf32>
    %cst_51 = arith.constant dense<0.000000e+00> : vector<16x8xf32>
    %105 = tpu.matmul %104, %92, %cst_51 {dimension_numbers = #tpu.dot_dimension_numbers<[1], [0], [0], [1], [0, 0, 1, 1], [], []>} : vector<16x16xf32>, vector<16x8xf32>, vector<16x8xf32> -> vector<16x8xf32>
    %106 = vector.extract_strided_slice %66 {offsets = [8, 0], sizes = [8, 32], strides = [1, 1]} : vector<32x32xf32> to vector<8x32xf32>
    %cst_52 = arith.constant dense<0.000000e+00> : vector<16x32xf32>
    %107 = tpu.matmul %105, %106, %cst_52 {dimension_numbers = #tpu.dot_dimension_numbers<[1], [0], [0], [1], [0, 0, 1, 1], [], []>} : vector<16x8xf32>, vector<8x32xf32>, vector<16x32xf32> -> vector<16x32xf32>
    %108 = arith.addf %89, %107 : vector<16x32xf32>
    %109 = vector.extract_strided_slice %56 {offsets = [0, 16], sizes = [16, 8], strides = [1, 1]} : vector<16x32xf32> to vector<16x8xf32>
    %110 = vector.extract_strided_slice %63 {offsets = [0, 16], sizes = [16, 8], strides = [1, 1]} : vector<16x64xf32> to vector<16x8xf32>
    %111 = vector.extract_strided_slice %63 {offsets = [0, 48], sizes = [16, 8], strides = [1, 1]} : vector<16x64xf32> to vector<16x8xf32>
    %cst_53 = arith.constant dense<0.000000e+00> : vector<16x16xf32>
    %112 = tpu.matmul %109, %110, %cst_53 {dimension_numbers = #tpu.dot_dimension_numbers<[1], [1], [0], [0], [0, 0, 1, 0], [], []>} : vector<16x8xf32>, vector<16x8xf32>, vector<16x16xf32> -> vector<16x16xf32>
    %113 = arith.addf %112, %64 : vector<16x16xf32>
    %cst_54 = arith.constant dense<0xFF800000> : vector<16xf32>
    %114 = vector.multi_reduction <maximumf>, %113, %cst_54 [1] : vector<16x16xf32> to vector<16xf32>
    %115 = vector.shape_cast %114 : vector<16xf32> to vector<16x1xf32>
    %116 = vector.broadcast %115 : vector<16x1xf32> to vector<16x16xf32>
    %117 = arith.subf %113, %116 : vector<16x16xf32>
    %118 = math.exp %117 : vector<16x16xf32>
    %cst_55 = arith.constant dense<0.000000e+00> : vector<16xf32>
    %119 = vector.multi_reduction <add>, %118, %cst_55 [1] : vector<16x16xf32> to vector<16xf32>
    %120 = vector.shape_cast %119 : vector<16xf32> to vector<16x1xf32>
    %121 = tpu.reciprocal %120 {approx = true} : vector<16x1xf32> -> vector<16x1xf32>
    %122 = vector.broadcast %121 : vector<16x1xf32> to vector<16x16xf32>
    %123 = arith.mulf %118, %122 : vector<16x16xf32>
    %cst_56 = arith.constant dense<0.000000e+00> : vector<16x8xf32>
    %124 = tpu.matmul %123, %111, %cst_56 {dimension_numbers = #tpu.dot_dimension_numbers<[1], [0], [0], [1], [0, 0, 1, 1], [], []>} : vector<16x16xf32>, vector<16x8xf32>, vector<16x8xf32> -> vector<16x8xf32>
    %125 = vector.extract_strided_slice %66 {offsets = [16, 0], sizes = [8, 32], strides = [1, 1]} : vector<32x32xf32> to vector<8x32xf32>
    %cst_57 = arith.constant dense<0.000000e+00> : vector<16x32xf32>
    %126 = tpu.matmul %124, %125, %cst_57 {dimension_numbers = #tpu.dot_dimension_numbers<[1], [0], [0], [1], [0, 0, 1, 1], [], []>} : vector<16x8xf32>, vector<8x32xf32>, vector<16x32xf32> -> vector<16x32xf32>
    %127 = arith.addf %108, %126 : vector<16x32xf32>
    %128 = vector.extract_strided_slice %56 {offsets = [0, 24], sizes = [16, 8], strides = [1, 1]} : vector<16x32xf32> to vector<16x8xf32>
    %129 = vector.extract_strided_slice %63 {offsets = [0, 24], sizes = [16, 8], strides = [1, 1]} : vector<16x64xf32> to vector<16x8xf32>
    %130 = vector.extract_strided_slice %63 {offsets = [0, 56], sizes = [16, 8], strides = [1, 1]} : vector<16x64xf32> to vector<16x8xf32>
    %cst_58 = arith.constant dense<0.000000e+00> : vector<16x16xf32>
    %131 = tpu.matmul %128, %129, %cst_58 {dimension_numbers = #tpu.dot_dimension_numbers<[1], [1], [0], [0], [0, 0, 1, 0], [], []>} : vector<16x8xf32>, vector<16x8xf32>, vector<16x16xf32> -> vector<16x16xf32>
    %132 = arith.addf %131, %64 : vector<16x16xf32>
    %cst_59 = arith.constant dense<0xFF800000> : vector<16xf32>
    %133 = vector.multi_reduction <maximumf>, %132, %cst_59 [1] : vector<16x16xf32> to vector<16xf32>
    %134 = vector.shape_cast %133 : vector<16xf32> to vector<16x1xf32>
    %135 = vector.broadcast %134 : vector<16x1xf32> to vector<16x16xf32>
    %136 = arith.subf %132, %135 : vector<16x16xf32>
    %137 = math.exp %136 : vector<16x16xf32>
    %cst_60 = arith.constant dense<0.000000e+00> : vector<16xf32>
    %138 = vector.multi_reduction <add>, %137, %cst_60 [1] : vector<16x16xf32> to vector<16xf32>
    %139 = vector.shape_cast %138 : vector<16xf32> to vector<16x1xf32>
    %140 = tpu.reciprocal %139 {approx = true} : vector<16x1xf32> -> vector<16x1xf32>
    %141 = vector.broadcast %140 : vector<16x1xf32> to vector<16x16xf32>
    %142 = arith.mulf %137, %141 : vector<16x16xf32>
    %cst_61 = arith.constant dense<0.000000e+00> : vector<16x8xf32>
    %143 = tpu.matmul %142, %130, %cst_61 {dimension_numbers = #tpu.dot_dimension_numbers<[1], [0], [0], [1], [0, 0, 1, 1], [], []>} : vector<16x16xf32>, vector<16x8xf32>, vector<16x8xf32> -> vector<16x8xf32>
    %144 = vector.extract_strided_slice %66 {offsets = [24, 0], sizes = [8, 32], strides = [1, 1]} : vector<32x32xf32> to vector<8x32xf32>
    %cst_62 = arith.constant dense<0.000000e+00> : vector<16x32xf32>
    %145 = tpu.matmul %143, %144, %cst_62 {dimension_numbers = #tpu.dot_dimension_numbers<[1], [0], [0], [1], [0, 0, 1, 1], [], []>} : vector<16x8xf32>, vector<8x32xf32>, vector<16x32xf32> -> vector<16x32xf32>
    %146 = arith.addf %127, %145 : vector<16x32xf32>
    %c0_63 = arith.constant 0 : index
    %c0_64 = arith.constant 0 : index
    %c0_65 = arith.constant 0 : index
    %147 = vector.load %arg12[%c0_63, %c0_64, %c0_65] : memref<1x1x32xf32, #tpu.memory_space<vmem>>, vector<1x1x32xf32>
    %148 = vector.shape_cast %147 : vector<1x1x32xf32> to vector<1x32xf32>
    %c0_66 = arith.constant 0 : index
    %c0_67 = arith.constant 0 : index
    %c0_68 = arith.constant 0 : index
    %149 = vector.load %arg13[%c0_66, %c0_67, %c0_68] : memref<1x1x32xf32, #tpu.memory_space<vmem>>, vector<1x1x32xf32>
    %150 = vector.shape_cast %149 : vector<1x1x32xf32> to vector<1x32xf32>
    %cst_69 = arith.constant dense<0.000000e+00> : vector<16xf32>
    %151 = vector.multi_reduction <add>, %146, %cst_69 [1] : vector<16x32xf32> to vector<16xf32>
    %152 = vector.shape_cast %151 : vector<16xf32> to vector<16x1xf32>
    %cst_70 = arith.constant 3.200000e+01 : f32
    %153 = vector.broadcast %cst_70 : f32 to vector<16x1xf32>
    %154 = arith.divf %152, %153 : vector<16x1xf32>
    %155 = vector.broadcast %154 : vector<16x1xf32> to vector<16x32xf32>
    %156 = arith.subf %146, %155 : vector<16x32xf32>
    %157 = arith.mulf %156, %156 : vector<16x32xf32>
    %cst_71 = arith.constant dense<0.000000e+00> : vector<16xf32>
    %158 = vector.multi_reduction <add>, %157, %cst_71 [1] : vector<16x32xf32> to vector<16xf32>
    %159 = vector.shape_cast %158 : vector<16xf32> to vector<16x1xf32>
    %cst_72 = arith.constant 3.200000e+01 : f32
    %160 = vector.broadcast %cst_72 : f32 to vector<16x1xf32>
    %161 = arith.divf %159, %160 : vector<16x1xf32>
    %cst_73 = arith.constant 9.99999974E-6 : f32
    %162 = vector.broadcast %cst_73 : f32 to vector<16x1xf32>
    %163 = arith.addf %161, %162 : vector<16x1xf32>
    %164 = math.rsqrt %163 : vector<16x1xf32>
    %165 = vector.broadcast %164 : vector<16x1xf32> to vector<16x32xf32>
    %166 = arith.mulf %156, %165 : vector<16x32xf32>
    %167 = vector.broadcast %148 : vector<1x32xf32> to vector<16x32xf32>
    %168 = arith.mulf %166, %167 : vector<16x32xf32>
    %169 = vector.broadcast %150 : vector<1x32xf32> to vector<16x32xf32>
    %170 = arith.addf %168, %169 : vector<16x32xf32>
    %c0_74 = arith.constant 0 : index
    %c0_75 = arith.constant 0 : index
    %c0_76 = arith.constant 0 : index
    %171 = vector.load %arg14[%c0_74, %c0_75, %c0_76] : memref<1x32x128xf32, #tpu.memory_space<vmem>>, vector<1x32x128xf32>
    %172 = vector.shape_cast %171 : vector<1x32x128xf32> to vector<32x128xf32>
    %cst_77 = arith.constant dense<0.000000e+00> : vector<16x128xf32>
    %173 = tpu.matmul %170, %172, %cst_77 {dimension_numbers = #tpu.dot_dimension_numbers<[1], [0], [0], [1], [0, 0, 1, 1], [], []>} : vector<16x32xf32>, vector<32x128xf32>, vector<16x128xf32> -> vector<16x128xf32>
    %c0_78 = arith.constant 0 : index
    %c0_79 = arith.constant 0 : index
    %c0_80 = arith.constant 0 : index
    %174 = vector.load %arg15[%c0_78, %c0_79, %c0_80] : memref<1x1x128xf32, #tpu.memory_space<vmem>>, vector<1x1x128xf32>
    %175 = vector.shape_cast %174 : vector<1x1x128xf32> to vector<1x128xf32>
    %176 = vector.broadcast %175 : vector<1x128xf32> to vector<16x128xf32>
    %177 = arith.addf %173, %176 : vector<16x128xf32>
    %cst_81 = arith.constant 0.000000e+00 : f32
    %178 = vector.broadcast %cst_81 : f32 to vector<16x128xf32>
    %179 = arith.maximumf %177, %178 : vector<16x128xf32>
    %c0_82 = arith.constant 0 : index
    %c0_83 = arith.constant 0 : index
    %c0_84 = arith.constant 0 : index
    %180 = vector.load %arg16[%c0_82, %c0_83, %c0_84] : memref<1x128x32xf32, #tpu.memory_space<vmem>>, vector<1x128x32xf32>
    %181 = vector.shape_cast %180 : vector<1x128x32xf32> to vector<128x32xf32>
    %cst_85 = arith.constant dense<0.000000e+00> : vector<16x32xf32>
    %182 = tpu.matmul %179, %181, %cst_85 {dimension_numbers = #tpu.dot_dimension_numbers<[1], [0], [0], [1], [0, 0, 1, 1], [], []>} : vector<16x128xf32>, vector<128x32xf32>, vector<16x32xf32> -> vector<16x32xf32>
    %183 = arith.addf %146, %182 : vector<16x32xf32>
    %c0_86 = arith.constant 0 : index
    %c0_87 = arith.constant 0 : index
    %c0_88 = arith.constant 0 : index
    %184 = vector.load %arg17[%c0_86, %c0_87, %c0_88] : memref<1x1x32xf32, #tpu.memory_space<vmem>>, vector<1x1x32xf32>
    %185 = vector.shape_cast %184 : vector<1x1x32xf32> to vector<1x32xf32>
    %186 = vector.broadcast %185 : vector<1x32xf32> to vector<16x32xf32>
    %187 = arith.addf %183, %186 : vector<16x32xf32>
    %c0_89 = arith.constant 0 : index
    %c0_90 = arith.constant 0 : index
    %c0_91 = arith.constant 0 : index
    %188 = vector.load %arg18[%c0_89, %c0_90, %c0_91] : memref<1x16x32xf32, #tpu.memory_space<vmem>>, vector<1x16x32xf32>
    %189 = vector.shape_cast %188 : vector<1x16x32xf32> to vector<16x32xf32>
    %190 = vector.shape_cast %187 : vector<16x32xf32> to vector<1x16x32xf32>
    tpu.vector_store %arg18[%c0_89, %c0_90, %c0_91], %190 {strides = array<i32>} : memref<1x16x32xf32, #tpu.memory_space<vmem>>, vector<1x16x32xf32>,
    return
  }
  func.func @transform_0(%arg0: i32) -> (i32, i32, i32) {
    %c0_i32 = arith.constant 0 : i32
    %c0_i32_0 = arith.constant 0 : i32
    %c0_i32_1 = arith.constant 0 : i32
    return %arg0, %c0_i32, %c0_i32_0 : i32, i32, i32
  }
  func.func @transform_1(%arg0: i32) -> (i32, i32, i32) {
    %c0_i32 = arith.constant 0 : i32
    %c0_i32_0 = arith.constant 0 : i32
    %c0_i32_1 = arith.constant 0 : i32
    return %arg0, %c0_i32, %c0_i32_0 : i32, i32, i32
  }
  func.func @transform_2(%arg0: i32) -> (i32, i32) {
    %c0_i32 = arith.constant 0 : i32
    %c0_i32_0 = arith.constant 0 : i32
    %c0_i32_1 = arith.constant 0 : i32
    return %c0_i32, %c0_i32_0 : i32, i32
  }
  func.func @transform_3(%arg0: i32) -> (i32, i32, i32) {
    %c0_i32 = arith.constant 0 : i32
    %c0_i32_0 = arith.constant 0 : i32
    %c0_i32_1 = arith.constant 0 : i32
    return %arg0, %c0_i32, %c0_i32_0 : i32, i32, i32
  }
  func.func @transform_4(%arg0: i32) -> (i32, i32, i32) {
    %c0_i32 = arith.constant 0 : i32
    %c0_i32_0 = arith.constant 0 : i32
    %c0_i32_1 = arith.constant 0 : i32
    return %arg0, %c0_i32, %c0_i32_0 : i32, i32, i32
  }
  func.func @transform_5(%arg0: i32) -> (i32, i32, i32) {
    %c0_i32 = arith.constant 0 : i32
    %c0_i32_0 = arith.constant 0 : i32
    %c0_i32_1 = arith.constant 0 : i32
    return %arg0, %c0_i32, %c0_i32_0 : i32, i32, i32
  }
  func.func @transform_6(%arg0: i32) -> (i32, i32, i32) {
    %c0_i32 = arith.constant 0 : i32
    %c0_i32_0 = arith.constant 0 : i32
    %c0_i32_1 = arith.constant 0 : i32
    return %arg0, %c0_i32, %c0_i32_0 : i32, i32, i32
  }
  func.func @transform_7(%arg0: i32) -> (i32, i32, i32) {
    %c0_i32 = arith.constant 0 : i32
    %c0_i32_0 = arith.constant 0 : i32
    %c0_i32_1 = arith.constant 0 : i32
    return %arg0, %c0_i32, %c0_i32_0 : i32, i32, i32
  }
  func.func @transform_8(%arg0: i32) -> (i32, i32, i32) {
    %c0_i32 = arith.constant 0 : i32
    %c0_i32_0 = arith.constant 0 : i32
    %c0_i32_1 = arith.constant 0 : i32
    return %arg0, %c0_i32, %c0_i32_0 : i32, i32, i32
  }
  func.func @transform_9(%arg0: i32) -> (i32, i32, i32) {
    %c0_i32 = arith.constant 0 : i32
    %c0_i32_0 = arith.constant 0 : i32
    %c0_i32_1 = arith.constant 0 : i32
    return %arg0, %c0_i32, %c0_i32_0 : i32, i32, i32
  }
  func.func @transform_10(%arg0: i32) -> (i32, i32, i32) {
    %c0_i32 = arith.constant 0 : i32
    %c0_i32_0 = arith.constant 0 : i32
    %c0_i32_1 = arith.constant 0 : i32
    return %arg0, %c0_i32, %c0_i32_0 : i32, i32, i32
  }
  func.func @transform_11(%arg0: i32) -> (i32, i32, i32) {
    %c0_i32 = arith.constant 0 : i32
    %c0_i32_0 = arith.constant 0 : i32
    %c0_i32_1 = arith.constant 0 : i32
    return %arg0, %c0_i32, %c0_i32_0 : i32, i32, i32
  }
  func.func @transform_12(%arg0: i32) -> (i32, i32, i32) {
    %c0_i32 = arith.constant 0 : i32
    %c0_i32_0 = arith.constant 0 : i32
    %c0_i32_1 = arith.constant 0 : i32
    return %arg0, %c0_i32, %c0_i32_0 : i32, i32, i32
  }
  func.func @transform_13(%arg0: i32) -> (i32, i32, i32) {
    %c0_i32 = arith.constant 0 : i32
    %c0_i32_0 = arith.constant 0 : i32
    %c0_i32_1 = arith.constant 0 : i32
    return %arg0, %c0_i32, %c0_i32_0 : i32, i32, i32
  }
  func.func @transform_14(%arg0: i32) -> (i32, i32, i32) {
    %c0_i32 = arith.constant 0 : i32
    %c0_i32_0 = arith.constant 0 : i32
    %c0_i32_1 = arith.constant 0 : i32
    return %arg0, %c0_i32, %c0_i32_0 : i32, i32, i32
  }
  func.func @transform_15(%arg0: i32) -> (i32, i32, i32) {
    %c0_i32 = arith.constant 0 : i32
    %c0_i32_0 = arith.constant 0 : i32
    %c0_i32_1 = arith.constant 0 : i32
    return %arg0, %c0_i32, %c0_i32_0 : i32, i32, i32
  }
  func.func @transform_16(%arg0: i32) -> (i32, i32, i32) {
    %c0_i32 = arith.constant 0 : i32
    %c0_i32_0 = arith.constant 0 : i32
    %c0_i32_1 = arith.constant 0 : i32
    return %arg0, %c0_i32, %c0_i32_0 : i32, i32, i32
  }
  func.func @transform_17(%arg0: i32) -> (i32, i32, i32) {
    %c0_i32 = arith.constant 0 : i32
    %c0_i32_0 = arith.constant 0 : i32
    %c0_i32_1 = arith.constant 0 : i32
    return %arg0, %c0_i32, %c0_i32_0 : i32, i32, i32
  }
}

module attributes {stable_mosaic.version = 11 : i64} {
  func.func @_layernorm_kernel(%arg0: i32, %arg1: memref<96x32xf32, #tpu.memory_space<vmem>>, %arg2: memref<1x32xf32, #tpu.memory_space<vmem>>, %arg3: memref<1x32xf32, #tpu.memory_space<vmem>>, %arg4: memref<96x32xf32, #tpu.memory_space<vmem>>) attributes {dimension_semantics = [#tpu.dimension_semantics<arbitrary>], iteration_bounds = array<i64: 1>, scalar_prefetch = 0 : i64, scratch_operands = 0 : i64, tpu.core_type = #tpu.core_type<tc>, window_params = [{pipeline_mode = #tpu.pipeline_mode<synchronous>, transform_indices = @transform_0, window_bounds = array<i64: 96, 32>}, {pipeline_mode = #tpu.pipeline_mode<synchronous>, transform_indices = @transform_1, window_bounds = array<i64: 1, 32>}, {pipeline_mode = #tpu.pipeline_mode<synchronous>, transform_indices = @transform_2, window_bounds = array<i64: 1, 32>}, {pipeline_mode = #tpu.pipeline_mode<synchronous>, transform_indices = @transform_3, window_bounds = array<i64: 96, 32>}]} {
    %c0 = arith.constant 0 : index
    %c0_0 = arith.constant 0 : index
    %0 = vector.load %arg1[%c0, %c0_0] : memref<96x32xf32, #tpu.memory_space<vmem>>, vector<96x32xf32>
    %c0_1 = arith.constant 0 : index
    %c0_2 = arith.constant 0 : index
    %1 = vector.load %arg2[%c0_1, %c0_2] : memref<1x32xf32, #tpu.memory_space<vmem>>, vector<1x32xf32>
    %c0_3 = arith.constant 0 : index
    %c0_4 = arith.constant 0 : index
    %2 = vector.load %arg3[%c0_3, %c0_4] : memref<1x32xf32, #tpu.memory_space<vmem>>, vector<1x32xf32>
    %cst = arith.constant dense<0.000000e+00> : vector<96xf32>
    %3 = vector.multi_reduction <add>, %0, %cst [1] : vector<96x32xf32> to vector<96xf32>
    %4 = vector.shape_cast %3 : vector<96xf32> to vector<96x1xf32>
    %cst_5 = arith.constant 3.200000e+01 : f32
    %5 = vector.broadcast %cst_5 : f32 to vector<96x1xf32>
    %6 = arith.divf %4, %5 : vector<96x1xf32>
    %7 = vector.broadcast %6 : vector<96x1xf32> to vector<96x32xf32>
    %8 = arith.subf %0, %7 : vector<96x32xf32>
    %9 = arith.mulf %8, %8 : vector<96x32xf32>
    %cst_6 = arith.constant dense<0.000000e+00> : vector<96xf32>
    %10 = vector.multi_reduction <add>, %9, %cst_6 [1] : vector<96x32xf32> to vector<96xf32>
    %11 = vector.shape_cast %10 : vector<96xf32> to vector<96x1xf32>
    %cst_7 = arith.constant 3.200000e+01 : f32
    %12 = vector.broadcast %cst_7 : f32 to vector<96x1xf32>
    %13 = arith.divf %11, %12 : vector<96x1xf32>
    %cst_8 = arith.constant 9.99999974E-6 : f32
    %14 = vector.broadcast %cst_8 : f32 to vector<96x1xf32>
    %15 = arith.addf %13, %14 : vector<96x1xf32>
    %16 = math.rsqrt %15 : vector<96x1xf32>
    %17 = vector.broadcast %16 : vector<96x1xf32> to vector<96x32xf32>
    %18 = arith.mulf %8, %17 : vector<96x32xf32>
    %19 = vector.broadcast %1 : vector<1x32xf32> to vector<96x32xf32>
    %20 = arith.mulf %18, %19 : vector<96x32xf32>
    %21 = vector.broadcast %2 : vector<1x32xf32> to vector<96x32xf32>
    %22 = arith.addf %20, %21 : vector<96x32xf32>
    %c0_9 = arith.constant 0 : index
    %c0_10 = arith.constant 0 : index
    %23 = vector.load %arg4[%c0_9, %c0_10] : memref<96x32xf32, #tpu.memory_space<vmem>>, vector<96x32xf32>
    tpu.vector_store %arg4[%c0_9, %c0_10], %22 {strides = array<i32>} : memref<96x32xf32, #tpu.memory_space<vmem>>, vector<96x32xf32>,
    return
  }
  func.func @transform_0(%arg0: i32) -> (i32, i32) {
    %c0_i32 = arith.constant 0 : i32
    %c0_i32_0 = arith.constant 0 : i32
    %c0_i32_1 = arith.constant 0 : i32
    return %c0_i32, %c0_i32_0 : i32, i32
  }
  func.func @transform_1(%arg0: i32) -> (i32, i32) {
    %c0_i32 = arith.constant 0 : i32
    %c0_i32_0 = arith.constant 0 : i32
    %c0_i32_1 = arith.constant 0 : i32
    return %c0_i32, %c0_i32_0 : i32, i32
  }
  func.func @transform_2(%arg0: i32) -> (i32, i32) {
    %c0_i32 = arith.constant 0 : i32
    %c0_i32_0 = arith.constant 0 : i32
    %c0_i32_1 = arith.constant 0 : i32
    return %c0_i32, %c0_i32_0 : i32, i32
  }
  func.func @transform_3(%arg0: i32) -> (i32, i32) {
    %c0_i32 = arith.constant 0 : i32
    %c0_i32_0 = arith.constant 0 : i32
    %c0_i32_1 = arith.constant 0 : i32
    return %c0_i32, %c0_i32_0 : i32, i32
  }
}

module attributes {stable_mosaic.version = 11 : i64} {
  func.func @_encoder_layer_kernel(%arg0: i32, %arg1: memref<1x16x64xf32, #tpu.memory_space<vmem>>, %arg2: memref<16x16xf32, #tpu.memory_space<vmem>>, %arg3: memref<1x1x64xf32, #tpu.memory_space<vmem>>, %arg4: memref<1x1x64xf32, #tpu.memory_space<vmem>>, %arg5: memref<1x64x64xf32, #tpu.memory_space<vmem>>, %arg6: memref<1x1x64xf32, #tpu.memory_space<vmem>>, %arg7: memref<1x64x128xf32, #tpu.memory_space<vmem>>, %arg8: memref<1x1x128xf32, #tpu.memory_space<vmem>>, %arg9: memref<1x64x64xf32, #tpu.memory_space<vmem>>, %arg10: memref<1x1x64xf32, #tpu.memory_space<vmem>>, %arg11: memref<1x1x64xf32, #tpu.memory_space<vmem>>, %arg12: memref<1x1x64xf32, #tpu.memory_space<vmem>>, %arg13: memref<1x64x256xf32, #tpu.memory_space<vmem>>, %arg14: memref<1x1x256xf32, #tpu.memory_space<vmem>>, %arg15: memref<1x256x64xf32, #tpu.memory_space<vmem>>, %arg16: memref<1x1x64xf32, #tpu.memory_space<vmem>>, %arg17: memref<1x16x64xf32, #tpu.memory_space<vmem>>) attributes {dimension_semantics = [#tpu.dimension_semantics<parallel>], iteration_bounds = array<i64: 3>, scalar_prefetch = 0 : i64, scratch_operands = 0 : i64, tpu.core_type = #tpu.core_type<tc>, window_params = [{transform_indices = @transform_0, window_bounds = array<i64: 1, 16, 64>}, {pipeline_mode = #tpu.pipeline_mode<synchronous>, transform_indices = @transform_1, window_bounds = array<i64: 16, 16>}, {transform_indices = @transform_2, window_bounds = array<i64: 1, 1, 64>}, {transform_indices = @transform_3, window_bounds = array<i64: 1, 1, 64>}, {transform_indices = @transform_4, window_bounds = array<i64: 1, 64, 64>}, {transform_indices = @transform_5, window_bounds = array<i64: 1, 1, 64>}, {transform_indices = @transform_6, window_bounds = array<i64: 1, 64, 128>}, {transform_indices = @transform_7, window_bounds = array<i64: 1, 1, 128>}, {transform_indices = @transform_8, window_bounds = array<i64: 1, 64, 64>}, {transform_indices = @transform_9, window_bounds = array<i64: 1, 1, 64>}, {transform_indices = @transform_10, window_bounds = array<i64: 1, 1, 64>}, {transform_indices = @transform_11, window_bounds = array<i64: 1, 1, 64>}, {transform_indices = @transform_12, window_bounds = array<i64: 1, 64, 256>}, {transform_indices = @transform_13, window_bounds = array<i64: 1, 1, 256>}, {transform_indices = @transform_14, window_bounds = array<i64: 1, 256, 64>}, {transform_indices = @transform_15, window_bounds = array<i64: 1, 1, 64>}, {transform_indices = @transform_16, window_bounds = array<i64: 1, 16, 64>}]} {
    %c0 = arith.constant 0 : index
    %c0_0 = arith.constant 0 : index
    %c0_1 = arith.constant 0 : index
    %0 = vector.load %arg1[%c0, %c0_0, %c0_1] : memref<1x16x64xf32, #tpu.memory_space<vmem>>, vector<1x16x64xf32>
    %1 = vector.shape_cast %0 : vector<1x16x64xf32> to vector<16x64xf32>
    %c0_2 = arith.constant 0 : index
    %c0_3 = arith.constant 0 : index
    %c0_4 = arith.constant 0 : index
    %2 = vector.load %arg3[%c0_2, %c0_3, %c0_4] : memref<1x1x64xf32, #tpu.memory_space<vmem>>, vector<1x1x64xf32>
    %3 = vector.shape_cast %2 : vector<1x1x64xf32> to vector<1x64xf32>
    %c0_5 = arith.constant 0 : index
    %c0_6 = arith.constant 0 : index
    %c0_7 = arith.constant 0 : index
    %4 = vector.load %arg4[%c0_5, %c0_6, %c0_7] : memref<1x1x64xf32, #tpu.memory_space<vmem>>, vector<1x1x64xf32>
    %5 = vector.shape_cast %4 : vector<1x1x64xf32> to vector<1x64xf32>
    %cst = arith.constant dense<0.000000e+00> : vector<16xf32>
    %6 = vector.multi_reduction <add>, %1, %cst [1] : vector<16x64xf32> to vector<16xf32>
    %7 = vector.shape_cast %6 : vector<16xf32> to vector<16x1xf32>
    %cst_8 = arith.constant 6.400000e+01 : f32
    %8 = vector.broadcast %cst_8 : f32 to vector<16x1xf32>
    %9 = arith.divf %7, %8 : vector<16x1xf32>
    %10 = vector.broadcast %9 : vector<16x1xf32> to vector<16x64xf32>
    %11 = arith.subf %1, %10 : vector<16x64xf32>
    %12 = arith.mulf %11, %11 : vector<16x64xf32>
    %cst_9 = arith.constant dense<0.000000e+00> : vector<16xf32>
    %13 = vector.multi_reduction <add>, %12, %cst_9 [1] : vector<16x64xf32> to vector<16xf32>
    %14 = vector.shape_cast %13 : vector<16xf32> to vector<16x1xf32>
    %cst_10 = arith.constant 6.400000e+01 : f32
    %15 = vector.broadcast %cst_10 : f32 to vector<16x1xf32>
    %16 = arith.divf %14, %15 : vector<16x1xf32>
    %cst_11 = arith.constant 9.99999974E-6 : f32
    %17 = vector.broadcast %cst_11 : f32 to vector<16x1xf32>
    %18 = arith.addf %16, %17 : vector<16x1xf32>
    %19 = math.rsqrt %18 : vector<16x1xf32>
    %20 = vector.broadcast %19 : vector<16x1xf32> to vector<16x64xf32>
    %21 = arith.mulf %11, %20 : vector<16x64xf32>
    %22 = vector.broadcast %3 : vector<1x64xf32> to vector<16x64xf32>
    %23 = arith.mulf %21, %22 : vector<16x64xf32>
    %24 = vector.broadcast %5 : vector<1x64xf32> to vector<16x64xf32>
    %25 = arith.addf %23, %24 : vector<16x64xf32>
    %c0_12 = arith.constant 0 : index
    %c0_13 = arith.constant 0 : index
    %c0_14 = arith.constant 0 : index
    %26 = vector.load %arg5[%c0_12, %c0_13, %c0_14] : memref<1x64x64xf32, #tpu.memory_space<vmem>>, vector<1x64x64xf32>
    %27 = vector.shape_cast %26 : vector<1x64x64xf32> to vector<64x64xf32>
    %cst_15 = arith.constant dense<0.000000e+00> : vector<16x64xf32>
    %28 = tpu.matmul %25, %27, %cst_15 {dimension_numbers = #tpu.dot_dimension_numbers<[1], [0], [0], [1], [0, 0, 1, 1], [], []>} : vector<16x64xf32>, vector<64x64xf32>, vector<16x64xf32> -> vector<16x64xf32>
    %c0_16 = arith.constant 0 : index
    %c0_17 = arith.constant 0 : index
    %c0_18 = arith.constant 0 : index
    %29 = vector.load %arg6[%c0_16, %c0_17, %c0_18] : memref<1x1x64xf32, #tpu.memory_space<vmem>>, vector<1x1x64xf32>
    %30 = vector.shape_cast %29 : vector<1x1x64xf32> to vector<1x64xf32>
    %31 = vector.broadcast %30 : vector<1x64xf32> to vector<16x64xf32>
    %32 = arith.addf %28, %31 : vector<16x64xf32>
    %cst_19 = arith.constant 2.500000e-01 : f32
    %33 = vector.broadcast %cst_19 : f32 to vector<16x64xf32>
    %34 = arith.mulf %32, %33 : vector<16x64xf32>
    %c0_20 = arith.constant 0 : index
    %c0_21 = arith.constant 0 : index
    %c0_22 = arith.constant 0 : index
    %35 = vector.load %arg7[%c0_20, %c0_21, %c0_22] : memref<1x64x128xf32, #tpu.memory_space<vmem>>, vector<1x64x128xf32>
    %36 = vector.shape_cast %35 : vector<1x64x128xf32> to vector<64x128xf32>
    %cst_23 = arith.constant dense<0.000000e+00> : vector<16x128xf32>
    %37 = tpu.matmul %25, %36, %cst_23 {dimension_numbers = #tpu.dot_dimension_numbers<[1], [0], [0], [1], [0, 0, 1, 1], [], []>} : vector<16x64xf32>, vector<64x128xf32>, vector<16x128xf32> -> vector<16x128xf32>
    %c0_24 = arith.constant 0 : index
    %c0_25 = arith.constant 0 : index
    %c0_26 = arith.constant 0 : index
    %38 = vector.load %arg8[%c0_24, %c0_25, %c0_26] : memref<1x1x128xf32, #tpu.memory_space<vmem>>, vector<1x1x128xf32>
    %39 = vector.shape_cast %38 : vector<1x1x128xf32> to vector<1x128xf32>
    %40 = vector.broadcast %39 : vector<1x128xf32> to vector<16x128xf32>
    %41 = arith.addf %37, %40 : vector<16x128xf32>
    %c0_27 = arith.constant 0 : index
    %c0_28 = arith.constant 0 : index
    %42 = vector.load %arg2[%c0_27, %c0_28] : memref<16x16xf32, #tpu.memory_space<vmem>>, vector<16x16xf32>
    %c0_29 = arith.constant 0 : index
    %c0_30 = arith.constant 0 : index
    %c0_31 = arith.constant 0 : index
    %43 = vector.load %arg9[%c0_29, %c0_30, %c0_31] : memref<1x64x64xf32, #tpu.memory_space<vmem>>, vector<1x64x64xf32>
    %44 = vector.shape_cast %43 : vector<1x64x64xf32> to vector<64x64xf32>
    %c0_32 = arith.constant 0 : index
    %c0_33 = arith.constant 0 : index
    %c0_34 = arith.constant 0 : index
    %45 = vector.load %arg10[%c0_32, %c0_33, %c0_34] : memref<1x1x64xf32, #tpu.memory_space<vmem>>, vector<1x1x64xf32>
    %46 = vector.shape_cast %45 : vector<1x1x64xf32> to vector<1x64xf32>
    %47 = vector.broadcast %46 : vector<1x64xf32> to vector<16x64xf32>
    %48 = arith.addf %1, %47 : vector<16x64xf32>
    %49 = vector.extract_strided_slice %34 {offsets = [0, 0], sizes = [16, 16], strides = [1, 1]} : vector<16x64xf32> to vector<16x16xf32>
    %50 = vector.extract_strided_slice %41 {offsets = [0, 0], sizes = [16, 16], strides = [1, 1]} : vector<16x128xf32> to vector<16x16xf32>
    %51 = vector.extract_strided_slice %41 {offsets = [0, 64], sizes = [16, 16], strides = [1, 1]} : vector<16x128xf32> to vector<16x16xf32>
    %cst_35 = arith.constant dense<0.000000e+00> : vector<16x16xf32>
    %52 = tpu.matmul %49, %50, %cst_35 {dimension_numbers = #tpu.dot_dimension_numbers<[1], [1], [0], [0], [0, 0, 1, 0], [], []>} : vector<16x16xf32>, vector<16x16xf32>, vector<16x16xf32> -> vector<16x16xf32>
    %53 = arith.addf %52, %42 : vector<16x16xf32>
    %cst_36 = arith.constant dense<0xFF800000> : vector<16xf32>
    %54 = vector.multi_reduction <maximumf>, %53, %cst_36 [1] : vector<16x16xf32> to vector<16xf32>
    %55 = vector.shape_cast %54 : vector<16xf32> to vector<16x1xf32>
    %56 = vector.broadcast %55 : vector<16x1xf32> to vector<16x16xf32>
    %57 = arith.subf %53, %56 : vector<16x16xf32>
    %58 = math.exp %57 : vector<16x16xf32>
    %cst_37 = arith.constant dense<0.000000e+00> : vector<16xf32>
    %59 = vector.multi_reduction <add>, %58, %cst_37 [1] : vector<16x16xf32> to vector<16xf32>
    %60 = vector.shape_cast %59 : vector<16xf32> to vector<16x1xf32>
    %61 = tpu.reciprocal %60 {approx = true} : vector<16x1xf32> -> vector<16x1xf32>
    %62 = vector.broadcast %61 : vector<16x1xf32> to vector<16x16xf32>
    %63 = arith.mulf %58, %62 : vector<16x16xf32>
    %cst_38 = arith.constant dense<0.000000e+00> : vector<16x16xf32>
    %64 = tpu.matmul %63, %51, %cst_38 {dimension_numbers = #tpu.dot_dimension_numbers<[1], [0], [0], [1], [0, 0, 1, 1], [], []>} : vector<16x16xf32>, vector<16x16xf32>, vector<16x16xf32> -> vector<16x16xf32>
    %65 = vector.extract_strided_slice %44 {offsets = [0, 0], sizes = [16, 64], strides = [1, 1]} : vector<64x64xf32> to vector<16x64xf32>
    %cst_39 = arith.constant dense<0.000000e+00> : vector<16x64xf32>
    %66 = tpu.matmul %64, %65, %cst_39 {dimension_numbers = #tpu.dot_dimension_numbers<[1], [0], [0], [1], [0, 0, 1, 1], [], []>} : vector<16x16xf32>, vector<16x64xf32>, vector<16x64xf32> -> vector<16x64xf32>
    %67 = arith.addf %48, %66 : vector<16x64xf32>
    %68 = vector.extract_strided_slice %34 {offsets = [0, 16], sizes = [16, 16], strides = [1, 1]} : vector<16x64xf32> to vector<16x16xf32>
    %69 = vector.extract_strided_slice %41 {offsets = [0, 16], sizes = [16, 16], strides = [1, 1]} : vector<16x128xf32> to vector<16x16xf32>
    %70 = vector.extract_strided_slice %41 {offsets = [0, 80], sizes = [16, 16], strides = [1, 1]} : vector<16x128xf32> to vector<16x16xf32>
    %cst_40 = arith.constant dense<0.000000e+00> : vector<16x16xf32>
    %71 = tpu.matmul %68, %69, %cst_40 {dimension_numbers = #tpu.dot_dimension_numbers<[1], [1], [0], [0], [0, 0, 1, 0], [], []>} : vector<16x16xf32>, vector<16x16xf32>, vector<16x16xf32> -> vector<16x16xf32>
    %72 = arith.addf %71, %42 : vector<16x16xf32>
    %cst_41 = arith.constant dense<0xFF800000> : vector<16xf32>
    %73 = vector.multi_reduction <maximumf>, %72, %cst_41 [1] : vector<16x16xf32> to vector<16xf32>
    %74 = vector.shape_cast %73 : vector<16xf32> to vector<16x1xf32>
    %75 = vector.broadcast %74 : vector<16x1xf32> to vector<16x16xf32>
    %76 = arith.subf %72, %75 : vector<16x16xf32>
    %77 = math.exp %76 : vector<16x16xf32>
    %cst_42 = arith.constant dense<0.000000e+00> : vector<16xf32>
    %78 = vector.multi_reduction <add>, %77, %cst_42 [1] : vector<16x16xf32> to vector<16xf32>
    %79 = vector.shape_cast %78 : vector<16xf32> to vector<16x1xf32>
    %80 = tpu.reciprocal %79 {approx = true} : vector<16x1xf32> -> vector<16x1xf32>
    %81 = vector.broadcast %80 : vector<16x1xf32> to vector<16x16xf32>
    %82 = arith.mulf %77, %81 : vector<16x16xf32>
    %cst_43 = arith.constant dense<0.000000e+00> : vector<16x16xf32>
    %83 = tpu.matmul %82, %70, %cst_43 {dimension_numbers = #tpu.dot_dimension_numbers<[1], [0], [0], [1], [0, 0, 1, 1], [], []>} : vector<16x16xf32>, vector<16x16xf32>, vector<16x16xf32> -> vector<16x16xf32>
    %84 = vector.extract_strided_slice %44 {offsets = [16, 0], sizes = [16, 64], strides = [1, 1]} : vector<64x64xf32> to vector<16x64xf32>
    %cst_44 = arith.constant dense<0.000000e+00> : vector<16x64xf32>
    %85 = tpu.matmul %83, %84, %cst_44 {dimension_numbers = #tpu.dot_dimension_numbers<[1], [0], [0], [1], [0, 0, 1, 1], [], []>} : vector<16x16xf32>, vector<16x64xf32>, vector<16x64xf32> -> vector<16x64xf32>
    %86 = arith.addf %67, %85 : vector<16x64xf32>
    %87 = vector.extract_strided_slice %34 {offsets = [0, 32], sizes = [16, 16], strides = [1, 1]} : vector<16x64xf32> to vector<16x16xf32>
    %88 = vector.extract_strided_slice %41 {offsets = [0, 32], sizes = [16, 16], strides = [1, 1]} : vector<16x128xf32> to vector<16x16xf32>
    %89 = vector.extract_strided_slice %41 {offsets = [0, 96], sizes = [16, 16], strides = [1, 1]} : vector<16x128xf32> to vector<16x16xf32>
    %cst_45 = arith.constant dense<0.000000e+00> : vector<16x16xf32>
    %90 = tpu.matmul %87, %88, %cst_45 {dimension_numbers = #tpu.dot_dimension_numbers<[1], [1], [0], [0], [0, 0, 1, 0], [], []>} : vector<16x16xf32>, vector<16x16xf32>, vector<16x16xf32> -> vector<16x16xf32>
    %91 = arith.addf %90, %42 : vector<16x16xf32>
    %cst_46 = arith.constant dense<0xFF800000> : vector<16xf32>
    %92 = vector.multi_reduction <maximumf>, %91, %cst_46 [1] : vector<16x16xf32> to vector<16xf32>
    %93 = vector.shape_cast %92 : vector<16xf32> to vector<16x1xf32>
    %94 = vector.broadcast %93 : vector<16x1xf32> to vector<16x16xf32>
    %95 = arith.subf %91, %94 : vector<16x16xf32>
    %96 = math.exp %95 : vector<16x16xf32>
    %cst_47 = arith.constant dense<0.000000e+00> : vector<16xf32>
    %97 = vector.multi_reduction <add>, %96, %cst_47 [1] : vector<16x16xf32> to vector<16xf32>
    %98 = vector.shape_cast %97 : vector<16xf32> to vector<16x1xf32>
    %99 = tpu.reciprocal %98 {approx = true} : vector<16x1xf32> -> vector<16x1xf32>
    %100 = vector.broadcast %99 : vector<16x1xf32> to vector<16x16xf32>
    %101 = arith.mulf %96, %100 : vector<16x16xf32>
    %cst_48 = arith.constant dense<0.000000e+00> : vector<16x16xf32>
    %102 = tpu.matmul %101, %89, %cst_48 {dimension_numbers = #tpu.dot_dimension_numbers<[1], [0], [0], [1], [0, 0, 1, 1], [], []>} : vector<16x16xf32>, vector<16x16xf32>, vector<16x16xf32> -> vector<16x16xf32>
    %103 = vector.extract_strided_slice %44 {offsets = [32, 0], sizes = [16, 64], strides = [1, 1]} : vector<64x64xf32> to vector<16x64xf32>
    %cst_49 = arith.constant dense<0.000000e+00> : vector<16x64xf32>
    %104 = tpu.matmul %102, %103, %cst_49 {dimension_numbers = #tpu.dot_dimension_numbers<[1], [0], [0], [1], [0, 0, 1, 1], [], []>} : vector<16x16xf32>, vector<16x64xf32>, vector<16x64xf32> -> vector<16x64xf32>
    %105 = arith.addf %86, %104 : vector<16x64xf32>
    %106 = vector.extract_strided_slice %34 {offsets = [0, 48], sizes = [16, 16], strides = [1, 1]} : vector<16x64xf32> to vector<16x16xf32>
    %107 = vector.extract_strided_slice %41 {offsets = [0, 48], sizes = [16, 16], strides = [1, 1]} : vector<16x128xf32> to vector<16x16xf32>
    %108 = vector.extract_strided_slice %41 {offsets = [0, 112], sizes = [16, 16], strides = [1, 1]} : vector<16x128xf32> to vector<16x16xf32>
    %cst_50 = arith.constant dense<0.000000e+00> : vector<16x16xf32>
    %109 = tpu.matmul %106, %107, %cst_50 {dimension_numbers = #tpu.dot_dimension_numbers<[1], [1], [0], [0], [0, 0, 1, 0], [], []>} : vector<16x16xf32>, vector<16x16xf32>, vector<16x16xf32> -> vector<16x16xf32>
    %110 = arith.addf %109, %42 : vector<16x16xf32>
    %cst_51 = arith.constant dense<0xFF800000> : vector<16xf32>
    %111 = vector.multi_reduction <maximumf>, %110, %cst_51 [1] : vector<16x16xf32> to vector<16xf32>
    %112 = vector.shape_cast %111 : vector<16xf32> to vector<16x1xf32>
    %113 = vector.broadcast %112 : vector<16x1xf32> to vector<16x16xf32>
    %114 = arith.subf %110, %113 : vector<16x16xf32>
    %115 = math.exp %114 : vector<16x16xf32>
    %cst_52 = arith.constant dense<0.000000e+00> : vector<16xf32>
    %116 = vector.multi_reduction <add>, %115, %cst_52 [1] : vector<16x16xf32> to vector<16xf32>
    %117 = vector.shape_cast %116 : vector<16xf32> to vector<16x1xf32>
    %118 = tpu.reciprocal %117 {approx = true} : vector<16x1xf32> -> vector<16x1xf32>
    %119 = vector.broadcast %118 : vector<16x1xf32> to vector<16x16xf32>
    %120 = arith.mulf %115, %119 : vector<16x16xf32>
    %cst_53 = arith.constant dense<0.000000e+00> : vector<16x16xf32>
    %121 = tpu.matmul %120, %108, %cst_53 {dimension_numbers = #tpu.dot_dimension_numbers<[1], [0], [0], [1], [0, 0, 1, 1], [], []>} : vector<16x16xf32>, vector<16x16xf32>, vector<16x16xf32> -> vector<16x16xf32>
    %122 = vector.extract_strided_slice %44 {offsets = [48, 0], sizes = [16, 64], strides = [1, 1]} : vector<64x64xf32> to vector<16x64xf32>
    %cst_54 = arith.constant dense<0.000000e+00> : vector<16x64xf32>
    %123 = tpu.matmul %121, %122, %cst_54 {dimension_numbers = #tpu.dot_dimension_numbers<[1], [0], [0], [1], [0, 0, 1, 1], [], []>} : vector<16x16xf32>, vector<16x64xf32>, vector<16x64xf32> -> vector<16x64xf32>
    %124 = arith.addf %105, %123 : vector<16x64xf32>
    %c0_55 = arith.constant 0 : index
    %c0_56 = arith.constant 0 : index
    %c0_57 = arith.constant 0 : index
    %125 = vector.load %arg11[%c0_55, %c0_56, %c0_57] : memref<1x1x64xf32, #tpu.memory_space<vmem>>, vector<1x1x64xf32>
    %126 = vector.shape_cast %125 : vector<1x1x64xf32> to vector<1x64xf32>
    %c0_58 = arith.constant 0 : index
    %c0_59 = arith.constant 0 : index
    %c0_60 = arith.constant 0 : index
    %127 = vector.load %arg12[%c0_58, %c0_59, %c0_60] : memref<1x1x64xf32, #tpu.memory_space<vmem>>, vector<1x1x64xf32>
    %128 = vector.shape_cast %127 : vector<1x1x64xf32> to vector<1x64xf32>
    %cst_61 = arith.constant dense<0.000000e+00> : vector<16xf32>
    %129 = vector.multi_reduction <add>, %124, %cst_61 [1] : vector<16x64xf32> to vector<16xf32>
    %130 = vector.shape_cast %129 : vector<16xf32> to vector<16x1xf32>
    %cst_62 = arith.constant 6.400000e+01 : f32
    %131 = vector.broadcast %cst_62 : f32 to vector<16x1xf32>
    %132 = arith.divf %130, %131 : vector<16x1xf32>
    %133 = vector.broadcast %132 : vector<16x1xf32> to vector<16x64xf32>
    %134 = arith.subf %124, %133 : vector<16x64xf32>
    %135 = arith.mulf %134, %134 : vector<16x64xf32>
    %cst_63 = arith.constant dense<0.000000e+00> : vector<16xf32>
    %136 = vector.multi_reduction <add>, %135, %cst_63 [1] : vector<16x64xf32> to vector<16xf32>
    %137 = vector.shape_cast %136 : vector<16xf32> to vector<16x1xf32>
    %cst_64 = arith.constant 6.400000e+01 : f32
    %138 = vector.broadcast %cst_64 : f32 to vector<16x1xf32>
    %139 = arith.divf %137, %138 : vector<16x1xf32>
    %cst_65 = arith.constant 9.99999974E-6 : f32
    %140 = vector.broadcast %cst_65 : f32 to vector<16x1xf32>
    %141 = arith.addf %139, %140 : vector<16x1xf32>
    %142 = math.rsqrt %141 : vector<16x1xf32>
    %143 = vector.broadcast %142 : vector<16x1xf32> to vector<16x64xf32>
    %144 = arith.mulf %134, %143 : vector<16x64xf32>
    %145 = vector.broadcast %126 : vector<1x64xf32> to vector<16x64xf32>
    %146 = arith.mulf %144, %145 : vector<16x64xf32>
    %147 = vector.broadcast %128 : vector<1x64xf32> to vector<16x64xf32>
    %148 = arith.addf %146, %147 : vector<16x64xf32>
    %c0_66 = arith.constant 0 : index
    %c0_67 = arith.constant 0 : index
    %c0_68 = arith.constant 0 : index
    %149 = vector.load %arg13[%c0_66, %c0_67, %c0_68] : memref<1x64x256xf32, #tpu.memory_space<vmem>>, vector<1x64x256xf32>
    %150 = vector.shape_cast %149 : vector<1x64x256xf32> to vector<64x256xf32>
    %cst_69 = arith.constant dense<0.000000e+00> : vector<16x256xf32>
    %151 = tpu.matmul %148, %150, %cst_69 {dimension_numbers = #tpu.dot_dimension_numbers<[1], [0], [0], [1], [0, 0, 1, 1], [], []>} : vector<16x64xf32>, vector<64x256xf32>, vector<16x256xf32> -> vector<16x256xf32>
    %c0_70 = arith.constant 0 : index
    %c0_71 = arith.constant 0 : index
    %c0_72 = arith.constant 0 : index
    %152 = vector.load %arg14[%c0_70, %c0_71, %c0_72] : memref<1x1x256xf32, #tpu.memory_space<vmem>>, vector<1x1x256xf32>
    %153 = vector.shape_cast %152 : vector<1x1x256xf32> to vector<1x256xf32>
    %154 = vector.broadcast %153 : vector<1x256xf32> to vector<16x256xf32>
    %155 = arith.addf %151, %154 : vector<16x256xf32>
    %cst_73 = arith.constant 0.000000e+00 : f32
    %156 = vector.broadcast %cst_73 : f32 to vector<16x256xf32>
    %157 = arith.maximumf %155, %156 : vector<16x256xf32>
    %c0_74 = arith.constant 0 : index
    %c0_75 = arith.constant 0 : index
    %c0_76 = arith.constant 0 : index
    %158 = vector.load %arg15[%c0_74, %c0_75, %c0_76] : memref<1x256x64xf32, #tpu.memory_space<vmem>>, vector<1x256x64xf32>
    %159 = vector.shape_cast %158 : vector<1x256x64xf32> to vector<256x64xf32>
    %cst_77 = arith.constant dense<0.000000e+00> : vector<16x64xf32>
    %160 = tpu.matmul %157, %159, %cst_77 {dimension_numbers = #tpu.dot_dimension_numbers<[1], [0], [0], [1], [0, 0, 1, 1], [], []>} : vector<16x256xf32>, vector<256x64xf32>, vector<16x64xf32> -> vector<16x64xf32>
    %161 = arith.addf %124, %160 : vector<16x64xf32>
    %c0_78 = arith.constant 0 : index
    %c0_79 = arith.constant 0 : index
    %c0_80 = arith.constant 0 : index
    %162 = vector.load %arg16[%c0_78, %c0_79, %c0_80] : memref<1x1x64xf32, #tpu.memory_space<vmem>>, vector<1x1x64xf32>
    %163 = vector.shape_cast %162 : vector<1x1x64xf32> to vector<1x64xf32>
    %164 = vector.broadcast %163 : vector<1x64xf32> to vector<16x64xf32>
    %165 = arith.addf %161, %164 : vector<16x64xf32>
    %c0_81 = arith.constant 0 : index
    %c0_82 = arith.constant 0 : index
    %c0_83 = arith.constant 0 : index
    %166 = vector.load %arg17[%c0_81, %c0_82, %c0_83] : memref<1x16x64xf32, #tpu.memory_space<vmem>>, vector<1x16x64xf32>
    %167 = vector.shape_cast %166 : vector<1x16x64xf32> to vector<16x64xf32>
    %168 = vector.shape_cast %165 : vector<16x64xf32> to vector<1x16x64xf32>
    tpu.vector_store %arg17[%c0_81, %c0_82, %c0_83], %168 {strides = array<i32>} : memref<1x16x64xf32, #tpu.memory_space<vmem>>, vector<1x16x64xf32>,
    return
  }
  func.func @transform_0(%arg0: i32) -> (i32, i32, i32) {
    %c0_i32 = arith.constant 0 : i32
    %c0_i32_0 = arith.constant 0 : i32
    %c0_i32_1 = arith.constant 0 : i32
    return %arg0, %c0_i32, %c0_i32_0 : i32, i32, i32
  }
  func.func @transform_1(%arg0: i32) -> (i32, i32) {
    %c0_i32 = arith.constant 0 : i32
    %c0_i32_0 = arith.constant 0 : i32
    %c0_i32_1 = arith.constant 0 : i32
    return %c0_i32, %c0_i32_0 : i32, i32
  }
  func.func @transform_2(%arg0: i32) -> (i32, i32, i32) {
    %c0_i32 = arith.constant 0 : i32
    %c0_i32_0 = arith.constant 0 : i32
    %c0_i32_1 = arith.constant 0 : i32
    return %arg0, %c0_i32, %c0_i32_0 : i32, i32, i32
  }
  func.func @transform_3(%arg0: i32) -> (i32, i32, i32) {
    %c0_i32 = arith.constant 0 : i32
    %c0_i32_0 = arith.constant 0 : i32
    %c0_i32_1 = arith.constant 0 : i32
    return %arg0, %c0_i32, %c0_i32_0 : i32, i32, i32
  }
  func.func @transform_4(%arg0: i32) -> (i32, i32, i32) {
    %c0_i32 = arith.constant 0 : i32
    %c0_i32_0 = arith.constant 0 : i32
    %c0_i32_1 = arith.constant 0 : i32
    return %arg0, %c0_i32, %c0_i32_0 : i32, i32, i32
  }
  func.func @transform_5(%arg0: i32) -> (i32, i32, i32) {
    %c0_i32 = arith.constant 0 : i32
    %c0_i32_0 = arith.constant 0 : i32
    %c0_i32_1 = arith.constant 0 : i32
    return %arg0, %c0_i32, %c0_i32_0 : i32, i32, i32
  }
  func.func @transform_6(%arg0: i32) -> (i32, i32, i32) {
    %c0_i32 = arith.constant 0 : i32
    %c0_i32_0 = arith.constant 0 : i32
    %c0_i32_1 = arith.constant 0 : i32
    return %arg0, %c0_i32, %c0_i32_0 : i32, i32, i32
  }
  func.func @transform_7(%arg0: i32) -> (i32, i32, i32) {
    %c0_i32 = arith.constant 0 : i32
    %c0_i32_0 = arith.constant 0 : i32
    %c0_i32_1 = arith.constant 0 : i32
    return %arg0, %c0_i32, %c0_i32_0 : i32, i32, i32
  }
  func.func @transform_8(%arg0: i32) -> (i32, i32, i32) {
    %c0_i32 = arith.constant 0 : i32
    %c0_i32_0 = arith.constant 0 : i32
    %c0_i32_1 = arith.constant 0 : i32
    return %arg0, %c0_i32, %c0_i32_0 : i32, i32, i32
  }
  func.func @transform_9(%arg0: i32) -> (i32, i32, i32) {
    %c0_i32 = arith.constant 0 : i32
    %c0_i32_0 = arith.constant 0 : i32
    %c0_i32_1 = arith.constant 0 : i32
    return %arg0, %c0_i32, %c0_i32_0 : i32, i32, i32
  }
  func.func @transform_10(%arg0: i32) -> (i32, i32, i32) {
    %c0_i32 = arith.constant 0 : i32
    %c0_i32_0 = arith.constant 0 : i32
    %c0_i32_1 = arith.constant 0 : i32
    return %arg0, %c0_i32, %c0_i32_0 : i32, i32, i32
  }
  func.func @transform_11(%arg0: i32) -> (i32, i32, i32) {
    %c0_i32 = arith.constant 0 : i32
    %c0_i32_0 = arith.constant 0 : i32
    %c0_i32_1 = arith.constant 0 : i32
    return %arg0, %c0_i32, %c0_i32_0 : i32, i32, i32
  }
  func.func @transform_12(%arg0: i32) -> (i32, i32, i32) {
    %c0_i32 = arith.constant 0 : i32
    %c0_i32_0 = arith.constant 0 : i32
    %c0_i32_1 = arith.constant 0 : i32
    return %arg0, %c0_i32, %c0_i32_0 : i32, i32, i32
  }
  func.func @transform_13(%arg0: i32) -> (i32, i32, i32) {
    %c0_i32 = arith.constant 0 : i32
    %c0_i32_0 = arith.constant 0 : i32
    %c0_i32_1 = arith.constant 0 : i32
    return %arg0, %c0_i32, %c0_i32_0 : i32, i32, i32
  }
  func.func @transform_14(%arg0: i32) -> (i32, i32, i32) {
    %c0_i32 = arith.constant 0 : i32
    %c0_i32_0 = arith.constant 0 : i32
    %c0_i32_1 = arith.constant 0 : i32
    return %arg0, %c0_i32, %c0_i32_0 : i32, i32, i32
  }
  func.func @transform_15(%arg0: i32) -> (i32, i32, i32) {
    %c0_i32 = arith.constant 0 : i32
    %c0_i32_0 = arith.constant 0 : i32
    %c0_i32_1 = arith.constant 0 : i32
    return %arg0, %c0_i32, %c0_i32_0 : i32, i32, i32
  }
  func.func @transform_16(%arg0: i32) -> (i32, i32, i32) {
    %c0_i32 = arith.constant 0 : i32
    %c0_i32_0 = arith.constant 0 : i32
    %c0_i32_1 = arith.constant 0 : i32
    return %arg0, %c0_i32, %c0_i32_0 : i32, i32, i32
  }
}

module attributes {stable_mosaic.version = 11 : i64} {
  func.func @_encoder_layer_kernel(%arg0: i32, %arg1: memref<1x16x64xf32, #tpu.memory_space<vmem>>, %arg2: memref<16x16xf32, #tpu.memory_space<vmem>>, %arg3: memref<1x1x64xf32, #tpu.memory_space<vmem>>, %arg4: memref<1x1x64xf32, #tpu.memory_space<vmem>>, %arg5: memref<1x64x64xf32, #tpu.memory_space<vmem>>, %arg6: memref<1x1x64xf32, #tpu.memory_space<vmem>>, %arg7: memref<1x64x128xf32, #tpu.memory_space<vmem>>, %arg8: memref<1x1x128xf32, #tpu.memory_space<vmem>>, %arg9: memref<1x64x64xf32, #tpu.memory_space<vmem>>, %arg10: memref<1x1x64xf32, #tpu.memory_space<vmem>>, %arg11: memref<1x1x64xf32, #tpu.memory_space<vmem>>, %arg12: memref<1x1x64xf32, #tpu.memory_space<vmem>>, %arg13: memref<1x64x256xf32, #tpu.memory_space<vmem>>, %arg14: memref<1x1x256xf32, #tpu.memory_space<vmem>>, %arg15: memref<1x256x64xf32, #tpu.memory_space<vmem>>, %arg16: memref<1x1x64xf32, #tpu.memory_space<vmem>>, %arg17: memref<1x16x64xf32, #tpu.memory_space<vmem>>) attributes {dimension_semantics = [#tpu.dimension_semantics<parallel>], iteration_bounds = array<i64: 3>, scalar_prefetch = 0 : i64, scratch_operands = 0 : i64, tpu.core_type = #tpu.core_type<tc>, window_params = [{transform_indices = @transform_0, window_bounds = array<i64: 1, 16, 64>}, {pipeline_mode = #tpu.pipeline_mode<synchronous>, transform_indices = @transform_1, window_bounds = array<i64: 16, 16>}, {transform_indices = @transform_2, window_bounds = array<i64: 1, 1, 64>}, {transform_indices = @transform_3, window_bounds = array<i64: 1, 1, 64>}, {transform_indices = @transform_4, window_bounds = array<i64: 1, 64, 64>}, {transform_indices = @transform_5, window_bounds = array<i64: 1, 1, 64>}, {transform_indices = @transform_6, window_bounds = array<i64: 1, 64, 128>}, {transform_indices = @transform_7, window_bounds = array<i64: 1, 1, 128>}, {transform_indices = @transform_8, window_bounds = array<i64: 1, 64, 64>}, {transform_indices = @transform_9, window_bounds = array<i64: 1, 1, 64>}, {transform_indices = @transform_10, window_bounds = array<i64: 1, 1, 64>}, {transform_indices = @transform_11, window_bounds = array<i64: 1, 1, 64>}, {transform_indices = @transform_12, window_bounds = array<i64: 1, 64, 256>}, {transform_indices = @transform_13, window_bounds = array<i64: 1, 1, 256>}, {transform_indices = @transform_14, window_bounds = array<i64: 1, 256, 64>}, {transform_indices = @transform_15, window_bounds = array<i64: 1, 1, 64>}, {transform_indices = @transform_16, window_bounds = array<i64: 1, 16, 64>}]} {
    %c0 = arith.constant 0 : index
    %c0_0 = arith.constant 0 : index
    %c0_1 = arith.constant 0 : index
    %0 = vector.load %arg1[%c0, %c0_0, %c0_1] : memref<1x16x64xf32, #tpu.memory_space<vmem>>, vector<1x16x64xf32>
    %1 = vector.shape_cast %0 : vector<1x16x64xf32> to vector<16x64xf32>
    %c0_2 = arith.constant 0 : index
    %c0_3 = arith.constant 0 : index
    %c0_4 = arith.constant 0 : index
    %2 = vector.load %arg3[%c0_2, %c0_3, %c0_4] : memref<1x1x64xf32, #tpu.memory_space<vmem>>, vector<1x1x64xf32>
    %3 = vector.shape_cast %2 : vector<1x1x64xf32> to vector<1x64xf32>
    %c0_5 = arith.constant 0 : index
    %c0_6 = arith.constant 0 : index
    %c0_7 = arith.constant 0 : index
    %4 = vector.load %arg4[%c0_5, %c0_6, %c0_7] : memref<1x1x64xf32, #tpu.memory_space<vmem>>, vector<1x1x64xf32>
    %5 = vector.shape_cast %4 : vector<1x1x64xf32> to vector<1x64xf32>
    %cst = arith.constant dense<0.000000e+00> : vector<16xf32>
    %6 = vector.multi_reduction <add>, %1, %cst [1] : vector<16x64xf32> to vector<16xf32>
    %7 = vector.shape_cast %6 : vector<16xf32> to vector<16x1xf32>
    %cst_8 = arith.constant 6.400000e+01 : f32
    %8 = vector.broadcast %cst_8 : f32 to vector<16x1xf32>
    %9 = arith.divf %7, %8 : vector<16x1xf32>
    %10 = vector.broadcast %9 : vector<16x1xf32> to vector<16x64xf32>
    %11 = arith.subf %1, %10 : vector<16x64xf32>
    %12 = arith.mulf %11, %11 : vector<16x64xf32>
    %cst_9 = arith.constant dense<0.000000e+00> : vector<16xf32>
    %13 = vector.multi_reduction <add>, %12, %cst_9 [1] : vector<16x64xf32> to vector<16xf32>
    %14 = vector.shape_cast %13 : vector<16xf32> to vector<16x1xf32>
    %cst_10 = arith.constant 6.400000e+01 : f32
    %15 = vector.broadcast %cst_10 : f32 to vector<16x1xf32>
    %16 = arith.divf %14, %15 : vector<16x1xf32>
    %cst_11 = arith.constant 9.99999974E-6 : f32
    %17 = vector.broadcast %cst_11 : f32 to vector<16x1xf32>
    %18 = arith.addf %16, %17 : vector<16x1xf32>
    %19 = math.rsqrt %18 : vector<16x1xf32>
    %20 = vector.broadcast %19 : vector<16x1xf32> to vector<16x64xf32>
    %21 = arith.mulf %11, %20 : vector<16x64xf32>
    %22 = vector.broadcast %3 : vector<1x64xf32> to vector<16x64xf32>
    %23 = arith.mulf %21, %22 : vector<16x64xf32>
    %24 = vector.broadcast %5 : vector<1x64xf32> to vector<16x64xf32>
    %25 = arith.addf %23, %24 : vector<16x64xf32>
    %c0_12 = arith.constant 0 : index
    %c0_13 = arith.constant 0 : index
    %c0_14 = arith.constant 0 : index
    %26 = vector.load %arg5[%c0_12, %c0_13, %c0_14] : memref<1x64x64xf32, #tpu.memory_space<vmem>>, vector<1x64x64xf32>
    %27 = vector.shape_cast %26 : vector<1x64x64xf32> to vector<64x64xf32>
    %cst_15 = arith.constant dense<0.000000e+00> : vector<16x64xf32>
    %28 = tpu.matmul %25, %27, %cst_15 {dimension_numbers = #tpu.dot_dimension_numbers<[1], [0], [0], [1], [0, 0, 1, 1], [], []>} : vector<16x64xf32>, vector<64x64xf32>, vector<16x64xf32> -> vector<16x64xf32>
    %c0_16 = arith.constant 0 : index
    %c0_17 = arith.constant 0 : index
    %c0_18 = arith.constant 0 : index
    %29 = vector.load %arg6[%c0_16, %c0_17, %c0_18] : memref<1x1x64xf32, #tpu.memory_space<vmem>>, vector<1x1x64xf32>
    %30 = vector.shape_cast %29 : vector<1x1x64xf32> to vector<1x64xf32>
    %31 = vector.broadcast %30 : vector<1x64xf32> to vector<16x64xf32>
    %32 = arith.addf %28, %31 : vector<16x64xf32>
    %cst_19 = arith.constant 2.500000e-01 : f32
    %33 = vector.broadcast %cst_19 : f32 to vector<16x64xf32>
    %34 = arith.mulf %32, %33 : vector<16x64xf32>
    %c0_20 = arith.constant 0 : index
    %c0_21 = arith.constant 0 : index
    %c0_22 = arith.constant 0 : index
    %35 = vector.load %arg7[%c0_20, %c0_21, %c0_22] : memref<1x64x128xf32, #tpu.memory_space<vmem>>, vector<1x64x128xf32>
    %36 = vector.shape_cast %35 : vector<1x64x128xf32> to vector<64x128xf32>
    %cst_23 = arith.constant dense<0.000000e+00> : vector<16x128xf32>
    %37 = tpu.matmul %25, %36, %cst_23 {dimension_numbers = #tpu.dot_dimension_numbers<[1], [0], [0], [1], [0, 0, 1, 1], [], []>} : vector<16x64xf32>, vector<64x128xf32>, vector<16x128xf32> -> vector<16x128xf32>
    %c0_24 = arith.constant 0 : index
    %c0_25 = arith.constant 0 : index
    %c0_26 = arith.constant 0 : index
    %38 = vector.load %arg8[%c0_24, %c0_25, %c0_26] : memref<1x1x128xf32, #tpu.memory_space<vmem>>, vector<1x1x128xf32>
    %39 = vector.shape_cast %38 : vector<1x1x128xf32> to vector<1x128xf32>
    %40 = vector.broadcast %39 : vector<1x128xf32> to vector<16x128xf32>
    %41 = arith.addf %37, %40 : vector<16x128xf32>
    %c0_27 = arith.constant 0 : index
    %c0_28 = arith.constant 0 : index
    %42 = vector.load %arg2[%c0_27, %c0_28] : memref<16x16xf32, #tpu.memory_space<vmem>>, vector<16x16xf32>
    %c0_29 = arith.constant 0 : index
    %c0_30 = arith.constant 0 : index
    %c0_31 = arith.constant 0 : index
    %43 = vector.load %arg9[%c0_29, %c0_30, %c0_31] : memref<1x64x64xf32, #tpu.memory_space<vmem>>, vector<1x64x64xf32>
    %44 = vector.shape_cast %43 : vector<1x64x64xf32> to vector<64x64xf32>
    %c0_32 = arith.constant 0 : index
    %c0_33 = arith.constant 0 : index
    %c0_34 = arith.constant 0 : index
    %45 = vector.load %arg10[%c0_32, %c0_33, %c0_34] : memref<1x1x64xf32, #tpu.memory_space<vmem>>, vector<1x1x64xf32>
    %46 = vector.shape_cast %45 : vector<1x1x64xf32> to vector<1x64xf32>
    %47 = vector.broadcast %46 : vector<1x64xf32> to vector<16x64xf32>
    %48 = arith.addf %1, %47 : vector<16x64xf32>
    %49 = vector.extract_strided_slice %34 {offsets = [0, 0], sizes = [16, 16], strides = [1, 1]} : vector<16x64xf32> to vector<16x16xf32>
    %50 = vector.extract_strided_slice %41 {offsets = [0, 0], sizes = [16, 16], strides = [1, 1]} : vector<16x128xf32> to vector<16x16xf32>
    %51 = vector.extract_strided_slice %41 {offsets = [0, 64], sizes = [16, 16], strides = [1, 1]} : vector<16x128xf32> to vector<16x16xf32>
    %cst_35 = arith.constant dense<0.000000e+00> : vector<16x16xf32>
    %52 = tpu.matmul %49, %50, %cst_35 {dimension_numbers = #tpu.dot_dimension_numbers<[1], [1], [0], [0], [0, 0, 1, 0], [], []>} : vector<16x16xf32>, vector<16x16xf32>, vector<16x16xf32> -> vector<16x16xf32>
    %53 = arith.addf %52, %42 : vector<16x16xf32>
    %cst_36 = arith.constant dense<0xFF800000> : vector<16xf32>
    %54 = vector.multi_reduction <maximumf>, %53, %cst_36 [1] : vector<16x16xf32> to vector<16xf32>
    %55 = vector.shape_cast %54 : vector<16xf32> to vector<16x1xf32>
    %56 = vector.broadcast %55 : vector<16x1xf32> to vector<16x16xf32>
    %57 = arith.subf %53, %56 : vector<16x16xf32>
    %58 = math.exp %57 : vector<16x16xf32>
    %cst_37 = arith.constant dense<0.000000e+00> : vector<16xf32>
    %59 = vector.multi_reduction <add>, %58, %cst_37 [1] : vector<16x16xf32> to vector<16xf32>
    %60 = vector.shape_cast %59 : vector<16xf32> to vector<16x1xf32>
    %61 = tpu.reciprocal %60 {approx = true} : vector<16x1xf32> -> vector<16x1xf32>
    %62 = vector.broadcast %61 : vector<16x1xf32> to vector<16x16xf32>
    %63 = arith.mulf %58, %62 : vector<16x16xf32>
    %cst_38 = arith.constant dense<0.000000e+00> : vector<16x16xf32>
    %64 = tpu.matmul %63, %51, %cst_38 {dimension_numbers = #tpu.dot_dimension_numbers<[1], [0], [0], [1], [0, 0, 1, 1], [], []>} : vector<16x16xf32>, vector<16x16xf32>, vector<16x16xf32> -> vector<16x16xf32>
    %65 = vector.extract_strided_slice %44 {offsets = [0, 0], sizes = [16, 64], strides = [1, 1]} : vector<64x64xf32> to vector<16x64xf32>
    %cst_39 = arith.constant dense<0.000000e+00> : vector<16x64xf32>
    %66 = tpu.matmul %64, %65, %cst_39 {dimension_numbers = #tpu.dot_dimension_numbers<[1], [0], [0], [1], [0, 0, 1, 1], [], []>} : vector<16x16xf32>, vector<16x64xf32>, vector<16x64xf32> -> vector<16x64xf32>
    %67 = arith.addf %48, %66 : vector<16x64xf32>
    %68 = vector.extract_strided_slice %34 {offsets = [0, 16], sizes = [16, 16], strides = [1, 1]} : vector<16x64xf32> to vector<16x16xf32>
    %69 = vector.extract_strided_slice %41 {offsets = [0, 16], sizes = [16, 16], strides = [1, 1]} : vector<16x128xf32> to vector<16x16xf32>
    %70 = vector.extract_strided_slice %41 {offsets = [0, 80], sizes = [16, 16], strides = [1, 1]} : vector<16x128xf32> to vector<16x16xf32>
    %cst_40 = arith.constant dense<0.000000e+00> : vector<16x16xf32>
    %71 = tpu.matmul %68, %69, %cst_40 {dimension_numbers = #tpu.dot_dimension_numbers<[1], [1], [0], [0], [0, 0, 1, 0], [], []>} : vector<16x16xf32>, vector<16x16xf32>, vector<16x16xf32> -> vector<16x16xf32>
    %72 = arith.addf %71, %42 : vector<16x16xf32>
    %cst_41 = arith.constant dense<0xFF800000> : vector<16xf32>
    %73 = vector.multi_reduction <maximumf>, %72, %cst_41 [1] : vector<16x16xf32> to vector<16xf32>
    %74 = vector.shape_cast %73 : vector<16xf32> to vector<16x1xf32>
    %75 = vector.broadcast %74 : vector<16x1xf32> to vector<16x16xf32>
    %76 = arith.subf %72, %75 : vector<16x16xf32>
    %77 = math.exp %76 : vector<16x16xf32>
    %cst_42 = arith.constant dense<0.000000e+00> : vector<16xf32>
    %78 = vector.multi_reduction <add>, %77, %cst_42 [1] : vector<16x16xf32> to vector<16xf32>
    %79 = vector.shape_cast %78 : vector<16xf32> to vector<16x1xf32>
    %80 = tpu.reciprocal %79 {approx = true} : vector<16x1xf32> -> vector<16x1xf32>
    %81 = vector.broadcast %80 : vector<16x1xf32> to vector<16x16xf32>
    %82 = arith.mulf %77, %81 : vector<16x16xf32>
    %cst_43 = arith.constant dense<0.000000e+00> : vector<16x16xf32>
    %83 = tpu.matmul %82, %70, %cst_43 {dimension_numbers = #tpu.dot_dimension_numbers<[1], [0], [0], [1], [0, 0, 1, 1], [], []>} : vector<16x16xf32>, vector<16x16xf32>, vector<16x16xf32> -> vector<16x16xf32>
    %84 = vector.extract_strided_slice %44 {offsets = [16, 0], sizes = [16, 64], strides = [1, 1]} : vector<64x64xf32> to vector<16x64xf32>
    %cst_44 = arith.constant dense<0.000000e+00> : vector<16x64xf32>
    %85 = tpu.matmul %83, %84, %cst_44 {dimension_numbers = #tpu.dot_dimension_numbers<[1], [0], [0], [1], [0, 0, 1, 1], [], []>} : vector<16x16xf32>, vector<16x64xf32>, vector<16x64xf32> -> vector<16x64xf32>
    %86 = arith.addf %67, %85 : vector<16x64xf32>
    %87 = vector.extract_strided_slice %34 {offsets = [0, 32], sizes = [16, 16], strides = [1, 1]} : vector<16x64xf32> to vector<16x16xf32>
    %88 = vector.extract_strided_slice %41 {offsets = [0, 32], sizes = [16, 16], strides = [1, 1]} : vector<16x128xf32> to vector<16x16xf32>
    %89 = vector.extract_strided_slice %41 {offsets = [0, 96], sizes = [16, 16], strides = [1, 1]} : vector<16x128xf32> to vector<16x16xf32>
    %cst_45 = arith.constant dense<0.000000e+00> : vector<16x16xf32>
    %90 = tpu.matmul %87, %88, %cst_45 {dimension_numbers = #tpu.dot_dimension_numbers<[1], [1], [0], [0], [0, 0, 1, 0], [], []>} : vector<16x16xf32>, vector<16x16xf32>, vector<16x16xf32> -> vector<16x16xf32>
    %91 = arith.addf %90, %42 : vector<16x16xf32>
    %cst_46 = arith.constant dense<0xFF800000> : vector<16xf32>
    %92 = vector.multi_reduction <maximumf>, %91, %cst_46 [1] : vector<16x16xf32> to vector<16xf32>
    %93 = vector.shape_cast %92 : vector<16xf32> to vector<16x1xf32>
    %94 = vector.broadcast %93 : vector<16x1xf32> to vector<16x16xf32>
    %95 = arith.subf %91, %94 : vector<16x16xf32>
    %96 = math.exp %95 : vector<16x16xf32>
    %cst_47 = arith.constant dense<0.000000e+00> : vector<16xf32>
    %97 = vector.multi_reduction <add>, %96, %cst_47 [1] : vector<16x16xf32> to vector<16xf32>
    %98 = vector.shape_cast %97 : vector<16xf32> to vector<16x1xf32>
    %99 = tpu.reciprocal %98 {approx = true} : vector<16x1xf32> -> vector<16x1xf32>
    %100 = vector.broadcast %99 : vector<16x1xf32> to vector<16x16xf32>
    %101 = arith.mulf %96, %100 : vector<16x16xf32>
    %cst_48 = arith.constant dense<0.000000e+00> : vector<16x16xf32>
    %102 = tpu.matmul %101, %89, %cst_48 {dimension_numbers = #tpu.dot_dimension_numbers<[1], [0], [0], [1], [0, 0, 1, 1], [], []>} : vector<16x16xf32>, vector<16x16xf32>, vector<16x16xf32> -> vector<16x16xf32>
    %103 = vector.extract_strided_slice %44 {offsets = [32, 0], sizes = [16, 64], strides = [1, 1]} : vector<64x64xf32> to vector<16x64xf32>
    %cst_49 = arith.constant dense<0.000000e+00> : vector<16x64xf32>
    %104 = tpu.matmul %102, %103, %cst_49 {dimension_numbers = #tpu.dot_dimension_numbers<[1], [0], [0], [1], [0, 0, 1, 1], [], []>} : vector<16x16xf32>, vector<16x64xf32>, vector<16x64xf32> -> vector<16x64xf32>
    %105 = arith.addf %86, %104 : vector<16x64xf32>
    %106 = vector.extract_strided_slice %34 {offsets = [0, 48], sizes = [16, 16], strides = [1, 1]} : vector<16x64xf32> to vector<16x16xf32>
    %107 = vector.extract_strided_slice %41 {offsets = [0, 48], sizes = [16, 16], strides = [1, 1]} : vector<16x128xf32> to vector<16x16xf32>
    %108 = vector.extract_strided_slice %41 {offsets = [0, 112], sizes = [16, 16], strides = [1, 1]} : vector<16x128xf32> to vector<16x16xf32>
    %cst_50 = arith.constant dense<0.000000e+00> : vector<16x16xf32>
    %109 = tpu.matmul %106, %107, %cst_50 {dimension_numbers = #tpu.dot_dimension_numbers<[1], [1], [0], [0], [0, 0, 1, 0], [], []>} : vector<16x16xf32>, vector<16x16xf32>, vector<16x16xf32> -> vector<16x16xf32>
    %110 = arith.addf %109, %42 : vector<16x16xf32>
    %cst_51 = arith.constant dense<0xFF800000> : vector<16xf32>
    %111 = vector.multi_reduction <maximumf>, %110, %cst_51 [1] : vector<16x16xf32> to vector<16xf32>
    %112 = vector.shape_cast %111 : vector<16xf32> to vector<16x1xf32>
    %113 = vector.broadcast %112 : vector<16x1xf32> to vector<16x16xf32>
    %114 = arith.subf %110, %113 : vector<16x16xf32>
    %115 = math.exp %114 : vector<16x16xf32>
    %cst_52 = arith.constant dense<0.000000e+00> : vector<16xf32>
    %116 = vector.multi_reduction <add>, %115, %cst_52 [1] : vector<16x16xf32> to vector<16xf32>
    %117 = vector.shape_cast %116 : vector<16xf32> to vector<16x1xf32>
    %118 = tpu.reciprocal %117 {approx = true} : vector<16x1xf32> -> vector<16x1xf32>
    %119 = vector.broadcast %118 : vector<16x1xf32> to vector<16x16xf32>
    %120 = arith.mulf %115, %119 : vector<16x16xf32>
    %cst_53 = arith.constant dense<0.000000e+00> : vector<16x16xf32>
    %121 = tpu.matmul %120, %108, %cst_53 {dimension_numbers = #tpu.dot_dimension_numbers<[1], [0], [0], [1], [0, 0, 1, 1], [], []>} : vector<16x16xf32>, vector<16x16xf32>, vector<16x16xf32> -> vector<16x16xf32>
    %122 = vector.extract_strided_slice %44 {offsets = [48, 0], sizes = [16, 64], strides = [1, 1]} : vector<64x64xf32> to vector<16x64xf32>
    %cst_54 = arith.constant dense<0.000000e+00> : vector<16x64xf32>
    %123 = tpu.matmul %121, %122, %cst_54 {dimension_numbers = #tpu.dot_dimension_numbers<[1], [0], [0], [1], [0, 0, 1, 1], [], []>} : vector<16x16xf32>, vector<16x64xf32>, vector<16x64xf32> -> vector<16x64xf32>
    %124 = arith.addf %105, %123 : vector<16x64xf32>
    %c0_55 = arith.constant 0 : index
    %c0_56 = arith.constant 0 : index
    %c0_57 = arith.constant 0 : index
    %125 = vector.load %arg11[%c0_55, %c0_56, %c0_57] : memref<1x1x64xf32, #tpu.memory_space<vmem>>, vector<1x1x64xf32>
    %126 = vector.shape_cast %125 : vector<1x1x64xf32> to vector<1x64xf32>
    %c0_58 = arith.constant 0 : index
    %c0_59 = arith.constant 0 : index
    %c0_60 = arith.constant 0 : index
    %127 = vector.load %arg12[%c0_58, %c0_59, %c0_60] : memref<1x1x64xf32, #tpu.memory_space<vmem>>, vector<1x1x64xf32>
    %128 = vector.shape_cast %127 : vector<1x1x64xf32> to vector<1x64xf32>
    %cst_61 = arith.constant dense<0.000000e+00> : vector<16xf32>
    %129 = vector.multi_reduction <add>, %124, %cst_61 [1] : vector<16x64xf32> to vector<16xf32>
    %130 = vector.shape_cast %129 : vector<16xf32> to vector<16x1xf32>
    %cst_62 = arith.constant 6.400000e+01 : f32
    %131 = vector.broadcast %cst_62 : f32 to vector<16x1xf32>
    %132 = arith.divf %130, %131 : vector<16x1xf32>
    %133 = vector.broadcast %132 : vector<16x1xf32> to vector<16x64xf32>
    %134 = arith.subf %124, %133 : vector<16x64xf32>
    %135 = arith.mulf %134, %134 : vector<16x64xf32>
    %cst_63 = arith.constant dense<0.000000e+00> : vector<16xf32>
    %136 = vector.multi_reduction <add>, %135, %cst_63 [1] : vector<16x64xf32> to vector<16xf32>
    %137 = vector.shape_cast %136 : vector<16xf32> to vector<16x1xf32>
    %cst_64 = arith.constant 6.400000e+01 : f32
    %138 = vector.broadcast %cst_64 : f32 to vector<16x1xf32>
    %139 = arith.divf %137, %138 : vector<16x1xf32>
    %cst_65 = arith.constant 9.99999974E-6 : f32
    %140 = vector.broadcast %cst_65 : f32 to vector<16x1xf32>
    %141 = arith.addf %139, %140 : vector<16x1xf32>
    %142 = math.rsqrt %141 : vector<16x1xf32>
    %143 = vector.broadcast %142 : vector<16x1xf32> to vector<16x64xf32>
    %144 = arith.mulf %134, %143 : vector<16x64xf32>
    %145 = vector.broadcast %126 : vector<1x64xf32> to vector<16x64xf32>
    %146 = arith.mulf %144, %145 : vector<16x64xf32>
    %147 = vector.broadcast %128 : vector<1x64xf32> to vector<16x64xf32>
    %148 = arith.addf %146, %147 : vector<16x64xf32>
    %c0_66 = arith.constant 0 : index
    %c0_67 = arith.constant 0 : index
    %c0_68 = arith.constant 0 : index
    %149 = vector.load %arg13[%c0_66, %c0_67, %c0_68] : memref<1x64x256xf32, #tpu.memory_space<vmem>>, vector<1x64x256xf32>
    %150 = vector.shape_cast %149 : vector<1x64x256xf32> to vector<64x256xf32>
    %cst_69 = arith.constant dense<0.000000e+00> : vector<16x256xf32>
    %151 = tpu.matmul %148, %150, %cst_69 {dimension_numbers = #tpu.dot_dimension_numbers<[1], [0], [0], [1], [0, 0, 1, 1], [], []>} : vector<16x64xf32>, vector<64x256xf32>, vector<16x256xf32> -> vector<16x256xf32>
    %c0_70 = arith.constant 0 : index
    %c0_71 = arith.constant 0 : index
    %c0_72 = arith.constant 0 : index
    %152 = vector.load %arg14[%c0_70, %c0_71, %c0_72] : memref<1x1x256xf32, #tpu.memory_space<vmem>>, vector<1x1x256xf32>
    %153 = vector.shape_cast %152 : vector<1x1x256xf32> to vector<1x256xf32>
    %154 = vector.broadcast %153 : vector<1x256xf32> to vector<16x256xf32>
    %155 = arith.addf %151, %154 : vector<16x256xf32>
    %cst_73 = arith.constant 0.000000e+00 : f32
    %156 = vector.broadcast %cst_73 : f32 to vector<16x256xf32>
    %157 = arith.maximumf %155, %156 : vector<16x256xf32>
    %c0_74 = arith.constant 0 : index
    %c0_75 = arith.constant 0 : index
    %c0_76 = arith.constant 0 : index
    %158 = vector.load %arg15[%c0_74, %c0_75, %c0_76] : memref<1x256x64xf32, #tpu.memory_space<vmem>>, vector<1x256x64xf32>
    %159 = vector.shape_cast %158 : vector<1x256x64xf32> to vector<256x64xf32>
    %cst_77 = arith.constant dense<0.000000e+00> : vector<16x64xf32>
    %160 = tpu.matmul %157, %159, %cst_77 {dimension_numbers = #tpu.dot_dimension_numbers<[1], [0], [0], [1], [0, 0, 1, 1], [], []>} : vector<16x256xf32>, vector<256x64xf32>, vector<16x64xf32> -> vector<16x64xf32>
    %161 = arith.addf %124, %160 : vector<16x64xf32>
    %c0_78 = arith.constant 0 : index
    %c0_79 = arith.constant 0 : index
    %c0_80 = arith.constant 0 : index
    %162 = vector.load %arg16[%c0_78, %c0_79, %c0_80] : memref<1x1x64xf32, #tpu.memory_space<vmem>>, vector<1x1x64xf32>
    %163 = vector.shape_cast %162 : vector<1x1x64xf32> to vector<1x64xf32>
    %164 = vector.broadcast %163 : vector<1x64xf32> to vector<16x64xf32>
    %165 = arith.addf %161, %164 : vector<16x64xf32>
    %c0_81 = arith.constant 0 : index
    %c0_82 = arith.constant 0 : index
    %c0_83 = arith.constant 0 : index
    %166 = vector.load %arg17[%c0_81, %c0_82, %c0_83] : memref<1x16x64xf32, #tpu.memory_space<vmem>>, vector<1x16x64xf32>
    %167 = vector.shape_cast %166 : vector<1x16x64xf32> to vector<16x64xf32>
    %168 = vector.shape_cast %165 : vector<16x64xf32> to vector<1x16x64xf32>
    tpu.vector_store %arg17[%c0_81, %c0_82, %c0_83], %168 {strides = array<i32>} : memref<1x16x64xf32, #tpu.memory_space<vmem>>, vector<1x16x64xf32>,
    return
  }
  func.func @transform_0(%arg0: i32) -> (i32, i32, i32) {
    %c0_i32 = arith.constant 0 : i32
    %c0_i32_0 = arith.constant 0 : i32
    %c0_i32_1 = arith.constant 0 : i32
    return %arg0, %c0_i32, %c0_i32_0 : i32, i32, i32
  }
  func.func @transform_1(%arg0: i32) -> (i32, i32) {
    %c0_i32 = arith.constant 0 : i32
    %c0_i32_0 = arith.constant 0 : i32
    %c0_i32_1 = arith.constant 0 : i32
    return %c0_i32, %c0_i32_0 : i32, i32
  }
  func.func @transform_2(%arg0: i32) -> (i32, i32, i32) {
    %c0_i32 = arith.constant 0 : i32
    %c0_i32_0 = arith.constant 0 : i32
    %c0_i32_1 = arith.constant 0 : i32
    return %arg0, %c0_i32, %c0_i32_0 : i32, i32, i32
  }
  func.func @transform_3(%arg0: i32) -> (i32, i32, i32) {
    %c0_i32 = arith.constant 0 : i32
    %c0_i32_0 = arith.constant 0 : i32
    %c0_i32_1 = arith.constant 0 : i32
    return %arg0, %c0_i32, %c0_i32_0 : i32, i32, i32
  }
  func.func @transform_4(%arg0: i32) -> (i32, i32, i32) {
    %c0_i32 = arith.constant 0 : i32
    %c0_i32_0 = arith.constant 0 : i32
    %c0_i32_1 = arith.constant 0 : i32
    return %arg0, %c0_i32, %c0_i32_0 : i32, i32, i32
  }
  func.func @transform_5(%arg0: i32) -> (i32, i32, i32) {
    %c0_i32 = arith.constant 0 : i32
    %c0_i32_0 = arith.constant 0 : i32
    %c0_i32_1 = arith.constant 0 : i32
    return %arg0, %c0_i32, %c0_i32_0 : i32, i32, i32
  }
  func.func @transform_6(%arg0: i32) -> (i32, i32, i32) {
    %c0_i32 = arith.constant 0 : i32
    %c0_i32_0 = arith.constant 0 : i32
    %c0_i32_1 = arith.constant 0 : i32
    return %arg0, %c0_i32, %c0_i32_0 : i32, i32, i32
  }
  func.func @transform_7(%arg0: i32) -> (i32, i32, i32) {
    %c0_i32 = arith.constant 0 : i32
    %c0_i32_0 = arith.constant 0 : i32
    %c0_i32_1 = arith.constant 0 : i32
    return %arg0, %c0_i32, %c0_i32_0 : i32, i32, i32
  }
  func.func @transform_8(%arg0: i32) -> (i32, i32, i32) {
    %c0_i32 = arith.constant 0 : i32
    %c0_i32_0 = arith.constant 0 : i32
    %c0_i32_1 = arith.constant 0 : i32
    return %arg0, %c0_i32, %c0_i32_0 : i32, i32, i32
  }
  func.func @transform_9(%arg0: i32) -> (i32, i32, i32) {
    %c0_i32 = arith.constant 0 : i32
    %c0_i32_0 = arith.constant 0 : i32
    %c0_i32_1 = arith.constant 0 : i32
    return %arg0, %c0_i32, %c0_i32_0 : i32, i32, i32
  }
  func.func @transform_10(%arg0: i32) -> (i32, i32, i32) {
    %c0_i32 = arith.constant 0 : i32
    %c0_i32_0 = arith.constant 0 : i32
    %c0_i32_1 = arith.constant 0 : i32
    return %arg0, %c0_i32, %c0_i32_0 : i32, i32, i32
  }
  func.func @transform_11(%arg0: i32) -> (i32, i32, i32) {
    %c0_i32 = arith.constant 0 : i32
    %c0_i32_0 = arith.constant 0 : i32
    %c0_i32_1 = arith.constant 0 : i32
    return %arg0, %c0_i32, %c0_i32_0 : i32, i32, i32
  }
  func.func @transform_12(%arg0: i32) -> (i32, i32, i32) {
    %c0_i32 = arith.constant 0 : i32
    %c0_i32_0 = arith.constant 0 : i32
    %c0_i32_1 = arith.constant 0 : i32
    return %arg0, %c0_i32, %c0_i32_0 : i32, i32, i32
  }
  func.func @transform_13(%arg0: i32) -> (i32, i32, i32) {
    %c0_i32 = arith.constant 0 : i32
    %c0_i32_0 = arith.constant 0 : i32
    %c0_i32_1 = arith.constant 0 : i32
    return %arg0, %c0_i32, %c0_i32_0 : i32, i32, i32
  }
  func.func @transform_14(%arg0: i32) -> (i32, i32, i32) {
    %c0_i32 = arith.constant 0 : i32
    %c0_i32_0 = arith.constant 0 : i32
    %c0_i32_1 = arith.constant 0 : i32
    return %arg0, %c0_i32, %c0_i32_0 : i32, i32, i32
  }
  func.func @transform_15(%arg0: i32) -> (i32, i32, i32) {
    %c0_i32 = arith.constant 0 : i32
    %c0_i32_0 = arith.constant 0 : i32
    %c0_i32_1 = arith.constant 0 : i32
    return %arg0, %c0_i32, %c0_i32_0 : i32, i32, i32
  }
  func.func @transform_16(%arg0: i32) -> (i32, i32, i32) {
    %c0_i32 = arith.constant 0 : i32
    %c0_i32_0 = arith.constant 0 : i32
    %c0_i32_1 = arith.constant 0 : i32
    return %arg0, %c0_i32, %c0_i32_0 : i32, i32, i32
  }
}

module attributes {stable_mosaic.version = 11 : i64} {
  func.func @_head_kernel(%arg0: i32, %arg1: memref<2x64xf32, #tpu.memory_space<vmem>>, %arg2: memref<2x64xf32, #tpu.memory_space<vmem>>, %arg3: memref<2x64xf32, #tpu.memory_space<vmem>>, %arg4: memref<1x64xf32, #tpu.memory_space<vmem>>, %arg5: memref<1x64xf32, #tpu.memory_space<vmem>>, %arg6: memref<192x192xf32, #tpu.memory_space<vmem>>, %arg7: memref<1x192xf32, #tpu.memory_space<vmem>>, %arg8: memref<192x192xf32, #tpu.memory_space<vmem>>, %arg9: memref<1x192xf32, #tpu.memory_space<vmem>>, %arg10: memref<1x192xf32, #tpu.memory_space<vmem>>, %arg11: memref<1x192xf32, #tpu.memory_space<vmem>>, %arg12: memref<192x4xf32, #tpu.memory_space<vmem>>, %arg13: memref<1x4xf32, #tpu.memory_space<vmem>>, %arg14: memref<2x4xf32, #tpu.memory_space<vmem>>) attributes {dimension_semantics = [#tpu.dimension_semantics<arbitrary>], iteration_bounds = array<i64: 1>, scalar_prefetch = 0 : i64, scratch_operands = 0 : i64, tpu.core_type = #tpu.core_type<tc>, window_params = [{pipeline_mode = #tpu.pipeline_mode<synchronous>, transform_indices = @transform_0, window_bounds = array<i64: 2, 64>}, {pipeline_mode = #tpu.pipeline_mode<synchronous>, transform_indices = @transform_1, window_bounds = array<i64: 2, 64>}, {pipeline_mode = #tpu.pipeline_mode<synchronous>, transform_indices = @transform_2, window_bounds = array<i64: 2, 64>}, {pipeline_mode = #tpu.pipeline_mode<synchronous>, transform_indices = @transform_3, window_bounds = array<i64: 1, 64>}, {pipeline_mode = #tpu.pipeline_mode<synchronous>, transform_indices = @transform_4, window_bounds = array<i64: 1, 64>}, {pipeline_mode = #tpu.pipeline_mode<synchronous>, transform_indices = @transform_5, window_bounds = array<i64: 192, 192>}, {pipeline_mode = #tpu.pipeline_mode<synchronous>, transform_indices = @transform_6, window_bounds = array<i64: 1, 192>}, {pipeline_mode = #tpu.pipeline_mode<synchronous>, transform_indices = @transform_7, window_bounds = array<i64: 192, 192>}, {pipeline_mode = #tpu.pipeline_mode<synchronous>, transform_indices = @transform_8, window_bounds = array<i64: 1, 192>}, {pipeline_mode = #tpu.pipeline_mode<synchronous>, transform_indices = @transform_9, window_bounds = array<i64: 1, 192>}, {pipeline_mode = #tpu.pipeline_mode<synchronous>, transform_indices = @transform_10, window_bounds = array<i64: 1, 192>}, {pipeline_mode = #tpu.pipeline_mode<synchronous>, transform_indices = @transform_11, window_bounds = array<i64: 192, 4>}, {pipeline_mode = #tpu.pipeline_mode<synchronous>, transform_indices = @transform_12, window_bounds = array<i64: 1, 4>}, {pipeline_mode = #tpu.pipeline_mode<synchronous>, transform_indices = @transform_13, window_bounds = array<i64: 2, 4>}]} {
    %c0 = arith.constant 0 : index
    %c0_0 = arith.constant 0 : index
    %0 = vector.load %arg4[%c0, %c0_0] : memref<1x64xf32, #tpu.memory_space<vmem>>, vector<1x64xf32>
    %c0_1 = arith.constant 0 : index
    %c0_2 = arith.constant 0 : index
    %1 = vector.load %arg5[%c0_1, %c0_2] : memref<1x64xf32, #tpu.memory_space<vmem>>, vector<1x64xf32>
    %c0_3 = arith.constant 0 : index
    %c0_4 = arith.constant 0 : index
    %2 = vector.load %arg1[%c0_3, %c0_4] : memref<2x64xf32, #tpu.memory_space<vmem>>, vector<2x64xf32>
    %cst = arith.constant dense<0.000000e+00> : vector<2xf32>
    %3 = vector.multi_reduction <add>, %2, %cst [1] : vector<2x64xf32> to vector<2xf32>
    %4 = vector.shape_cast %3 : vector<2xf32> to vector<2x1xf32>
    %cst_5 = arith.constant 6.400000e+01 : f32
    %5 = vector.broadcast %cst_5 : f32 to vector<2x1xf32>
    %6 = arith.divf %4, %5 : vector<2x1xf32>
    %7 = vector.broadcast %6 : vector<2x1xf32> to vector<2x64xf32>
    %8 = arith.subf %2, %7 : vector<2x64xf32>
    %9 = arith.mulf %8, %8 : vector<2x64xf32>
    %cst_6 = arith.constant dense<0.000000e+00> : vector<2xf32>
    %10 = vector.multi_reduction <add>, %9, %cst_6 [1] : vector<2x64xf32> to vector<2xf32>
    %11 = vector.shape_cast %10 : vector<2xf32> to vector<2x1xf32>
    %cst_7 = arith.constant 6.400000e+01 : f32
    %12 = vector.broadcast %cst_7 : f32 to vector<2x1xf32>
    %13 = arith.divf %11, %12 : vector<2x1xf32>
    %cst_8 = arith.constant 9.99999974E-6 : f32
    %14 = vector.broadcast %cst_8 : f32 to vector<2x1xf32>
    %15 = arith.addf %13, %14 : vector<2x1xf32>
    %16 = math.rsqrt %15 : vector<2x1xf32>
    %17 = vector.broadcast %16 : vector<2x1xf32> to vector<2x64xf32>
    %18 = arith.mulf %8, %17 : vector<2x64xf32>
    %19 = vector.broadcast %0 : vector<1x64xf32> to vector<2x64xf32>
    %20 = arith.mulf %18, %19 : vector<2x64xf32>
    %21 = vector.broadcast %1 : vector<1x64xf32> to vector<2x64xf32>
    %22 = arith.addf %20, %21 : vector<2x64xf32>
    %c0_9 = arith.constant 0 : index
    %c0_10 = arith.constant 0 : index
    %23 = vector.load %arg2[%c0_9, %c0_10] : memref<2x64xf32, #tpu.memory_space<vmem>>, vector<2x64xf32>
    %cst_11 = arith.constant dense<0.000000e+00> : vector<2xf32>
    %24 = vector.multi_reduction <add>, %23, %cst_11 [1] : vector<2x64xf32> to vector<2xf32>
    %25 = vector.shape_cast %24 : vector<2xf32> to vector<2x1xf32>
    %cst_12 = arith.constant 6.400000e+01 : f32
    %26 = vector.broadcast %cst_12 : f32 to vector<2x1xf32>
    %27 = arith.divf %25, %26 : vector<2x1xf32>
    %28 = vector.broadcast %27 : vector<2x1xf32> to vector<2x64xf32>
    %29 = arith.subf %23, %28 : vector<2x64xf32>
    %30 = arith.mulf %29, %29 : vector<2x64xf32>
    %cst_13 = arith.constant dense<0.000000e+00> : vector<2xf32>
    %31 = vector.multi_reduction <add>, %30, %cst_13 [1] : vector<2x64xf32> to vector<2xf32>
    %32 = vector.shape_cast %31 : vector<2xf32> to vector<2x1xf32>
    %cst_14 = arith.constant 6.400000e+01 : f32
    %33 = vector.broadcast %cst_14 : f32 to vector<2x1xf32>
    %34 = arith.divf %32, %33 : vector<2x1xf32>
    %cst_15 = arith.constant 9.99999974E-6 : f32
    %35 = vector.broadcast %cst_15 : f32 to vector<2x1xf32>
    %36 = arith.addf %34, %35 : vector<2x1xf32>
    %37 = math.rsqrt %36 : vector<2x1xf32>
    %38 = vector.broadcast %37 : vector<2x1xf32> to vector<2x64xf32>
    %39 = arith.mulf %29, %38 : vector<2x64xf32>
    %40 = vector.broadcast %0 : vector<1x64xf32> to vector<2x64xf32>
    %41 = arith.mulf %39, %40 : vector<2x64xf32>
    %42 = vector.broadcast %1 : vector<1x64xf32> to vector<2x64xf32>
    %43 = arith.addf %41, %42 : vector<2x64xf32>
    %c0_16 = arith.constant 0 : index
    %c0_17 = arith.constant 0 : index
    %44 = vector.load %arg3[%c0_16, %c0_17] : memref<2x64xf32, #tpu.memory_space<vmem>>, vector<2x64xf32>
    %cst_18 = arith.constant dense<0.000000e+00> : vector<2xf32>
    %45 = vector.multi_reduction <add>, %44, %cst_18 [1] : vector<2x64xf32> to vector<2xf32>
    %46 = vector.shape_cast %45 : vector<2xf32> to vector<2x1xf32>
    %cst_19 = arith.constant 6.400000e+01 : f32
    %47 = vector.broadcast %cst_19 : f32 to vector<2x1xf32>
    %48 = arith.divf %46, %47 : vector<2x1xf32>
    %49 = vector.broadcast %48 : vector<2x1xf32> to vector<2x64xf32>
    %50 = arith.subf %44, %49 : vector<2x64xf32>
    %51 = arith.mulf %50, %50 : vector<2x64xf32>
    %cst_20 = arith.constant dense<0.000000e+00> : vector<2xf32>
    %52 = vector.multi_reduction <add>, %51, %cst_20 [1] : vector<2x64xf32> to vector<2xf32>
    %53 = vector.shape_cast %52 : vector<2xf32> to vector<2x1xf32>
    %cst_21 = arith.constant 6.400000e+01 : f32
    %54 = vector.broadcast %cst_21 : f32 to vector<2x1xf32>
    %55 = arith.divf %53, %54 : vector<2x1xf32>
    %cst_22 = arith.constant 9.99999974E-6 : f32
    %56 = vector.broadcast %cst_22 : f32 to vector<2x1xf32>
    %57 = arith.addf %55, %56 : vector<2x1xf32>
    %58 = math.rsqrt %57 : vector<2x1xf32>
    %59 = vector.broadcast %58 : vector<2x1xf32> to vector<2x64xf32>
    %60 = arith.mulf %50, %59 : vector<2x64xf32>
    %61 = vector.broadcast %0 : vector<1x64xf32> to vector<2x64xf32>
    %62 = arith.mulf %60, %61 : vector<2x64xf32>
    %63 = vector.broadcast %1 : vector<1x64xf32> to vector<2x64xf32>
    %64 = arith.addf %62, %63 : vector<2x64xf32>
    %65 = tpu.concatenate %22, %43, %64 in 1 : vector<2x64xf32>, vector<2x64xf32>, vector<2x64xf32> -> vector<2x192xf32>
    %c0_23 = arith.constant 0 : index
    %c0_24 = arith.constant 0 : index
    %66 = vector.load %arg6[%c0_23, %c0_24] : memref<192x192xf32, #tpu.memory_space<vmem>>, vector<192x192xf32>
    %cst_25 = arith.constant dense<0.000000e+00> : vector<2x192xf32>
    %67 = tpu.matmul %65, %66, %cst_25 {dimension_numbers = #tpu.dot_dimension_numbers<[1], [0], [0], [1], [0, 0, 1, 1], [], []>} : vector<2x192xf32>, vector<192x192xf32>, vector<2x192xf32> -> vector<2x192xf32>
    %c0_26 = arith.constant 0 : index
    %c0_27 = arith.constant 0 : index
    %68 = vector.load %arg7[%c0_26, %c0_27] : memref<1x192xf32, #tpu.memory_space<vmem>>, vector<1x192xf32>
    %69 = vector.broadcast %68 : vector<1x192xf32> to vector<2x192xf32>
    %70 = arith.addf %67, %69 : vector<2x192xf32>
    %cst_28 = arith.constant 0.000000e+00 : f32
    %71 = vector.broadcast %cst_28 : f32 to vector<2x192xf32>
    %72 = arith.maximumf %70, %71 : vector<2x192xf32>
    %c0_29 = arith.constant 0 : index
    %c0_30 = arith.constant 0 : index
    %73 = vector.load %arg8[%c0_29, %c0_30] : memref<192x192xf32, #tpu.memory_space<vmem>>, vector<192x192xf32>
    %cst_31 = arith.constant dense<0.000000e+00> : vector<2x192xf32>
    %74 = tpu.matmul %72, %73, %cst_31 {dimension_numbers = #tpu.dot_dimension_numbers<[1], [0], [0], [1], [0, 0, 1, 1], [], []>} : vector<2x192xf32>, vector<192x192xf32>, vector<2x192xf32> -> vector<2x192xf32>
    %75 = arith.addf %65, %74 : vector<2x192xf32>
    %c0_32 = arith.constant 0 : index
    %c0_33 = arith.constant 0 : index
    %76 = vector.load %arg9[%c0_32, %c0_33] : memref<1x192xf32, #tpu.memory_space<vmem>>, vector<1x192xf32>
    %77 = vector.broadcast %76 : vector<1x192xf32> to vector<2x192xf32>
    %78 = arith.addf %75, %77 : vector<2x192xf32>
    %c0_34 = arith.constant 0 : index
    %c0_35 = arith.constant 0 : index
    %79 = vector.load %arg10[%c0_34, %c0_35] : memref<1x192xf32, #tpu.memory_space<vmem>>, vector<1x192xf32>
    %c0_36 = arith.constant 0 : index
    %c0_37 = arith.constant 0 : index
    %80 = vector.load %arg11[%c0_36, %c0_37] : memref<1x192xf32, #tpu.memory_space<vmem>>, vector<1x192xf32>
    %cst_38 = arith.constant dense<0.000000e+00> : vector<2xf32>
    %81 = vector.multi_reduction <add>, %78, %cst_38 [1] : vector<2x192xf32> to vector<2xf32>
    %82 = vector.shape_cast %81 : vector<2xf32> to vector<2x1xf32>
    %cst_39 = arith.constant 1.920000e+02 : f32
    %83 = vector.broadcast %cst_39 : f32 to vector<2x1xf32>
    %84 = arith.divf %82, %83 : vector<2x1xf32>
    %85 = vector.broadcast %84 : vector<2x1xf32> to vector<2x192xf32>
    %86 = arith.subf %78, %85 : vector<2x192xf32>
    %87 = arith.mulf %86, %86 : vector<2x192xf32>
    %cst_40 = arith.constant dense<0.000000e+00> : vector<2xf32>
    %88 = vector.multi_reduction <add>, %87, %cst_40 [1] : vector<2x192xf32> to vector<2xf32>
    %89 = vector.shape_cast %88 : vector<2xf32> to vector<2x1xf32>
    %cst_41 = arith.constant 1.920000e+02 : f32
    %90 = vector.broadcast %cst_41 : f32 to vector<2x1xf32>
    %91 = arith.divf %89, %90 : vector<2x1xf32>
    %cst_42 = arith.constant 9.99999974E-6 : f32
    %92 = vector.broadcast %cst_42 : f32 to vector<2x1xf32>
    %93 = arith.addf %91, %92 : vector<2x1xf32>
    %94 = math.rsqrt %93 : vector<2x1xf32>
    %95 = vector.broadcast %94 : vector<2x1xf32> to vector<2x192xf32>
    %96 = arith.mulf %86, %95 : vector<2x192xf32>
    %97 = vector.broadcast %79 : vector<1x192xf32> to vector<2x192xf32>
    %98 = arith.mulf %96, %97 : vector<2x192xf32>
    %99 = vector.broadcast %80 : vector<1x192xf32> to vector<2x192xf32>
    %100 = arith.addf %98, %99 : vector<2x192xf32>
    %c0_43 = arith.constant 0 : index
    %c0_44 = arith.constant 0 : index
    %101 = vector.load %arg12[%c0_43, %c0_44] : memref<192x4xf32, #tpu.memory_space<vmem>>, vector<192x4xf32>
    %cst_45 = arith.constant dense<0.000000e+00> : vector<2x4xf32>
    %102 = tpu.matmul %100, %101, %cst_45 {dimension_numbers = #tpu.dot_dimension_numbers<[1], [0], [0], [1], [0, 0, 1, 1], [], []>} : vector<2x192xf32>, vector<192x4xf32>, vector<2x4xf32> -> vector<2x4xf32>
    %c0_46 = arith.constant 0 : index
    %c0_47 = arith.constant 0 : index
    %103 = vector.load %arg13[%c0_46, %c0_47] : memref<1x4xf32, #tpu.memory_space<vmem>>, vector<1x4xf32>
    %104 = vector.broadcast %103 : vector<1x4xf32> to vector<2x4xf32>
    %105 = arith.addf %102, %104 : vector<2x4xf32>
    %c0_48 = arith.constant 0 : index
    %c0_49 = arith.constant 0 : index
    %106 = vector.load %arg14[%c0_48, %c0_49] : memref<2x4xf32, #tpu.memory_space<vmem>>, vector<2x4xf32>
    tpu.vector_store %arg14[%c0_48, %c0_49], %105 {strides = array<i32>} : memref<2x4xf32, #tpu.memory_space<vmem>>, vector<2x4xf32>,
    return
  }
  func.func @transform_0(%arg0: i32) -> (i32, i32) {
    %c0_i32 = arith.constant 0 : i32
    %c0_i32_0 = arith.constant 0 : i32
    %c0_i32_1 = arith.constant 0 : i32
    return %c0_i32, %c0_i32_0 : i32, i32
  }
  func.func @transform_1(%arg0: i32) -> (i32, i32) {
    %c0_i32 = arith.constant 0 : i32
    %c0_i32_0 = arith.constant 0 : i32
    %c0_i32_1 = arith.constant 0 : i32
    return %c0_i32, %c0_i32_0 : i32, i32
  }
  func.func @transform_2(%arg0: i32) -> (i32, i32) {
    %c0_i32 = arith.constant 0 : i32
    %c0_i32_0 = arith.constant 0 : i32
    %c0_i32_1 = arith.constant 0 : i32
    return %c0_i32, %c0_i32_0 : i32, i32
  }
  func.func @transform_3(%arg0: i32) -> (i32, i32) {
    %c0_i32 = arith.constant 0 : i32
    %c0_i32_0 = arith.constant 0 : i32
    %c0_i32_1 = arith.constant 0 : i32
    return %c0_i32, %c0_i32_0 : i32, i32
  }
  func.func @transform_4(%arg0: i32) -> (i32, i32) {
    %c0_i32 = arith.constant 0 : i32
    %c0_i32_0 = arith.constant 0 : i32
    %c0_i32_1 = arith.constant 0 : i32
    return %c0_i32, %c0_i32_0 : i32, i32
  }
  func.func @transform_5(%arg0: i32) -> (i32, i32) {
    %c0_i32 = arith.constant 0 : i32
    %c0_i32_0 = arith.constant 0 : i32
    %c0_i32_1 = arith.constant 0 : i32
    return %c0_i32, %c0_i32_0 : i32, i32
  }
  func.func @transform_6(%arg0: i32) -> (i32, i32) {
    %c0_i32 = arith.constant 0 : i32
    %c0_i32_0 = arith.constant 0 : i32
    %c0_i32_1 = arith.constant 0 : i32
    return %c0_i32, %c0_i32_0 : i32, i32
  }
  func.func @transform_7(%arg0: i32) -> (i32, i32) {
    %c0_i32 = arith.constant 0 : i32
    %c0_i32_0 = arith.constant 0 : i32
    %c0_i32_1 = arith.constant 0 : i32
    return %c0_i32, %c0_i32_0 : i32, i32
  }
  func.func @transform_8(%arg0: i32) -> (i32, i32) {
    %c0_i32 = arith.constant 0 : i32
    %c0_i32_0 = arith.constant 0 : i32
    %c0_i32_1 = arith.constant 0 : i32
    return %c0_i32, %c0_i32_0 : i32, i32
  }
  func.func @transform_9(%arg0: i32) -> (i32, i32) {
    %c0_i32 = arith.constant 0 : i32
    %c0_i32_0 = arith.constant 0 : i32
    %c0_i32_1 = arith.constant 0 : i32
    return %c0_i32, %c0_i32_0 : i32, i32
  }
  func.func @transform_10(%arg0: i32) -> (i32, i32) {
    %c0_i32 = arith.constant 0 : i32
    %c0_i32_0 = arith.constant 0 : i32
    %c0_i32_1 = arith.constant 0 : i32
    return %c0_i32, %c0_i32_0 : i32, i32
  }
  func.func @transform_11(%arg0: i32) -> (i32, i32) {
    %c0_i32 = arith.constant 0 : i32
    %c0_i32_0 = arith.constant 0 : i32
    %c0_i32_1 = arith.constant 0 : i32
    return %c0_i32, %c0_i32_0 : i32, i32
  }
  func.func @transform_12(%arg0: i32) -> (i32, i32) {
    %c0_i32 = arith.constant 0 : i32
    %c0_i32_0 = arith.constant 0 : i32
    %c0_i32_1 = arith.constant 0 : i32
    return %c0_i32, %c0_i32_0 : i32, i32
  }
  func.func @transform_13(%arg0: i32) -> (i32, i32) {
    %c0_i32 = arith.constant 0 : i32
    %c0_i32_0 = arith.constant 0 : i32
    %c0_i32_1 = arith.constant 0 : i32
    return %c0_i32, %c0_i32_0 : i32, i32
  }
}

</mosaic_0001>

<bundles_post_ra>
// kernel: forward.8
= control target key start
LH: loop header
LB: loop body
LE: loop exit
PB: predicated region body
PF: predicated region fallthrough
CT: control target
= control target key end

     0   :  { %vm28_vm0 = vcmask 261120   ;;  %v375_v24 = vmov 32.0   ;;  %s741_s0 = inlined_call_operand.vmem [shape: f32[96,32], index: 0, kind: input, shape index: {}]   ;;  %s742_s1 = inlined_call_operand.vmem [shape: f32[1,32], index: 1, kind: input, shape index: {}]   ;;  %s743_s2 = inlined_call_operand.vmem [shape: f32[1,32], index: 2, kind: input, shape index: {}]   ;;  %s744_s3 = inlined_call_operand.vmem [shape: f32[96,32], index: 3, kind: output, shape index: {}]  }
   0x1   :  { %v399_v0 = vld [vmem:[%s741_s0 + $0x20] sm:$0xff]  ;;  %v16_v1 = vld [vmem:[%s741_s0 + $0x10] sm:$0xff]  ;;  %v19_v6 = vld [vmem:[%s741_s0 + $0x28] sm:$0xff]  ;;  %349 = vrcp.f32 %v375_v24 }
   0x2   :  { %v14_v2 = vld [vmem:[%s741_s0] sm:$0xff]  ;;  %v41_v3 = vsel %vm28_vm0, %v399_v0, 0.0  ;;  %v35_v4 = vsel %vm28_vm0, %v16_v1, 0.0  ;;  %v17_v7 = vld [vmem:[%s741_s0 + $0x18] sm:$0xff]  ;;  %v15_v8 = vld [vmem:[%s741_s0 + $0x8] sm:$0xff]  ;;  %v44_v9 = vsel %vm28_vm0, %v19_v6, 0.0 }
   0x3   :  { %v29_v5 = vsel %vm28_vm0, %v14_v2, 0.0  ;;  %42 = vadd.xlane.f32.xlu2 %v41_v3  ;;  %36 = vadd.xlane.f32.xlu1 %v35_v4  ;;  %v38_v10 = vsel %vm28_vm0, %v17_v7, 0.0  ;;  %v32_v11 = vsel %vm28_vm0, %v15_v8, 0.0  ;;  %v426_v12 = vld [vmem:[%s741_s0 + $0x40] sm:$0xff]  ;;  %v431_v13 = vld [vmem:[%s741_s0 + $0x38] sm:$0xff]  ;;  %v436_v14 = vld [vmem:[%s741_s0 + $0x30] sm:$0xff] }
   0x4   :  { %30 = vadd.xlane.f32.xlu0 %v29_v5  ;;  %v53_v15 = vsel %vm28_vm0, %v426_v12, 0.0  ;;  %v50_v16 = vsel %vm28_vm0, %v431_v13, 0.0  ;;  %v47_v17 = vsel %vm28_vm0, %v436_v14, 0.0  ;;  %v447_v18 = vld [vmem:[%s741_s0 + $0x58] sm:$0xff]  ;;  %v452_v19 = vld [vmem:[%s741_s0 + $0x50] sm:$0xff]  ;;  %v457_v20 = vld [vmem:[%s741_s0 + $0x48] sm:$0xff] }
   0x5   :  { %v62_v21 = vsel %vm28_vm0, %v447_v18, 0.0  ;;  %v59_v22 = vsel %vm28_vm0, %v452_v19, 0.0  ;;  %v56_v23 = vsel %vm28_vm0, %v457_v20, 0.0 }
   0x7   :  { %v350_v25 = vpop.eup %349 }
   0x8   :  { %v66_v26 = vmul.f32 32.0, %v350_v25  ;;  %vm70_vm1 = vweird.f32 %v350_v25 }
   0xa   :  { %v67_v27 = vsub.f32 1.0, %v66_v26 }
   0xb   :  { %45 = vadd.xlane.f32.xlu2 %v44_v9  ;;  %39 = vadd.xlane.f32.xlu1 %v38_v10 }
   0xc   :  { %33 = vadd.xlane.f32.xlu0 %v32_v11  ;;  %v68_v28 = vmul.f32 %v350_v25, %v67_v27 }
   0xe   :  { %v69_v29 = vadd.f32 %v350_v25, %v68_v28 }
  0x10   :  { %v465_v30 = vsel %vm70_vm1, %v350_v25, %v69_v29 }
  0x13   :  { %54 = vadd.xlane.f32.xlu2 %v53_v15  ;;  %51 = vadd.xlane.f32.xlu1 %v50_v16 }
  0x14   :  { %48 = vadd.xlane.f32.xlu0 %v47_v17 }
  0x1b   :  { %63 = vadd.xlane.f32.xlu2 %v62_v21  ;;  %60 = vadd.xlane.f32.xlu1 %v59_v22 }
  0x1c   :  { %57 = vadd.xlane.f32.xlu0 %v56_v23 }
  0x76   :  { %v43_v31 = vpop.xlane.xlu2 %42  ;;  %v37_v32 = vpop.xlane.xlu1 %36 }
  0x77   :  { %v74_v33 = vmul.f32 %v465_v30, %v37_v32  ;;  %v31_v34 = vpop.xlane.xlu0 %30  ;;  %v76_v50 = vmul.f32 %v465_v30, %v43_v31 }
  0x78   :  { %v72_v35 = vmul.f32 %v465_v30, %v31_v34 }
  0x79   :  { %v469_v36 = vsub.f32 %v16_v1, %v74_v33  ;;  %v498_v57 = vsub.f32 %v399_v0, %v76_v50 }
  0x7a   :  { %v471_v37 = vsub.f32 %v14_v2, %v72_v35 }
  0x7b   :  { %v98_v38 = vmul.f32 %v469_v36, %v469_v36  ;;  %v100_v3 = vmul.f32 %v498_v57, %v498_v57 }
  0x7c   :  { %v96_v39 = vmul.f32 %v471_v37, %v471_v37 }
  0x7d   :  { %v114_v40 = vsel %vm28_vm0, %v98_v38, 0.0  ;;  %v120_v9 = vsel %vm28_vm0, %v100_v3, 0.0 }
  0x7e   :  { %v46_v41 = vpop.xlane.xlu2 %45  ;;  %115 = vadd.xlane.f32.xlu2 %v114_v40  ;;  %v40_v42 = vpop.xlane.xlu1 %39  ;;  %v108_v43 = vsel %vm28_vm0, %v96_v39, 0.0 }
  0x7f   :  { %v77_v44 = vmul.f32 %v465_v30, %v46_v41  ;;  %v75_v45 = vmul.f32 %v465_v30, %v40_v42  ;;  %109 = vadd.xlane.f32.xlu0 %v108_v43  ;;  %v34_v46 = vpop.xlane.xlu0 %33 }
  0x80   :  { %v73_v47 = vmul.f32 %v465_v30, %v34_v46 }
  0x81   :  { %v482_v48 = vsub.f32 %v19_v6, %v77_v44  ;;  %v484_v49 = vsub.f32 %v17_v7, %v75_v45 }
  0x82   :  { %v487_v51 = vsub.f32 %v15_v8, %v73_v47 }
  0x83   :  { %v101_v52 = vmul.f32 %v482_v48, %v482_v48  ;;  %v99_v53 = vmul.f32 %v484_v49, %v484_v49 }
  0x84   :  { %v97_v54 = vmul.f32 %v487_v51, %v487_v51 }
  0x85   :  { %v123_v55 = vsel %vm28_vm0, %v101_v52, 0.0  ;;  %v117_v56 = vsel %vm28_vm0, %v99_v53, 0.0 }
  0x86   :  { %v55_v58 = vpop.xlane.xlu2 %54  ;;  %124 = vadd.xlane.f32.xlu2 %v123_v55  ;;  %v111_v59 = vsel %vm28_vm0, %v97_v54, 0.0  ;;  %v52_v60 = vpop.xlane.xlu1 %51 }
  0x87   :  { %v80_v61 = vmul.f32 %v465_v30, %v55_v58  ;;  %118 = vadd.xlane.f32.xlu0 %v117_v56  ;;  %112 = vadd.xlane.f32.xlu1 %v111_v59  ;;  %v49_v62 = vpop.xlane.xlu0 %48  ;;  %v79_v1 = vmul.f32 %v465_v30, %v52_v60 }
  0x88   :  { %v78_v63 = vmul.f32 %v465_v30, %v49_v62 }
  0x89   :  { %v505_v2 = vsub.f32 %v426_v12, %v80_v61  ;;  %v515_v5 = vsub.f32 %v431_v13, %v79_v1 }
  0x8a   :  { %v508_v0 = vsub.f32 %v436_v14, %v78_v63 }
  0x8b   :  { %v104_v4 = vmul.f32 %v505_v2, %v505_v2  ;;  %v103_v16 = vmul.f32 %v515_v5, %v515_v5 }
  0x8c   :  { %v102_v6 = vmul.f32 %v508_v0, %v508_v0 }
  0x8d   :  { %v132_v7 = vsel %vm28_vm0, %v104_v4, 0.0  ;;  %v129_v24 = vsel %vm28_vm0, %v103_v16, 0.0 }
  0x8e   :  { %v64_v8 = vpop.xlane.xlu2 %63  ;;  %133 = vadd.xlane.f32.xlu2 %v132_v7  ;;  %v126_v10 = vsel %vm28_vm0, %v102_v6, 0.0  ;;  %v61_v11 = vpop.xlane.xlu1 %60 }
  0x8f   :  { %v83_v12 = vmul.f32 %v465_v30, %v64_v8  ;;  %121 = vadd.xlane.f32.xlu1 %v120_v9  ;;  %127 = vadd.xlane.f32.xlu0 %v126_v10  ;;  %v58_v14 = vpop.xlane.xlu0 %57  ;;  %v82_v15 = vmul.f32 %v465_v30, %v61_v11  ;;  %v578_v10 = vld [vmem:[%s742_s1] ss:$0 sm:$0xff] }
  0x90   :  { %v81_v13 = vmul.f32 %v465_v30, %v58_v14 }
  0x91   :  { %v528_v17 = vsub.f32 %v447_v18, %v83_v12  ;;  %v536_v23 = vsub.f32 %v452_v19, %v82_v15 }
  0x92   :  { %v531_v21 = vsub.f32 %v457_v20, %v81_v13 }
  0x93   :  { %v107_v22 = vmul.f32 %v528_v17, %v528_v17  ;;  %v106_v20 = vmul.f32 %v536_v23, %v536_v23 }
  0x94   :  { %v105_v25 = vmul.f32 %v531_v21, %v531_v21 }
  0x95   :  { %v141_v26 = vsel %vm28_vm0, %v107_v22, 0.0  ;;  %v138_v27 = vsel %vm28_vm0, %v106_v20, 0.0  ;;  %v595_v22 = vld [vmem:[%s743_s2] ss:$0 sm:$0xff] }
  0x96   :  { %142 = vadd.xlane.f32.xlu2 %v141_v26  ;;  %v135_v18 = vsel %vm28_vm0, %v105_v25, 0.0 }
  0x97   :  { %130 = vadd.xlane.f32.xlu1 %v129_v24  ;;  %136 = vadd.xlane.f32.xlu0 %v135_v18 }
  0x9f   :  { %139 = vadd.xlane.f32.xlu1 %v138_v27 }
  0xf1   :  { %v116_v19 = vpop.xlane.xlu2 %115 }
  0xf2   :  { %v146_v28 = vmul.f32 %v116_v19, %v465_v30  ;;  %v110_v29 = vpop.xlane.xlu0 %109 }
  0xf3   :  { %v144_v31 = vmul.f32 %v110_v29, %v465_v30 }
  0xf4   :  { %v158_v32 = vadd.f32 1e-05, %v146_v28 }
  0xf5   :  { %v156_v33 = vadd.f32 1e-05, %v144_v31 }
  0xf6   :  { %351 = vrsqrt.f32 %v158_v32  ;;  %vm194_vm2 = vweird.f32 %v158_v32 }
  0xf7   :  { %353 = vrsqrt.f32 %v156_v33  ;;  %vm174_vm4 = vweird.f32 %v156_v33 }
  0xf9   :  { %v125_v34 = vpop.xlane.xlu2 %124 }
  0xfa   :  { %v149_v35 = vmul.f32 %v125_v34, %v465_v30  ;;  %v113_v38 = vpop.xlane.xlu1 %112  ;;  %v119_v39 = vpop.xlane.xlu0 %118 }
  0xfb   :  { %v145_v40 = vmul.f32 %v113_v38, %v465_v30  ;;  %v147_v41 = vmul.f32 %v119_v39, %v465_v30 }
  0xfc   :  { %v352_v42 = vpop.eup %351  ;;  %v551_v43 = vadd.f32 1e-05, %v149_v35 }
  0xfd   :  { %v354_v44 = vpop.eup %353  ;;  %v189_v45 = vmul.f32 %v352_v42, %v158_v32  ;;  %v553_v46 = vadd.f32 1e-05, %v145_v40  ;;  %v555_v47 = vadd.f32 1e-05, %v147_v41  ;;  %vm195_vm3 = vweird.f32 %v352_v42 }
  0xfe   :  { %v169_v50 = vmul.f32 %v354_v44, %v156_v33  ;;  %355 = vrsqrt.f32 %v551_v43  ;;  %vm175_vm5 = vweird.f32 %v354_v44  ;;  %vm224_vm6 = vweird.f32 %v551_v43  ;;  %vm196_vm7 = vmor %vm194_vm2, %vm195_vm3 }
  0xff   :  { %v190_v52 = vmul.f32 %v352_v42, %v189_v45  ;;  %357 = vrsqrt.f32 %v553_v46  ;;  %vm176_vm8 = vmor %vm174_vm4, %vm175_vm5  ;;  %vm204_vm9 = vweird.f32 %v555_v47  ;;  %vm184_vm14 = vweird.f32 %v553_v46 }
 0x100   :  { %v170_v53 = vmul.f32 %v354_v44, %v169_v50  ;;  %359 = vrsqrt.f32 %v555_v47 }
 0x101   :  { %v191_v54 = vmul.f32 0.5, %v190_v52  ;;  %v134_v55 = vpop.xlane.xlu2 %133 }
 0x102   :  { %v171_v56 = vmul.f32 0.5, %v170_v53  ;;  %v152_v58 = vmul.f32 %v134_v55, %v465_v30  ;;  %v122_v59 = vpop.xlane.xlu1 %121  ;;  %v128_v62 = vpop.xlane.xlu0 %127 }
 0x103   :  { %v192_v60 = vsub.f32 1.5, %v191_v54  ;;  %v148_v61 = vmul.f32 %v122_v59, %v465_v30  ;;  %v150_v14 = vmul.f32 %v128_v62, %v465_v30 }
 0x104   :  { %v562_v63 = vpop.eup %355  ;;  %v172_v1 = vsub.f32 1.5, %v171_v56  ;;  %v564_v3 = vadd.f32 1e-05, %v152_v58 }
 0x105   :  { %v566_v4 = vpop.eup %357  ;;  %v193_v6 = vmul.f32 %v352_v42, %v192_v60  ;;  %v219_v7 = vmul.f32 %v562_v63, %v551_v43  ;;  %v571_v8 = vadd.f32 1e-05, %v148_v61  ;;  %vm225_vm10 = vweird.f32 %v562_v63 }
 0x106   :  { %v573_v9 = vpop.eup %359  ;;  %v173_v11 = vmul.f32 %v354_v44, %v172_v1  ;;  %v179_v12 = vmul.f32 %v566_v4, %v553_v46  ;;  %361 = vrsqrt.f32 %v564_v3  ;;  %vm185_vm11 = vweird.f32 %v566_v4  ;;  %vm226_vm13 = vmor %vm224_vm6, %vm225_vm10 }
 0x107   :  { %v197_v13 = vsel %vm196_vm7, %v352_v42, %v193_v6  ;;  %v220_v15 = vmul.f32 %v562_v63, %v219_v7  ;;  %v199_v16 = vmul.f32 %v573_v9, %v555_v47  ;;  %363 = vrsqrt.f32 %v571_v8  ;;  %vm186_vm15 = vmor %vm184_vm14, %vm185_vm11 }
 0x108   :  { %v290_v24 = vmul.f32 %v197_v13, %v469_v36  ;;  %v177_v25 = vsel %vm176_vm8, %v354_v44, %v173_v11  ;;  %v180_v26 = vmul.f32 %v566_v4, %v179_v12  ;;  %v605_v31 = vadd.f32 1e-05, %v150_v14 }
 0x109   :  { %v288_v18 = vmul.f32 %v177_v25, %v471_v37  ;;  %v221_v20 = vmul.f32 0.5, %v220_v15  ;;  %v200_v27 = vmul.f32 %v573_v9, %v199_v16  ;;  %v143_v19 = vpop.xlane.xlu2 %142  ;;  %vm205_vm12 = vweird.f32 %v573_v9 }
 0x10a   :  { %v305_v28 = vmul.f32 %v578_v10, %v290_v24  ;;  %v181_v29 = vmul.f32 0.5, %v180_v26  ;;  %v155_v34 = vmul.f32 %v143_v19, %v465_v30  ;;  %365 = vrsqrt.f32 %v605_v31  ;;  %v131_v39 = vpop.xlane.xlu1 %130  ;;  %v137_v45 = vpop.xlane.xlu0 %136  ;;  %vm206_vm1 = vmor %vm204_vm9, %vm205_vm12 }
 0x10b   :  { %v303_v36 = vmul.f32 %v578_v10, %v288_v18  ;;  %v222_v32 = vsub.f32 1.5, %v221_v20  ;;  %v201_v33 = vmul.f32 0.5, %v200_v27  ;;  %v151_v56 = vmul.f32 %v131_v39, %v465_v30 }
 0x10c   :  { %v609_v37 = vpop.eup %361  ;;  %v320_v35 = vadd.f32 %v595_v22, %v305_v28  ;;  %v182_v38 = vsub.f32 1.5, %v181_v29  ;;  %v628_v52 = vadd.f32 1e-05, %v155_v34  ;;  %v153_v60 = vmul.f32 %v137_v45, %v465_v30 }
 0x10d   :  { %v318_v40 = vadd.f32 %v595_v22, %v303_v36  ;;  %v223_v41 = vmul.f32 %v562_v63, %v222_v32  ;;  %v202_v42 = vsub.f32 1.5, %v201_v33  ;;  %v249_v44 = vmul.f32 %v609_v37, %v564_v3  ;;  %v364_v53 = vpop.eup %363 }
 0x10e   :  { %332 = vst.msk [vmem:[%s744_s3 + $0x10] sm:$0xff] %vm28_vm0, %v320_v35  ;;  %v183_v50 = vmul.f32 %v566_v4, %v182_v38  ;;  %v209_v59 = vmul.f32 %v364_v53, %v571_v8  ;;  %367 = vrsqrt.f32 %v628_v52  ;;  %vm254_vm2 = vweird.f32 %v564_v3 }
 0x10f   :  { %330 = vst.msk [vmem:[%s744_s3] sm:$0xff] %vm28_vm0, %v318_v40  ;;  %v227_v54 = vsel %vm226_vm13, %v562_v63, %v223_v41  ;;  %v203_v43 = vmul.f32 %v573_v9, %v202_v42  ;;  %v250_v55 = vmul.f32 %v609_v37, %v249_v44  ;;  %vm255_vm3 = vweird.f32 %v609_v37 }
 0x110   :  { %v293_v46 = vmul.f32 %v227_v54, %v482_v48  ;;  %v187_v58 = vsel %vm186_vm15, %v566_v4, %v183_v50  ;;  %v366_v1 = vpop.eup %365  ;;  %v210_v47 = vmul.f32 %v364_v53, %v209_v59  ;;  %v659_v14 = vadd.f32 1e-05, %v151_v56  ;;  %vm256_vm4 = vmor %vm254_vm2, %vm255_vm3 }
 0x111   :  { %v289_v61 = vmul.f32 %v187_v58, %v487_v51  ;;  %v207_v62 = vsel %vm206_vm1, %v573_v9, %v203_v43  ;;  %v251_v63 = vmul.f32 0.5, %v250_v55  ;;  %v229_v51 = vmul.f32 %v366_v1, %v605_v31 }
 0x112   :  { %v308_v48 = vmul.f32 %v578_v10, %v293_v46  ;;  %v291_v4 = vmul.f32 %v207_v62, %v484_v49  ;;  %v211_v12 = vmul.f32 0.5, %v210_v47  ;;  %v663_v16 = vadd.f32 1e-05, %v153_v60  ;;  %v140_v26 = vpop.xlane.xlu1 %139 }
 0x113   :  { %v304_v6 = vmul.f32 %v578_v10, %v289_v61  ;;  %v252_v7 = vsub.f32 1.5, %v251_v63  ;;  %v230_v15 = vmul.f32 %v366_v1, %v229_v51  ;;  %vm215_vm5 = vweird.f32 %v364_v53 }
 0x114   :  { %v323_v9 = vadd.f32 %v595_v22, %v308_v48  ;;  %v306_v11 = vmul.f32 %v578_v10, %v291_v4  ;;  %v212_v25 = vsub.f32 1.5, %v211_v12  ;;  %369 = vrsqrt.f32 %v659_v14  ;;  %v368_v18 = vpop.eup %367 }
 0x115   :  { %v319_v13 = vadd.f32 %v595_v22, %v304_v6  ;;  %v253_v49 = vmul.f32 %v609_v37, %v252_v7  ;;  %v231_v27 = vmul.f32 0.5, %v230_v15  ;;  %371 = vrsqrt.f32 %v663_v16 }
 0x116   :  { %335 = vst.msk [vmem:[%s744_s3 + $0x28] sm:$0xff] %vm28_vm0, %v323_v9  ;;  %v321_v24 = vadd.f32 %v595_v22, %v306_v11  ;;  %v213_v19 = vmul.f32 %v364_v53, %v212_v25  ;;  %vm214_vm6 = vweird.f32 %v571_v8  ;;  %v279_v28 = vmul.f32 %v368_v18, %v628_v52 }
 0x117   :  { %331 = vst.msk [vmem:[%s744_s3 + $0x8] sm:$0xff] %vm28_vm0, %v319_v13  ;;  %v257_v20 = vsel %vm256_vm4, %v609_v37, %v253_v49  ;;  %vm216_vm7 = vmor %vm214_vm6, %vm215_vm5  ;;  %v232_v29 = vsub.f32 1.5, %v231_v27  ;;  %vm234_vm8 = vweird.f32 %v605_v31  ;;  %vm235_vm9 = vweird.f32 %v366_v1 }
 0x118   :  { %333 = vst.msk [vmem:[%s744_s3 + $0x18] sm:$0xff] %vm28_vm0, %v321_v24  ;;  %v296_v3 = vmul.f32 %v257_v20, %v505_v2  ;;  %v154_v36 = vmul.f32 %v140_v26, %v465_v30  ;;  %v217_v33 = vsel %vm216_vm7, %v364_v53, %v213_v19  ;;  %v280_v34 = vmul.f32 %v368_v18, %v279_v28  ;;  %vm236_vm10 = vmor %vm234_vm8, %vm235_vm9 }
 0x119   :  { %v292_v37 = vmul.f32 %v217_v33, %v498_v57  ;;  %v233_v35 = vmul.f32 %v366_v1, %v232_v29  ;;  %vm284_vm11 = vweird.f32 %v628_v52  ;;  %vm285_vm12 = vweird.f32 %v368_v18 }
 0x11a   :  { %v311_v32 = vmul.f32 %v578_v10, %v296_v3  ;;  %v166_v2 = vadd.f32 1e-05, %v154_v36  ;;  %v370_v38 = vpop.eup %369  ;;  %v281_v39 = vmul.f32 0.5, %v280_v34  ;;  %vm286_vm13 = vmor %vm284_vm11, %vm285_vm12  ;;  %vm264_vm15 = vweird.f32 %v663_v16 }
 0x11b   :  { %v372_v40 = vpop.eup %371  ;;  %v307_v41 = vmul.f32 %v578_v10, %v292_v37  ;;  %v237_v31 = vsel %vm236_vm10, %v366_v1, %v233_v35  ;;  %v239_v30 = vmul.f32 %v370_v38, %v659_v14  ;;  %vm245_vm14 = vweird.f32 %v370_v38 }
 0x11c   :  { %v326_v8 = vadd.f32 %v595_v22, %v311_v32  ;;  %v294_v57 = vmul.f32 %v237_v31, %v508_v0  ;;  %v282_v42 = vsub.f32 1.5, %v281_v39  ;;  %v259_v44 = vmul.f32 %v372_v40, %v663_v16 }
 0x11d   :  { %v322_v45 = vadd.f32 %v595_v22, %v307_v41  ;;  %v240_v50 = vmul.f32 %v370_v38, %v239_v30  ;;  %373 = vrsqrt.f32 %v166_v2  ;;  %vm265_vm1 = vweird.f32 %v372_v40 }
 0x11e   :  { %338 = vst.msk [vmem:[%s744_s3 + $0x40] sm:$0xff] %vm28_vm0, %v326_v8  ;;  %v309_v53 = vmul.f32 %v578_v10, %v294_v57  ;;  %v283_v52 = vmul.f32 %v368_v18, %v282_v42  ;;  %v260_v54 = vmul.f32 %v372_v40, %v259_v44  ;;  %vm244_vm2 = vweird.f32 %v659_v14  ;;  %vm266_vm4 = vmor %vm264_vm15, %vm265_vm1 }
 0x11f   :  { %334 = vst.msk [vmem:[%s744_s3 + $0x20] sm:$0xff] %vm28_vm0, %v322_v45  ;;  %v241_v43 = vmul.f32 0.5, %v240_v50  ;;  %vm246_vm3 = vmor %vm244_vm2, %vm245_vm14  ;;  %vm274_vm6 = vweird.f32 %v166_v2 }
 0x120   :  { %v324_v0 = vadd.f32 %v595_v22, %v309_v53  ;;  %v287_v55 = vsel %vm286_vm13, %v368_v18, %v283_v52  ;;  %v261_v56 = vmul.f32 0.5, %v260_v54 }
 0x121   :  { %v299_v46 = vmul.f32 %v287_v55, %v528_v17  ;;  %v242_v58 = vsub.f32 1.5, %v241_v43 }
 0x122   :  { %336 = vst.msk [vmem:[%s744_s3 + $0x30] sm:$0xff] %vm28_vm0, %v324_v0  ;;  %v262_v59 = vsub.f32 1.5, %v261_v56 }
 0x123   :  { %v374_v60 = vpop.eup %373  ;;  %v314_v61 = vmul.f32 %v578_v10, %v299_v46  ;;  %v243_v62 = vmul.f32 %v370_v38, %v242_v58 }
 0x124   :  { %v263_v63 = vmul.f32 %v372_v40, %v262_v59  ;;  %v269_v17 = vmul.f32 %v374_v60, %v166_v2  ;;  %vm275_vm5 = vweird.f32 %v374_v60 }
 0x125   :  { %v329_v1 = vadd.f32 %v595_v22, %v314_v61  ;;  %v247_v48 = vsel %vm246_vm3, %v370_v38, %v243_v62  ;;  %vm276_vm7 = vmor %vm274_vm6, %vm275_vm5 }
 0x126   :  { %v295_v4 = vmul.f32 %v247_v48, %v515_v5  ;;  %v267_v47 = vsel %vm266_vm4, %v372_v40, %v263_v63  ;;  %v270_v6 = vmul.f32 %v374_v60, %v269_v17 }
 0x127   :  { %341 = vst.msk [vmem:[%s744_s3 + $0x58] sm:$0xff] %vm28_vm0, %v329_v1  ;;  %v297_v7 = vmul.f32 %v267_v47, %v531_v21 }
 0x128   :  { %v310_v51 = vmul.f32 %v578_v10, %v295_v4  ;;  %v271_v9 = vmul.f32 0.5, %v270_v6 }
 0x129   :  { %v312_v11 = vmul.f32 %v578_v10, %v297_v7 }
 0x12a   :  { %v325_v12 = vadd.f32 %v595_v22, %v310_v51  ;;  %v272_v14 = vsub.f32 1.5, %v271_v9 }
 0x12b   :  { %v327_v5 = vadd.f32 %v595_v22, %v312_v11 }
 0x12c   :  { %337 = vst.msk [vmem:[%s744_s3 + $0x38] sm:$0xff] %vm28_vm0, %v325_v12  ;;  %v273_v13 = vmul.f32 %v374_v60, %v272_v14 }
 0x12d   :  { %339 = vst.msk [vmem:[%s744_s3 + $0x48] sm:$0xff] %vm28_vm0, %v327_v5 }
 0x12e   :  { %v277_v21 = vsel %vm276_vm7, %v374_v60, %v273_v13 }
 0x12f   :  { %v298_v49 = vmul.f32 %v277_v21, %v536_v23 }
 0x131   :  { %v313_v15 = vmul.f32 %v578_v10, %v298_v49 }
 0x133   :  { %v328_v16 = vadd.f32 %v595_v22, %v313_v15 }
 0x135   :  { %340 = vst.msk [vmem:[%s744_s3 + $0x50] sm:$0xff] %vm28_vm0, %v328_v16 }

// kernel: forward.6
= control target key start
LH: loop header
LB: loop body
LE: loop exit
PB: predicated region body
PF: predicated region fallthrough
CT: control target
= control target key end

     0   :  { %s2125_s24 = smov 0   ;;  %s2461_s0 = inlined_call_operand.vmem [shape: f32[6,16,32], index: 0, kind: input, shape index: {}]   ;;  %s2462_s1 = inlined_call_operand.vmem [shape: f32[6,16,32], index: 1, kind: input, shape index: {}]   ;;  %s2463_s2 = inlined_call_operand.vmem [shape: f32[16,16], index: 2, kind: input, shape index: {}]   ;;  %s2464_s3 = inlined_call_operand.vmem [shape: f32[6,1,32], index: 3, kind: input, shape index: {}]   ;;  %s2465_s4 = inlined_call_operand.vmem [shape: f32[6,1,32], index: 4, kind: input, shape index: {}]   ;;  %s2466_s5 = inlined_call_operand.vmem [shape: f32[6,32,32], index: 5, kind: input, shape index: {}]   ;;  %s2467_s6 = inlined_call_operand.vmem [shape: f32[6,1,32], index: 6, kind: input, shape index: {}]   ;;  %s2468_s7 = inlined_call_operand.vmem [shape: f32[6,32,64], index: 7, kind: input, shape index: {}]   ;;  %s2469_s8 = inlined_call_operand.vmem [shape: f32[6,1,64], index: 8, kind: input, shape index: {}]   ;;  %s2470_s9 = inlined_call_operand.vmem [shape: f32[6,32,32], index: 9, kind: input, shape index: {}]   ;;  %s2471_s10 = inlined_call_operand.vmem [shape: f32[6,1,32], index: 10, kind: input, shape index: {}]   ;;  %s2472_s11 = inlined_call_operand.vmem [shape: f32[6,1,32], index: 11, kind: input, shape index: {}]   ;;  %s2473_s12 = inlined_call_operand.vmem [shape: f32[6,1,32], index: 12, kind: input, shape index: {}]   ;;  %s2474_s13 = inlined_call_operand.vmem [shape: f32[6,32,128], index: 13, kind: input, shape index: {}]   ;;  %s2475_s14 = inlined_call_operand.vmem [shape: f32[6,1,128], index: 14, kind: input, shape index: {}]   ;;  %s2476_s15 = inlined_call_operand.vmem [shape: f32[6,128,32], index: 15, kind: input, shape index: {}]   ;;  %s2477_s16 = inlined_call_operand.vmem [shape: f32[6,1,32], index: 16, kind: input, shape index: {}]   ;;  %s2478_s17 = inlined_call_operand.vmem [shape: f32[6,16,32], index: 17, kind: output, shape index: {}]  }
   0x1   :  { %2481 = sst [smem:[#allocation4_spill]] %s2461_s0 }
   0x2   :  { %2482 = sst [smem:[#allocation5_spill]] %s2462_s1 }
   0x3   :  { %2483 = sst [smem:[#allocation6_spill]] %s2478_s17 }
   0x4 LB: > { %2484 = sst [smem:[#allocation2_spill]] %s2025_s24  ;;  %s1857_s25 = sadd.s32 4294967295, %s2025_s24   ;;  %s2025_s24 = sphi %s2125_s24, %s27_s24  }
   0x5   : > { %p1861_p0 = scmp.ge.s32.totalorder %s2025_s24, 1  ;;  %p619_p1 = scmp.lt.s32.totalorder %s2025_s24, 7 }
   0x7   : > { %p620_p2 = pnand %p1861_p0, %p619_p1 }
   0x9   : > { %623 = sbr.rel (%p620_p2) target bundleno = 2275 (0x8e3), region = 88 }
   0xe   : > { %p728_p3 = scmp.lt.s32.totalorder %s1857_s25, 5  ;;  %vm799_vm0 = vcmask 261120   ;;  %s2486_s29 = sld [smem:[#allocation5_spill]]  ;;  %v2027_v8 = vmov 32.0   ;;  %vm999_vm14 = vcmask 64512   ;;  %vm1035_vm15 = vcmask 130048  }
   0xf   : > { %s2487_s19 = sld [smem:[#allocation4_spill]]  ;;  %1973 = vrcp.f32 %v2027_v8  ;;  %s2029_s17 = smov 96  }
  0x10   : > { %s2492_s25 = smov (!%p728_p3, %s1857_s25), 5 }
  0x11   : > { %s2136_s26 = sshll.u32 %s2492_s25, 4  ;;  %s740_s22 = scalar_lea.vmem %s2464_s3, %s2492_s25 }
  0x12   : > { %2485 = sst [smem:[#allocation3_spill]] %s2136_s26  ;;  %s743_s28 = scalar_lea.vmem %s2465_s4, %s2492_s25 }
  0x13   : > { %s751_s30 = scalar_lea.vmem %s2467_s6, %s2492_s25  ;;  %s2197_s18 = sshll.u32 %s2492_s25, 5 }
  0x14   : > { %s737_s0 = scalar_lea.vmem %s2486_s29, %s2136_s26  ;;  %s748_s24 = scalar_lea.vmem %s2466_s5, %s2197_s18 }
  0x15   : > { %v861_v0 = vld [vmem:[%s737_s0] sm:$0xff]  ;;  %s732_s1 = scalar_lea.vmem %s2487_s19, %s2136_s26  ;;  %v862_v4 = vld [vmem:[%s737_s0 + $0x8] sm:$0xff]  ;;  %v1974_v9 = vpop.eup %1973  ;;  %s756_s20 = scalar_lea.vmem %s2468_s7, %s2197_s18  ;;  %v914_v35 = vld [vmem:[%s748_s24 + $0x18] sm:$0xff] }
  0x16   : > { %v863_v1 = vsel %vm799_vm0, %v861_v0, 0.0  ;;  %v2147_v2 = vld [vmem:[%s732_s1] sm:$0xff]  ;;  %v2151_v5 = vld [vmem:[%s732_s1 + $0x8] sm:$0xff]  ;;  %v866_v6 = vsel %vm799_vm0, %v862_v4, 0.0  ;;  %v807_v10 = vmul.f32 32.0, %v1974_v9  ;;  %vm811_vm1 = vweird.f32 %v1974_v9  ;;  %v953_v36 = vld [vmem:[%s756_s20 + $0x18] sm:$0xff]  ;;  %937 = vmatpush.msra.mxu0 %v914_v35  ;;  %s759_s27 = scalar_lea.vmem %s2469_s8, %s2492_s25  ;;  %s2305_s23 = scalar_lea.vmem %s2470_s9, %s2197_s18 }
  0x17   : > { %864 = vadd.xlane.f32.xlu0 %v863_v1  ;;  %v800_v3 = vsel %vm799_vm0, %v2147_v2, 0.0  ;;  %v803_v7 = vsel %vm799_vm0, %v2151_v5, 0.0  ;;  %976 = vmatpush.msra.mxu1 %v953_v36  ;;  %v913_v37 = vld [vmem:[%s748_s24 + $0x10] sm:$0xff]  ;;  %v912_v39 = vld [vmem:[%s748_s24 + $0x8] sm:$0xff]  ;;  %v911_v41 = vld [vmem:[%s748_s24] sm:$0xff]  ;;  %s2028_s0 = smov 120   ;;  %s773_s21 = scalar_lea.vmem %s2473_s12, %s2492_s25 }
  0x18   : > { %801 = vadd.xlane.f32.xlu1 %v800_v3  ;;  %v808_v11 = vsub.f32 1.0, %v807_v10  ;;  %v952_v38 = vld [vmem:[%s756_s20 + $0x10] sm:$0xff]  ;;  %938 = vmatpush.msra.mxu0 %v913_v37  ;;  %v951_v40 = vld [vmem:[%s756_s20 + $0x8] sm:$0xff]  ;;  %v950_v42 = vld [vmem:[%s756_s20] sm:$0xff]  ;;  %s2030_s24 = smov 112   ;;  %s2031_s26 = smov 104  }
  0x19   : > { %977 = vmatpush.msra.mxu1 %v952_v38  ;;  %v1967_v38 = vld [vmem:[%s759_s27] ss:$0 sm:$0xff]  ;;  %s2032_s27 = smov 88   ;;  %s2034_s19 = smov 80  }
  0x1a   : > { %v809_v12 = vmul.f32 %v1974_v9, %v808_v11  ;;  %939 = vmatpush.msra.mxu0 %v912_v39  ;;  %v1966_v39 = vld [vmem:[%s751_s30] ss:$0 sm:$0xff]  ;;  %s2033_s30 = smov 72   ;;  %s2489_s1 = sld [smem:[#allocation6_spill]] }
  0x1b   : > { %978 = vmatpush.msra.mxu1 %v951_v40 }
  0x1c   : > { %v810_v13 = vadd.f32 %v1974_v9, %v809_v12  ;;  %940 = vmatpush.msra.mxu0 %v911_v41 }
  0x1d   : > { %979 = vmatpush.msra.mxu1 %v950_v42 }
  0x1e   : > { %v2156_v14 = vsel %vm811_vm1, %v1974_v9, %v810_v13  ;;  %v1964_v9 = vld [vmem:[%s740_s22] ss:$0 sm:$0xff] }
  0x1f   : > { %867 = vadd.xlane.f32.xlu0 %v866_v6 }
  0x20   : > { %804 = vadd.xlane.f32.xlu1 %v803_v7 }
  0x8a   : > { %v865_v15 = vpop.xlane.xlu0 %864 }
  0x8b   : > { %v869_v16 = vmul.f32 %v865_v15, %v2156_v14  ;;  %v802_v17 = vpop.xlane.xlu1 %801  ;;  %v1965_v15 = vld [vmem:[%s743_s28] ss:$0 sm:$0xff]  ;;  %s2488_s28 = sld [smem:[#allocation3_spill]] }
  0x8c   : > { %v813_v18 = vmul.f32 %v2156_v14, %v802_v17 }
  0x8d   : > { %v2160_v19 = vsub.f32 %v861_v0, %v869_v16 }
  0x8e   : > { %v2163_v20 = vsub.f32 %v2147_v2, %v813_v18 }
  0x8f   : > { %v873_v21 = vmul.f32 %v2160_v19, %v2160_v19 }
  0x90   : > { %v817_v22 = vmul.f32 %v2163_v20, %v2163_v20 }
  0x91   : > { %v875_v23 = vsel %vm799_vm0, %v873_v21, 0.0 }
  0x92   : > { %876 = vadd.xlane.f32.xlu2 %v875_v23  ;;  %v868_v24 = vpop.xlane.xlu0 %867  ;;  %v819_v25 = vsel %vm799_vm0, %v817_v22, 0.0 }
  0x93   : > { %v870_v26 = vmul.f32 %v868_v24, %v2156_v14  ;;  %820 = vadd.xlane.f32.xlu0 %v819_v25  ;;  %v805_v27 = vpop.xlane.xlu1 %804 }
  0x94   : > { %v814_v28 = vmul.f32 %v2156_v14, %v805_v27 }
  0x95   : > { %v2173_v29 = vsub.f32 %v862_v4, %v870_v26 }
  0x96   : > { %v2176_v30 = vsub.f32 %v2151_v5, %v814_v28 }
  0x97   : > { %v874_v31 = vmul.f32 %v2173_v29, %v2173_v29 }
  0x98   : > { %v818_v32 = vmul.f32 %v2176_v30, %v2176_v30 }
  0x99   : > { %v878_v33 = vsel %vm799_vm0, %v874_v31, 0.0 }
  0x9a   : > { %879 = vadd.xlane.f32.xlu2 %v878_v33  ;;  %v822_v34 = vsel %vm799_vm0, %v818_v32, 0.0 }
  0x9b   : > { %823 = vadd.xlane.f32.xlu1 %v822_v34 }
 0x105   : > { %v877_v43 = vpop.xlane.xlu2 %876 }
 0x106   : > { %v881_v44 = vmul.f32 %v877_v43, %v2156_v14  ;;  %v821_v45 = vpop.xlane.xlu0 %820 }
 0x107   : > { %v825_v46 = vmul.f32 %v821_v45, %v2156_v14 }
 0x108   : > { %v883_v47 = vadd.f32 1e-05, %v881_v44 }
 0x109   : > { %v827_v48 = vadd.f32 1e-05, %v825_v46 }
 0x10a   : > { %1975 = vrsqrt.f32 %v883_v47  ;;  %vm891_vm4 = vweird.f32 %v883_v47 }
 0x10b   : > { %1977 = vrsqrt.f32 %v827_v48  ;;  %vm835_vm6 = vweird.f32 %v827_v48 }
 0x10d   : > { %v880_v49 = vpop.xlane.xlu2 %879 }
 0x10e   : > { %v882_v50 = vmul.f32 %v880_v49, %v2156_v14  ;;  %v824_v51 = vpop.xlane.xlu1 %823 }
 0x10f   : > { %v826_v52 = vmul.f32 %v824_v51, %v2156_v14 }
 0x110   : > { %v1976_v53 = vpop.eup %1975  ;;  %v884_v54 = vadd.f32 1e-05, %v882_v50 }
 0x111   : > { %v1978_v55 = vpop.eup %1977  ;;  %v886_v56 = vmul.f32 %v1976_v53, %v883_v47  ;;  %v828_v57 = vadd.f32 1e-05, %v826_v52  ;;  %vm892_vm2 = vweird.f32 %v1976_v53  ;;  %v2269_v52 = vld [vmem:[%s2463_s2] sm:$0xff] }
 0x112   : > { %v830_v58 = vmul.f32 %v1978_v55, %v827_v48  ;;  %1979 = vrsqrt.f32 %v884_v54  ;;  %vm836_vm3 = vweird.f32 %v1978_v55  ;;  %vm893_vm5 = vmor %vm891_vm4, %vm892_vm2  ;;  %vm901_vm10 = vweird.f32 %v884_v54 }
 0x113   : > { %v887_v59 = vmul.f32 %v1976_v53, %v886_v56  ;;  %1981 = vrsqrt.f32 %v828_v57  ;;  %vm837_vm7 = vmor %vm835_vm6, %vm836_vm3  ;;  %vm845_vm8 = vweird.f32 %v828_v57 }
 0x114   : > { %v831_v60 = vmul.f32 %v1978_v55, %v830_v58 }
 0x115   : > { %v888_v61 = vmul.f32 0.5, %v887_v59 }
 0x116   : > { %v832_v62 = vmul.f32 0.5, %v831_v60 }
 0x117   : > { %v889_v63 = vsub.f32 1.5, %v888_v61 }
 0x118   : > { %v1980_v0 = vpop.eup %1979  ;;  %v833_v1 = vsub.f32 1.5, %v832_v62 }
 0x119   : > { %v1982_v3 = vpop.eup %1981  ;;  %v890_v4 = vmul.f32 %v1976_v53, %v889_v63  ;;  %v896_v6 = vmul.f32 %v1980_v0, %v884_v54  ;;  %vm902_vm11 = vweird.f32 %v1980_v0 }
 0x11a   : > { %v834_v7 = vmul.f32 %v1978_v55, %v833_v1  ;;  %v840_v8 = vmul.f32 %v1982_v3, %v828_v57  ;;  %vm846_vm9 = vweird.f32 %v1982_v3  ;;  %vm903_vm13 = vmor %vm901_vm10, %vm902_vm11 }
 0x11b   : > { %v894_v10 = vsel %vm893_vm5, %v1976_v53, %v890_v4  ;;  %v897_v11 = vmul.f32 %v1980_v0, %v896_v6  ;;  %vm847_vm12 = vmor %vm845_vm8, %vm846_vm9  ;;  %v2274_v53 = vld [vmem:[%s2463_s2 + $0x8] sm:$0xff] }
 0x11c   : > { %v838_v12 = vsel %vm837_vm7, %v1978_v55, %v834_v7  ;;  %v841_v13 = vmul.f32 %v1982_v3, %v840_v8  ;;  %v905_v16 = vmul.f32 %v894_v10, %v2160_v19 }
 0x11d   : > { %v898_v17 = vmul.f32 0.5, %v897_v11  ;;  %v849_v18 = vmul.f32 %v838_v12, %v2163_v20 }
 0x11e   : > { %v842_v21 = vmul.f32 0.5, %v841_v13  ;;  %v907_v22 = vmul.f32 %v1964_v9, %v905_v16 }
 0x11f   : > { %v899_v23 = vsub.f32 1.5, %v898_v17  ;;  %v854_v24 = vmul.f32 %v1964_v9, %v849_v18 }
 0x120   : > { %v843_v25 = vsub.f32 1.5, %v842_v21  ;;  %v909_v26 = vadd.f32 %v1965_v15, %v907_v22 }
 0x121   : > { %v900_v27 = vmul.f32 %v1980_v0, %v899_v23  ;;  %v859_v19 = vadd.f32 %v1965_v15, %v854_v24 }
 0x122   : > { %v844_v20 = vmul.f32 %v1982_v3, %v843_v25  ;;  %1880 = vmatmul.msk.f32.vlgmr.msra.gmra.mxu1 %vm799_vm0, %v909_v26 }
 0x123   : > { %v904_v28 = vsel %vm903_vm13, %v1980_v0, %v900_v27  ;;  %1878 = vmatmul.msk.f32.vlgmr.msra.gmra.mxu0 %vm799_vm0, %v859_v19 }
 0x124   : > { %v848_v31 = vsel %vm847_vm12, %v1982_v3, %v844_v20  ;;  %v906_v32 = vmul.f32 %v904_v28, %v2173_v29 }
 0x125   : > { %v850_v33 = vmul.f32 %v848_v31, %v2176_v30  ;;  %v989_v31 = vld [vmem:[%s2305_s23] sm:$0xff] }
 0x126   : > { %v908_v34 = vmul.f32 %v1964_v9, %v906_v32 }
 0x127   : > { %v855_v35 = vmul.f32 %v1964_v9, %v850_v33 }
 0x128   : > { %v910_v36 = vadd.f32 %v1965_v15, %v908_v34 }
 0x129   : > { %v860_v37 = vadd.f32 %v1965_v15, %v855_v35 }
 0x12a   : > { %1881 = vmatmul.msk.f32.gmra.mxu1 %vm799_vm0, %v910_v36 }
 0x12b   : > { %1879 = vmatmul.msk.f32.gmra.mxu0 %vm799_vm0, %v860_v37 }
 0x19f   : > { %v981_v40 = vpop.f32.mrf.mxu1 }
 0x1a0   : > { %v942_v41 = vpop.f32.mrf.mxu0  ;;  %v2238_v42 = vadd.f32 %v1967_v38, %v981_v40 }
 0x1a1   : > { %v943_v29 = vadd.f32 %v1966_v39, %v942_v41  ;;  %v990_v41 = vld [vmem:[%s2305_s23 + $0x8] sm:$0xff] }
 0x1a2   : > { %1128 = vrot.lane.b32.xlu0 %v2238_v42, %s2028_s0 }
 0x1a3   : > { %v2241_v30 = vmul.f32 0.35355338, %v943_v29 }
 0x1a5   : > { %1124 = vrot.lane.b32.xlu1 %v2241_v30, %s2028_s0 }
 0x1a7   : > { %v984_v43 = vpop.f32.mrf.mxu1 }
 0x1a8   : > { %v2244_v44 = vadd.f32 %v1967_v38, %v984_v43  ;;  %v945_v45 = vpop.f32.mrf.mxu0 }
 0x1a9   : > { %v946_v46 = vadd.f32 %v1966_v39, %v945_v45 }
 0x1aa   : > { %1130 = vrot.lane.b32.xlu2 %v2244_v44, %s2028_s0  ;;  %1882 = vmatpush.xpose.msk.msra.mxu2 %vm999_vm14, %v2244_v44  ;;  %v2286_v10 = vpack.i.bf16 %v2238_v42, %v2244_v44 }
 0x1ab   : > { %1926 = vmatpush.xpose.msk.msra.mxu3 %vm999_vm14, %v2244_v44  ;;  %v2255_v47 = vmul.f32 0.35355338, %v946_v46 }
 0x1ae   : > { %1883 = vmatpush.xpose.msk.msra.mxu2 %vm999_vm14, %v2238_v42 }
 0x1af   : > { %1927 = vmatpush.xpose.msk.msra.mxu3 %vm999_vm14, %v2238_v42 }
 0x1b1   : > { %1884 = vmatmul.msk.f32.vlgmr.msra.gmra.mxu2 %vm999_vm14, %v2241_v30 }
 0x1b2   : > { %1885 = vmatmul.msk.f32.vlgmr.msra.gmra.mxu3 %vm999_vm14, %v2255_v47  ;;  %1126 = vrot.lane.b32.xlu2 %v2255_v47, %s2028_s0  ;;  %s767_s0 = scalar_lea.vmem %s2471_s10, %s2492_s25 }
 0x1b3   : > { %1241 = vmatpush.msrb.mxu2 %v990_v41 }
 0x204   : > { %v1131_v48 = vpop.permute.xlu2 %1130 }
 0x205   : > { %1890 = vmatpush.xpose.msk.msrb.mxu0 %vm999_vm14, %v1131_v48 }
 0x20c   : > { %v1127_v51 = vpop.permute.xlu2 %1126 }
 0x214   : > { %v1129_v49 = vpop.permute.xlu0 %1128 }
 0x215   : > { %1891 = vmatpush.xpose.msk.msrb.mxu0 %vm999_vm14, %v1129_v49 }
 0x217   : > { %v1125_v50 = vpop.permute.xlu1 %1124 }
 0x218   : > { %1892 = vmatmul.msk.f32.vlgmr.msrb.gmra.mxu0 %vm999_vm14, %v1125_v50 }
 0x220   : > { %1893 = vmatmul.msk.f32.gmra.mxu0 %vm999_vm14, %v1127_v51 }
 0x234   : > { %v1029_v54 = vpop.f32.mrf.mxu2 }
 0x235   : > { %v1030_v55 = vadd.f32 %v1029_v54, %v2269_v52  ;;  %v1032_v56 = vpop.f32.mrf.mxu3 }
 0x236   : > { %v1033_v57 = vadd.f32 %v1032_v56, %v2274_v53 }
 0x237   : > { %v1036_v58 = vsel %vm1035_vm15, %v1030_v55, -inf }
 0x238   : > { %1037 = vmax.xlane.f32.xlu0 %v1036_v58  ;;  %v1039_v59 = vsel %vm1035_vm15, %v1033_v57, -inf }
 0x239   : > { %1040 = vmax.xlane.f32.xlu1 %v1039_v59 }
 0x295   : > { %v1157_v60 = vpop.f32.mrf.mxu0 }
 0x296   : > { %v1158_v61 = vadd.f32 %v1157_v60, %v2269_v52 }
 0x298   : > { %v1163_v62 = vsel %vm1035_vm15, %v1158_v61, -inf }
 0x299   : > { %1164 = vmax.xlane.f32.xlu2 %v1163_v62 }
 0x29d   : > { %v1160_v63 = vpop.f32.mrf.mxu0 }
 0x29e   : > { %v1161_v0 = vadd.f32 %v1160_v63, %v2274_v53 }
 0x2a0   : > { %v1166_v1 = vsel %vm1035_vm15, %v1161_v0, -inf }
 0x2a1   : > { %1167 = vmax.xlane.f32.xlu0 %v1166_v1  ;;  %v1968_v1 = vld [vmem:[%s767_s0] ss:$0 sm:$0xff]  ;;  %s778_s0 = scalar_lea.vmem %s2474_s13, %s2197_s18 }
 0x2ab   : > { %v1038_v3 = vpop.xlane.xlu0 %1037 }
 0x2ac   : > { %v1042_v4 = vsub.f32 %v1030_v55, %v1038_v3  ;;  %v1041_v6 = vpop.xlane.xlu1 %1040  ;;  %v997_v3 = vadd.f32 %v1968_v1, %v2147_v2 }
 0x2ad   : > { %v1043_v8 = vsub.f32 %v1033_v57, %v1041_v6 }
 0x2ae   : > { %v1044_v7 = vmul.f32 1.442695, %v1042_v4 }
 0x2af   : > { %v1046_v9 = vmul.f32 1.442695, %v1043_v8  ;;  %v998_v8 = vadd.f32 %v1968_v1, %v2151_v5 }
 0x2b0   : > { %1983 = vpow2.f32 %v1044_v7 }
 0x2b1   : > { %1985 = vpow2.f32 %v1046_v9 }
 0x2b5   : > { %1945 = vrot.lane.b32.xlu0 %v2286_v10, %s2029_s17  ;;  %s770_s17 = scalar_lea.vmem %s2472_s11, %s2492_s25 }
 0x2b6   : > { %v1984_v11 = vpop.eup %1983 }
 0x2b7   : > { %v1048_v12 = vsel %vm1035_vm15, %v1984_v11, 0.0  ;;  %v1986_v13 = vpop.eup %1985 }
 0x2b8   : > { %1049 = vadd.xlane.f32.xlu2 %v1048_v12  ;;  %v1051_v15 = vsel %vm1035_vm15, %v1986_v13, 0.0 }
 0x2bd   : > { %1257 = vrot.lane.b32.xlu0 %v2244_v44, %s2030_s24 }
 0x2c0   : > { %1052 = vadd.xlane.f32.xlu2 %v1051_v15 }
 0x2c5   : > { %1382 = vrot.lane.b32.xlu0 %v2238_v42, %s2031_s26 }
 0x2cd   : > { %1255 = vrot.lane.b32.xlu0 %v2238_v42, %s2030_s24 }
 0x2d5   : > { %1253 = vrot.lane.b32.xlu0 %v2255_v47, %s2030_s24 }
 0x30c   : > { %v1165_v16 = vpop.xlane.xlu2 %1164 }
 0x30d   : > { %v1169_v17 = vsub.f32 %v1158_v61, %v1165_v16 }
 0x30f   : > { %v1171_v18 = vmul.f32 1.442695, %v1169_v17 }
 0x311   : > { %1987 = vpow2.f32 %v1171_v18 }
 0x314   : > { %v1168_v21 = vpop.xlane.xlu0 %1167 }
 0x315   : > { %v1170_v22 = vsub.f32 %v1161_v0, %v1168_v21 }
 0x317   : > { %v1988_v23 = vpop.eup %1987  ;;  %v1173_v24 = vmul.f32 1.442695, %v1170_v22 }
 0x318   : > { %v1175_v25 = vsel %vm1035_vm15, %v1988_v23, 0.0 }
 0x319   : > { %1989 = vpow2.f32 %v1173_v24  ;;  %1176 = vadd.xlane.f32.xlu1 %v1175_v25 }
 0x31f   : > { %v1990_v26 = vpop.eup %1989 }
 0x320   : > { %v1178_v27 = vsel %vm1035_vm15, %v1990_v26, 0.0 }
 0x321   : > { %1179 = vadd.xlane.f32.xlu2 %v1178_v27 }
 0x327   : > { %v1946_v19 = vpop.permute.xlu0 %1945 }
 0x328   : > { %v1947_v20 = vunpack.i.l.bf16 %v1946_v19  ;;  %v1948_v28 = vunpack.i.h.bf16 %v1946_v19 }
 0x32a   : > { %1084 = vmatpush.msrb.mxu3 %v1947_v20 }
 0x32b   : > { %v1050_v32 = vpop.xlane.xlu2 %1049 }
 0x32c   : > { %1991 = vrcp.f32 %v1050_v32  ;;  %1085 = vmatpush.msrb.mxu3 %v1948_v28 }
 0x32e   : > { %1114 = vmatpush.msra.mxu3 %v989_v31 }
 0x32f   : > { %v1258_v33 = vpop.permute.xlu0 %1257 }
 0x332   : > { %v1992_v34 = vpop.eup %1991  ;;  %1950 = vrot.lane.b32.xlu1 %v2286_v10, %s2032_s27  ;;  %s781_s27 = scalar_lea.vmem %s2475_s14, %s2492_s25 }
 0x333   : > { %v1053_v35 = vpop.xlane.xlu2 %1052  ;;  %v1056_v36 = vmul.f32 %v1992_v34, %v1984_v11 }
 0x334   : > { %1993 = vrcp.f32 %v1053_v35 }
 0x335   : > { %1886 = vmatmul.msk.f32.vlgmr.msrb.gmra.mxu3 %vm1035_vm15, %v1056_v36 }
 0x336   : > { %1898 = vmatpush.xpose.msk.msrb.mxu3 %vm999_vm14, %v1258_v33 }
 0x337   : > { %v1383_v37 = vpop.permute.xlu0 %1382 }
 0x339   : > { %1384 = vrot.lane.b32.xlu2 %v2244_v44, %s2031_s26 }
 0x33a   : > { %v1994_v38 = vpop.eup %1993  ;;  %1378 = vrot.lane.b32.xlu1 %v2241_v30, %s2031_s26 }
 0x33b   : > { %v1057_v39 = vmul.f32 %v1994_v38, %v1986_v13 }
 0x33d   : > { %1887 = vmatmul.msk.f32.gmra.mxu3 %vm1035_vm15, %v1057_v39 }
 0x33f   : > { %v1256_v40 = vpop.permute.xlu0 %1255 }
 0x340   : > { %1899 = vmatpush.xpose.msk.msrb.mxu3 %vm999_vm14, %v1256_v40 }
 0x341   : > { %1380 = vrot.lane.b32.xlu2 %v2255_v47, %s2031_s26 }
 0x342   : > { %1251 = vrot.lane.b32.xlu1 %v2241_v30, %s2030_s24 }
 0x347   : > { %v1254_v56 = vpop.permute.xlu0 %1253 }
 0x38c   : > { %v1177_v29 = vpop.xlane.xlu1 %1176 }
 0x38d   : > { %1995 = vrcp.f32 %v1177_v29 }
 0x393   : > { %v1996_v45 = vpop.eup %1995 }
 0x394   : > { %v1180_v42 = vpop.xlane.xlu2 %1179  ;;  %v1183_v48 = vmul.f32 %v1996_v45, %v1988_v23 }
 0x395   : > { %1997 = vrcp.f32 %v1180_v42 }
 0x39b   : > { %v1998_v30 = vpop.eup %1997 }
 0x39c   : > { %v1385_v43 = vpop.permute.xlu2 %1384  ;;  %v1184_v49 = vmul.f32 %v1998_v30, %v1990_v26 }
 0x39d   : > { %1906 = vmatpush.xpose.msk.msra.mxu2 %vm999_vm14, %v1385_v43 }
 0x3a1   : > { %1907 = vmatpush.xpose.msk.msra.mxu2 %vm999_vm14, %v1383_v37 }
 0x3a4   : > { %v1951_v44 = vpop.permute.xlu1 %1950  ;;  %v1381_v60 = vpop.permute.xlu2 %1380 }
 0x3a5   : > { %v1952_v46 = vunpack.i.l.bf16 %v1951_v44  ;;  %v1953_v47 = vunpack.i.h.bf16 %v1951_v44 }
 0x3a7   : > { %1211 = vmatpush.msrb.mxu1 %v1952_v46 }
 0x3a9   : > { %1212 = vmatpush.msrb.mxu1 %v1953_v47 }
 0x3aa   : > { %1894 = vmatmul.msk.f32.vlgmr.msrb.gmra.mxu1 %vm1035_vm15, %v1183_v48 }
 0x3ac   : > { %v1379_v51 = vpop.permute.xlu1 %1378 }
 0x3b2   : > { %1895 = vmatmul.msk.f32.gmra.mxu1 %vm1035_vm15, %v1184_v49  ;;  %v991_v49 = vld [vmem:[%s2305_s23 + $0x10] sm:$0xff] }
 0x3b3   : > { %1368 = vmatpush.msra.mxu1 %v991_v49 }
 0x3b4   : > { %v1252_v55 = vpop.permute.xlu1 %1251 }
 0x3b8   : > { %v1087_v50 = vpop.f32.mrf.mxu3 }
 0x3b9   : > { %1888 = vmatmul.msk.f32.vlgmr.msra.gmra.mxu3 %vm999_vm14, %v1087_v50 }
 0x3c0   : > { %v1090_v54 = vpop.f32.mrf.mxu3 }
 0x3c1   : > { %1889 = vmatmul.msk.f32.gmra.mxu3 %vm999_vm14, %v1090_v54 }
 0x3c9   : > { %1900 = vmatmul.msk.f32.vlgmr.msrb.gmra.mxu3 %vm999_vm14, %v1252_v55 }
 0x3d1   : > { %1901 = vmatmul.msk.f32.gmra.mxu3 %vm999_vm14, %v1254_v56 }
 0x427   : > { %v1214_v57 = vpop.f32.mrf.mxu1 }
 0x428   : > { %1896 = vmatmul.msk.f32.vlgmr.msrb.gmra.mxu2 %vm999_vm14, %v1214_v57 }
 0x42f   : > { %v1217_v58 = vpop.f32.mrf.mxu1 }
 0x430   : > { %1897 = vmatmul.msk.f32.gmra.mxu2 %vm999_vm14, %v1217_v58 }
 0x438   : > { %1908 = vmatmul.msk.f32.vlgmr.msra.gmra.mxu2 %vm999_vm14, %v1379_v51 }
 0x43c   : > { %v1116_v59 = vpop.f32.mrf.mxu3 }
 0x43d   : > { %v1122_v4 = vadd.f32 %v1116_v59, %v997_v3 }
 0x440   : > { %1909 = vmatmul.msk.f32.gmra.mxu2 %vm999_vm14, %v1381_v60  ;;  %v992_v60 = vld [vmem:[%s2305_s23 + $0x18] sm:$0xff]  ;;  %s789_s23 = scalar_lea.vmem %s2477_s16, %s2492_s25 }
 0x444   : > { %v1119_v61 = vpop.f32.mrf.mxu3 }
 0x445   : > { %v1123_v9 = vadd.f32 %v1119_v61, %v998_v8 }
 0x44c   : > { %v1284_v62 = vpop.f32.mrf.mxu3 }
 0x44d   : > { %v1285_v63 = vadd.f32 %v1284_v62, %v2269_v52 }
 0x44f   : > { %v1290_v0 = vsel %vm1035_vm15, %v1285_v63, -inf }
 0x450   : > { %1291 = vmax.xlane.f32.xlu2 %v1290_v0 }
 0x454   : > { %v1287_v17 = vpop.f32.mrf.mxu3 }
 0x455   : > { %v1288_v18 = vadd.f32 %v1287_v17, %v2274_v53 }
 0x457   : > { %v1293_v25 = vsel %vm1035_vm15, %v1288_v18, -inf }
 0x4ab   : > { %v1243_v6 = vpop.f32.mrf.mxu2 }
 0x4ac   : > { %v2341_v7 = vadd.f32 %v1243_v6, %v1122_v4 }
 0x4b3   : > { %v1246_v11 = vpop.f32.mrf.mxu2 }
 0x4b4   : > { %v2344_v12 = vadd.f32 %v1246_v11, %v1123_v9 }
 0x4bb   : > { %v1411_v13 = vpop.f32.mrf.mxu2 }
 0x4bc   : > { %v1412_v15 = vadd.f32 %v1411_v13, %v2269_v52 }
 0x4be   : > { %v1417_v16 = vsel %vm1035_vm15, %v1412_v15, -inf }
 0x4bf   : > { %1418 = vmax.xlane.f32.xlu1 %v1417_v16 }
 0x4c3   : > { %v1292_v2 = vpop.xlane.xlu2 %1291  ;;  %v1414_v21 = vpop.f32.mrf.mxu2 }
 0x4c4   : > { %v1296_v22 = vsub.f32 %v1285_v63, %v1292_v2  ;;  %v1415_v23 = vadd.f32 %v1414_v21, %v2274_v53 }
 0x4c6   : > { %v1298_v24 = vmul.f32 1.442695, %v1296_v22  ;;  %v1420_v5 = vsel %vm1035_vm15, %v1415_v23, -inf }
 0x4c7   : > { %1421 = vmax.xlane.f32.xlu0 %v1420_v5  ;;  %1294 = vmax.xlane.f32.xlu1 %v1293_v25  ;;  %v1564_v5 = vld [vmem:[%s778_s0 + $0x18] sm:$0xff]  ;;  %v1563_v25 = vld [vmem:[%s778_s0 + $0x10] sm:$0xff] }
 0x4c8   : > { %1999 = vpow2.f32 %v1298_v24  ;;  %1587 = vmatpush.msrb.mxu1 %v1564_v5 }
 0x4ca   : > { %1588 = vmatpush.msrb.mxu1 %v1563_v25 }
 0x4ce   : > { %v2000_v52 = vpop.eup %1999 }
 0x4cf   : > { %v1302_v26 = vsel %vm1035_vm15, %v2000_v52, 0.0 }
 0x4d0   : > { %1303 = vadd.xlane.f32.xlu0 %v1302_v26  ;;  %v1561_v26 = vld [vmem:[%s778_s0] sm:$0xff] }
 0x4e0   : > { %1955 = vrot.lane.b32.xlu1 %v2286_v10, %s2033_s30  ;;  %s1924_s30 = sshll.u32 %s2492_s25, 7 }
 0x4e1   : > { %s2409_s20 = scalar_lea.vmem %s2476_s15, %s1924_s30 }
 0x4e4   : > { %1960 = vrot.lane.b32.xlu0 %v2286_v10, %s2034_s19 }
 0x532   : > { %v1419_v27 = vpop.xlane.xlu1 %1418 }
 0x533   : > { %v1423_v53 = vsub.f32 %v1412_v15, %v1419_v27 }
 0x535   : > { %v1425_v19 = vmul.f32 1.442695, %v1423_v53 }
 0x537   : > { %2001 = vpow2.f32 %v1425_v19 }
 0x53a   : > { %v1422_v20 = vpop.xlane.xlu0 %1421  ;;  %v1295_v28 = vpop.xlane.xlu1 %1294 }
 0x53b   : > { %v1424_v31 = vsub.f32 %v1415_v23, %v1422_v20  ;;  %v1297_v34 = vsub.f32 %v1288_v18, %v1295_v28  ;;  %v1615_v20 = vld [vmem:[%s2409_s20 + $0x78] sm:$0xff]  ;;  %v1614_v28 = vld [vmem:[%s2409_s20 + $0x70] sm:$0xff] }
 0x53c   : > { %1616 = vmatpush.msrb.mxu2 %v1615_v20 }
 0x53d   : > { %v2002_v32 = vpop.eup %2001  ;;  %v1427_v33 = vmul.f32 1.442695, %v1424_v31  ;;  %v1300_v36 = vmul.f32 1.442695, %v1297_v34 }
 0x53e   : > { %v1429_v35 = vsel %vm1035_vm15, %v2002_v32, 0.0  ;;  %1617 = vmatpush.msrb.mxu2 %v1614_v28 }
 0x53f   : > { %2003 = vpow2.f32 %v1427_v33  ;;  %1430 = vadd.xlane.f32.xlu2 %v1429_v35 }
 0x540   : > { %2005 = vpow2.f32 %v1300_v36  ;;  %v1612_v36 = vld [vmem:[%s2409_s20 + $0x60] sm:$0xff] }
 0x543   : > { %v1304_v39 = vpop.xlane.xlu0 %1303 }
 0x544   : > { %2007 = vrcp.f32 %v1304_v39 }
 0x545   : > { %v2004_v37 = vpop.eup %2003 }
 0x546   : > { %v1432_v38 = vsel %vm1035_vm15, %v2004_v37, 0.0  ;;  %v2006_v10 = vpop.eup %2005 }
 0x547   : > { %1433 = vadd.xlane.f32.xlu2 %v1432_v38  ;;  %v1305_v40 = vsel %vm1035_vm15, %v2006_v10, 0.0 }
 0x54a   : > { %v2008_v44 = vpop.eup %2007 }
 0x54b   : > { %v1310_v47 = vmul.f32 %v2008_v44, %v2000_v52  ;;  %v1562_v52 = vld [vmem:[%s778_s0 + $0x8] sm:$0xff] }
 0x54c   : > { %1589 = vmatpush.msrb.mxu1 %v1562_v52 }
 0x54e   : > { %1590 = vmatpush.msrb.mxu1 %v1561_v26 }
 0x54f   : > { %1306 = vadd.xlane.f32.xlu2 %v1305_v40  ;;  %v1610_v40 = vld [vmem:[%s2409_s20 + $0x50] sm:$0xff] }
 0x552   : > { %v1956_v41 = vpop.permute.xlu1 %1955 }
 0x553   : > { %v1957_v42 = vunpack.i.l.bf16 %v1956_v41  ;;  %v1958_v29 = vunpack.i.h.bf16 %v1956_v41 }
 0x555   : > { %1465 = vmatpush.msra.mxu3 %v1957_v42  ;;  %v1609_v42 = vld [vmem:[%s2409_s20 + $0x48] sm:$0xff] }
 0x556   : > { %v1961_v43 = vpop.permute.xlu0 %1960 }
 0x557   : > { %v1962_v45 = vunpack.i.l.bf16 %v1961_v43  ;;  %1466 = vmatpush.msra.mxu3 %v1958_v29  ;;  %v1963_v46 = vunpack.i.h.bf16 %v1961_v43  ;;  %v1608_v43 = vld [vmem:[%s2409_s20 + $0x40] sm:$0xff] }
 0x559   : > { %1338 = vmatpush.msra.mxu0 %v1962_v45 }
 0x55b   : > { %1339 = vmatpush.msra.mxu0 %v1963_v46 }
 0x55c   : > { %1902 = vmatmul.msk.f32.vlgmr.msra.gmra.mxu0 %vm1035_vm15, %v1310_v47  ;;  %v1970_v47 = vld [vmem:[%s773_s21] ss:$0 sm:$0xff] }
 0x55d   : > { %1495 = vmatpush.msrb.mxu0 %v992_v60 }
 0x5b2   : > { %v1431_v48 = vpop.xlane.xlu2 %1430 }
 0x5b3   : > { %2009 = vrcp.f32 %v1431_v48  ;;  %v1607_v48 = vld [vmem:[%s2409_s20 + $0x38] sm:$0xff] }
 0x5b9   : > { %v2010_v30 = vpop.eup %2009 }
 0x5ba   : > { %v1437_v50 = vmul.f32 %v2010_v30, %v2002_v32  ;;  %v1434_v51 = vpop.xlane.xlu2 %1433  ;;  %v1613_v32 = vld [vmem:[%s2409_s20 + $0x68] sm:$0xff] }
 0x5bb   : > { %2011 = vrcp.f32 %v1434_v51  ;;  %1618 = vmatpush.msrb.mxu2 %v1613_v32 }
 0x5bc   : > { %1910 = vmatmul.msk.f32.vlgmr.msra.gmra.mxu3 %vm1035_vm15, %v1437_v50  ;;  %v1606_v50 = vld [vmem:[%s2409_s20 + $0x30] sm:$0xff] }
 0x5bd   : > { %1619 = vmatpush.msrb.mxu2 %v1612_v36 }
 0x5c1   : > { %v2012_v54 = vpop.eup %2011 }
 0x5c2   : > { %v1307_v55 = vpop.xlane.xlu2 %1306  ;;  %v1438_v56 = vmul.f32 %v2012_v54, %v2004_v37 }
 0x5c3   : > { %2013 = vrcp.f32 %v1307_v55  ;;  %v1605_v55 = vld [vmem:[%s2409_s20 + $0x28] sm:$0xff] }
 0x5c4   : > { %1911 = vmatmul.msk.f32.gmra.mxu3 %vm1035_vm15, %v1438_v56 }
 0x5c9   : > { %v2014_v57 = vpop.eup %2013 }
 0x5ca   : > { %v1311_v58 = vmul.f32 %v2014_v57, %v2006_v10  ;;  %v1611_v10 = vld [vmem:[%s2409_s20 + $0x58] sm:$0xff]  ;;  %v1604_v57 = vld [vmem:[%s2409_s20 + $0x20] sm:$0xff] }
 0x5cb   : > { %1620 = vmatpush.msrb.mxu2 %v1611_v10 }
 0x5cc   : > { %1903 = vmatmul.msk.f32.gmra.mxu0 %vm1035_vm15, %v1311_v58 }
 0x5cd   : > { %1621 = vmatpush.msrb.mxu2 %v1610_v40 }
 0x5cf   : > { %1622 = vmatpush.msrb.mxu2 %v1609_v42 }
 0x5d1   : > { %1623 = vmatpush.msrb.mxu2 %v1608_v43 }
 0x5d3   : > { %1624 = vmatpush.msrb.mxu2 %v1607_v48 }
 0x5d5   : > { %1625 = vmatpush.msrb.mxu2 %v1606_v50 }
 0x5d7   : > { %1626 = vmatpush.msrb.mxu2 %v1605_v55 }
 0x5d9   : > { %v1341_v59 = vpop.f32.mrf.mxu0  ;;  %1627 = vmatpush.msrb.mxu2 %v1604_v57 }
 0x5da   : > { %1904 = vmatmul.msk.f32.vlgmr.msra.gmra.mxu1 %vm999_vm14, %v1341_v59  ;;  %v1603_v59 = vld [vmem:[%s2409_s20 + $0x18] sm:$0xff] }
 0x5db   : > { %1628 = vmatpush.msrb.mxu2 %v1603_v59 }
 0x63f   : > { %v1468_v61 = vpop.f32.mrf.mxu3 }
 0x640   : > { %1912 = vmatmul.msk.f32.vlgmr.msrb.gmra.mxu0 %vm999_vm14, %v1468_v61 }
 0x647   : > { %v1471_v62 = vpop.f32.mrf.mxu3 }
 0x648   : > { %1913 = vmatmul.msk.f32.gmra.mxu0 %vm999_vm14, %v1471_v62 }
 0x649   : > { %v1344_v63 = vpop.f32.mrf.mxu0 }
 0x64a   : > { %1905 = vmatmul.msk.f32.gmra.mxu1 %vm999_vm14, %v1344_v63 }
 0x657   : > { %v1370_v0 = vpop.f32.mrf.mxu1 }
 0x658   : > { %v1376_v1 = vadd.f32 %v1370_v0, %v2341_v7 }
 0x6bd   : > { %v1497_v3 = vpop.f32.mrf.mxu0 }
 0x6be   : > { %v2369_v4 = vadd.f32 %v1497_v3, %v1376_v1  ;;  %v1602_v1 = vld [vmem:[%s2409_s20 + $0x10] sm:$0xff]  ;;  %v1601_v3 = vld [vmem:[%s2409_s20 + $0x8] sm:$0xff] }
 0x6bf   : > { %1629 = vmatpush.msrb.mxu2 %v1602_v1 }
 0x6c0   : > { %v1507_v6 = vsel %vm799_vm0, %v2369_v4, 0.0 }
 0x6c1   : > { %1508 = vadd.xlane.f32.xlu2 %v1507_v6  ;;  %1630 = vmatpush.msrb.mxu2 %v1601_v3  ;;  %v1600_v6 = vld [vmem:[%s2409_s20] sm:$0xff]  ;;  %s794_s20 = scalar_lea.vmem %s2489_s1, %s2488_s28 }
 0x6c3   : > { %1631 = vmatpush.msrb.mxu2 %v1600_v6 }
 0x6c5   : > { %v1500_v11 = vpop.f32.mrf.mxu0 }
 0x6c7   : > { %v1373_v8 = vpop.f32.mrf.mxu1 }
 0x6c8   : > { %v1377_v9 = vadd.f32 %v1373_v8, %v2344_v12  ;;  %v1971_v8 = vld [vmem:[%s781_s27] ss:$0 sm:$0xff] }
 0x6ca   : > { %v2378_v13 = vadd.f32 %v1500_v11, %v1377_v9 }
 0x6cc   : > { %v1510_v7 = vsel %vm799_vm0, %v2378_v13, 0.0 }
 0x6cd   : > { %1511 = vadd.xlane.f32.xlu1 %v1510_v7 }
 0x734   : > { %v1509_v15 = vpop.xlane.xlu2 %1508 }
 0x735   : > { %v1513_v16 = vmul.f32 %v1509_v15, %v2156_v14 }
 0x737   : > { %v1515_v17 = vsub.f32 %v2369_v4, %v1513_v16 }
 0x739   : > { %v1517_v12 = vmul.f32 %v1515_v17, %v1515_v17 }
 0x73b   : > { %v1519_v18 = vsel %vm799_vm0, %v1517_v12, 0.0  ;;  %v1972_v12 = vld [vmem:[%s789_s23] ss:$0 sm:$0xff] }
 0x73c   : > { %1520 = vadd.xlane.f32.xlu0 %v1519_v18 }
 0x740   : > { %v1512_v2 = vpop.xlane.xlu1 %1511 }
 0x741   : > { %v1514_v21 = vmul.f32 %v1512_v2, %v2156_v14 }
 0x743   : > { %v2387_v22 = vsub.f32 %v2378_v13, %v1514_v21 }
 0x745   : > { %v1518_v23 = vmul.f32 %v2387_v22, %v2387_v22 }
 0x747   : > { %v1522_v24 = vsel %vm799_vm0, %v1518_v23, 0.0 }
 0x748   : > { %1523 = vadd.xlane.f32.xlu2 %v1522_v24 }
 0x7af   : > { %v1521_v27 = vpop.xlane.xlu0 %1520 }
 0x7b0   : > { %v1525_v53 = vmul.f32 %v1521_v27, %v2156_v14 }
 0x7b2   : > { %v1527_v19 = vadd.f32 1e-05, %v1525_v53 }
 0x7b4   : > { %2015 = vrsqrt.f32 %v1527_v19  ;;  %vm1535_vm2 = vweird.f32 %v1527_v19 }
 0x7ba   : > { %v2016_v31 = vpop.eup %2015 }
 0x7bb   : > { %v1530_v33 = vmul.f32 %v2016_v31, %v1527_v19  ;;  %v1524_v34 = vpop.xlane.xlu2 %1523  ;;  %vm1536_vm1 = vweird.f32 %v2016_v31 }
 0x7bc   : > { %v1526_v35 = vmul.f32 %v1524_v34, %v2156_v14  ;;  %v1969_v14 = vld [vmem:[%s770_s17] ss:$0 sm:$0xff]  ;;  %vm1537_vm3 = vmor %vm1535_vm2, %vm1536_vm1 }
 0x7bd   : > { %v1531_v37 = vmul.f32 %v2016_v31, %v1530_v33 }
 0x7be   : > { %v1528_v38 = vadd.f32 1e-05, %v1526_v35 }
 0x7bf   : > { %v1532_v39 = vmul.f32 0.5, %v1531_v37 }
 0x7c0   : > { %2017 = vrsqrt.f32 %v1528_v38  ;;  %vm1545_vm5 = vweird.f32 %v1528_v38 }
 0x7c1   : > { %v1533_v41 = vsub.f32 1.5, %v1532_v39 }
 0x7c3   : > { %v1534_v29 = vmul.f32 %v2016_v31, %v1533_v41 }
 0x7c5   : > { %v1538_v44 = vsel %vm1537_vm3, %v2016_v31, %v1534_v29 }
 0x7c6   : > { %v2018_v45 = vpop.eup %2017  ;;  %v1549_v46 = vmul.f32 %v1538_v44, %v1515_v17 }
 0x7c7   : > { %v1540_v30 = vmul.f32 %v2018_v45, %v1528_v38  ;;  %vm1546_vm4 = vweird.f32 %v2018_v45 }
 0x7c8   : > { %v1554_v49 = vmul.f32 %v1969_v14, %v1549_v46  ;;  %vm1547_vm6 = vmor %vm1545_vm5, %vm1546_vm4 }
 0x7c9   : > { %v1541_v51 = vmul.f32 %v2018_v45, %v1540_v30 }
 0x7ca   : > { %v1559_v54 = vadd.f32 %v1970_v47, %v1554_v49 }
 0x7cb   : > { %v1542_v56 = vmul.f32 0.5, %v1541_v51 }
 0x7cc   : > { %1914 = vmatmul.msk.f32.vlgmr.msrb.gmra.mxu1 %vm799_vm0, %v1559_v54 }
 0x7cd   : > { %v1543_v58 = vsub.f32 1.5, %v1542_v56 }
 0x7cf   : > { %v1544_v60 = vmul.f32 %v2018_v45, %v1543_v58 }
 0x7d1   : > { %v1548_v61 = vsel %vm1547_vm6, %v2018_v45, %v1544_v60 }
 0x7d2   : > { %v1550_v62 = vmul.f32 %v1548_v61, %v2387_v22 }
 0x7d4   : > { %v1555_v63 = vmul.f32 %v1969_v14, %v1550_v62 }
 0x7d6   : > { %v1560_v0 = vadd.f32 %v1970_v47, %v1555_v63 }
 0x7d8   : > { %1915 = vmatmul.msk.f32.gmra.mxu1 %vm799_vm0, %v1560_v0 }
 0x849   : > { %v1592_v9 = vpop.f32.mrf.mxu1 }
 0x84a   : > { %v1593_v11 = vadd.f32 %v1971_v8, %v1592_v9 }
 0x84c   : > { %v1598_v7 = vmax.f32 %v1593_v11, 0.0 }
 0x84e   : > { %1632 = vmatmul.f32.vlgmr.msrb.gmra.mxu2 %v1598_v7 }
 0x855   : > { %v1595_v15 = vpop.f32.mrf.mxu1 }
 0x856   : > { %v1596_v16 = vadd.f32 %v1971_v8, %v1595_v15 }
 0x858   : > { %v1599_v17 = vmax.f32 %v1596_v16, 0.0 }
 0x85a   : > { %1635 = vmatmul.f32.gmra.mxu2 %v1599_v17 }
 0x8d1   : > { %v1633_v18 = vpop.f32.mrf.mxu2 }
 0x8d2   : > { %v1639_v2 = vadd.f32 %v1633_v18, %v2369_v4 }
 0x8d4   : > { %v1645_v21 = vadd.f32 %v1972_v12, %v1639_v2 }
 0x8d6   : > { %1647 = vst.msk [vmem:[%s794_s20] sm:$0xff] %vm799_vm0, %v1645_v21 }
 0x8dd   : > { %v1636_v22 = vpop.f32.mrf.mxu2 }
 0x8de   : > { %v1640_v23 = vadd.f32 %v1636_v22, %v2378_v13 }
 0x8e0   : > { %v1646_v24 = vadd.f32 %v1972_v12, %v1640_v23 }
 0x8e2   : > { %1648 = vst.msk [vmem:[%s794_s20 + $0x8] sm:$0xff] %vm799_vm0, %v1646_v24 }
 0x8e3 PF: > { %s2490_s25 = sld [smem:[#allocation2_spill]] }
 0x8e9   : > { %s27_s24 = sadd.s32 1, %s2490_s25  }
 0x8ea   : > { %p24_p4 = scmp.ge.s32.totalorder %s27_s24, 8  }
 0x8ec   :  { %26 = sbr.rel (!%p24_p4) target bundleno = 4 (0x4), region = 163 }

// kernel: forward.7
= control target key start
LH: loop header
LB: loop body
LE: loop exit
PB: predicated region body
PF: predicated region fallthrough
CT: control target
= control target key end

     0   :  { %s2669_s0 = inlined_call_operand.vmem [shape: f32[6,16,32], index: 0, kind: input, shape index: {}]   ;;  %s2670_s1 = inlined_call_operand.vmem [shape: f32[6,16,32], index: 1, kind: input, shape index: {}]   ;;  %s2671_s2 = inlined_call_operand.vmem [shape: f32[16,16], index: 2, kind: input, shape index: {}]   ;;  %s2672_s3 = inlined_call_operand.vmem [shape: f32[6,1,32], index: 3, kind: input, shape index: {}]   ;;  %s2673_s4 = inlined_call_operand.vmem [shape: f32[6,1,32], index: 4, kind: input, shape index: {}]   ;;  %s2674_s5 = inlined_call_operand.vmem [shape: f32[6,32,32], index: 5, kind: input, shape index: {}]   ;;  %s2675_s6 = inlined_call_operand.vmem [shape: f32[6,1,32], index: 6, kind: input, shape index: {}]   ;;  %s2676_s7 = inlined_call_operand.vmem [shape: f32[6,32,64], index: 7, kind: input, shape index: {}]   ;;  %s2677_s8 = inlined_call_operand.vmem [shape: f32[6,1,64], index: 8, kind: input, shape index: {}]   ;;  %s2678_s9 = inlined_call_operand.vmem [shape: f32[6,32,32], index: 9, kind: input, shape index: {}]   ;;  %s2679_s10 = inlined_call_operand.vmem [shape: f32[6,1,32], index: 10, kind: input, shape index: {}]   ;;  %s2680_s11 = inlined_call_operand.vmem [shape: f32[6,1,32], index: 11, kind: input, shape index: {}]   ;;  %s2681_s12 = inlined_call_operand.vmem [shape: f32[6,1,32], index: 12, kind: input, shape index: {}]   ;;  %s2682_s13 = inlined_call_operand.hbm [shape: f32[6,32,128], index: 13, kind: input, shape index: {}]   ;;  %s2683_s14 = inlined_call_operand.vmem [shape: f32[6,1,128], index: 14, kind: input, shape index: {}]   ;;  %s2684_s15 = inlined_call_operand.vmem [shape: f32[6,128,32], index: 15, kind: input, shape index: {}]   ;;  %s2685_s16 = inlined_call_operand.vmem [shape: f32[6,1,32], index: 16, kind: input, shape index: {}]   ;;  %s2686_s17 = inlined_call_operand.vmem [shape: f32[6,16,32], index: 17, kind: output, shape index: {}]  }
   0x1   :  { %2690 = sst [smem:[#allocation8_spill]] %s2669_s0 }
   0x2   :  { %2691 = sst [smem:[#allocation9_spill]] %s2670_s1 }
   0x3   :  { %2692 = sst [smem:[#allocation10_spill]] %s2682_s13 }
   0x4   :  { %2693 = sst [smem:[#allocation11_spill]] %s2684_s15 }
   0x5   :  { %2694 = sst [smem:[#allocation12_spill]] %s2685_s16 }
   0x6   :  { %2695 = sst [smem:[#allocation13_spill]] %s2686_s17 }
   0x7   :  { %22 = vsyncpa [#allocation3], 0 }
   0x8   :  { %24 = vsyncpa [#allocation3 + $0x1], 0  ;;  %s2253_s24 = smov 0   ;;  %s2255_s25 = smov 0  }
   0x9   :  { %s2257_s26 = smov 0   ;;  %s2259_s27 = smov 0  }
   0xa LB: > { %2696 = sst [smem:[#allocation5_spill]] %s2147_s26  ;;  %s2272_s28 = sadd.s32 4294967295, %s2151_s27   ;;  %s2151_s27 = sphi %s2259_s27, %s2708_s27   ;;  %s2147_s26 = sphi %s2257_s26, %s2710_s26   ;;  %s2143_s25 = sphi %s2255_s25, %s2712_s25   ;;  %s2139_s24 = sphi %s2253_s24, %s2711_s24  }
   0xb   : > { %s2275_s29 = sadd.s32 1, %s2151_s27   ;;  %s370_s30 = sadd.s32 1, %s2147_s26 }
   0xc   : > { %2697 = sst [smem:[#allocation6_spill]] %s2275_s29  ;;  %s367_s0 = ssub.s32 %s2151_s27, %s2275_s29 }
   0xd   : > { %p368_p0 = scmp.eq.s32.totalorder %s367_s0, 0  ;;  %p377_p1 = scmp.ne.s32.totalorder %s2147_s26, %s2143_s25 }
   0xe   : > { %p378_p2 = scmp.eq.s32.totalorder %s2151_s27, 0  ;;  %p383_p3 = scmp.ne.s32.totalorder %s2143_s25, %s2139_s24 }
   0xf   : > { %s2285_s18 = scalar_select %p368_p0, %s2147_s26, %s370_s30  }
  0x10   : > { %p2287_p4 = por %p378_p2, %p377_p1  ;;  %p384_p5 = scmp.eq.s32.totalorder %s2272_s28, 0 }
  0x11   : > { %2698 = sst [smem:[#allocation7_spill]] %s2285_s18  ;;  %p1969_p6 = scmp.lt.s32.totalorder %s2151_s27, 6 }
  0x12   : > { %p2293_p7 = por %p384_p5, %p383_p3  ;;  %s596_s20 = sand.u32 1, %s2147_s26  }
  0x13   : > { %s1894_s21 = sshll.u32 %s596_s20, 5  ;;  %s1953_s22 = sshll.u32 %s2151_s27, 5 }
  0x14   : > { %s2701_s13 = sld [smem:[#allocation10_spill]]  ;;  %s600_s30 = scalar_lea.vmem [#allocation2], %s1894_s21 }
  0x15   : > { %s608_s18 = sshll.u32 %s600_s30, 4  ;;  %p2304_p8 = pnand %p1969_p6, %p2287_p4  ;;  %s609_s18 = int_to_ptr.vmem [resolvable:$true] %s608_s18 }
  0x16   : > { %p1897_p9 = scmp.ge.s32.totalorder %s2151_s27, 1  ;;  %s597_s16 = scalar_lea.sflag [#allocation3], %s596_s20 }
  0x17   : > { %p2091_p11 = pneg %p2304_p8 }
  0x1a   : > { %s605_s24 = scalar_lea.hbm %s2701_s13, %s1953_s22  ;;  %s2094_s23 = scalar_lea.hbm %s2701_s13, 192 }
  0x1b   : > { %s606_s29 = sshll.u32 %s605_s24, 4  ;;  %s607_s29 = int_to_ptr.hbm [resolvable:$true] %s606_s29 }
  0x1c   : > { %s2087_s26 = sshra.s32 %s607_s29, 4  ;;  %s2088_s26 = int_to_ptr.hbm [resolvable:$true] %s2087_s26 }
  0x1d   : > { %s2089_s15 = scalar_lea.hbm %s2088_s26, 32  ;;  %p2095_p0 = scmp.lt.s32.totalorder %s2088_s26, %s2701_s13 }
  0x1e   : > { %p2090_p10 = scmp.ne.s32.totalorder %s2088_s26, %s2089_s15  ;;  %p2096_p1 = scmp.lt.s32.totalorder %s2094_s23, %s2089_s15 }
  0x20   : > { %p2092_p12 = pnand %p2091_p11, %p2090_p10  ;;  %p2097_p2 = por %p2096_p1, %p2095_p0 }
  0x22   : > { %p2093_p13 = pneg %p2092_p12 }
  0x24   : > { %p2098_p3 = pnand %p2097_p2, %p2093_p13 }
  0x26   : > { %2101 = shalt.err (!%p2098_p3)
}
  0x27   : > { %s2153_s20 = smov 128   ;;  %s2154_s24 = smov 8  }
  0x28   : > { %1968 = dma.hbm_to_vmem [thread:$0]  (!%p2304_p8), %s607_s29, 512, %s609_s18, %s597_s16, %s2153_s20, %s2153_s20, %s2154_s24  }
  0x29   : > { %p636_p4 = scmp.lt.s32.totalorder %s2151_s27, 7 }
  0x2b   : > { %p637_p5 = pnand %p1897_p9, %p636_p4 }
  0x2c   : > { %s642_s30 = sand.u32 (!%p637_p5), 1, %s2143_s25  }
  0x2d   : > { %640 = sbr.rel (%p637_p5) target bundleno = 2312 (0x908), region = 88  ;;  %s1898_s21 = sshll.u32 (!%p637_p5), %s642_s30, 5 }
  0x2e   : > { %s643_s26 = scalar_lea.sflag (!%p637_p5), [#allocation3], %s642_s30  ;;  %s2323_s15 = scalar_lea.vmem (!%p637_p5), [#allocation2], %s1898_s21 }
  0x32   : > { %2134 = dma.done.wait (%p2293_p7), %s643_s26, 512  }
  0x33   : > { %2136 = vsyncadd (%p2293_p7), %s643_s26, 4294966784  ;;  %p755_p6 = scmp.lt.s32.totalorder %s2272_s28, 5  ;;  %s2703_s29 = sld [smem:[#allocation9_spill]]  ;;  %vm821_vm0 = vcmask 261120   ;;  %v2155_v8 = vmov 32.0   ;;  %vm1021_vm14 = vcmask 64512  }
  0x34   : > { %s2704_s19 = sld [smem:[#allocation8_spill]]  ;;  %2041 = vrcp.f32 %v2155_v8  ;;  %s2156_s23 = smov 120   ;;  %vm1057_vm15 = vcmask 130048  }
  0x35   : > { %s2714_s28 = smov (!%p755_p6, %s2272_s28), 5  ;;  %s2157_s13 = smov 96  }
  0x36   : > { %s2334_s16 = sshll.u32 %s2714_s28, 4  ;;  %s767_s24 = scalar_lea.vmem %s2672_s3, %s2714_s28 }
  0x37   : > { %s770_s26 = scalar_lea.vmem %s2673_s4, %s2714_s28  ;;  %s786_s27 = scalar_lea.vmem %s2677_s8, %s2714_s28 }
  0x38   : > { %s2158_s20 = smov 112   ;;  %s2159_s30 = smov 104  }
  0x39   : > { %s764_s18 = scalar_lea.vmem %s2703_s29, %s2334_s16  ;;  %s778_s29 = scalar_lea.vmem %s2675_s6, %s2714_s28 }
  0x3a   : > { %s759_s1 = scalar_lea.vmem %s2704_s19, %s2334_s16  ;;  %v883_v0 = vld [vmem:[%s764_s18] sm:$0xff]  ;;  %v884_v4 = vld [vmem:[%s764_s18 + $0x8] sm:$0xff]  ;;  %v2042_v9 = vpop.eup %2041  ;;  %s2395_s18 = sshll.u32 %s2714_s28, 5 }
  0x3b   : > { %v2344_v1 = vld [vmem:[%s759_s1] sm:$0xff]  ;;  %v885_v2 = vsel %vm821_vm0, %v883_v0, 0.0  ;;  %v2349_v5 = vld [vmem:[%s759_s1 + $0x8] sm:$0xff]  ;;  %v888_v6 = vsel %vm821_vm0, %v884_v4, 0.0  ;;  %v829_v10 = vmul.f32 32.0, %v2042_v9  ;;  %vm833_vm1 = vweird.f32 %v2042_v9  ;;  %s775_s19 = scalar_lea.vmem %s2674_s5, %s2395_s18  ;;  %s783_s0 = scalar_lea.vmem %s2676_s7, %s2395_s18 }
  0x3c   : > { %v822_v3 = vsel %vm821_vm0, %v2344_v1, 0.0  ;;  %886 = vadd.xlane.f32.xlu0 %v885_v2  ;;  %v825_v7 = vsel %vm821_vm0, %v2349_v5, 0.0  ;;  %v936_v35 = vld [vmem:[%s775_s19 + $0x18] sm:$0xff]  ;;  %v935_v37 = vld [vmem:[%s775_s19 + $0x10] sm:$0xff]  ;;  %v934_v39 = vld [vmem:[%s775_s19 + $0x8] sm:$0xff]  ;;  %s2503_s17 = scalar_lea.vmem %s2678_s9, %s2395_s18  ;;  %s794_s22 = scalar_lea.vmem %s2679_s10, %s2714_s28 }
  0x3d   : > { %823 = vadd.xlane.f32.xlu1 %v822_v3  ;;  %v830_v11 = vsub.f32 1.0, %v829_v10  ;;  %v975_v36 = vld [vmem:[%s783_s0 + $0x18] sm:$0xff]  ;;  %959 = vmatpush.msra.mxu0 %v936_v35  ;;  %v974_v38 = vld [vmem:[%s783_s0 + $0x10] sm:$0xff]  ;;  %v973_v40 = vld [vmem:[%s783_s0 + $0x8] sm:$0xff] }
  0x3e   : > { %998 = vmatpush.msra.mxu1 %v975_v36  ;;  %v933_v41 = vld [vmem:[%s775_s19] sm:$0xff] }
  0x3f   : > { %v831_v12 = vmul.f32 %v2042_v9, %v830_v11  ;;  %960 = vmatpush.msra.mxu0 %v935_v37  ;;  %v972_v42 = vld [vmem:[%s783_s0] sm:$0xff]  ;;  %s797_s0 = scalar_lea.vmem %s2680_s11, %s2714_s28 }
  0x40   : > { %999 = vmatpush.msra.mxu1 %v974_v38  ;;  %v2035_v38 = vld [vmem:[%s786_s27] ss:$0 sm:$0xff]  ;;  %s2160_s27 = smov 88  }
  0x41   : > { %v832_v13 = vadd.f32 %v2042_v9, %v831_v12  ;;  %961 = vmatpush.msra.mxu0 %v934_v39  ;;  %v2034_v39 = vld [vmem:[%s778_s29] ss:$0 sm:$0xff]  ;;  %s2162_s29 = smov 80  }
  0x42   : > { %1000 = vmatpush.msra.mxu1 %v973_v40 }
  0x43   : > { %v2354_v14 = vsel %vm833_vm1, %v2042_v9, %v832_v13  ;;  %962 = vmatpush.msra.mxu0 %v933_v41  ;;  %v2032_v9 = vld [vmem:[%s767_s24] ss:$0 sm:$0xff] }
  0x44   : > { %889 = vadd.xlane.f32.xlu0 %v888_v6  ;;  %1001 = vmatpush.msra.mxu1 %v972_v42 }
  0x45   : > { %826 = vadd.xlane.f32.xlu1 %v825_v7 }
  0xaf   : > { %v887_v15 = vpop.xlane.xlu0 %886 }
  0xb0   : > { %v824_v16 = vpop.xlane.xlu1 %823  ;;  %v891_v17 = vmul.f32 %v887_v15, %v2354_v14  ;;  %v2033_v15 = vld [vmem:[%s770_s26] ss:$0 sm:$0xff]  ;;  %s2707_s26 = sld [smem:[#allocation13_spill]] }
  0xb1   : > { %v835_v18 = vmul.f32 %v2354_v14, %v824_v16 }
  0xb2   : > { %v2358_v19 = vsub.f32 %v883_v0, %v891_v17 }
  0xb3   : > { %v2361_v20 = vsub.f32 %v2344_v1, %v835_v18 }
  0xb4   : > { %v895_v21 = vmul.f32 %v2358_v19, %v2358_v19 }
  0xb5   : > { %v839_v22 = vmul.f32 %v2361_v20, %v2361_v20 }
  0xb6   : > { %v897_v23 = vsel %vm821_vm0, %v895_v21, 0.0 }
  0xb7   : > { %v841_v24 = vsel %vm821_vm0, %v839_v22, 0.0  ;;  %898 = vadd.xlane.f32.xlu2 %v897_v23  ;;  %v890_v25 = vpop.xlane.xlu0 %889 }
  0xb8   : > { %842 = vadd.xlane.f32.xlu0 %v841_v24  ;;  %v827_v26 = vpop.xlane.xlu1 %826  ;;  %v892_v27 = vmul.f32 %v890_v25, %v2354_v14 }
  0xb9   : > { %v836_v28 = vmul.f32 %v2354_v14, %v827_v26 }
  0xba   : > { %v2371_v29 = vsub.f32 %v884_v4, %v892_v27 }
  0xbb   : > { %v2374_v30 = vsub.f32 %v2349_v5, %v836_v28 }
  0xbc   : > { %v896_v31 = vmul.f32 %v2371_v29, %v2371_v29 }
  0xbd   : > { %v840_v32 = vmul.f32 %v2374_v30, %v2374_v30 }
  0xbe   : > { %v900_v33 = vsel %vm821_vm0, %v896_v31, 0.0 }
  0xbf   : > { %v844_v34 = vsel %vm821_vm0, %v840_v32, 0.0  ;;  %901 = vadd.xlane.f32.xlu2 %v900_v33 }
  0xc0   : > { %845 = vadd.xlane.f32.xlu1 %v844_v34 }
 0x12a   : > { %v899_v43 = vpop.xlane.xlu2 %898 }
 0x12b   : > { %v843_v44 = vpop.xlane.xlu0 %842  ;;  %v903_v45 = vmul.f32 %v899_v43, %v2354_v14 }
 0x12c   : > { %v847_v46 = vmul.f32 %v843_v44, %v2354_v14 }
 0x12d   : > { %v905_v47 = vadd.f32 1e-05, %v903_v45 }
 0x12e   : > { %v849_v48 = vadd.f32 1e-05, %v847_v46 }
 0x12f   : > { %2043 = vrsqrt.f32 %v905_v47  ;;  %vm913_vm4 = vweird.f32 %v905_v47 }
 0x130   : > { %2045 = vrsqrt.f32 %v849_v48  ;;  %vm857_vm6 = vweird.f32 %v849_v48 }
 0x132   : > { %v902_v49 = vpop.xlane.xlu2 %901 }
 0x133   : > { %v846_v50 = vpop.xlane.xlu1 %845  ;;  %v904_v51 = vmul.f32 %v902_v49, %v2354_v14 }
 0x134   : > { %v848_v52 = vmul.f32 %v846_v50, %v2354_v14 }
 0x135   : > { %v2044_v53 = vpop.eup %2043  ;;  %v906_v54 = vadd.f32 1e-05, %v904_v51 }
 0x136   : > { %v850_v55 = vadd.f32 1e-05, %v848_v52  ;;  %v2046_v56 = vpop.eup %2045  ;;  %v908_v57 = vmul.f32 %v2044_v53, %v905_v47  ;;  %vm914_vm2 = vweird.f32 %v2044_v53  ;;  %v2467_v52 = vld [vmem:[%s2671_s2] sm:$0xff] }
 0x137   : > { %v852_v58 = vmul.f32 %v2046_v56, %v849_v48  ;;  %2047 = vrsqrt.f32 %v906_v54  ;;  %vm858_vm3 = vweird.f32 %v2046_v56  ;;  %vm915_vm5 = vmor %vm913_vm4, %vm914_vm2  ;;  %vm923_vm10 = vweird.f32 %v906_v54 }
 0x138   : > { %v909_v59 = vmul.f32 %v2044_v53, %v908_v57  ;;  %2049 = vrsqrt.f32 %v850_v55  ;;  %vm859_vm7 = vmor %vm857_vm6, %vm858_vm3  ;;  %vm867_vm8 = vweird.f32 %v850_v55 }
 0x139   : > { %v853_v60 = vmul.f32 %v2046_v56, %v852_v58 }
 0x13a   : > { %v910_v61 = vmul.f32 0.5, %v909_v59 }
 0x13b   : > { %v854_v62 = vmul.f32 0.5, %v853_v60 }
 0x13c   : > { %v911_v63 = vsub.f32 1.5, %v910_v61 }
 0x13d   : > { %v2048_v0 = vpop.eup %2047  ;;  %v855_v2 = vsub.f32 1.5, %v854_v62 }
 0x13e   : > { %v2050_v3 = vpop.eup %2049  ;;  %v912_v4 = vmul.f32 %v2044_v53, %v911_v63  ;;  %v918_v6 = vmul.f32 %v2048_v0, %v906_v54  ;;  %vm924_vm11 = vweird.f32 %v2048_v0 }
 0x13f   : > { %v856_v7 = vmul.f32 %v2046_v56, %v855_v2  ;;  %v862_v8 = vmul.f32 %v2050_v3, %v850_v55  ;;  %vm868_vm9 = vweird.f32 %v2050_v3  ;;  %vm925_vm13 = vmor %vm923_vm10, %vm924_vm11 }
 0x140   : > { %v916_v10 = vsel %vm915_vm5, %v2044_v53, %v912_v4  ;;  %v919_v11 = vmul.f32 %v2048_v0, %v918_v6  ;;  %vm869_vm12 = vmor %vm867_vm8, %vm868_vm9  ;;  %v2472_v53 = vld [vmem:[%s2671_s2 + $0x8] sm:$0xff] }
 0x141   : > { %v860_v12 = vsel %vm859_vm7, %v2046_v56, %v856_v7  ;;  %v863_v13 = vmul.f32 %v2050_v3, %v862_v8  ;;  %v927_v16 = vmul.f32 %v916_v10, %v2358_v19 }
 0x142   : > { %v920_v17 = vmul.f32 0.5, %v919_v11  ;;  %v871_v18 = vmul.f32 %v860_v12, %v2361_v20 }
 0x143   : > { %v864_v21 = vmul.f32 0.5, %v863_v13  ;;  %v929_v22 = vmul.f32 %v2032_v9, %v927_v16 }
 0x144   : > { %v921_v23 = vsub.f32 1.5, %v920_v17  ;;  %v876_v24 = vmul.f32 %v2032_v9, %v871_v18 }
 0x145   : > { %v865_v25 = vsub.f32 1.5, %v864_v21  ;;  %v931_v26 = vadd.f32 %v2033_v15, %v929_v22 }
 0x146   : > { %v922_v27 = vmul.f32 %v2048_v0, %v921_v23  ;;  %v881_v19 = vadd.f32 %v2033_v15, %v876_v24 }
 0x147   : > { %v866_v20 = vmul.f32 %v2050_v3, %v865_v25  ;;  %1915 = vmatmul.msk.f32.vlgmr.msra.gmra.mxu1 %vm821_vm0, %v931_v26 }
 0x148   : > { %v926_v28 = vsel %vm925_vm13, %v2048_v0, %v922_v27  ;;  %1913 = vmatmul.msk.f32.vlgmr.msra.gmra.mxu0 %vm821_vm0, %v881_v19 }
 0x149   : > { %v870_v31 = vsel %vm869_vm12, %v2050_v3, %v866_v20  ;;  %v928_v32 = vmul.f32 %v926_v28, %v2371_v29 }
 0x14a   : > { %v872_v33 = vmul.f32 %v870_v31, %v2374_v30  ;;  %v1011_v31 = vld [vmem:[%s2503_s17] sm:$0xff] }
 0x14b   : > { %v930_v34 = vmul.f32 %v2032_v9, %v928_v32 }
 0x14c   : > { %v877_v35 = vmul.f32 %v2032_v9, %v872_v33 }
 0x14d   : > { %v932_v36 = vadd.f32 %v2033_v15, %v930_v34 }
 0x14e   : > { %v882_v37 = vadd.f32 %v2033_v15, %v877_v35 }
 0x14f   : > { %1916 = vmatmul.msk.f32.gmra.mxu1 %vm821_vm0, %v932_v36 }
 0x150   : > { %1914 = vmatmul.msk.f32.gmra.mxu0 %vm821_vm0, %v882_v37 }
 0x1c4   : > { %v1003_v40 = vpop.f32.mrf.mxu1 }
 0x1c5   : > { %v964_v41 = vpop.f32.mrf.mxu0  ;;  %v2436_v42 = vadd.f32 %v2035_v38, %v1003_v40 }
 0x1c6   : > { %v965_v29 = vadd.f32 %v2034_v39, %v964_v41  ;;  %v1012_v41 = vld [vmem:[%s2503_s17 + $0x8] sm:$0xff] }
 0x1c7   : > { %1150 = vrot.lane.b32.xlu0 %v2436_v42, %s2156_s23 }
 0x1c8   : > { %v2439_v30 = vmul.f32 0.35355338, %v965_v29 }
 0x1ca   : > { %1146 = vrot.lane.b32.xlu1 %v2439_v30, %s2156_s23 }
 0x1cc   : > { %v1006_v43 = vpop.f32.mrf.mxu1 }
 0x1cd   : > { %v2442_v44 = vadd.f32 %v2035_v38, %v1006_v43  ;;  %v967_v45 = vpop.f32.mrf.mxu0 }
 0x1ce   : > { %v968_v46 = vadd.f32 %v2034_v39, %v967_v45 }
 0x1cf   : > { %1152 = vrot.lane.b32.xlu2 %v2442_v44, %s2156_s23  ;;  %1917 = vmatpush.xpose.msk.msra.mxu2 %vm1021_vm14, %v2442_v44  ;;  %v2484_v10 = vpack.i.bf16 %v2436_v42, %v2442_v44 }
 0x1d0   : > { %1961 = vmatpush.xpose.msk.msra.mxu3 %vm1021_vm14, %v2442_v44  ;;  %v2453_v47 = vmul.f32 0.35355338, %v968_v46 }
 0x1d3   : > { %1918 = vmatpush.xpose.msk.msra.mxu2 %vm1021_vm14, %v2436_v42 }
 0x1d4   : > { %1962 = vmatpush.xpose.msk.msra.mxu3 %vm1021_vm14, %v2436_v42 }
 0x1d6   : > { %1919 = vmatmul.msk.f32.vlgmr.msra.gmra.mxu2 %vm1021_vm14, %v2439_v30 }
 0x1d7   : > { %1920 = vmatmul.msk.f32.vlgmr.msra.gmra.mxu3 %vm1021_vm14, %v2453_v47  ;;  %1148 = vrot.lane.b32.xlu2 %v2453_v47, %s2156_s23  ;;  %s2161_s23 = smov 72  }
 0x1d8   : > { %1263 = vmatpush.msrb.mxu2 %v1012_v41 }
 0x229   : > { %v1153_v48 = vpop.permute.xlu2 %1152 }
 0x22a   : > { %1925 = vmatpush.xpose.msk.msrb.mxu0 %vm1021_vm14, %v1153_v48 }
 0x231   : > { %v1149_v51 = vpop.permute.xlu2 %1148 }
 0x239   : > { %v1151_v49 = vpop.permute.xlu0 %1150 }
 0x23a   : > { %1926 = vmatpush.xpose.msk.msrb.mxu0 %vm1021_vm14, %v1151_v49 }
 0x23c   : > { %v1147_v50 = vpop.permute.xlu1 %1146 }
 0x23d   : > { %1927 = vmatmul.msk.f32.vlgmr.msrb.gmra.mxu0 %vm1021_vm14, %v1147_v50 }
 0x245   : > { %1928 = vmatmul.msk.f32.gmra.mxu0 %vm1021_vm14, %v1149_v51 }
 0x259   : > { %v1051_v54 = vpop.f32.mrf.mxu2 }
 0x25a   : > { %v1052_v55 = vadd.f32 %v1051_v54, %v2467_v52  ;;  %v1054_v56 = vpop.f32.mrf.mxu3 }
 0x25b   : > { %v1055_v57 = vadd.f32 %v1054_v56, %v2472_v53 }
 0x25c   : > { %v1058_v58 = vsel %vm1057_vm15, %v1052_v55, -inf }
 0x25d   : > { %1059 = vmax.xlane.f32.xlu0 %v1058_v58  ;;  %v1061_v59 = vsel %vm1057_vm15, %v1055_v57, -inf }
 0x25e   : > { %1062 = vmax.xlane.f32.xlu1 %v1061_v59 }
 0x2ba   : > { %v1179_v60 = vpop.f32.mrf.mxu0 }
 0x2bb   : > { %v1180_v61 = vadd.f32 %v1179_v60, %v2467_v52 }
 0x2bd   : > { %v1185_v62 = vsel %vm1057_vm15, %v1180_v61, -inf }
 0x2be   : > { %1186 = vmax.xlane.f32.xlu2 %v1185_v62 }
 0x2c2   : > { %v1182_v63 = vpop.f32.mrf.mxu0 }
 0x2c3   : > { %v1183_v0 = vadd.f32 %v1182_v63, %v2472_v53 }
 0x2c5   : > { %v1188_v2 = vsel %vm1057_vm15, %v1183_v0, -inf }
 0x2c6   : > { %1189 = vmax.xlane.f32.xlu0 %v1188_v2  ;;  %v2036_v2 = vld [vmem:[%s794_s22] ss:$0 sm:$0xff]  ;;  %s2705_s22 = sld [smem:[#allocation11_spill]] }
 0x2d0   : > { %v1060_v3 = vpop.xlane.xlu0 %1059 }
 0x2d1   : > { %v1064_v4 = vsub.f32 %v1052_v55, %v1060_v3  ;;  %v1063_v6 = vpop.xlane.xlu1 %1062  ;;  %v1019_v3 = vadd.f32 %v2036_v2, %v2344_v1 }
 0x2d2   : > { %v1065_v8 = vsub.f32 %v1055_v57, %v1063_v6 }
 0x2d3   : > { %v1066_v7 = vmul.f32 1.442695, %v1064_v4 }
 0x2d4   : > { %v1068_v9 = vmul.f32 1.442695, %v1065_v8  ;;  %v1020_v8 = vadd.f32 %v2036_v2, %v2349_v5 }
 0x2d5   : > { %2051 = vpow2.f32 %v1066_v7 }
 0x2d6   : > { %2053 = vpow2.f32 %v1068_v9 }
 0x2da   : > { %2013 = vrot.lane.b32.xlu0 %v2484_v10, %s2157_s13 }
 0x2db   : > { %v2052_v11 = vpop.eup %2051 }
 0x2dc   : > { %v1070_v12 = vsel %vm1057_vm15, %v2052_v11, 0.0  ;;  %v2054_v13 = vpop.eup %2053 }
 0x2dd   : > { %1071 = vadd.xlane.f32.xlu2 %v1070_v12  ;;  %v1073_v15 = vsel %vm1057_vm15, %v2054_v13, 0.0 }
 0x2e2   : > { %1279 = vrot.lane.b32.xlu0 %v2442_v44, %s2158_s20 }
 0x2e5   : > { %1074 = vadd.xlane.f32.xlu2 %v1073_v15 }
 0x2ea   : > { %1404 = vrot.lane.b32.xlu0 %v2436_v42, %s2159_s30 }
 0x2f2   : > { %1277 = vrot.lane.b32.xlu0 %v2436_v42, %s2158_s20 }
 0x2fa   : > { %1275 = vrot.lane.b32.xlu0 %v2453_v47, %s2158_s20 }
 0x331   : > { %v1187_v16 = vpop.xlane.xlu2 %1186 }
 0x332   : > { %v1191_v17 = vsub.f32 %v1180_v61, %v1187_v16 }
 0x334   : > { %v1193_v18 = vmul.f32 1.442695, %v1191_v17 }
 0x336   : > { %2055 = vpow2.f32 %v1193_v18 }
 0x339   : > { %v1190_v21 = vpop.xlane.xlu0 %1189 }
 0x33a   : > { %v1192_v22 = vsub.f32 %v1183_v0, %v1190_v21 }
 0x33c   : > { %v2056_v23 = vpop.eup %2055  ;;  %v1195_v24 = vmul.f32 1.442695, %v1192_v22 }
 0x33d   : > { %v1197_v25 = vsel %vm1057_vm15, %v2056_v23, 0.0 }
 0x33e   : > { %2057 = vpow2.f32 %v1195_v24  ;;  %1198 = vadd.xlane.f32.xlu1 %v1197_v25 }
 0x344   : > { %v2058_v26 = vpop.eup %2057 }
 0x345   : > { %v1200_v27 = vsel %vm1057_vm15, %v2058_v26, 0.0 }
 0x346   : > { %1201 = vadd.xlane.f32.xlu2 %v1200_v27 }
 0x34c   : > { %v2014_v19 = vpop.permute.xlu0 %2013 }
 0x34d   : > { %v2015_v20 = vunpack.i.l.bf16 %v2014_v19  ;;  %v2016_v28 = vunpack.i.h.bf16 %v2014_v19 }
 0x34f   : > { %1106 = vmatpush.msrb.mxu3 %v2015_v20 }
 0x350   : > { %v1072_v32 = vpop.xlane.xlu2 %1071 }
 0x351   : > { %2059 = vrcp.f32 %v1072_v32  ;;  %1107 = vmatpush.msrb.mxu3 %v2016_v28 }
 0x353   : > { %1136 = vmatpush.msra.mxu3 %v1011_v31 }
 0x354   : > { %v1280_v33 = vpop.permute.xlu0 %1279 }
 0x357   : > { %v2060_v34 = vpop.eup %2059  ;;  %2018 = vrot.lane.b32.xlu1 %v2484_v10, %s2160_s27  ;;  %s1959_s27 = sshll.u32 %s2714_s28, 7 }
 0x358   : > { %v1075_v35 = vpop.xlane.xlu2 %1074  ;;  %v1078_v36 = vmul.f32 %v2060_v34, %v2052_v11 }
 0x359   : > { %2061 = vrcp.f32 %v1075_v35 }
 0x35a   : > { %1921 = vmatmul.msk.f32.vlgmr.msrb.gmra.mxu3 %vm1057_vm15, %v1078_v36 }
 0x35b   : > { %1933 = vmatpush.xpose.msk.msrb.mxu3 %vm1021_vm14, %v1280_v33 }
 0x35c   : > { %v1405_v37 = vpop.permute.xlu0 %1404 }
 0x35e   : > { %1406 = vrot.lane.b32.xlu2 %v2442_v44, %s2159_s30 }
 0x35f   : > { %v2062_v38 = vpop.eup %2061  ;;  %1400 = vrot.lane.b32.xlu1 %v2439_v30, %s2159_s30 }
 0x360   : > { %v1079_v39 = vmul.f32 %v2062_v38, %v2054_v13 }
 0x362   : > { %1922 = vmatmul.msk.f32.gmra.mxu3 %vm1057_vm15, %v1079_v39 }
 0x364   : > { %v1278_v40 = vpop.permute.xlu0 %1277 }
 0x365   : > { %1934 = vmatpush.xpose.msk.msrb.mxu3 %vm1021_vm14, %v1278_v40 }
 0x366   : > { %1402 = vrot.lane.b32.xlu2 %v2453_v47, %s2159_s30  ;;  %s800_s30 = scalar_lea.vmem %s2681_s12, %s2714_s28 }
 0x367   : > { %1273 = vrot.lane.b32.xlu1 %v2439_v30, %s2158_s20  ;;  %s2706_s20 = sld [smem:[#allocation12_spill]] }
 0x36c   : > { %v1276_v56 = vpop.permute.xlu0 %1275 }
 0x3b1   : > { %v1199_v29 = vpop.xlane.xlu1 %1198 }
 0x3b2   : > { %2063 = vrcp.f32 %v1199_v29 }
 0x3b8   : > { %v2064_v45 = vpop.eup %2063 }
 0x3b9   : > { %v1202_v42 = vpop.xlane.xlu2 %1201  ;;  %v1205_v48 = vmul.f32 %v2064_v45, %v2056_v23 }
 0x3ba   : > { %2065 = vrcp.f32 %v1202_v42 }
 0x3c0   : > { %v2066_v30 = vpop.eup %2065 }
 0x3c1   : > { %v1407_v43 = vpop.permute.xlu2 %1406  ;;  %v1206_v49 = vmul.f32 %v2066_v30, %v2058_v26 }
 0x3c2   : > { %1941 = vmatpush.xpose.msk.msra.mxu2 %vm1021_vm14, %v1407_v43 }
 0x3c6   : > { %1942 = vmatpush.xpose.msk.msra.mxu2 %vm1021_vm14, %v1405_v37 }
 0x3c9   : > { %v2019_v44 = vpop.permute.xlu1 %2018  ;;  %v1403_v60 = vpop.permute.xlu2 %1402 }
 0x3ca   : > { %v2020_v46 = vunpack.i.l.bf16 %v2019_v44  ;;  %v2021_v47 = vunpack.i.h.bf16 %v2019_v44 }
 0x3cc   : > { %1233 = vmatpush.msrb.mxu1 %v2020_v46 }
 0x3ce   : > { %1234 = vmatpush.msrb.mxu1 %v2021_v47 }
 0x3cf   : > { %1929 = vmatmul.msk.f32.vlgmr.msrb.gmra.mxu1 %vm1057_vm15, %v1205_v48 }
 0x3d1   : > { %v1401_v51 = vpop.permute.xlu1 %1400 }
 0x3d7   : > { %1930 = vmatmul.msk.f32.gmra.mxu1 %vm1057_vm15, %v1206_v49  ;;  %v1013_v49 = vld [vmem:[%s2503_s17 + $0x10] sm:$0xff] }
 0x3d8   : > { %1390 = vmatpush.msra.mxu1 %v1013_v49 }
 0x3d9   : > { %v1274_v55 = vpop.permute.xlu1 %1273 }
 0x3dd   : > { %v1109_v50 = vpop.f32.mrf.mxu3 }
 0x3de   : > { %1923 = vmatmul.msk.f32.vlgmr.msra.gmra.mxu3 %vm1021_vm14, %v1109_v50 }
 0x3e5   : > { %v1112_v54 = vpop.f32.mrf.mxu3 }
 0x3e6   : > { %1924 = vmatmul.msk.f32.gmra.mxu3 %vm1021_vm14, %v1112_v54 }
 0x3ee   : > { %1935 = vmatmul.msk.f32.vlgmr.msrb.gmra.mxu3 %vm1021_vm14, %v1274_v55 }
 0x3f6   : > { %1936 = vmatmul.msk.f32.gmra.mxu3 %vm1021_vm14, %v1276_v56 }
 0x44c   : > { %v1236_v57 = vpop.f32.mrf.mxu1 }
 0x44d   : > { %1931 = vmatmul.msk.f32.vlgmr.msrb.gmra.mxu2 %vm1021_vm14, %v1236_v57 }
 0x454   : > { %v1239_v58 = vpop.f32.mrf.mxu1 }
 0x455   : > { %1932 = vmatmul.msk.f32.gmra.mxu2 %vm1021_vm14, %v1239_v58 }
 0x45d   : > { %1943 = vmatmul.msk.f32.vlgmr.msra.gmra.mxu2 %vm1021_vm14, %v1401_v51 }
 0x461   : > { %v1138_v59 = vpop.f32.mrf.mxu3 }
 0x462   : > { %v1144_v4 = vadd.f32 %v1138_v59, %v1019_v3 }
 0x465   : > { %1944 = vmatmul.msk.f32.gmra.mxu2 %vm1021_vm14, %v1403_v60  ;;  %v1014_v60 = vld [vmem:[%s2503_s17 + $0x18] sm:$0xff]  ;;  %s803_s17 = scalar_lea.vmem %s2683_s14, %s2714_s28 }
 0x469   : > { %v1141_v61 = vpop.f32.mrf.mxu3 }
 0x46a   : > { %v1145_v9 = vadd.f32 %v1141_v61, %v1020_v8 }
 0x471   : > { %v1306_v62 = vpop.f32.mrf.mxu3 }
 0x472   : > { %v1307_v63 = vadd.f32 %v1306_v62, %v2467_v52 }
 0x474   : > { %v1312_v0 = vsel %vm1057_vm15, %v1307_v63, -inf }
 0x475   : > { %1313 = vmax.xlane.f32.xlu2 %v1312_v0 }
 0x479   : > { %v1309_v17 = vpop.f32.mrf.mxu3 }
 0x47a   : > { %v1310_v18 = vadd.f32 %v1309_v17, %v2472_v53 }
 0x47c   : > { %v1315_v25 = vsel %vm1057_vm15, %v1310_v18, -inf }
 0x4d0   : > { %v1265_v6 = vpop.f32.mrf.mxu2 }
 0x4d1   : > { %v2539_v7 = vadd.f32 %v1265_v6, %v1144_v4 }
 0x4d8   : > { %v1268_v11 = vpop.f32.mrf.mxu2 }
 0x4d9   : > { %v2542_v12 = vadd.f32 %v1268_v11, %v1145_v9 }
 0x4e0   : > { %v1433_v13 = vpop.f32.mrf.mxu2 }
 0x4e1   : > { %v1434_v15 = vadd.f32 %v1433_v13, %v2467_v52 }
 0x4e3   : > { %v1439_v16 = vsel %vm1057_vm15, %v1434_v15, -inf }
 0x4e4   : > { %1440 = vmax.xlane.f32.xlu1 %v1439_v16 }
 0x4e8   : > { %v1314_v1 = vpop.xlane.xlu2 %1313  ;;  %v1436_v21 = vpop.f32.mrf.mxu2 }
 0x4e9   : > { %v1318_v22 = vsub.f32 %v1307_v63, %v1314_v1  ;;  %v1437_v23 = vadd.f32 %v1436_v21, %v2472_v53 }
 0x4eb   : > { %v1320_v24 = vmul.f32 1.442695, %v1318_v22  ;;  %v1442_v5 = vsel %vm1057_vm15, %v1437_v23, -inf }
 0x4ec   : > { %1443 = vmax.xlane.f32.xlu0 %v1442_v5  ;;  %1316 = vmax.xlane.f32.xlu1 %v1315_v25  ;;  %v1586_v5 = vld [vmem:[%s2323_s15 + $0x18] sm:$0xff]  ;;  %v1585_v25 = vld [vmem:[%s2323_s15 + $0x10] sm:$0xff] }
 0x4ed   : > { %2067 = vpow2.f32 %v1320_v24  ;;  %1609 = vmatpush.msrb.mxu1 %v1586_v5 }
 0x4ef   : > { %1610 = vmatpush.msrb.mxu1 %v1585_v25 }
 0x4f3   : > { %v2068_v52 = vpop.eup %2067 }
 0x4f4   : > { %v1324_v26 = vsel %vm1057_vm15, %v2068_v52, 0.0 }
 0x4f5   : > { %1325 = vadd.xlane.f32.xlu0 %v1324_v26  ;;  %v1583_v26 = vld [vmem:[%s2323_s15] sm:$0xff] }
 0x505   : > { %2023 = vrot.lane.b32.xlu1 %v2484_v10, %s2161_s23  ;;  %s2607_s23 = scalar_lea.vmem %s2705_s22, %s1959_s27  ;;  %s816_s22 = scalar_lea.vmem %s2707_s26, %s2334_s16 }
 0x509   : > { %2028 = vrot.lane.b32.xlu0 %v2484_v10, %s2162_s29 }
 0x557   : > { %v1441_v27 = vpop.xlane.xlu1 %1440 }
 0x558   : > { %v1445_v53 = vsub.f32 %v1434_v15, %v1441_v27 }
 0x55a   : > { %v1447_v19 = vmul.f32 1.442695, %v1445_v53 }
 0x55c   : > { %2069 = vpow2.f32 %v1447_v19 }
 0x55f   : > { %v1444_v20 = vpop.xlane.xlu0 %1443  ;;  %v1317_v28 = vpop.xlane.xlu1 %1316 }
 0x560   : > { %v1446_v31 = vsub.f32 %v1437_v23, %v1444_v20  ;;  %v1319_v34 = vsub.f32 %v1310_v18, %v1317_v28  ;;  %v1637_v20 = vld [vmem:[%s2607_s23 + $0x78] sm:$0xff]  ;;  %v1636_v28 = vld [vmem:[%s2607_s23 + $0x70] sm:$0xff] }
 0x561   : > { %1638 = vmatpush.msrb.mxu2 %v1637_v20 }
 0x562   : > { %v2070_v32 = vpop.eup %2069  ;;  %v1449_v33 = vmul.f32 1.442695, %v1446_v31  ;;  %v1322_v36 = vmul.f32 1.442695, %v1319_v34 }
 0x563   : > { %v1451_v35 = vsel %vm1057_vm15, %v2070_v32, 0.0  ;;  %1639 = vmatpush.msrb.mxu2 %v1636_v28 }
 0x564   : > { %2071 = vpow2.f32 %v1449_v33  ;;  %1452 = vadd.xlane.f32.xlu2 %v1451_v35 }
 0x565   : > { %2073 = vpow2.f32 %v1322_v36  ;;  %v1634_v36 = vld [vmem:[%s2607_s23 + $0x60] sm:$0xff] }
 0x568   : > { %v1326_v39 = vpop.xlane.xlu0 %1325 }
 0x569   : > { %2075 = vrcp.f32 %v1326_v39 }
 0x56a   : > { %v2072_v37 = vpop.eup %2071 }
 0x56b   : > { %v1454_v38 = vsel %vm1057_vm15, %v2072_v37, 0.0  ;;  %v2074_v10 = vpop.eup %2073 }
 0x56c   : > { %1455 = vadd.xlane.f32.xlu2 %v1454_v38  ;;  %v1327_v40 = vsel %vm1057_vm15, %v2074_v10, 0.0 }
 0x56f   : > { %v2076_v44 = vpop.eup %2075 }
 0x570   : > { %v1332_v47 = vmul.f32 %v2076_v44, %v2068_v52  ;;  %v1584_v52 = vld [vmem:[%s2323_s15 + $0x8] sm:$0xff] }
 0x571   : > { %1611 = vmatpush.msrb.mxu1 %v1584_v52 }
 0x573   : > { %1612 = vmatpush.msrb.mxu1 %v1583_v26 }
 0x574   : > { %1328 = vadd.xlane.f32.xlu2 %v1327_v40  ;;  %v1632_v40 = vld [vmem:[%s2607_s23 + $0x50] sm:$0xff] }
 0x577   : > { %v2024_v41 = vpop.permute.xlu1 %2023 }
 0x578   : > { %v2025_v42 = vunpack.i.l.bf16 %v2024_v41  ;;  %v2026_v29 = vunpack.i.h.bf16 %v2024_v41 }
 0x57a   : > { %1487 = vmatpush.msra.mxu3 %v2025_v42  ;;  %v1631_v42 = vld [vmem:[%s2607_s23 + $0x48] sm:$0xff] }
 0x57b   : > { %v2029_v43 = vpop.permute.xlu0 %2028 }
 0x57c   : > { %v2030_v45 = vunpack.i.l.bf16 %v2029_v43  ;;  %1488 = vmatpush.msra.mxu3 %v2026_v29  ;;  %v2031_v46 = vunpack.i.h.bf16 %v2029_v43  ;;  %v1630_v43 = vld [vmem:[%s2607_s23 + $0x40] sm:$0xff] }
 0x57e   : > { %1360 = vmatpush.msra.mxu0 %v2030_v45 }
 0x580   : > { %1361 = vmatpush.msra.mxu0 %v2031_v46 }
 0x581   : > { %1937 = vmatmul.msk.f32.vlgmr.msra.gmra.mxu0 %vm1057_vm15, %v1332_v47  ;;  %v2038_v47 = vld [vmem:[%s800_s30] ss:$0 sm:$0xff]  ;;  %s811_s30 = scalar_lea.vmem %s2706_s20, %s2714_s28 }
 0x582   : > { %1517 = vmatpush.msrb.mxu0 %v1014_v60 }
 0x5d7   : > { %v1453_v48 = vpop.xlane.xlu2 %1452 }
 0x5d8   : > { %2077 = vrcp.f32 %v1453_v48  ;;  %v1629_v48 = vld [vmem:[%s2607_s23 + $0x38] sm:$0xff] }
 0x5de   : > { %v2078_v30 = vpop.eup %2077 }
 0x5df   : > { %v1459_v50 = vmul.f32 %v2078_v30, %v2070_v32  ;;  %v1456_v51 = vpop.xlane.xlu2 %1455  ;;  %v1635_v32 = vld [vmem:[%s2607_s23 + $0x68] sm:$0xff] }
 0x5e0   : > { %2079 = vrcp.f32 %v1456_v51  ;;  %1640 = vmatpush.msrb.mxu2 %v1635_v32 }
 0x5e1   : > { %1945 = vmatmul.msk.f32.vlgmr.msra.gmra.mxu3 %vm1057_vm15, %v1459_v50  ;;  %v1628_v50 = vld [vmem:[%s2607_s23 + $0x30] sm:$0xff] }
 0x5e2   : > { %1641 = vmatpush.msrb.mxu2 %v1634_v36 }
 0x5e6   : > { %v2080_v54 = vpop.eup %2079 }
 0x5e7   : > { %v1329_v55 = vpop.xlane.xlu2 %1328  ;;  %v1460_v56 = vmul.f32 %v2080_v54, %v2072_v37 }
 0x5e8   : > { %2081 = vrcp.f32 %v1329_v55  ;;  %v1627_v55 = vld [vmem:[%s2607_s23 + $0x28] sm:$0xff] }
 0x5e9   : > { %1946 = vmatmul.msk.f32.gmra.mxu3 %vm1057_vm15, %v1460_v56 }
 0x5ee   : > { %v2082_v57 = vpop.eup %2081 }
 0x5ef   : > { %v1333_v58 = vmul.f32 %v2082_v57, %v2074_v10  ;;  %v1633_v10 = vld [vmem:[%s2607_s23 + $0x58] sm:$0xff]  ;;  %v1626_v57 = vld [vmem:[%s2607_s23 + $0x20] sm:$0xff] }
 0x5f0   : > { %1642 = vmatpush.msrb.mxu2 %v1633_v10 }
 0x5f1   : > { %1938 = vmatmul.msk.f32.gmra.mxu0 %vm1057_vm15, %v1333_v58 }
 0x5f2   : > { %1643 = vmatpush.msrb.mxu2 %v1632_v40 }
 0x5f4   : > { %1644 = vmatpush.msrb.mxu2 %v1631_v42 }
 0x5f6   : > { %1645 = vmatpush.msrb.mxu2 %v1630_v43 }
 0x5f8   : > { %1646 = vmatpush.msrb.mxu2 %v1629_v48 }
 0x5fa   : > { %1647 = vmatpush.msrb.mxu2 %v1628_v50 }
 0x5fc   : > { %1648 = vmatpush.msrb.mxu2 %v1627_v55 }
 0x5fe   : > { %v1363_v59 = vpop.f32.mrf.mxu0  ;;  %1649 = vmatpush.msrb.mxu2 %v1626_v57 }
 0x5ff   : > { %1939 = vmatmul.msk.f32.vlgmr.msra.gmra.mxu1 %vm1021_vm14, %v1363_v59  ;;  %v1625_v59 = vld [vmem:[%s2607_s23 + $0x18] sm:$0xff] }
 0x600   : > { %1650 = vmatpush.msrb.mxu2 %v1625_v59 }
 0x664   : > { %v1490_v61 = vpop.f32.mrf.mxu3 }
 0x665   : > { %1947 = vmatmul.msk.f32.vlgmr.msrb.gmra.mxu0 %vm1021_vm14, %v1490_v61 }
 0x66c   : > { %v1493_v62 = vpop.f32.mrf.mxu3 }
 0x66d   : > { %1948 = vmatmul.msk.f32.gmra.mxu0 %vm1021_vm14, %v1493_v62 }
 0x66e   : > { %v1366_v63 = vpop.f32.mrf.mxu0 }
 0x66f   : > { %1940 = vmatmul.msk.f32.gmra.mxu1 %vm1021_vm14, %v1366_v63 }
 0x67c   : > { %v1392_v0 = vpop.f32.mrf.mxu1 }
 0x67d   : > { %v1398_v2 = vadd.f32 %v1392_v0, %v2539_v7 }
 0x6e2   : > { %v1519_v3 = vpop.f32.mrf.mxu0 }
 0x6e3   : > { %v2567_v4 = vadd.f32 %v1519_v3, %v1398_v2  ;;  %v1624_v2 = vld [vmem:[%s2607_s23 + $0x10] sm:$0xff]  ;;  %v1623_v3 = vld [vmem:[%s2607_s23 + $0x8] sm:$0xff] }
 0x6e4   : > { %1651 = vmatpush.msrb.mxu2 %v1624_v2 }
 0x6e5   : > { %v1529_v6 = vsel %vm821_vm0, %v2567_v4, 0.0 }
 0x6e6   : > { %1530 = vadd.xlane.f32.xlu2 %v1529_v6  ;;  %1652 = vmatpush.msrb.mxu2 %v1623_v3  ;;  %v1622_v6 = vld [vmem:[%s2607_s23] sm:$0xff] }
 0x6e8   : > { %1653 = vmatpush.msrb.mxu2 %v1622_v6 }
 0x6ea   : > { %v1522_v11 = vpop.f32.mrf.mxu0 }
 0x6ec   : > { %v1395_v8 = vpop.f32.mrf.mxu1 }
 0x6ed   : > { %v1399_v9 = vadd.f32 %v1395_v8, %v2542_v12  ;;  %v2039_v8 = vld [vmem:[%s803_s17] ss:$0 sm:$0xff] }
 0x6ef   : > { %v2576_v13 = vadd.f32 %v1522_v11, %v1399_v9 }
 0x6f1   : > { %v1532_v7 = vsel %vm821_vm0, %v2576_v13, 0.0 }
 0x6f2   : > { %1533 = vadd.xlane.f32.xlu1 %v1532_v7 }
 0x759   : > { %v1531_v15 = vpop.xlane.xlu2 %1530 }
 0x75a   : > { %v1535_v16 = vmul.f32 %v1531_v15, %v2354_v14 }
 0x75c   : > { %v1537_v12 = vsub.f32 %v2567_v4, %v1535_v16 }
 0x75e   : > { %v1539_v17 = vmul.f32 %v1537_v12, %v1537_v12 }
 0x760   : > { %v1541_v18 = vsel %vm821_vm0, %v1539_v17, 0.0  ;;  %v2040_v17 = vld [vmem:[%s811_s30] ss:$0 sm:$0xff] }
 0x761   : > { %1542 = vadd.xlane.f32.xlu0 %v1541_v18 }
 0x765   : > { %v1534_v1 = vpop.xlane.xlu1 %1533 }
 0x766   : > { %v1536_v21 = vmul.f32 %v1534_v1, %v2354_v14 }
 0x768   : > { %v2585_v22 = vsub.f32 %v2576_v13, %v1536_v21 }
 0x76a   : > { %v1540_v23 = vmul.f32 %v2585_v22, %v2585_v22 }
 0x76c   : > { %v1544_v24 = vsel %vm821_vm0, %v1540_v23, 0.0 }
 0x76d   : > { %1545 = vadd.xlane.f32.xlu2 %v1544_v24 }
 0x7d4   : > { %v1543_v27 = vpop.xlane.xlu0 %1542 }
 0x7d5   : > { %v1547_v53 = vmul.f32 %v1543_v27, %v2354_v14 }
 0x7d7   : > { %v1549_v19 = vadd.f32 1e-05, %v1547_v53 }
 0x7d9   : > { %2083 = vrsqrt.f32 %v1549_v19  ;;  %vm1557_vm2 = vweird.f32 %v1549_v19 }
 0x7df   : > { %v2084_v31 = vpop.eup %2083 }
 0x7e0   : > { %v1552_v33 = vmul.f32 %v2084_v31, %v1549_v19  ;;  %v1546_v34 = vpop.xlane.xlu2 %1545  ;;  %vm1558_vm1 = vweird.f32 %v2084_v31 }
 0x7e1   : > { %v1548_v35 = vmul.f32 %v1546_v34, %v2354_v14  ;;  %v2037_v14 = vld [vmem:[%s797_s0] ss:$0 sm:$0xff]  ;;  %vm1559_vm3 = vmor %vm1557_vm2, %vm1558_vm1 }
 0x7e2   : > { %v1553_v37 = vmul.f32 %v2084_v31, %v1552_v33 }
 0x7e3   : > { %v1550_v38 = vadd.f32 1e-05, %v1548_v35 }
 0x7e4   : > { %v1554_v39 = vmul.f32 0.5, %v1553_v37 }
 0x7e5   : > { %2085 = vrsqrt.f32 %v1550_v38  ;;  %vm1567_vm5 = vweird.f32 %v1550_v38 }
 0x7e6   : > { %v1555_v41 = vsub.f32 1.5, %v1554_v39 }
 0x7e8   : > { %v1556_v29 = vmul.f32 %v2084_v31, %v1555_v41 }
 0x7ea   : > { %v1560_v44 = vsel %vm1559_vm3, %v2084_v31, %v1556_v29 }
 0x7eb   : > { %v2086_v45 = vpop.eup %2085  ;;  %v1571_v46 = vmul.f32 %v1560_v44, %v1537_v12 }
 0x7ec   : > { %v1562_v30 = vmul.f32 %v2086_v45, %v1550_v38  ;;  %vm1568_vm4 = vweird.f32 %v2086_v45 }
 0x7ed   : > { %v1576_v49 = vmul.f32 %v2037_v14, %v1571_v46  ;;  %vm1569_vm6 = vmor %vm1567_vm5, %vm1568_vm4 }
 0x7ee   : > { %v1563_v51 = vmul.f32 %v2086_v45, %v1562_v30 }
 0x7ef   : > { %v1581_v54 = vadd.f32 %v2038_v47, %v1576_v49 }
 0x7f0   : > { %v1564_v56 = vmul.f32 0.5, %v1563_v51 }
 0x7f1   : > { %1949 = vmatmul.msk.f32.vlgmr.msrb.gmra.mxu1 %vm821_vm0, %v1581_v54 }
 0x7f2   : > { %v1565_v58 = vsub.f32 1.5, %v1564_v56 }
 0x7f4   : > { %v1566_v60 = vmul.f32 %v2086_v45, %v1565_v58 }
 0x7f6   : > { %v1570_v61 = vsel %vm1569_vm6, %v2086_v45, %v1566_v60 }
 0x7f7   : > { %v1572_v62 = vmul.f32 %v1570_v61, %v2585_v22 }
 0x7f9   : > { %v1577_v63 = vmul.f32 %v2037_v14, %v1572_v62 }
 0x7fb   : > { %v1582_v0 = vadd.f32 %v2038_v47, %v1577_v63 }
 0x7fd   : > { %1950 = vmatmul.msk.f32.gmra.mxu1 %vm821_vm0, %v1582_v0 }
 0x86e   : > { %v1614_v9 = vpop.f32.mrf.mxu1 }
 0x86f   : > { %v1615_v11 = vadd.f32 %v2039_v8, %v1614_v9 }
 0x871   : > { %v1620_v7 = vmax.f32 %v1615_v11, 0.0 }
 0x873   : > { %1654 = vmatmul.f32.vlgmr.msrb.gmra.mxu2 %v1620_v7 }
 0x87a   : > { %v1617_v15 = vpop.f32.mrf.mxu1 }
 0x87b   : > { %v1618_v16 = vadd.f32 %v2039_v8, %v1617_v15 }
 0x87d   : > { %v1621_v12 = vmax.f32 %v1618_v16, 0.0 }
 0x87f   : > { %1657 = vmatmul.f32.gmra.mxu2 %v1621_v12 }
 0x8f6   : > { %v1655_v18 = vpop.f32.mrf.mxu2 }
 0x8f7   : > { %v1661_v1 = vadd.f32 %v1655_v18, %v2567_v4 }
 0x8f9   : > { %v1667_v21 = vadd.f32 %v2040_v17, %v1661_v1 }
 0x8fb   : > { %1669 = vst.msk [vmem:[%s816_s22] sm:$0xff] %vm821_vm0, %v1667_v21 }
 0x902   : > { %v1658_v22 = vpop.f32.mrf.mxu2 }
 0x903   : > { %v1662_v23 = vadd.f32 %v1658_v22, %v2576_v13 }
 0x905   : > { %v1668_v24 = vadd.f32 %v2040_v17, %v1662_v23 }
 0x907   : > { %1670 = vst.msk [vmem:[%s816_s22 + $0x8] sm:$0xff] %vm821_vm0, %v1668_v24 }
 0x908 PF: > { %s2708_s27 = sld [smem:[#allocation6_spill]]  ;;  %s2711_s24 = smov %s2143_s25 }
 0x909   : > { %s2709_s28 = sld [smem:[#allocation5_spill]] }
 0x90a   : > { %s2710_s26 = sld [smem:[#allocation7_spill]] }
 0x90e   : > { %p27_p7 = scmp.ge.s32.totalorder %s2708_s27, 8  }
 0x90f   : > { %s2712_s25 = smov %s2709_s28 }
 0x910   :  { %29 = sbr.rel (!%p27_p7) target bundleno = 10 (0xa), region = 173 }
 0x915   :  { %1692 = vsyncpa [#allocation3], 1 }
 0x916   :  { %1694 = vsyncpa [#allocation3 + $0x1], 1 }

// kernel: forward.9
= control target key start
LH: loop header
LB: loop body
LE: loop exit
PB: predicated region body
PF: predicated region fallthrough
CT: control target
= control target key end

     0   :  { %s2095_s21 = smov 0   ;;  %s2420_s0 = inlined_call_operand.vmem [shape: f32[3,16,64], index: 0, kind: input, shape index: {}]   ;;  %s2421_s1 = inlined_call_operand.vmem [shape: f32[16,16], index: 1, kind: input, shape index: {}]   ;;  %s2422_s2 = inlined_call_operand.vmem [shape: f32[3,1,64], index: 2, kind: input, shape index: {}]   ;;  %s2423_s3 = inlined_call_operand.vmem [shape: f32[3,1,64], index: 3, kind: input, shape index: {}]   ;;  %s2424_s4 = inlined_call_operand.vmem [shape: f32[3,64,64], index: 4, kind: input, shape index: {}]   ;;  %s2425_s5 = inlined_call_operand.vmem [shape: f32[3,1,64], index: 5, kind: input, shape index: {}]   ;;  %s2426_s6 = inlined_call_operand.vmem [shape: f32[3,64,128], index: 6, kind: input, shape index: {}]   ;;  %s2427_s7 = inlined_call_operand.vmem [shape: f32[3,1,128], index: 7, kind: input, shape index: {}]   ;;  %s2428_s8 = inlined_call_operand.vmem [shape: f32[3,64,64], index: 8, kind: input, shape index: {}]   ;;  %s2429_s9 = inlined_call_operand.vmem [shape: f32[3,1,64], index: 9, kind: input, shape index: {}]   ;;  %s2430_s10 = inlined_call_operand.vmem [shape: f32[3,1,64], index: 10, kind: input, shape index: {}]   ;;  %s2431_s11 = inlined_call_operand.vmem [shape: f32[3,1,64], index: 11, kind: input, shape index: {}]   ;;  %s2432_s12 = inlined_call_operand.vmem [shape: f32[3,64,256], index: 12, kind: input, shape index: {}]   ;;  %s2433_s13 = inlined_call_operand.vmem [shape: f32[3,1,256], index: 13, kind: input, shape index: {}]   ;;  %s2434_s14 = inlined_call_operand.vmem [shape: f32[3,256,64], index: 14, kind: input, shape index: {}]   ;;  %s2435_s15 = inlined_call_operand.vmem [shape: f32[3,1,64], index: 15, kind: input, shape index: {}]   ;;  %s2436_s16 = inlined_call_operand.vmem [shape: f32[3,16,64], index: 16, kind: output, shape index: {}]  }
   0x1   :  { %2439 = sst [smem:[#allocation3_spill]] %s2420_s0 }
   0x2   :  { %2440 = sst [smem:[#allocation4_spill]] %s2436_s16 }
   0x3 LB: > { %2441 = sst [smem:[#allocation2_spill]] %s2000_s21  ;;  %s1837_s22 = sadd.s32 4294967295, %s2000_s21   ;;  %s2000_s21 = sphi %s2095_s21, %s26_s21  }
   0x4   : > { %p1841_p0 = scmp.ge.s32.totalorder %s2000_s21, 1  ;;  %p585_p1 = scmp.lt.s32.totalorder %s2000_s21, 4 }
   0x6   : > { %p586_p2 = pnand %p1841_p0, %p585_p1 }
   0x7   : > { %p688_p3 = scmp.lt.s32.totalorder (!%p586_p2), %s1837_s22, 2  ;;  %s2442_s26 = sld [smem:[#allocation3_spill]] (!%p586_p2) }
   0x8   : > { %589 = sbr.rel (%p586_p2) target bundleno = 2277 (0x8e5), region = 84  ;;  %s2003_s20 = smov (!%p586_p2), 112  }
   0x9   : > { %s2004_s16 = smov (!%p586_p2), 48   ;;  %s2005_s21 = smov (!%p586_p2), 96  }
   0xa   : > { %s2007_s29 = smov (!%p586_p2), 64  }
   0xd   : > { %s2447_s22 = smov (!%p688_p3, %s1837_s22), 2  ;;  %vm755_vm0 = vcmask 523264   ;;  %v2002_v4 = vmov 64.0   ;;  %vm911_vm8 = vcmask 130048  }
   0xe   : > { %s2437_s23 = sshll.u32 %s2447_s22, 4  ;;  %1952 = vrcp.f32 %v2002_v4  ;;  %s695_s30 = scalar_lea.vmem %s2422_s2, %s2447_s22 }
   0xf   : > { %s692_s27 = scalar_lea.vmem %s2442_s26, %s2437_s23  ;;  %s698_s18 = scalar_lea.vmem %s2423_s3, %s2447_s22  ;;  %v1944_v51 = vld [vmem:[%s695_s30] ss:$0 sm:$0xff] }
  0x10   : > { %v2111_v0 = vld [vmem:[%s692_s27] sm:$0xff]  ;;  %v2115_v2 = vld [vmem:[%s692_s27 + $0x8] sm:$0xff]  ;;  %s706_s24 = scalar_lea.vmem %s2425_s5, %s2447_s22  ;;  %s2148_s25 = sshll.u32 %s2447_s22, 6 }
  0x11   : > { %v756_v1 = vsel %vm755_vm0, %v2111_v0, 0.0  ;;  %v759_v3 = vsel %vm755_vm0, %v2115_v2, 0.0  ;;  %s703_s23 = scalar_lea.vmem %s2424_s4, %s2148_s25  ;;  %s711_s28 = scalar_lea.vmem %s2426_s6, %s2148_s25  ;;  %v1945_v55 = vld [vmem:[%s698_s18] ss:$0 sm:$0xff] }
  0x12   : > { %757 = vadd.xlane.f32.xlu0 %v756_v1  ;;  %v824_v21 = vld [vmem:[%s703_s23 + $0x38] sm:$0xff]  ;;  %v823_v23 = vld [vmem:[%s703_s23 + $0x30] sm:$0xff]  ;;  %v822_v25 = vld [vmem:[%s703_s23 + $0x28] sm:$0xff]  ;;  %s714_s19 = scalar_lea.vmem %s2427_s7, %s2447_s22  ;;  %s722_s18 = scalar_lea.vmem %s2429_s9, %s2447_s22 }
  0x13   : > { %v867_v22 = vld [vmem:[%s711_s28 + $0x38] sm:$0xff]  ;;  %843 = vmatpush.msra.mxu0 %v824_v21  ;;  %v866_v24 = vld [vmem:[%s711_s28 + $0x30] sm:$0xff]  ;;  %v865_v26 = vld [vmem:[%s711_s28 + $0x28] sm:$0xff] }
  0x14   : > { %v1953_v5 = vpop.eup %1952  ;;  %880 = vmatpush.msra.mxu1 %v867_v22  ;;  %v821_v27 = vld [vmem:[%s703_s23 + $0x20] sm:$0xff]  ;;  %v820_v29 = vld [vmem:[%s703_s23 + $0x18] sm:$0xff]  ;;  %v819_v31 = vld [vmem:[%s703_s23 + $0x10] sm:$0xff] }
  0x15   : > { %v763_v6 = vmul.f32 64.0, %v1953_v5  ;;  %vm767_vm1 = vweird.f32 %v1953_v5  ;;  %844 = vmatpush.msra.mxu0 %v823_v23  ;;  %v864_v28 = vld [vmem:[%s711_s28 + $0x20] sm:$0xff]  ;;  %v863_v30 = vld [vmem:[%s711_s28 + $0x18] sm:$0xff]  ;;  %v862_v32 = vld [vmem:[%s711_s28 + $0x10] sm:$0xff] }
  0x16   : > { %881 = vmatpush.msra.mxu1 %v866_v24  ;;  %v818_v33 = vld [vmem:[%s703_s23 + $0x8] sm:$0xff]  ;;  %v817_v35 = vld [vmem:[%s703_s23] sm:$0xff]  ;;  %s2006_s23 = smov 80  }
  0x17   : > { %v764_v7 = vsub.f32 1.0, %v763_v6  ;;  %845 = vmatpush.msra.mxu0 %v822_v25  ;;  %v861_v34 = vld [vmem:[%s711_s28 + $0x8] sm:$0xff]  ;;  %v860_v36 = vld [vmem:[%s711_s28] sm:$0xff]  ;;  %s725_s28 = scalar_lea.vmem %s2430_s10, %s2447_s22 }
  0x18   : > { %882 = vmatpush.msra.mxu1 %v865_v26  ;;  %v2215_v24 = vld [vmem:[%s2421_s1 + $0x8] sm:$0xff] }
  0x19   : > { %v765_v8 = vmul.f32 %v1953_v5, %v764_v7  ;;  %846 = vmatpush.msra.mxu0 %v821_v27 }
  0x1a   : > { %760 = vadd.xlane.f32.xlu0 %v759_v3  ;;  %883 = vmatpush.msra.mxu1 %v864_v28  ;;  %v1946_v3 = vld [vmem:[%s706_s24] ss:$0 sm:$0xff]  ;;  %s2009_s24 = smov 32  }
  0x1b   : > { %v766_v9 = vadd.f32 %v1953_v5, %v765_v8  ;;  %847 = vmatpush.msra.mxu0 %v820_v29  ;;  %v1947_v8 = vld [vmem:[%s714_s19] ss:$0 sm:$0xff]  ;;  %s2244_s19 = scalar_lea.vmem %s2428_s8, %s2148_s25  ;;  %s1904_s25 = sshll.u32 %s2447_s22, 8 }
  0x1c   : > { %884 = vmatpush.msra.mxu1 %v863_v30 }
  0x1d   : > { %v2119_v10 = vsel %vm767_vm1, %v1953_v5, %v766_v9  ;;  %848 = vmatpush.msra.mxu0 %v819_v31 }
  0x1e   : > { %885 = vmatpush.msra.mxu1 %v862_v32 }
  0x1f   : > { %849 = vmatpush.msra.mxu0 %v818_v33 }
  0x20   : > { %886 = vmatpush.msra.mxu1 %v861_v34 }
  0x21   : > { %850 = vmatpush.msra.mxu0 %v817_v35 }
  0x22   : > { %887 = vmatpush.msra.mxu1 %v860_v36 }
  0x85   : > { %v758_v11 = vpop.xlane.xlu0 %757 }
  0x86   : > { %v769_v12 = vmul.f32 %v2119_v10, %v758_v11 }
  0x88   : > { %v2123_v13 = vsub.f32 %v2111_v0, %v769_v12 }
  0x8a   : > { %v773_v14 = vmul.f32 %v2123_v13, %v2123_v13 }
  0x8c   : > { %v775_v15 = vsel %vm755_vm0, %v773_v14, 0.0 }
  0x8d   : > { %776 = vadd.xlane.f32.xlu1 %v775_v15  ;;  %v761_v16 = vpop.xlane.xlu0 %760 }
  0x8e   : > { %v770_v17 = vmul.f32 %v2119_v10, %v761_v16 }
  0x90   : > { %v2130_v18 = vsub.f32 %v2115_v2, %v770_v17 }
  0x92   : > { %v774_v19 = vmul.f32 %v2130_v18, %v2130_v18 }
  0x94   : > { %v778_v20 = vsel %vm755_vm0, %v774_v19, 0.0 }
  0x95   : > { %779 = vadd.xlane.f32.xlu1 %v778_v20  ;;  %v2208_v20 = vld [vmem:[%s2421_s1] sm:$0xff] }
 0x100   : > { %v777_v37 = vpop.xlane.xlu1 %776 }
 0x101   : > { %v781_v38 = vmul.f32 %v777_v37, %v2119_v10 }
 0x103   : > { %v783_v39 = vadd.f32 1e-05, %v781_v38 }
 0x105   : > { %1954 = vrsqrt.f32 %v783_v39  ;;  %vm791_vm3 = vweird.f32 %v783_v39 }
 0x108   : > { %v780_v40 = vpop.xlane.xlu1 %779 }
 0x109   : > { %v782_v41 = vmul.f32 %v780_v40, %v2119_v10 }
 0x10b   : > { %v1955_v42 = vpop.eup %1954  ;;  %v784_v43 = vadd.f32 1e-05, %v782_v41 }
 0x10c   : > { %v786_v44 = vmul.f32 %v1955_v42, %v783_v39  ;;  %vm792_vm2 = vweird.f32 %v1955_v42 }
 0x10d   : > { %1956 = vrsqrt.f32 %v784_v43  ;;  %vm793_vm4 = vmor %vm791_vm3, %vm792_vm2  ;;  %vm801_vm6 = vweird.f32 %v784_v43 }
 0x10e   : > { %v787_v45 = vmul.f32 %v1955_v42, %v786_v44 }
 0x110   : > { %v788_v46 = vmul.f32 0.5, %v787_v45 }
 0x112   : > { %v789_v47 = vsub.f32 1.5, %v788_v46 }
 0x113   : > { %v1957_v48 = vpop.eup %1956 }
 0x114   : > { %v790_v49 = vmul.f32 %v1955_v42, %v789_v47  ;;  %v796_v50 = vmul.f32 %v1957_v48, %v784_v43  ;;  %vm802_vm5 = vweird.f32 %v1957_v48 }
 0x115   : > { %vm803_vm7 = vmor %vm801_vm6, %vm802_vm5 }
 0x116   : > { %v794_v52 = vsel %vm793_vm4, %v1955_v42, %v790_v49  ;;  %v797_v53 = vmul.f32 %v1957_v48, %v796_v50 }
 0x117   : > { %v805_v54 = vmul.f32 %v794_v52, %v2123_v13 }
 0x118   : > { %v798_v56 = vmul.f32 0.5, %v797_v53 }
 0x119   : > { %v810_v57 = vmul.f32 %v1944_v51, %v805_v54 }
 0x11a   : > { %v799_v58 = vsub.f32 1.5, %v798_v56 }
 0x11b   : > { %v815_v59 = vadd.f32 %v1945_v55, %v810_v57 }
 0x11c   : > { %v800_v60 = vmul.f32 %v1957_v48, %v799_v58 }
 0x11d   : > { %1857 = vmatmul.msk.f32.vlgmr.msra.gmra.mxu0 %vm755_vm0, %v815_v59  ;;  %1859 = vmatmul.msk.f32.vlgmr.msra.gmra.mxu1 %vm755_vm0, %v815_v59 }
 0x11e   : > { %v804_v61 = vsel %vm803_vm7, %v1957_v48, %v800_v60 }
 0x11f   : > { %v806_v62 = vmul.f32 %v804_v61, %v2130_v18 }
 0x121   : > { %v811_v63 = vmul.f32 %v1944_v51, %v806_v62 }
 0x123   : > { %v816_v1 = vadd.f32 %v1945_v55, %v811_v63 }
 0x125   : > { %1858 = vmatmul.msk.f32.gmra.mxu0 %vm755_vm0, %v816_v1  ;;  %1860 = vmatmul.msk.f32.gmra.mxu1 %vm755_vm0, %v816_v1 }
 0x19a   : > { %v852_v4 = vpop.f32.mrf.mxu0  ;;  %v889_v5 = vpop.f32.mrf.mxu1 }
 0x19b   : > { %v853_v6 = vadd.f32 %v1946_v3, %v852_v4  ;;  %v890_v15 = vadd.f32 %v1947_v8, %v889_v5  ;;  %v900_v5 = vld [vmem:[%s2244_s19 + $0x18] sm:$0xff] }
 0x19d   : > { %v2185_v7 = vmul.f32 0.25, %v853_v6  ;;  %v899_v6 = vld [vmem:[%s2244_s19 + $0x10] sm:$0xff] }
 0x19f   : > { %1035 = vrot.lane.b32.xlu0 %v2185_v7, %s2003_s20 }
 0x1a2   : > { %v855_v9 = vpop.f32.mrf.mxu0  ;;  %v892_v11 = vpop.f32.mrf.mxu1 }
 0x1a3   : > { %v856_v12 = vadd.f32 %v1946_v3, %v855_v9  ;;  %v2188_v13 = vadd.f32 %v1947_v8, %v892_v11 }
 0x1a5   : > { %v2190_v14 = vmul.f32 0.25, %v856_v12  ;;  %1041 = vrot.lane.b32.xlu2 %v2188_v13, %s2003_s20  ;;  %1861 = vmatpush.xpose.msk.msrb.mxu0 %vm911_vm8, %v2188_v13  ;;  %v2224_v41 = vpack.i.bf16 %v890_v15, %v2188_v13  ;;  %v898_v12 = vld [vmem:[%s2244_s19 + $0x8] sm:$0xff] }
 0x1a7   : > { %1037 = vrot.lane.b32.xlu1 %v2190_v14, %s2003_s20 }
 0x1a9   : > { %1862 = vmatpush.xpose.msk.msrb.mxu0 %vm911_vm8, %v890_v15 }
 0x1ac   : > { %1863 = vmatmul.msk.f32.vlgmr.msrb.gmra.mxu0 %vm911_vm8, %v2185_v7 }
 0x1ad   : > { %1039 = vrot.lane.b32.xlu2 %v890_v15, %s2003_s20  ;;  %s2008_s20 = smov 16  }
 0x1b4   : > { %1864 = vmatmul.msk.f32.gmra.mxu0 %vm911_vm8, %v2190_v14 }
 0x1ff   : > { %v1042_v16 = vpop.permute.xlu2 %1041 }
 0x200   : > { %1869 = vmatpush.xpose.msk.msra.mxu2 %vm911_vm8, %v1042_v16 }
 0x207   : > { %v1040_v17 = vpop.permute.xlu2 %1039 }
 0x208   : > { %1870 = vmatpush.xpose.msk.msra.mxu2 %vm911_vm8, %v1040_v17  ;;  %v897_v17 = vld [vmem:[%s2244_s19] sm:$0xff] }
 0x211   : > { %v1036_v18 = vpop.permute.xlu0 %1035 }
 0x212   : > { %1871 = vmatmul.msk.f32.vlgmr.msra.gmra.mxu2 %vm911_vm8, %v1036_v18 }
 0x219   : > { %v1038_v19 = vpop.permute.xlu1 %1037 }
 0x21a   : > { %1872 = vmatmul.msk.f32.gmra.mxu2 %vm911_vm8, %v1038_v19 }
 0x229   : > { %v941_v21 = vpop.f32.mrf.mxu0 }
 0x22a   : > { %v942_v22 = vadd.f32 %v941_v21, %v2208_v20 }
 0x22c   : > { %v947_v23 = vsel %vm911_vm8, %v942_v22, -inf }
 0x22d   : > { %948 = vmax.xlane.f32.xlu2 %v947_v23 }
 0x231   : > { %v944_v25 = vpop.f32.mrf.mxu0 }
 0x232   : > { %v945_v26 = vadd.f32 %v944_v25, %v2215_v24 }
 0x234   : > { %v950_v27 = vsel %vm911_vm8, %v945_v26, -inf }
 0x235   : > { %951 = vmax.xlane.f32.xlu0 %v950_v27 }
 0x295   : > { %v1068_v28 = vpop.f32.mrf.mxu2 }
 0x296   : > { %v1069_v29 = vadd.f32 %v1068_v28, %v2208_v20 }
 0x298   : > { %v1074_v30 = vsel %vm911_vm8, %v1069_v29, -inf }
 0x299   : > { %1075 = vmax.xlane.f32.xlu1 %v1074_v30 }
 0x29d   : > { %v1071_v38 = vpop.f32.mrf.mxu2 }
 0x29e   : > { %v1072_v40 = vadd.f32 %v1071_v38, %v2215_v24 }
 0x2a0   : > { %v949_v31 = vpop.xlane.xlu2 %948  ;;  %v1077_v42 = vsel %vm911_vm8, %v1072_v40, -inf }
 0x2a1   : > { %v953_v32 = vsub.f32 %v942_v22, %v949_v31 }
 0x2a3   : > { %v955_v33 = vmul.f32 1.442695, %v953_v32 }
 0x2a5   : > { %1958 = vpow2.f32 %v955_v33 }
 0x2a8   : > { %v952_v34 = vpop.xlane.xlu0 %951 }
 0x2a9   : > { %v954_v36 = vsub.f32 %v945_v26, %v952_v34 }
 0x2ab   : > { %v1959_v35 = vpop.eup %1958  ;;  %v957_v39 = vmul.f32 1.442695, %v954_v36 }
 0x2ac   : > { %v959_v37 = vsel %vm911_vm8, %v1959_v35, 0.0 }
 0x2ad   : > { %960 = vadd.xlane.f32.xlu2 %v959_v37  ;;  %1960 = vpow2.f32 %v957_v39 }
 0x2b2   : > { %1930 = vrot.lane.b32.xlu1 %v2224_v41, %s2004_s16 }
 0x2b3   : > { %v1961_v43 = vpop.eup %1960 }
 0x2b4   : > { %v962_v44 = vsel %vm911_vm8, %v1961_v43, 0.0 }
 0x2b5   : > { %1078 = vmax.xlane.f32.xlu2 %v1077_v42 }
 0x2ba   : > { %1166 = vrot.lane.b32.xlu1 %v890_v15, %s2005_s21 }
 0x2bd   : > { %963 = vadd.xlane.f32.xlu2 %v962_v44 }
 0x2c2   : > { %1289 = vrot.lane.b32.xlu1 %v2185_v7, %s2006_s23 }
 0x2d5   : > { %1925 = vrot.lane.b32.xlu2 %v2224_v41, %s2007_s29  ;;  %s1903_s29 = sshll.u32 %s2447_s22, 7 }
 0x2dd   : > { %1295 = vrot.lane.b32.xlu2 %v2188_v13, %s2006_s23 }
 0x2e5   : > { %1293 = vrot.lane.b32.xlu2 %v890_v15, %s2006_s23 }
 0x2ed   : > { %1164 = vrot.lane.b32.xlu2 %v2190_v14, %s2005_s21 }
 0x30c   : > { %v1076_v45 = vpop.xlane.xlu1 %1075 }
 0x30d   : > { %v1080_v46 = vsub.f32 %v1069_v29, %v1076_v45 }
 0x30f   : > { %v1082_v47 = vmul.f32 1.442695, %v1080_v46 }
 0x311   : > { %1962 = vpow2.f32 %v1082_v47 }
 0x317   : > { %v1963_v48 = vpop.eup %1962 }
 0x318   : > { %v1086_v49 = vsel %vm911_vm8, %v1963_v48, 0.0 }
 0x319   : > { %1087 = vadd.xlane.f32.xlu0 %v1086_v49 }
 0x320   : > { %v961_v50 = vpop.xlane.xlu2 %960 }
 0x324   : > { %v1931_v51 = vpop.permute.xlu1 %1930 }
 0x325   : > { %v1932_v52 = vunpack.i.l.bf16 %v1931_v51  ;;  %v1933_v53 = vunpack.i.h.bf16 %v1931_v51 }
 0x327   : > { %1122 = vmatpush.msra.mxu0 %v1932_v52 }
 0x328   : > { %v1079_v54 = vpop.xlane.xlu2 %1078 }
 0x329   : > { %v1081_v55 = vsub.f32 %v1072_v40, %v1079_v54  ;;  %1123 = vmatpush.msra.mxu0 %v1933_v53 }
 0x32b   : > { %v1084_v56 = vmul.f32 1.442695, %v1081_v55 }
 0x32c   : > { %v1167_v21 = vpop.permute.xlu1 %1166 }
 0x32d   : > { %1964 = vpow2.f32 %v1084_v56 }
 0x32e   : > { %1966 = vrcp.f32 %v961_v50 }
 0x330   : > { %v964_v57 = vpop.xlane.xlu2 %963 }
 0x331   : > { %1968 = vrcp.f32 %v964_v57 }
 0x333   : > { %v1965_v58 = vpop.eup %1964 }
 0x334   : > { %v1089_v59 = vsel %vm911_vm8, %v1965_v58, 0.0  ;;  %v1967_v60 = vpop.eup %1966  ;;  %v1290_v28 = vpop.permute.xlu1 %1289 }
 0x335   : > { %1090 = vadd.xlane.f32.xlu0 %v1089_v59  ;;  %v967_v3 = vmul.f32 %v1967_v60, %v1959_v35  ;;  %v1948_v35 = vld [vmem:[%s722_s18] ss:$0 sm:$0xff] }
 0x336   : > { %v909_v36 = vadd.f32 %v1948_v35, %v2111_v0  ;;  %v910_v40 = vadd.f32 %v1948_v35, %v2115_v2 }
 0x337   : > { %v1969_v62 = vpop.eup %1968 }
 0x338   : > { %v1926_v61 = vpop.permute.xlu2 %1925  ;;  %v968_v4 = vmul.f32 %v1969_v62, %v1961_v43 }
 0x339   : > { %v1927_v63 = vunpack.i.l.bf16 %v1926_v61  ;;  %v1928_v1 = vunpack.i.h.bf16 %v1926_v61 }
 0x33b   : > { %995 = vmatpush.msrb.mxu1 %v1927_v63  ;;  %1906 = vmatpush.msra.mxu3 %v1927_v63 }
 0x33d   : > { %996 = vmatpush.msrb.mxu1 %v1928_v1  ;;  %1907 = vmatpush.msra.mxu3 %v1928_v1 }
 0x33e   : > { %1865 = vmatmul.msk.f32.vlgmr.msrb.gmra.mxu1 %vm911_vm8, %v967_v3  ;;  %1866 = vmatmul.msk.f32.vlgmr.msra.gmra.mxu3 %vm911_vm8, %v968_v4 }
 0x33f   : > { %1151 = vmatpush.msra.mxu1 %v900_v5  ;;  %1024 = vmatpush.msrb.mxu3 %v898_v12 }
 0x340   : > { %v1296_v8 = vpop.permute.xlu2 %1295 }
 0x341   : > { %1152 = vmatpush.msra.mxu1 %v899_v6  ;;  %1025 = vmatpush.msrb.mxu3 %v897_v17 }
 0x343   : > { %1885 = vmatpush.xpose.msk.msrb.mxu1 %vm911_vm8, %v1296_v8 }
 0x348   : > { %v1294_v9 = vpop.permute.xlu2 %1293 }
 0x349   : > { %1168 = vrot.lane.b32.xlu0 %v2188_v13, %s2005_s21  ;;  %1886 = vmatpush.xpose.msk.msrb.mxu1 %vm911_vm8, %v1294_v9 }
 0x350   : > { %v1165_v25 = vpop.permute.xlu2 %1164 }
 0x351   : > { %1162 = vrot.lane.b32.xlu0 %v2185_v7, %s2005_s21 }
 0x359   : > { %1291 = vrot.lane.b32.xlu0 %v2190_v14, %s2006_s23  ;;  %s728_s23 = scalar_lea.vmem %s2431_s11, %s2447_s22 }
 0x38c   : > { %v1088_v11 = vpop.xlane.xlu0 %1087 }
 0x38d   : > { %1970 = vrcp.f32 %v1088_v11 }
 0x393   : > { %v1971_v15 = vpop.eup %1970 }
 0x394   : > { %v1094_v16 = vmul.f32 %v1971_v15, %v1963_v48 }
 0x396   : > { %1873 = vmatmul.msk.f32.vlgmr.msra.gmra.mxu0 %vm911_vm8, %v1094_v16 }
 0x3a8   : > { %v1091_v13 = vpop.xlane.xlu0 %1090 }
 0x3a9   : > { %1972 = vrcp.f32 %v1091_v13 }
 0x3af   : > { %v1973_v18 = vpop.eup %1972 }
 0x3b0   : > { %v1095_v19 = vmul.f32 %v1973_v18, %v1965_v58 }
 0x3b2   : > { %1874 = vmatmul.msk.f32.gmra.mxu0 %vm911_vm8, %v1095_v19  ;;  %v902_v19 = vld [vmem:[%s2244_s19 + $0x28] sm:$0xff] }
 0x3b3   : > { %1278 = vmatpush.msrb.mxu0 %v902_v19 }
 0x3bb   : > { %v998_v7 = vpop.f32.mrf.mxu1  ;;  %v1169_v14 = vpop.permute.xlu0 %1168 }
 0x3bc   : > { %1867 = vmatmul.msk.f32.vlgmr.msrb.gmra.mxu3 %vm911_vm8, %v998_v7 }
 0x3bd   : > { %1877 = vmatpush.xpose.msk.msra.mxu3 %vm911_vm8, %v1169_v14 }
 0x3c1   : > { %1878 = vmatpush.xpose.msk.msra.mxu3 %vm911_vm8, %v1167_v21  ;;  %v1001_v22 = vpop.f32.mrf.mxu3 }
 0x3c3   : > { %v1163_v23 = vpop.permute.xlu0 %1162 }
 0x3c4   : > { %1868 = vmatmul.msk.f32.gmra.mxu3 %vm911_vm8, %v1001_v22 }
 0x3cb   : > { %v1292_v29 = vpop.permute.xlu0 %1291 }
 0x3cc   : > { %1879 = vmatmul.msk.f32.vlgmr.msra.gmra.mxu3 %vm911_vm8, %v1163_v23 }
 0x3d4   : > { %1880 = vmatmul.msk.f32.gmra.mxu3 %vm911_vm8, %v1165_v25 }
 0x413   : > { %v1125_v26 = vpop.f32.mrf.mxu0 }
 0x414   : > { %1875 = vmatmul.msk.f32.vlgmr.msra.gmra.mxu1 %vm911_vm8, %v1125_v26 }
 0x42f   : > { %v1128_v27 = vpop.f32.mrf.mxu0 }
 0x430   : > { %1876 = vmatmul.msk.f32.gmra.mxu1 %vm911_vm8, %v1128_v27  ;;  %v901_v27 = vld [vmem:[%s2244_s19 + $0x20] sm:$0xff] }
 0x431   : > { %1279 = vmatpush.msrb.mxu0 %v901_v27 }
 0x438   : > { %1887 = vmatmul.msk.f32.vlgmr.msrb.gmra.mxu1 %vm911_vm8, %v1290_v28  ;;  %v904_v28 = vld [vmem:[%s2244_s19 + $0x38] sm:$0xff] }
 0x43f   : > { %v1027_v30 = vpop.f32.mrf.mxu3 }
 0x440   : > { %1888 = vmatmul.msk.f32.gmra.mxu1 %vm911_vm8, %v1292_v29  ;;  %v1033_v37 = vadd.f32 %v1027_v30, %v909_v36 }
 0x447   : > { %v1030_v31 = vpop.f32.mrf.mxu3 }
 0x448   : > { %v1034_v42 = vadd.f32 %v1030_v31, %v910_v40 }
 0x44f   : > { %v1195_v32 = vpop.f32.mrf.mxu3 }
 0x450   : > { %v1196_v33 = vadd.f32 %v1195_v32, %v2208_v20  ;;  %v903_v32 = vld [vmem:[%s2244_s19 + $0x30] sm:$0xff]  ;;  %s733_s19 = scalar_lea.vmem %s2432_s12, %s1903_s29 }
 0x452   : > { %v1201_v34 = vsel %vm911_vm8, %v1196_v33, -inf }
 0x453   : > { %1202 = vmax.xlane.f32.xlu2 %v1201_v34 }
 0x457   : > { %v1198_v48 = vpop.f32.mrf.mxu3 }
 0x458   : > { %v1199_v49 = vadd.f32 %v1198_v48, %v2215_v24 }
 0x45a   : > { %v1204_v51 = vsel %vm911_vm8, %v1199_v49, -inf }
 0x491   : > { %v1154_v38 = vpop.f32.mrf.mxu1 }
 0x492   : > { %v2279_v39 = vadd.f32 %v1154_v38, %v1033_v37 }
 0x4ad   : > { %v1157_v43 = vpop.f32.mrf.mxu1 }
 0x4ae   : > { %v2282_v44 = vadd.f32 %v1157_v43, %v1034_v42 }
 0x4b5   : > { %v1322_v45 = vpop.f32.mrf.mxu1 }
 0x4b6   : > { %v1323_v46 = vadd.f32 %v1322_v45, %v2208_v20 }
 0x4b8   : > { %v1328_v47 = vsel %vm911_vm8, %v1323_v46, -inf }
 0x4b9   : > { %1329 = vmax.xlane.f32.xlu1 %v1328_v47 }
 0x4bd   : > { %v1325_v0 = vpop.f32.mrf.mxu1 }
 0x4be   : > { %v1326_v50 = vadd.f32 %v1325_v0, %v2215_v24 }
 0x4c0   : > { %v1331_v2 = vsel %vm911_vm8, %v1326_v50, -inf }
 0x4c1   : > { %1205 = vmax.xlane.f32.xlu1 %v1204_v51  ;;  %1332 = vmax.xlane.f32.xlu0 %v1331_v2 }
 0x4c6   : > { %v1203_v52 = vpop.xlane.xlu2 %1202 }
 0x4c7   : > { %v1207_v53 = vsub.f32 %v1196_v33, %v1203_v52 }
 0x4c9   : > { %v1209_v54 = vmul.f32 1.442695, %v1207_v53 }
 0x4cb   : > { %1974 = vpow2.f32 %v1209_v54 }
 0x4d1   : > { %v1975_v20 = vpop.eup %1974 }
 0x4d2   : > { %v1213_v55 = vsel %vm911_vm8, %v1975_v20, 0.0 }
 0x4d3   : > { %1214 = vadd.xlane.f32.xlu0 %v1213_v55  ;;  %v1487_v55 = vld [vmem:[%s733_s19 + $0x78] sm:$0xff] }
 0x4d4   : > { %1531 = vmatpush.msra.mxu1 %v1487_v55 }
 0x4da   : > { %1935 = vrot.lane.b32.xlu1 %v2224_v41, %s2008_s20  ;;  %s2349_s20 = scalar_lea.vmem %s2434_s14, %s1904_s25  ;;  %s2443_s25 = sshll.u32 %s2447_s22, 4 }
 0x4db   : > { %v1579_v19 = vld [vmem:[%s2349_s20 + $0xe8] sm:$0xff]  ;;  %v1561_v27 = vld [vmem:[%s2349_s20 + $0x58] sm:$0xff]  ;;  %v1570_v55 = vld [vmem:[%s2349_s20 + $0xa0] sm:$0xff] }
 0x4e7   : > { %1940 = vrot.lane.b32.xlu0 %v2224_v41, %s2009_s24 }
 0x52c   : > { %v1330_v24 = vpop.xlane.xlu1 %1329 }
 0x52d   : > { %v1334_v56 = vsub.f32 %v1323_v46, %v1330_v24  ;;  %v1484_v24 = vld [vmem:[%s733_s19 + $0x60] sm:$0xff] }
 0x52f   : > { %v1336_v57 = vmul.f32 1.442695, %v1334_v56  ;;  %v1485_v56 = vld [vmem:[%s733_s19 + $0x68] sm:$0xff] }
 0x530   : > { %1532 = vmatpush.msra.mxu1 %v1485_v56  ;;  %v1553_v56 = vld [vmem:[%s2349_s20 + $0x18] sm:$0xff] }
 0x531   : > { %1976 = vpow2.f32 %v1336_v57  ;;  %v1482_v57 = vld [vmem:[%s733_s19 + $0x50] sm:$0xff] }
 0x534   : > { %v1333_v58 = vpop.xlane.xlu0 %1332  ;;  %v1206_v59 = vpop.xlane.xlu1 %1205 }
 0x535   : > { %v1335_v60 = vsub.f32 %v1326_v50, %v1333_v58  ;;  %v1208_v63 = vsub.f32 %v1199_v49, %v1206_v59  ;;  %v1483_v58 = vld [vmem:[%s733_s19 + $0x58] sm:$0xff]  ;;  %v1480_v59 = vld [vmem:[%s733_s19 + $0x40] sm:$0xff] }
 0x536   : > { %1533 = vmatpush.msra.mxu1 %v1483_v58 }
 0x537   : > { %v1977_v61 = vpop.eup %1976  ;;  %v1338_v62 = vmul.f32 1.442695, %v1335_v60  ;;  %v1211_v3 = vmul.f32 1.442695, %v1208_v63  ;;  %v1481_v60 = vld [vmem:[%s733_s19 + $0x48] sm:$0xff]  ;;  %v1476_v63 = vld [vmem:[%s733_s19 + $0x20] sm:$0xff] }
 0x538   : > { %v1340_v1 = vsel %vm911_vm8, %v1977_v61, 0.0  ;;  %1534 = vmatpush.msra.mxu1 %v1481_v60 }
 0x539   : > { %1341 = vadd.xlane.f32.xlu2 %v1340_v1  ;;  %1978 = vpow2.f32 %v1338_v62  ;;  %v1479_v62 = vld [vmem:[%s733_s19 + $0x38] sm:$0xff]  ;;  %v1477_v1 = vld [vmem:[%s733_s19 + $0x28] sm:$0xff] }
 0x53a   : > { %1980 = vpow2.f32 %v1211_v3  ;;  %1535 = vmatpush.msra.mxu1 %v1479_v62  ;;  %v1474_v3 = vld [vmem:[%s733_s19 + $0x10] sm:$0xff] }
 0x53b   : > { %v1552_v62 = vld [vmem:[%s2349_s20 + $0x10] sm:$0xff] }
 0x53c   : > { %1536 = vmatpush.msra.mxu1 %v1477_v1  ;;  %v1551_v1 = vld [vmem:[%s2349_s20 + $0x8] sm:$0xff] }
 0x53f   : > { %v1979_v4 = vpop.eup %1978 }
 0x540   : > { %v1343_v5 = vsel %vm911_vm8, %v1979_v4, 0.0  ;;  %v1981_v41 = vpop.eup %1980 }
 0x541   : > { %1344 = vadd.xlane.f32.xlu2 %v1343_v5  ;;  %v1216_v6 = vsel %vm911_vm8, %v1981_v41, 0.0  ;;  %v1472_v5 = vld [vmem:[%s733_s19] sm:$0xff] }
 0x546   : > { %v1215_v12 = vpop.xlane.xlu0 %1214 }
 0x547   : > { %1982 = vrcp.f32 %v1215_v12  ;;  %v1581_v12 = vld [vmem:[%s2349_s20 + $0xf8] sm:$0xff] }
 0x549   : > { %1217 = vadd.xlane.f32.xlu2 %v1216_v6 }
 0x54c   : > { %v1936_v8 = vpop.permute.xlu1 %1935 }
 0x54d   : > { %v1937_v9 = vunpack.i.l.bf16 %v1936_v8  ;;  %v1938_v11 = vunpack.i.h.bf16 %v1936_v8  ;;  %v1983_v16 = vpop.eup %1982 }
 0x54e   : > { %v1221_v18 = vmul.f32 %v1983_v16, %v1975_v20  ;;  %v1486_v20 = vld [vmem:[%s733_s19 + $0x70] sm:$0xff] }
 0x54f   : > { %1376 = vmatpush.msrb.mxu3 %v1937_v9  ;;  %1508 = vmatpush.msra.mxu0 %v1486_v20  ;;  %v1554_v20 = vld [vmem:[%s2349_s20 + $0x20] sm:$0xff] }
 0x551   : > { %1377 = vmatpush.msrb.mxu3 %v1938_v11  ;;  %1509 = vmatpush.msra.mxu0 %v1484_v24  ;;  %v1565_v11 = vld [vmem:[%s2349_s20 + $0x78] sm:$0xff] }
 0x553   : > { %1510 = vmatpush.msra.mxu0 %v1482_v57  ;;  %1582 = vmatpush.msra.mxu3 %v1565_v11  ;;  %v1569_v57 = vld [vmem:[%s2349_s20 + $0x98] sm:$0xff] }
 0x555   : > { %1511 = vmatpush.msra.mxu0 %v1480_v59 }
 0x559   : > { %v1941_v15 = vpop.permute.xlu0 %1940 }
 0x55a   : > { %v1942_v17 = vunpack.i.l.bf16 %v1941_v15  ;;  %v1943_v13 = vunpack.i.h.bf16 %v1941_v15  ;;  %v1564_v15 = vld [vmem:[%s2349_s20 + $0x70] sm:$0xff] }
 0x55b   : > { %1583 = vmatpush.msra.mxu3 %v1564_v15 }
 0x55c   : > { %1249 = vmatpush.msrb.mxu2 %v1942_v17  ;;  %v1580_v17 = vld [vmem:[%s2349_s20 + $0xf0] sm:$0xff] }
 0x55e   : > { %1250 = vmatpush.msrb.mxu2 %v1943_v13 }
 0x55f   : > { %1881 = vmatmul.msk.f32.vlgmr.msrb.gmra.mxu2 %vm911_vm8, %v1221_v18  ;;  %v1563_v18 = vld [vmem:[%s2349_s20 + $0x68] sm:$0xff] }
 0x560   : > { %1405 = vmatpush.msra.mxu2 %v904_v28  ;;  %1584 = vmatpush.msra.mxu3 %v1563_v18  ;;  %v1577_v28 = vld [vmem:[%s2349_s20 + $0xd8] sm:$0xff] }
 0x562   : > { %1406 = vmatpush.msra.mxu2 %v903_v32  ;;  %v1559_v32 = vld [vmem:[%s2349_s20 + $0x48] sm:$0xff] }
 0x564   : > { %1605 = vmatpush.msrb.mxu2 %v1581_v12 }
 0x566   : > { %1606 = vmatpush.msrb.mxu2 %v1580_v17 }
 0x568   : > { %1607 = vmatpush.msrb.mxu2 %v1579_v19 }
 0x5ac   : > { %v1342_v7 = vpop.xlane.xlu2 %1341 }
 0x5ad   : > { %1984 = vrcp.f32 %v1342_v7 }
 0x5b3   : > { %v1985_v14 = vpop.eup %1984 }
 0x5b4   : > { %v1348_v21 = vmul.f32 %v1985_v14, %v1977_v61  ;;  %v1345_v22 = vpop.xlane.xlu2 %1344  ;;  %v1478_v61 = vld [vmem:[%s733_s19 + $0x30] sm:$0xff] }
 0x5b5   : > { %1986 = vrcp.f32 %v1345_v22  ;;  %1512 = vmatpush.msra.mxu0 %v1478_v61  ;;  %v1562_v22 = vld [vmem:[%s2349_s20 + $0x60] sm:$0xff] }
 0x5b6   : > { %1889 = vmatmul.msk.f32.vlgmr.msrb.gmra.mxu3 %vm911_vm8, %v1348_v21 }
 0x5b7   : > { %1513 = vmatpush.msra.mxu0 %v1476_v63  ;;  %1585 = vmatpush.msra.mxu3 %v1562_v22  ;;  %v1568_v63 = vld [vmem:[%s2349_s20 + $0x90] sm:$0xff] }
 0x5b9   : > { %1514 = vmatpush.msra.mxu0 %v1474_v3  ;;  %1586 = vmatpush.msra.mxu3 %v1561_v27  ;;  %v1567_v3 = vld [vmem:[%s2349_s20 + $0x88] sm:$0xff] }
 0x5bb   : > { %v1987_v23 = vpop.eup %1986  ;;  %1515 = vmatpush.msra.mxu0 %v1472_v5 }
 0x5bc   : > { %v1218_v25 = vpop.xlane.xlu2 %1217  ;;  %v1349_v26 = vmul.f32 %v1987_v23, %v1979_v4  ;;  %v1475_v4 = vld [vmem:[%s733_s19 + $0x18] sm:$0xff]  ;;  %v1578_v23 = vld [vmem:[%s2349_s20 + $0xe0] sm:$0xff] }
 0x5bd   : > { %1988 = vrcp.f32 %v1218_v25  ;;  %1537 = vmatpush.msra.mxu1 %v1475_v4  ;;  %1608 = vmatpush.msrb.mxu2 %v1578_v23  ;;  %v1550_v4 = vld [vmem:[%s2349_s20] sm:$0xff] }
 0x5be   : > { %1890 = vmatmul.msk.f32.gmra.mxu3 %vm911_vm8, %v1349_v26 }
 0x5bf   : > { %1609 = vmatpush.msrb.mxu2 %v1577_v28 }
 0x5c3   : > { %v1989_v29 = vpop.eup %1988 }
 0x5c4   : > { %v1222_v30 = vmul.f32 %v1989_v29, %v1981_v41  ;;  %v1473_v41 = vld [vmem:[%s733_s19 + $0x8] sm:$0xff]  ;;  %s745_s19 = scalar_lea.vmem %s2435_s15, %s2447_s22 }
 0x5c5   : > { %1538 = vmatpush.msra.mxu1 %v1473_v41 }
 0x5c6   : > { %1882 = vmatmul.msk.f32.gmra.mxu2 %vm911_vm8, %v1222_v30  ;;  %v1560_v30 = vld [vmem:[%s2349_s20 + $0x50] sm:$0xff] }
 0x5c7   : > { %1587 = vmatpush.msra.mxu3 %v1560_v30 }
 0x5c9   : > { %1588 = vmatpush.msra.mxu3 %v1559_v32 }
 0x5e2   : > { %v1252_v31 = vpop.f32.mrf.mxu2 }
 0x5e3   : > { %1883 = vmatmul.msk.f32.vlgmr.msrb.gmra.mxu0 %vm911_vm8, %v1252_v31 }
 0x639   : > { %v1379_v33 = vpop.f32.mrf.mxu3 }
 0x63a   : > { %1891 = vmatmul.msk.f32.vlgmr.msra.gmra.mxu2 %vm911_vm8, %v1379_v33  ;;  %v1575_v33 = vld [vmem:[%s2349_s20 + $0xc8] sm:$0xff] }
 0x641   : > { %v1382_v34 = vpop.f32.mrf.mxu3 }
 0x642   : > { %1892 = vmatmul.msk.f32.gmra.mxu2 %vm911_vm8, %v1382_v34  ;;  %v1949_v34 = vld [vmem:[%s725_s28] ss:$0 sm:$0xff]  ;;  %s1852_s28 = sshll.u32 %s2447_s22, 1 }
 0x643   : > { %s737_s29 = scalar_lea.vmem %s2433_s13, %s1852_s28 }
 0x644   : > { %v1488_v5 = vld [vmem:[%s737_s29] sm:$0x3] }
 0x645   : > { %v1490_v41 = vperm.slane %v1488_v5, 0 }
 0x649   : > { %v1255_v35 = vpop.f32.mrf.mxu2 }
 0x64a   : > { %1884 = vmatmul.msk.f32.gmra.mxu0 %vm911_vm8, %v1255_v35 }
 0x660   : > { %v1281_v36 = vpop.f32.mrf.mxu0 }
 0x661   : > { %v1287_v37 = vadd.f32 %v1281_v36, %v2279_v39  ;;  %v1558_v36 = vld [vmem:[%s2349_s20 + $0x40] sm:$0xff] }
 0x662   : > { %1589 = vmatpush.msra.mxu3 %v1558_v36 }
 0x6bd   : > { %v1408_v38 = vpop.f32.mrf.mxu2 }
 0x6be   : > { %v2309_v40 = vadd.f32 %v1408_v38, %v1287_v37  ;;  %v1574_v37 = vld [vmem:[%s2349_s20 + $0xc0] sm:$0xff] }
 0x6c0   : > { %v1418_v42 = vsel %vm755_vm0, %v2309_v40, 0.0 }
 0x6c1   : > { %1419 = vadd.xlane.f32.xlu2 %v1418_v42  ;;  %v1950_v42 = vld [vmem:[%s728_s23] ss:$0 sm:$0xff] }
 0x6c5   : > { %v1411_v46 = vpop.f32.mrf.mxu2 }
 0x6c7   : > { %v1284_v43 = vpop.f32.mrf.mxu0 }
 0x6c8   : > { %v1288_v45 = vadd.f32 %v1284_v43, %v2282_v44 }
 0x6ca   : > { %v2318_v47 = vadd.f32 %v1411_v46, %v1288_v45  ;;  %v1557_v45 = vld [vmem:[%s2349_s20 + $0x38] sm:$0xff] }
 0x6cb   : > { %v1573_v46 = vld [vmem:[%s2349_s20 + $0xb8] sm:$0xff]  ;;  %1590 = vmatpush.msra.mxu3 %v1557_v45 }
 0x6cc   : > { %v1421_v39 = vsel %vm755_vm0, %v2318_v47, 0.0 }
 0x6cd   : > { %1422 = vadd.xlane.f32.xlu1 %v1421_v39 }
 0x734   : > { %v1420_v48 = vpop.xlane.xlu2 %1419 }
 0x735   : > { %v1424_v49 = vmul.f32 %v1420_v48, %v2119_v10 }
 0x737   : > { %v2324_v0 = vsub.f32 %v2309_v40, %v1424_v49 }
 0x739   : > { %v1428_v44 = vmul.f32 %v2324_v0, %v2324_v0 }
 0x73b   : > { %v1430_v50 = vsel %vm755_vm0, %v1428_v44, 0.0  ;;  %v1556_v44 = vld [vmem:[%s2349_s20 + $0x30] sm:$0xff] }
 0x73c   : > { %1431 = vadd.xlane.f32.xlu0 %v1430_v50  ;;  %v1572_v50 = vld [vmem:[%s2349_s20 + $0xb0] sm:$0xff]  ;;  %1591 = vmatpush.msra.mxu3 %v1556_v44 }
 0x740   : > { %v1423_v51 = vpop.xlane.xlu1 %1422 }
 0x741   : > { %v1425_v2 = vmul.f32 %v1423_v51, %v2119_v10 }
 0x743   : > { %v2331_v52 = vsub.f32 %v2318_v47, %v1425_v2  ;;  %v1555_v2 = vld [vmem:[%s2349_s20 + $0x28] sm:$0xff] }
 0x744   : > { %1592 = vmatpush.msra.mxu3 %v1555_v2 }
 0x745   : > { %v1429_v53 = vmul.f32 %v2331_v52, %v2331_v52 }
 0x746   : > { %1593 = vmatpush.msra.mxu3 %v1554_v20 }
 0x747   : > { %v1433_v54 = vsel %vm755_vm0, %v1429_v53, 0.0  ;;  %v1571_v53 = vld [vmem:[%s2349_s20 + $0xa8] sm:$0xff] }
 0x748   : > { %1434 = vadd.xlane.f32.xlu2 %v1433_v54  ;;  %1594 = vmatpush.msra.mxu3 %v1553_v56 }
 0x74a   : > { %1595 = vmatpush.msra.mxu3 %v1552_v62 }
 0x74c   : > { %1596 = vmatpush.msra.mxu3 %v1551_v1 }
 0x74e   : > { %1597 = vmatpush.msra.mxu3 %v1550_v4 }
 0x7af   : > { %v1432_v6 = vpop.xlane.xlu0 %1431 }
 0x7b0   : > { %v1436_v8 = vmul.f32 %v1432_v6, %v2119_v10  ;;  %v1491_v6 = vperm.slane %v1488_v5, 1 }
 0x7b2   : > { %v1438_v9 = vadd.f32 1e-05, %v1436_v8 }
 0x7b4   : > { %1990 = vrsqrt.f32 %v1438_v9  ;;  %vm1446_vm10 = vweird.f32 %v1438_v9 }
 0x7ba   : > { %v1991_v16 = vpop.eup %1990 }
 0x7bb   : > { %v1441_v13 = vmul.f32 %v1991_v16, %v1438_v9  ;;  %v1435_v7 = vpop.xlane.xlu2 %1434  ;;  %vm1447_vm9 = vweird.f32 %v1991_v16 }
 0x7bc   : > { %v1437_v21 = vmul.f32 %v1435_v7, %v2119_v10  ;;  %v1576_v10 = vld [vmem:[%s2349_s20 + $0xd0] sm:$0xff]  ;;  %vm1448_vm11 = vmor %vm1446_vm10, %vm1447_vm9 }
 0x7bd   : > { %v1442_v14 = vmul.f32 %v1991_v16, %v1441_v13  ;;  %1610 = vmatpush.msrb.mxu2 %v1576_v10 }
 0x7be   : > { %v1439_v26 = vadd.f32 1e-05, %v1437_v21 }
 0x7bf   : > { %v1443_v25 = vmul.f32 0.5, %v1442_v14  ;;  %1611 = vmatpush.msrb.mxu2 %v1575_v33 }
 0x7c0   : > { %1992 = vrsqrt.f32 %v1439_v26  ;;  %vm1456_vm13 = vweird.f32 %v1439_v26 }
 0x7c1   : > { %v1444_v29 = vsub.f32 1.5, %v1443_v25  ;;  %1612 = vmatpush.msrb.mxu2 %v1574_v37  ;;  %v1951_v25 = vld [vmem:[%s745_s19] ss:$0 sm:$0xff] }
 0x7c3   : > { %v1445_v31 = vmul.f32 %v1991_v16, %v1444_v29  ;;  %1613 = vmatpush.msrb.mxu2 %v1573_v46 }
 0x7c5   : > { %v1449_v35 = vsel %vm1448_vm11, %v1991_v16, %v1445_v31  ;;  %1614 = vmatpush.msrb.mxu2 %v1572_v50 }
 0x7c6   : > { %v1460_v38 = vmul.f32 %v1449_v35, %v2324_v0  ;;  %v1993_v43 = vpop.eup %1992 }
 0x7c7   : > { %v1451_v48 = vmul.f32 %v1993_v43, %v1439_v26  ;;  %vm1457_vm12 = vweird.f32 %v1993_v43  ;;  %1615 = vmatpush.msrb.mxu2 %v1571_v53 }
 0x7c8   : > { %v1465_v39 = vmul.f32 %v1949_v34, %v1460_v38  ;;  %vm1458_vm14 = vmor %vm1456_vm13, %vm1457_vm12 }
 0x7c9   : > { %v1452_v49 = vmul.f32 %v1993_v43, %v1451_v48  ;;  %1616 = vmatpush.msrb.mxu2 %v1570_v55 }
 0x7ca   : > { %v1470_v0 = vadd.f32 %v1950_v42, %v1465_v39 }
 0x7cb   : > { %v1453_v51 = vmul.f32 0.5, %v1452_v49  ;;  %1617 = vmatpush.msrb.mxu2 %v1569_v57 }
 0x7cc   : > { %1893 = vmatmul.msk.f32.vlgmr.msra.gmra.mxu0 %vm755_vm0, %v1470_v0  ;;  %1895 = vmatmul.msk.f32.vlgmr.msra.gmra.mxu1 %vm755_vm0, %v1470_v0 }
 0x7cd   : > { %v1454_v54 = vsub.f32 1.5, %v1453_v51  ;;  %1618 = vmatpush.msrb.mxu2 %v1568_v63 }
 0x7cf   : > { %v1455_v24 = vmul.f32 %v1993_v43, %v1454_v54  ;;  %1619 = vmatpush.msrb.mxu2 %v1567_v3 }
 0x7d1   : > { %v1459_v58 = vsel %vm1458_vm14, %v1993_v43, %v1455_v24 }
 0x7d2   : > { %v1461_v59 = vmul.f32 %v1459_v58, %v2331_v52  ;;  %v1566_v52 = vld [vmem:[%s2349_s20 + $0x80] sm:$0xff]  ;;  %s2444_s20 = sld [smem:[#allocation4_spill]] }
 0x7d3   : > { %1620 = vmatpush.msrb.mxu2 %v1566_v52 }
 0x7d4   : > { %v1466_v60 = vmul.f32 %v1949_v34, %v1461_v59 }
 0x7d6   : > { %v1471_v61 = vadd.f32 %v1950_v42, %v1466_v60 }
 0x7d8   : > { %1894 = vmatmul.msk.f32.gmra.mxu0 %vm755_vm0, %v1471_v61  ;;  %1896 = vmatmul.msk.f32.gmra.mxu1 %vm755_vm0, %v1471_v61  ;;  %s750_s24 = scalar_lea.vmem %s2444_s20, %s2443_s25 }
 0x849   : > { %v1517_v8 = vpop.f32.mrf.mxu0  ;;  %v1540_v9 = vpop.f32.mrf.mxu1 }
 0x84a   : > { %v1518_v11 = vadd.f32 %v1517_v8, %v1490_v41  ;;  %v1541_v12 = vadd.f32 %v1540_v9, %v1491_v6 }
 0x84c   : > { %v1546_v15 = vmax.f32 %v1518_v11, 0.0  ;;  %v1547_v16 = vmax.f32 %v1541_v12, 0.0 }
 0x84e   : > { %1598 = vmatmul.f32.vlgmr.msra.gmra.mxu3 %v1546_v15  ;;  %1621 = vmatmul.f32.vlgmr.msrb.gmra.mxu2 %v1547_v16 }
 0x855   : > { %v1520_v17 = vpop.f32.mrf.mxu0  ;;  %v1543_v13 = vpop.f32.mrf.mxu1 }
 0x856   : > { %v1521_v18 = vadd.f32 %v1520_v17, %v1490_v41  ;;  %v1544_v19 = vadd.f32 %v1543_v13, %v1491_v6 }
 0x858   : > { %v1548_v7 = vmax.f32 %v1521_v18, 0.0  ;;  %v1549_v14 = vmax.f32 %v1544_v19, 0.0 }
 0x85a   : > { %1601 = vmatmul.f32.gmra.mxu3 %v1548_v7  ;;  %1624 = vmatmul.f32.gmra.mxu2 %v1549_v14 }
 0x8d1   : > { %v1599_v21 = vpop.f32.mrf.mxu3  ;;  %v1622_v22 = vpop.f32.mrf.mxu2 }
 0x8d2   : > { %v1623_v23 = vadd.f32 %v1622_v22, %v1599_v21 }
 0x8d4   : > { %v1628_v26 = vadd.f32 %v1623_v23, %v2309_v40 }
 0x8d6   : > { %v1634_v27 = vadd.f32 %v1951_v25, %v1628_v26 }
 0x8d8   : > { %1636 = vst.msk [vmem:[%s750_s24] sm:$0xff] %vm755_vm0, %v1634_v27 }
 0x8dd   : > { %v1602_v28 = vpop.f32.mrf.mxu3  ;;  %v1625_v29 = vpop.f32.mrf.mxu2 }
 0x8de   : > { %v1626_v30 = vadd.f32 %v1625_v29, %v1602_v28 }
 0x8e0   : > { %v1629_v10 = vadd.f32 %v1626_v30, %v2318_v47 }
 0x8e2   : > { %v1635_v31 = vadd.f32 %v1951_v25, %v1629_v10 }
 0x8e4   : > { %1637 = vst.msk [vmem:[%s750_s24 + $0x8] sm:$0xff] %vm755_vm0, %v1635_v31 }
 0x8e5 PF: > { %s2445_s26 = sld [smem:[#allocation2_spill]] }
 0x8eb   : > { %s26_s21 = sadd.s32 1, %s2445_s26  }
 0x8ec   : > { %p23_p4 = scmp.ge.s32.totalorder %s26_s21, 5  }
 0x8ee   :  { %25 = sbr.rel (!%p23_p4) target bundleno = 3 (0x3), region = 156 }

// kernel: forward.10
= control target key start
LH: loop header
LB: loop body
LE: loop exit
PB: predicated region body
PF: predicated region fallthrough
CT: control target
= control target key end

     0   :  { %s2836_s0 = inlined_call_operand.vmem [shape: f32[3,16,64], index: 0, kind: input, shape index: {}]   ;;  %s2837_s1 = inlined_call_operand.vmem [shape: f32[16,16], index: 1, kind: input, shape index: {}]   ;;  %s2838_s2 = inlined_call_operand.vmem [shape: f32[3,1,64], index: 2, kind: input, shape index: {}]   ;;  %s2839_s3 = inlined_call_operand.vmem [shape: f32[3,1,64], index: 3, kind: input, shape index: {}]   ;;  %s2840_s4 = inlined_call_operand.hbm [shape: f32[3,64,64], index: 4, kind: input, shape index: {}]   ;;  %s2841_s5 = inlined_call_operand.vmem [shape: f32[3,1,64], index: 5, kind: input, shape index: {}]   ;;  %s2842_s6 = inlined_call_operand.hbm [shape: f32[3,64,128], index: 6, kind: input, shape index: {}]   ;;  %s2843_s7 = inlined_call_operand.vmem [shape: f32[3,1,128], index: 7, kind: input, shape index: {}]   ;;  %s2844_s8 = inlined_call_operand.hbm [shape: f32[3,64,64], index: 8, kind: input, shape index: {}]   ;;  %s2845_s9 = inlined_call_operand.vmem [shape: f32[3,1,64], index: 9, kind: input, shape index: {}]   ;;  %s2846_s10 = inlined_call_operand.vmem [shape: f32[3,1,64], index: 10, kind: input, shape index: {}]   ;;  %s2847_s11 = inlined_call_operand.vmem [shape: f32[3,1,64], index: 11, kind: input, shape index: {}]   ;;  %s2848_s12 = inlined_call_operand.vmem [shape: f32[3,64,256], index: 12, kind: input, shape index: {}]   ;;  %s2849_s13 = inlined_call_operand.vmem [shape: f32[3,1,256], index: 13, kind: input, shape index: {}]   ;;  %s2850_s14 = inlined_call_operand.vmem [shape: f32[3,256,64], index: 14, kind: input, shape index: {}]   ;;  %s2851_s15 = inlined_call_operand.vmem [shape: f32[3,1,64], index: 15, kind: input, shape index: {}]   ;;  %s2852_s16 = inlined_call_operand.vmem [shape: f32[3,16,64], index: 16, kind: output, shape index: {}]  }
   0x1   :  { %2858 = sst [smem:[#allocation11_spill]] %s2836_s0 }
   0x2   :  { %2859 = sst [smem:[#allocation12_spill]] %s2840_s4 }
   0x3   :  { %2860 = sst [smem:[#allocation13_spill]] %s2842_s6 }
   0x4   :  { %2861 = sst [smem:[#allocation14_spill]] %s2846_s10 }
   0x5   :  { %2862 = sst [smem:[#allocation15_spill]] %s2847_s11 }
   0x6   :  { %2863 = sst [smem:[#allocation16_spill]] %s2848_s12 }
   0x7   :  { %2864 = sst [smem:[#allocation17_spill]] %s2849_s13 }
   0x8   :  { %2865 = sst [smem:[#allocation18_spill]] %s2850_s14 }
   0x9   :  { %2866 = sst [smem:[#allocation19_spill]] %s2851_s15 }
   0xa   :  { %2867 = sst [smem:[#allocation20_spill]] %s2852_s16 }
   0xb   :  { %21 = vsyncpa [#allocation3], 0 }
   0xc   :  { %23 = vsyncpa [#allocation3 + $0x1], 0 }
   0xd   :  { %24 = vsyncpa [#allocation5], 0 }
   0xe   :  { %26 = vsyncpa [#allocation5 + $0x1], 0  ;;  %s2361_s21 = smov 0   ;;  %s2363_s22 = smov 0  }
   0xf   :  { %s2365_s23 = smov 0   ;;  %s2367_s24 = smov 0  }
  0x10 LB: > { %s2380_s25 = sadd.s32 4294967295, %s2264_s24   ;;  %s2383_s26 = sadd.s32 1, %s2264_s24   ;;  %s2264_s24 = sphi %s2367_s24, %s2884_s24   ;;  %s2260_s23 = sphi %s2365_s23, %s2888_s23   ;;  %s2256_s22 = sphi %s2363_s22, %s2887_s22   ;;  %s2252_s21 = sphi %s2361_s21, %s2886_s21  }
  0x11   : > { %2868 = sst [smem:[#allocation9_spill]] %s2383_s26  ;;  %s135_s27 = ssub.s32 %s2264_s24, %s2383_s26 }
  0x12   : > { %s138_s28 = sadd.s32 1, %s2260_s23  ;;  %p136_p0 = scmp.eq.s32.totalorder %s135_s27, 0 }
  0x13   : > { %p145_p1 = scmp.ne.s32.totalorder %s2260_s23, %s2256_s22  ;;  %p146_p2 = scmp.eq.s32.totalorder %s2264_s24, 0 }
  0x14   : > { %p151_p3 = scmp.ne.s32.totalorder %s2256_s22, %s2252_s21  ;;  %p152_p5 = scmp.eq.s32.totalorder %s2380_s25, 0 }
  0x15   : > { %s2393_s29 = scalar_select %p136_p0, %s2260_s23, %s138_s28  }
  0x16   : > { %p147_p4 = por %p146_p2, %p145_p1  ;;  %p2023_p6 = scmp.lt.s32.totalorder %s2264_s24, 3 }
  0x17   : > { %2869 = sst [smem:[#allocation10_spill]] %s2393_s29  ;;  %p2397_p7 = por %p152_p5, %p151_p3 }
  0x18   : > { %s2855_s0 = sand.u32 1, %s2260_s23   ;;  %s2407_s18 = sshll.u32 %s2264_s24, 6 }
  0x19   : > { %s2404_s17 = sshll.u32 %s2855_s0, 6  ;;  %p2409_p8 = pnand %p2023_p6, %p147_p4 }
  0x1a   : > { %s538_s20 = sand.u32 1, %s2264_s24   ;;  %s2872_s6 = sld [smem:[#allocation13_spill]] }
  0x1b   : > { %s542_s26 = scalar_lea.vmem [#allocation4], %s2404_s17  ;;  %s2419_s0 = scalar_lea.sflag [#allocation5], %s538_s20 }
  0x1c   : > { %s550_s16 = sshll.u32 %s542_s26, 4  ;;  %p2140_p10 = pneg %p2409_p8  ;;  %s551_s16 = int_to_ptr.vmem [resolvable:$true] %s550_s16 }
  0x20   : > { %s547_s28 = scalar_lea.hbm %s2872_s6, %s2407_s18  ;;  %s2143_s27 = scalar_lea.hbm %s2872_s6, 192 }
  0x21   : > { %s548_s29 = sshll.u32 %s547_s28, 4  ;;  %s549_s29 = int_to_ptr.hbm [resolvable:$true] %s548_s29 }
  0x22   : > { %s2136_s15 = sshra.s32 %s549_s29, 4  ;;  %s2137_s15 = int_to_ptr.hbm [resolvable:$true] %s2136_s15 }
  0x23   : > { %s2138_s13 = scalar_lea.hbm %s2137_s15, 64  ;;  %p2144_p13 = scmp.lt.s32.totalorder %s2137_s15, %s2872_s6 }
  0x24   : > { %p2139_p9 = scmp.ne.s32.totalorder %s2137_s15, %s2138_s13  ;;  %p2145_p0 = scmp.lt.s32.totalorder %s2143_s27, %s2138_s13 }
  0x26   : > { %p2141_p11 = pnand %p2140_p10, %p2139_p9  ;;  %p2146_p1 = por %p2145_p0, %p2144_p13 }
  0x28   : > { %p2142_p12 = pneg %p2141_p11 }
  0x2a   : > { %p2147_p2 = pnand %p2146_p1, %p2142_p12 }
  0x2c   : > { %2150 = shalt.err (!%p2147_p2)
}
  0x2d   : > { %s2266_s20 = smov 128   ;;  %s2267_s12 = smov 8  }
  0x2e   : > { %2019 = dma.hbm_to_vmem [thread:$0]  (!%p2409_p8), %s549_s29, 1024, %s551_s16, %s2419_s0, %s2266_s20, %s2266_s20, %s2267_s12  }
  0x2f   : > { %p1943_p3 = scmp.ge.s32.totalorder %s2264_s24, 1  ;;  %p633_p4 = scmp.lt.s32.totalorder %s2264_s24, 4 }
  0x30   : > { %s2874_s4 = sld [smem:[#allocation12_spill]]  ;;  %s514_s28 = scalar_lea.vmem [#allocation2], %s2404_s17 }
  0x31   : > { %p2440_p5 = pnand %p1943_p3, %p633_p4  ;;  %s522_s26 = sshll.u32 %s514_s28, 4  ;;  %s523_s26 = int_to_ptr.vmem [resolvable:$true] %s522_s26 }
  0x32   : > { %s2875_s6 = sand.u32 1, %s2260_s23  }
  0x33   : > { %s511_s11 = scalar_lea.sflag [#allocation3], %s2875_s6 }
  0x36   : > { %s519_s21 = scalar_lea.hbm %s2874_s4, %s2407_s18  ;;  %s2173_s14 = scalar_lea.hbm %s2874_s4, 192 }
  0x37   : > { %s520_s27 = sshll.u32 %s519_s21, 4  ;;  %s521_s27 = int_to_ptr.hbm [resolvable:$true] %s520_s27 }
  0x38   : > { %s2166_s10 = sshra.s32 %s521_s27, 4  ;;  %s2167_s10 = int_to_ptr.hbm [resolvable:$true] %s2166_s10 }
  0x39   : > { %s2168_s16 = scalar_lea.hbm %s2167_s10, 64  ;;  %p2174_p12 = scmp.lt.s32.totalorder %s2167_s10, %s2874_s4 }
  0x3a   : > { %p2169_p6 = scmp.ne.s32.totalorder %s2167_s10, %s2168_s16  ;;  %p2175_p13 = scmp.lt.s32.totalorder %s2173_s14, %s2168_s16 }
  0x3c   : > { %p2171_p9 = pnand %p2169_p6, %p2140_p10  ;;  %p2176_p0 = por %p2175_p13, %p2174_p12 }
  0x3e   : > { %p2172_p11 = pneg %p2171_p9 }
  0x40   : > { %p2177_p1 = pnand %p2176_p0, %p2172_p11 }
  0x42   : > { %2180 = shalt.err (!%p2177_p1)
}
  0x43   : > { %2016 = dma.hbm_to_vmem [thread:$0]  (!%p2409_p8), %s521_s27, 1024, %s523_s26, %s511_s11, %s2266_s20, %s2266_s20, %s2267_s12  }
  0x44   : > { %s575_s24 = scalar_lea.hbm %s2844_s8, %s2407_s18  ;;  %s570_s15 = scalar_lea.vmem [#allocation6], %s2404_s17 }
  0x45   : > { %s576_s29 = sshll.u32 %s575_s24, 4  ;;  %s578_s10 = sshll.u32 %s570_s15, 4  ;;  %s577_s29 = int_to_ptr.hbm [resolvable:$true] %s576_s29  ;;  %s579_s10 = int_to_ptr.vmem [resolvable:$true] %s578_s10 }
  0x46   : > { %s2196_s16 = sshra.s32 %s577_s29, 4  ;;  %s2203_s11 = scalar_lea.hbm %s2844_s8, 192  ;;  %s2197_s16 = int_to_ptr.hbm [resolvable:$true] %s2196_s16 }
  0x47   : > { %s2198_s14 = scalar_lea.hbm %s2197_s16, 64  ;;  %p2204_p6 = scmp.lt.s32.totalorder %s2197_s16, %s2844_s8 }
  0x48   : > { %p2199_p2 = scmp.ne.s32.totalorder %s2197_s16, %s2198_s14  ;;  %p2205_p9 = scmp.lt.s32.totalorder %s2203_s11, %s2198_s14 }
  0x4a   : > { %p2201_p3 = pnand %p2199_p2, %p2140_p10  ;;  %p2206_p11 = por %p2205_p9, %p2204_p6 }
  0x4c   : > { %p2202_p4 = pneg %p2201_p3 }
  0x4e   : > { %p2207_p12 = pnand %p2206_p11, %p2202_p4 }
  0x50   : > { %2210 = shalt.err (!%p2207_p12)
}
  0x51   : > { %2022 = dma.hbm_to_vmem [thread:$0]  (!%p2409_p8), %s577_s29, 1024, %s579_s10, %s2419_s0, %s2266_s20, %s2266_s20, %s2267_s12  }
  0x52   : > { %637 = sbr.rel (%p2440_p5) target bundleno = 2359 (0x937), region = 84  ;;  %s639_s4 = sand.u32 (!%p2440_p5), 1, %s2256_s22  }
  0x53   : > { %s2488_s17 = sshll.u32 (!%p2440_p5), %s639_s4, 6  ;;  %s640_s18 = scalar_lea.sflag (!%p2440_p5), [#allocation3], %s639_s4 }
  0x54   : > { %s2491_s6 = scalar_lea.vmem (!%p2440_p5), [#allocation2], %s2488_s17 }
  0x57   : > { %2243 = dma.done.wait (%p2397_p7), %s640_s18, 1024  }
  0x58   : > { %2245 = vsyncadd (%p2397_p7), %s640_s18, 4294966272  ;;  %s649_s12 = sand.u32 1, %s2380_s25   ;;  %s2499_s19 = scalar_lea.vmem [#allocation4], %s2488_s17 }
  0x59   : > { %s650_s0 = scalar_lea.sflag [#allocation5], %s649_s12 }
  0x5a   : > { %2247 = dma.done.wait (%p2397_p7), %s650_s0, 2048  }
  0x5b   : > { %2249 = vsyncadd (%p2397_p7), %s650_s0, 4294965248  ;;  %p766_p8 = scmp.lt.s32.totalorder %s2380_s25, 2  ;;  %s2876_s24 = sld [smem:[#allocation11_spill]]  ;;  %vm818_vm0 = vcmask 523264   ;;  %v2268_v4 = vmov 64.0   ;;  %v887_v21 = vld [vmem:[%s2491_s6 + $0x38] sm:$0xff] }
  0x5c   : > { %2094 = vrcp.f32 %v2268_v4  ;;  %v930_v22 = vld [vmem:[%s2499_s19 + $0x38] sm:$0xff]  ;;  %906 = vmatpush.msra.mxu0 %v887_v21  ;;  %v886_v23 = vld [vmem:[%s2491_s6 + $0x30] sm:$0xff]  ;;  %v885_v25 = vld [vmem:[%s2491_s6 + $0x28] sm:$0xff]  ;;  %vm974_vm8 = vcmask 130048   ;;  %s2270_s14 = smov 48   ;;  %s2272_s11 = smov 80  }
  0x5d   : > { %s2890_s25 = smov (!%p766_p8, %s2380_s25), 2  ;;  %943 = vmatpush.msra.mxu1 %v930_v22  ;;  %v929_v24 = vld [vmem:[%s2499_s19 + $0x30] sm:$0xff]  ;;  %v928_v26 = vld [vmem:[%s2499_s19 + $0x28] sm:$0xff]  ;;  %v884_v27 = vld [vmem:[%s2491_s6 + $0x20] sm:$0xff]  ;;  %s2273_s27 = smov 64  }
  0x5e   : > { %s2001_s20 = sshll.u32 %s2890_s25, 4  ;;  %s773_s10 = scalar_lea.vmem %s2838_s2, %s2890_s25  ;;  %907 = vmatpush.msra.mxu0 %v886_v23  ;;  %v927_v28 = vld [vmem:[%s2499_s19 + $0x20] sm:$0xff]  ;;  %v883_v29 = vld [vmem:[%s2491_s6 + $0x18] sm:$0xff]  ;;  %v882_v31 = vld [vmem:[%s2491_s6 + $0x10] sm:$0xff] }
  0x5f   : > { %s776_s21 = scalar_lea.vmem %s2839_s3, %s2890_s25  ;;  %s779_s26 = scalar_lea.vmem %s2841_s5, %s2890_s25  ;;  %944 = vmatpush.msra.mxu1 %v929_v24  ;;  %v926_v30 = vld [vmem:[%s2499_s19 + $0x18] sm:$0xff]  ;;  %v925_v32 = vld [vmem:[%s2499_s19 + $0x10] sm:$0xff]  ;;  %v881_v33 = vld [vmem:[%s2491_s6 + $0x8] sm:$0xff] }
  0x60   : > { %908 = vmatpush.msra.mxu0 %v885_v25  ;;  %v924_v34 = vld [vmem:[%s2499_s19 + $0x8] sm:$0xff]  ;;  %v880_v35 = vld [vmem:[%s2491_s6] sm:$0xff]  ;;  %s782_s13 = scalar_lea.vmem %s2843_s7, %s2890_s25  ;;  %s785_s18 = scalar_lea.vmem %s2845_s9, %s2890_s25 }
  0x61   : > { %s770_s29 = scalar_lea.vmem %s2876_s24, %s2001_s20  ;;  %945 = vmatpush.msra.mxu1 %v928_v26  ;;  %v923_v36 = vld [vmem:[%s2499_s19] sm:$0xff]  ;;  %v2624_v24 = vld [vmem:[%s2837_s1 + $0x8] sm:$0xff]  ;;  %s2274_s6 = smov 16  }
  0x62   : > { %v2515_v0 = vld [vmem:[%s770_s29] sm:$0xff]  ;;  %v2519_v2 = vld [vmem:[%s770_s29 + $0x8] sm:$0xff]  ;;  %v2095_v5 = vpop.eup %2094  ;;  %909 = vmatpush.msra.mxu0 %v884_v27  ;;  %s2269_s29 = smov 112   ;;  %s2275_s12 = smov 32  }
  0x63   : > { %v819_v1 = vsel %vm818_vm0, %v2515_v0, 0.0  ;;  %v822_v3 = vsel %vm818_vm0, %v2519_v2, 0.0  ;;  %v826_v6 = vmul.f32 64.0, %v2095_v5  ;;  %vm830_vm1 = vweird.f32 %v2095_v5  ;;  %946 = vmatpush.msra.mxu1 %v927_v28  ;;  %v2086_v51 = vld [vmem:[%s773_s10] ss:$0 sm:$0xff]  ;;  %s2878_s30 = sld [smem:[#allocation15_spill]] }
  0x64   : > { %820 = vadd.xlane.f32.xlu0 %v819_v1  ;;  %910 = vmatpush.msra.mxu0 %v883_v29  ;;  %v2087_v55 = vld [vmem:[%s776_s21] ss:$0 sm:$0xff]  ;;  %s2271_s21 = smov 96   ;;  %s2002_s10 = sshll.u32 %s2890_s25, 7 }
  0x65   : > { %v827_v7 = vsub.f32 1.0, %v826_v6  ;;  %947 = vmatpush.msra.mxu1 %v926_v30  ;;  %s2880_s4 = sld [smem:[#allocation18_spill]] }
  0x66   : > { %911 = vmatpush.msra.mxu0 %v882_v31 }
  0x67   : > { %v828_v8 = vmul.f32 %v2095_v5, %v827_v7  ;;  %948 = vmatpush.msra.mxu1 %v925_v32 }
  0x68   : > { %912 = vmatpush.msra.mxu0 %v881_v33 }
  0x69   : > { %v829_v9 = vadd.f32 %v2095_v5, %v828_v8  ;;  %949 = vmatpush.msra.mxu1 %v924_v34  ;;  %v2089_v8 = vld [vmem:[%s782_s13] ss:$0 sm:$0xff]  ;;  %s2877_s13 = sld [smem:[#allocation14_spill]]  ;;  %s791_s15 = scalar_lea.vmem %s2878_s30, %s2890_s25 }
  0x6a   : > { %913 = vmatpush.msra.mxu0 %v880_v35 }
  0x6b   : > { %v2523_v10 = vsel %vm830_vm1, %v2095_v5, %v829_v9  ;;  %950 = vmatpush.msra.mxu1 %v923_v36 }
  0x6c   : > { %823 = vadd.xlane.f32.xlu0 %v822_v3  ;;  %v2088_v3 = vld [vmem:[%s779_s26] ss:$0 sm:$0xff]  ;;  %s2650_s26 = scalar_lea.vmem [#allocation6], %s2488_s17  ;;  %s2883_s17 = sld [smem:[#allocation20_spill]] }
  0x6f   : > { %s788_s28 = scalar_lea.vmem %s2877_s13, %s2890_s25 }
  0xd7   : > { %v821_v11 = vpop.xlane.xlu0 %820 }
  0xd8   : > { %v832_v12 = vmul.f32 %v2523_v10, %v821_v11 }
  0xda   : > { %v2527_v13 = vsub.f32 %v2515_v0, %v832_v12 }
  0xdc   : > { %v836_v14 = vmul.f32 %v2527_v13, %v2527_v13 }
  0xde   : > { %v838_v15 = vsel %vm818_vm0, %v836_v14, 0.0 }
  0xdf   : > { %839 = vadd.xlane.f32.xlu1 %v838_v15  ;;  %v824_v16 = vpop.xlane.xlu0 %823 }
  0xe0   : > { %v833_v17 = vmul.f32 %v2523_v10, %v824_v16 }
  0xe2   : > { %v2534_v18 = vsub.f32 %v2519_v2, %v833_v17 }
  0xe4   : > { %v837_v19 = vmul.f32 %v2534_v18, %v2534_v18 }
  0xe6   : > { %v841_v20 = vsel %vm818_vm0, %v837_v19, 0.0 }
  0xe7   : > { %842 = vadd.xlane.f32.xlu1 %v841_v20  ;;  %v2617_v20 = vld [vmem:[%s2837_s1] sm:$0xff] }
 0x152   : > { %v840_v37 = vpop.xlane.xlu1 %839 }
 0x153   : > { %v844_v38 = vmul.f32 %v840_v37, %v2523_v10 }
 0x155   : > { %v846_v39 = vadd.f32 1e-05, %v844_v38 }
 0x157   : > { %2096 = vrsqrt.f32 %v846_v39  ;;  %vm854_vm3 = vweird.f32 %v846_v39 }
 0x15a   : > { %v843_v40 = vpop.xlane.xlu1 %842 }
 0x15b   : > { %v845_v41 = vmul.f32 %v843_v40, %v2523_v10 }
 0x15d   : > { %v2097_v42 = vpop.eup %2096  ;;  %v847_v43 = vadd.f32 1e-05, %v845_v41 }
 0x15e   : > { %v849_v44 = vmul.f32 %v2097_v42, %v846_v39  ;;  %vm855_vm2 = vweird.f32 %v2097_v42 }
 0x15f   : > { %2098 = vrsqrt.f32 %v847_v43  ;;  %vm856_vm4 = vmor %vm854_vm3, %vm855_vm2  ;;  %vm864_vm6 = vweird.f32 %v847_v43 }
 0x160   : > { %v850_v45 = vmul.f32 %v2097_v42, %v849_v44 }
 0x162   : > { %v851_v46 = vmul.f32 0.5, %v850_v45 }
 0x164   : > { %v852_v47 = vsub.f32 1.5, %v851_v46 }
 0x165   : > { %v2099_v48 = vpop.eup %2098 }
 0x166   : > { %v853_v49 = vmul.f32 %v2097_v42, %v852_v47  ;;  %v859_v50 = vmul.f32 %v2099_v48, %v847_v43  ;;  %vm865_vm5 = vweird.f32 %v2099_v48 }
 0x167   : > { %vm866_vm7 = vmor %vm864_vm6, %vm865_vm5 }
 0x168   : > { %v857_v52 = vsel %vm856_vm4, %v2097_v42, %v853_v49  ;;  %v860_v53 = vmul.f32 %v2099_v48, %v859_v50 }
 0x169   : > { %v868_v54 = vmul.f32 %v857_v52, %v2527_v13 }
 0x16a   : > { %v861_v56 = vmul.f32 0.5, %v860_v53 }
 0x16b   : > { %v873_v57 = vmul.f32 %v2086_v51, %v868_v54 }
 0x16c   : > { %v862_v58 = vsub.f32 1.5, %v861_v56 }
 0x16d   : > { %v878_v59 = vadd.f32 %v2087_v55, %v873_v57 }
 0x16e   : > { %v863_v60 = vmul.f32 %v2099_v48, %v862_v58 }
 0x16f   : > { %1956 = vmatmul.msk.f32.vlgmr.msra.gmra.mxu0 %vm818_vm0, %v878_v59  ;;  %1958 = vmatmul.msk.f32.vlgmr.msra.gmra.mxu1 %vm818_vm0, %v878_v59 }
 0x170   : > { %v867_v61 = vsel %vm866_vm7, %v2099_v48, %v863_v60 }
 0x171   : > { %v869_v62 = vmul.f32 %v867_v61, %v2534_v18 }
 0x173   : > { %v874_v63 = vmul.f32 %v2086_v51, %v869_v62 }
 0x175   : > { %v879_v1 = vadd.f32 %v2087_v55, %v874_v63 }
 0x177   : > { %1957 = vmatmul.msk.f32.gmra.mxu0 %vm818_vm0, %v879_v1  ;;  %1959 = vmatmul.msk.f32.gmra.mxu1 %vm818_vm0, %v879_v1 }
 0x1ec   : > { %v915_v4 = vpop.f32.mrf.mxu0  ;;  %v952_v5 = vpop.f32.mrf.mxu1 }
 0x1ed   : > { %v916_v6 = vadd.f32 %v2088_v3, %v915_v4  ;;  %v953_v15 = vadd.f32 %v2089_v8, %v952_v5  ;;  %v963_v5 = vld [vmem:[%s2650_s26 + $0x18] sm:$0xff] }
 0x1ef   : > { %v2594_v7 = vmul.f32 0.25, %v916_v6  ;;  %v962_v6 = vld [vmem:[%s2650_s26 + $0x10] sm:$0xff] }
 0x1f1   : > { %1098 = vrot.lane.b32.xlu0 %v2594_v7, %s2269_s29 }
 0x1f4   : > { %v918_v9 = vpop.f32.mrf.mxu0  ;;  %v955_v11 = vpop.f32.mrf.mxu1 }
 0x1f5   : > { %v919_v12 = vadd.f32 %v2088_v3, %v918_v9  ;;  %v2597_v13 = vadd.f32 %v2089_v8, %v955_v11 }
 0x1f7   : > { %v2599_v14 = vmul.f32 0.25, %v919_v12  ;;  %1104 = vrot.lane.b32.xlu2 %v2597_v13, %s2269_s29  ;;  %1960 = vmatpush.xpose.msk.msrb.mxu0 %vm974_vm8, %v2597_v13  ;;  %v2633_v41 = vpack.i.bf16 %v953_v15, %v2597_v13  ;;  %v961_v12 = vld [vmem:[%s2650_s26 + $0x8] sm:$0xff] }
 0x1f9   : > { %1100 = vrot.lane.b32.xlu1 %v2599_v14, %s2269_s29 }
 0x1fb   : > { %1961 = vmatpush.xpose.msk.msrb.mxu0 %vm974_vm8, %v953_v15 }
 0x1fe   : > { %1962 = vmatmul.msk.f32.vlgmr.msrb.gmra.mxu0 %vm974_vm8, %v2594_v7 }
 0x1ff   : > { %1102 = vrot.lane.b32.xlu2 %v953_v15, %s2269_s29 }
 0x206   : > { %1963 = vmatmul.msk.f32.gmra.mxu0 %vm974_vm8, %v2599_v14 }
 0x251   : > { %v1105_v16 = vpop.permute.xlu2 %1104 }
 0x252   : > { %1968 = vmatpush.xpose.msk.msra.mxu2 %vm974_vm8, %v1105_v16 }
 0x259   : > { %v1103_v17 = vpop.permute.xlu2 %1102 }
 0x25a   : > { %1969 = vmatpush.xpose.msk.msra.mxu2 %vm974_vm8, %v1103_v17  ;;  %v960_v17 = vld [vmem:[%s2650_s26] sm:$0xff] }
 0x263   : > { %v1099_v18 = vpop.permute.xlu0 %1098 }
 0x264   : > { %1970 = vmatmul.msk.f32.vlgmr.msra.gmra.mxu2 %vm974_vm8, %v1099_v18 }
 0x26b   : > { %v1101_v19 = vpop.permute.xlu1 %1100 }
 0x26c   : > { %1971 = vmatmul.msk.f32.gmra.mxu2 %vm974_vm8, %v1101_v19 }
 0x27b   : > { %v1004_v21 = vpop.f32.mrf.mxu0 }
 0x27c   : > { %v1005_v22 = vadd.f32 %v1004_v21, %v2617_v20 }
 0x27e   : > { %v1010_v23 = vsel %vm974_vm8, %v1005_v22, -inf }
 0x27f   : > { %1011 = vmax.xlane.f32.xlu2 %v1010_v23 }
 0x283   : > { %v1007_v25 = vpop.f32.mrf.mxu0 }
 0x284   : > { %v1008_v26 = vadd.f32 %v1007_v25, %v2624_v24 }
 0x286   : > { %v1013_v27 = vsel %vm974_vm8, %v1008_v26, -inf }
 0x287   : > { %1014 = vmax.xlane.f32.xlu0 %v1013_v27 }
 0x2e7   : > { %v1131_v28 = vpop.f32.mrf.mxu2 }
 0x2e8   : > { %v1132_v29 = vadd.f32 %v1131_v28, %v2617_v20 }
 0x2ea   : > { %v1137_v30 = vsel %vm974_vm8, %v1132_v29, -inf }
 0x2eb   : > { %1138 = vmax.xlane.f32.xlu1 %v1137_v30 }
 0x2ef   : > { %v1134_v38 = vpop.f32.mrf.mxu2 }
 0x2f0   : > { %v1135_v40 = vadd.f32 %v1134_v38, %v2624_v24 }
 0x2f2   : > { %v1012_v31 = vpop.xlane.xlu2 %1011  ;;  %v1140_v42 = vsel %vm974_vm8, %v1135_v40, -inf }
 0x2f3   : > { %v1016_v32 = vsub.f32 %v1005_v22, %v1012_v31 }
 0x2f5   : > { %v1018_v33 = vmul.f32 1.442695, %v1016_v32 }
 0x2f7   : > { %2100 = vpow2.f32 %v1018_v33 }
 0x2fa   : > { %v1015_v34 = vpop.xlane.xlu0 %1014 }
 0x2fb   : > { %v1017_v36 = vsub.f32 %v1008_v26, %v1015_v34 }
 0x2fd   : > { %v2101_v35 = vpop.eup %2100  ;;  %v1020_v39 = vmul.f32 1.442695, %v1017_v36 }
 0x2fe   : > { %v1022_v37 = vsel %vm974_vm8, %v2101_v35, 0.0 }
 0x2ff   : > { %1023 = vadd.xlane.f32.xlu2 %v1022_v37  ;;  %2102 = vpow2.f32 %v1020_v39 }
 0x304   : > { %2072 = vrot.lane.b32.xlu1 %v2633_v41, %s2270_s14 }
 0x305   : > { %v2103_v43 = vpop.eup %2102 }
 0x306   : > { %v1025_v44 = vsel %vm974_vm8, %v2103_v43, 0.0 }
 0x307   : > { %1141 = vmax.xlane.f32.xlu2 %v1140_v42 }
 0x30c   : > { %1229 = vrot.lane.b32.xlu1 %v953_v15, %s2271_s21 }
 0x30f   : > { %1026 = vadd.xlane.f32.xlu2 %v1025_v44 }
 0x314   : > { %1352 = vrot.lane.b32.xlu1 %v2594_v7, %s2272_s11 }
 0x327   : > { %2067 = vrot.lane.b32.xlu2 %v2633_v41, %s2273_s27  ;;  %s2003_s27 = sshll.u32 %s2890_s25, 8 }
 0x32f   : > { %1358 = vrot.lane.b32.xlu2 %v2597_v13, %s2272_s11 }
 0x337   : > { %1356 = vrot.lane.b32.xlu2 %v953_v15, %s2272_s11 }
 0x33f   : > { %1227 = vrot.lane.b32.xlu2 %v2599_v14, %s2271_s21 }
 0x35e   : > { %v1139_v45 = vpop.xlane.xlu1 %1138 }
 0x35f   : > { %v1143_v46 = vsub.f32 %v1132_v29, %v1139_v45 }
 0x361   : > { %v1145_v47 = vmul.f32 1.442695, %v1143_v46 }
 0x363   : > { %2104 = vpow2.f32 %v1145_v47 }
 0x369   : > { %v2105_v48 = vpop.eup %2104 }
 0x36a   : > { %v1149_v49 = vsel %vm974_vm8, %v2105_v48, 0.0 }
 0x36b   : > { %1150 = vadd.xlane.f32.xlu0 %v1149_v49 }
 0x372   : > { %v1024_v50 = vpop.xlane.xlu2 %1023 }
 0x376   : > { %v2073_v51 = vpop.permute.xlu1 %2072 }
 0x377   : > { %v2074_v52 = vunpack.i.l.bf16 %v2073_v51  ;;  %v2075_v53 = vunpack.i.h.bf16 %v2073_v51 }
 0x379   : > { %1185 = vmatpush.msra.mxu0 %v2074_v52 }
 0x37a   : > { %v1142_v54 = vpop.xlane.xlu2 %1141 }
 0x37b   : > { %v1144_v55 = vsub.f32 %v1135_v40, %v1142_v54  ;;  %1186 = vmatpush.msra.mxu0 %v2075_v53 }
 0x37d   : > { %v1147_v56 = vmul.f32 1.442695, %v1144_v55 }
 0x37e   : > { %v1230_v21 = vpop.permute.xlu1 %1229 }
 0x37f   : > { %2106 = vpow2.f32 %v1147_v56 }
 0x380   : > { %2108 = vrcp.f32 %v1024_v50 }
 0x382   : > { %v1027_v57 = vpop.xlane.xlu2 %1026 }
 0x383   : > { %2110 = vrcp.f32 %v1027_v57 }
 0x385   : > { %v2107_v58 = vpop.eup %2106 }
 0x386   : > { %v1152_v59 = vsel %vm974_vm8, %v2107_v58, 0.0  ;;  %v2109_v60 = vpop.eup %2108  ;;  %v1353_v28 = vpop.permute.xlu1 %1352 }
 0x387   : > { %1153 = vadd.xlane.f32.xlu0 %v1152_v59  ;;  %v1030_v3 = vmul.f32 %v2109_v60, %v2101_v35  ;;  %v2090_v35 = vld [vmem:[%s785_s18] ss:$0 sm:$0xff]  ;;  %s2755_s18 = scalar_lea.vmem %s2880_s4, %s2003_s27  ;;  %s813_s4 = scalar_lea.vmem %s2883_s17, %s2001_s20 }
 0x388   : > { %v972_v36 = vadd.f32 %v2090_v35, %v2515_v0  ;;  %v973_v40 = vadd.f32 %v2090_v35, %v2519_v2 }
 0x389   : > { %v2111_v62 = vpop.eup %2110 }
 0x38a   : > { %v2068_v61 = vpop.permute.xlu2 %2067  ;;  %v1031_v4 = vmul.f32 %v2111_v62, %v2103_v43 }
 0x38b   : > { %v2069_v63 = vunpack.i.l.bf16 %v2068_v61  ;;  %v2070_v1 = vunpack.i.h.bf16 %v2068_v61 }
 0x38d   : > { %1058 = vmatpush.msrb.mxu1 %v2069_v63  ;;  %2005 = vmatpush.msra.mxu3 %v2069_v63 }
 0x38f   : > { %1059 = vmatpush.msrb.mxu1 %v2070_v1  ;;  %2006 = vmatpush.msra.mxu3 %v2070_v1 }
 0x390   : > { %1964 = vmatmul.msk.f32.vlgmr.msrb.gmra.mxu1 %vm974_vm8, %v1030_v3  ;;  %1965 = vmatmul.msk.f32.vlgmr.msra.gmra.mxu3 %vm974_vm8, %v1031_v4 }
 0x391   : > { %1214 = vmatpush.msra.mxu1 %v963_v5  ;;  %1087 = vmatpush.msrb.mxu3 %v961_v12 }
 0x392   : > { %v1359_v8 = vpop.permute.xlu2 %1358 }
 0x393   : > { %1215 = vmatpush.msra.mxu1 %v962_v6  ;;  %1088 = vmatpush.msrb.mxu3 %v960_v17 }
 0x395   : > { %1984 = vmatpush.xpose.msk.msrb.mxu1 %vm974_vm8, %v1359_v8 }
 0x39a   : > { %v1357_v9 = vpop.permute.xlu2 %1356 }
 0x39b   : > { %1231 = vrot.lane.b32.xlu0 %v2597_v13, %s2271_s21  ;;  %1985 = vmatpush.xpose.msk.msrb.mxu1 %vm974_vm8, %v1357_v9 }
 0x3a2   : > { %v1228_v25 = vpop.permute.xlu2 %1227 }
 0x3a3   : > { %1225 = vrot.lane.b32.xlu0 %v2594_v7, %s2271_s21  ;;  %s2879_s21 = sld [smem:[#allocation16_spill]] }
 0x3ab   : > { %1354 = vrot.lane.b32.xlu0 %v2599_v14, %s2272_s11  ;;  %s796_s11 = scalar_lea.vmem %s2879_s21, %s2002_s10  ;;  %s2882_s21 = sld [smem:[#allocation19_spill]] }
 0x3de   : > { %v1151_v11 = vpop.xlane.xlu0 %1150 }
 0x3df   : > { %2112 = vrcp.f32 %v1151_v11 }
 0x3e5   : > { %v2113_v15 = vpop.eup %2112 }
 0x3e6   : > { %v1157_v16 = vmul.f32 %v2113_v15, %v2105_v48 }
 0x3e8   : > { %1972 = vmatmul.msk.f32.vlgmr.msra.gmra.mxu0 %vm974_vm8, %v1157_v16 }
 0x3fa   : > { %v1154_v13 = vpop.xlane.xlu0 %1153 }
 0x3fb   : > { %2114 = vrcp.f32 %v1154_v13 }
 0x401   : > { %v2115_v18 = vpop.eup %2114 }
 0x402   : > { %v1158_v19 = vmul.f32 %v2115_v18, %v2107_v58 }
 0x404   : > { %1973 = vmatmul.msk.f32.gmra.mxu0 %vm974_vm8, %v1158_v19  ;;  %v965_v19 = vld [vmem:[%s2650_s26 + $0x28] sm:$0xff] }
 0x405   : > { %1341 = vmatpush.msrb.mxu0 %v965_v19  ;;  %v1642_v19 = vld [vmem:[%s2755_s18 + $0xe8] sm:$0xff] }
 0x40d   : > { %v1061_v7 = vpop.f32.mrf.mxu1  ;;  %v1232_v14 = vpop.permute.xlu0 %1231 }
 0x40e   : > { %1966 = vmatmul.msk.f32.vlgmr.msrb.gmra.mxu3 %vm974_vm8, %v1061_v7 }
 0x40f   : > { %1976 = vmatpush.xpose.msk.msra.mxu3 %vm974_vm8, %v1232_v14 }
 0x413   : > { %1977 = vmatpush.xpose.msk.msra.mxu3 %vm974_vm8, %v1230_v21  ;;  %v1064_v22 = vpop.f32.mrf.mxu3 }
 0x415   : > { %v1226_v23 = vpop.permute.xlu0 %1225 }
 0x416   : > { %1967 = vmatmul.msk.f32.gmra.mxu3 %vm974_vm8, %v1064_v22 }
 0x41d   : > { %v1355_v29 = vpop.permute.xlu0 %1354 }
 0x41e   : > { %1978 = vmatmul.msk.f32.vlgmr.msra.gmra.mxu3 %vm974_vm8, %v1226_v23 }
 0x426   : > { %1979 = vmatmul.msk.f32.gmra.mxu3 %vm974_vm8, %v1228_v25 }
 0x465   : > { %v1188_v26 = vpop.f32.mrf.mxu0 }
 0x466   : > { %1974 = vmatmul.msk.f32.vlgmr.msra.gmra.mxu1 %vm974_vm8, %v1188_v26 }
 0x481   : > { %v1191_v27 = vpop.f32.mrf.mxu0 }
 0x482   : > { %1975 = vmatmul.msk.f32.gmra.mxu1 %vm974_vm8, %v1191_v27  ;;  %v964_v27 = vld [vmem:[%s2650_s26 + $0x20] sm:$0xff] }
 0x483   : > { %1342 = vmatpush.msrb.mxu0 %v964_v27  ;;  %v1624_v27 = vld [vmem:[%s2755_s18 + $0x58] sm:$0xff] }
 0x48a   : > { %1986 = vmatmul.msk.f32.vlgmr.msrb.gmra.mxu1 %vm974_vm8, %v1353_v28  ;;  %v967_v28 = vld [vmem:[%s2650_s26 + $0x38] sm:$0xff] }
 0x491   : > { %v1090_v30 = vpop.f32.mrf.mxu3 }
 0x492   : > { %1987 = vmatmul.msk.f32.gmra.mxu1 %vm974_vm8, %v1355_v29  ;;  %v1096_v37 = vadd.f32 %v1090_v30, %v972_v36 }
 0x499   : > { %v1093_v31 = vpop.f32.mrf.mxu3 }
 0x49a   : > { %v1097_v42 = vadd.f32 %v1093_v31, %v973_v40 }
 0x4a1   : > { %v1258_v32 = vpop.f32.mrf.mxu3 }
 0x4a2   : > { %v1259_v33 = vadd.f32 %v1258_v32, %v2617_v20  ;;  %v966_v32 = vld [vmem:[%s2650_s26 + $0x30] sm:$0xff] }
 0x4a4   : > { %v1264_v34 = vsel %vm974_vm8, %v1259_v33, -inf }
 0x4a5   : > { %1265 = vmax.xlane.f32.xlu2 %v1264_v34 }
 0x4a9   : > { %v1261_v48 = vpop.f32.mrf.mxu3 }
 0x4aa   : > { %v1262_v49 = vadd.f32 %v1261_v48, %v2624_v24 }
 0x4ac   : > { %v1267_v51 = vsel %vm974_vm8, %v1262_v49, -inf }
 0x4e3   : > { %v1217_v38 = vpop.f32.mrf.mxu1 }
 0x4e4   : > { %v2685_v39 = vadd.f32 %v1217_v38, %v1096_v37 }
 0x4ff   : > { %v1220_v43 = vpop.f32.mrf.mxu1 }
 0x500   : > { %v2688_v44 = vadd.f32 %v1220_v43, %v1097_v42 }
 0x507   : > { %v1385_v45 = vpop.f32.mrf.mxu1 }
 0x508   : > { %v1386_v46 = vadd.f32 %v1385_v45, %v2617_v20 }
 0x50a   : > { %v1391_v47 = vsel %vm974_vm8, %v1386_v46, -inf }
 0x50b   : > { %1392 = vmax.xlane.f32.xlu1 %v1391_v47 }
 0x50f   : > { %v1388_v0 = vpop.f32.mrf.mxu1 }
 0x510   : > { %v1389_v50 = vadd.f32 %v1388_v0, %v2624_v24 }
 0x512   : > { %v1394_v2 = vsel %vm974_vm8, %v1389_v50, -inf }
 0x513   : > { %1268 = vmax.xlane.f32.xlu1 %v1267_v51  ;;  %1395 = vmax.xlane.f32.xlu0 %v1394_v2 }
 0x518   : > { %v1266_v52 = vpop.xlane.xlu2 %1265 }
 0x519   : > { %v1270_v53 = vsub.f32 %v1259_v33, %v1266_v52 }
 0x51b   : > { %v1272_v54 = vmul.f32 1.442695, %v1270_v53 }
 0x51d   : > { %2116 = vpow2.f32 %v1272_v54 }
 0x523   : > { %v2117_v20 = vpop.eup %2116 }
 0x524   : > { %v1276_v55 = vsel %vm974_vm8, %v2117_v20, 0.0 }
 0x525   : > { %1277 = vadd.xlane.f32.xlu0 %v1276_v55  ;;  %v1550_v55 = vld [vmem:[%s796_s11 + $0x78] sm:$0xff] }
 0x526   : > { %1594 = vmatpush.msra.mxu1 %v1550_v55  ;;  %v1633_v55 = vld [vmem:[%s2755_s18 + $0xa0] sm:$0xff] }
 0x52c   : > { %2077 = vrot.lane.b32.xlu1 %v2633_v41, %s2274_s6 }
 0x539   : > { %2082 = vrot.lane.b32.xlu0 %v2633_v41, %s2275_s12 }
 0x57e   : > { %v1393_v24 = vpop.xlane.xlu1 %1392 }
 0x57f   : > { %v1397_v56 = vsub.f32 %v1386_v46, %v1393_v24  ;;  %v1547_v24 = vld [vmem:[%s796_s11 + $0x60] sm:$0xff] }
 0x581   : > { %v1399_v57 = vmul.f32 1.442695, %v1397_v56  ;;  %v1548_v56 = vld [vmem:[%s796_s11 + $0x68] sm:$0xff] }
 0x582   : > { %1595 = vmatpush.msra.mxu1 %v1548_v56  ;;  %v1616_v56 = vld [vmem:[%s2755_s18 + $0x18] sm:$0xff] }
 0x583   : > { %2118 = vpow2.f32 %v1399_v57  ;;  %v1545_v57 = vld [vmem:[%s796_s11 + $0x50] sm:$0xff] }
 0x586   : > { %v1396_v58 = vpop.xlane.xlu0 %1395  ;;  %v1269_v59 = vpop.xlane.xlu1 %1268 }
 0x587   : > { %v1398_v60 = vsub.f32 %v1389_v50, %v1396_v58  ;;  %v1271_v63 = vsub.f32 %v1262_v49, %v1269_v59  ;;  %v1546_v58 = vld [vmem:[%s796_s11 + $0x58] sm:$0xff]  ;;  %v1543_v59 = vld [vmem:[%s796_s11 + $0x40] sm:$0xff] }
 0x588   : > { %1596 = vmatpush.msra.mxu1 %v1546_v58 }
 0x589   : > { %v2119_v61 = vpop.eup %2118  ;;  %v1401_v62 = vmul.f32 1.442695, %v1398_v60  ;;  %v1274_v3 = vmul.f32 1.442695, %v1271_v63  ;;  %v1544_v60 = vld [vmem:[%s796_s11 + $0x48] sm:$0xff]  ;;  %v1539_v63 = vld [vmem:[%s796_s11 + $0x20] sm:$0xff] }
 0x58a   : > { %v1403_v1 = vsel %vm974_vm8, %v2119_v61, 0.0  ;;  %1597 = vmatpush.msra.mxu1 %v1544_v60 }
 0x58b   : > { %1404 = vadd.xlane.f32.xlu2 %v1403_v1  ;;  %2120 = vpow2.f32 %v1401_v62  ;;  %v1542_v62 = vld [vmem:[%s796_s11 + $0x38] sm:$0xff]  ;;  %v1540_v1 = vld [vmem:[%s796_s11 + $0x28] sm:$0xff] }
 0x58c   : > { %2122 = vpow2.f32 %v1274_v3  ;;  %1598 = vmatpush.msra.mxu1 %v1542_v62  ;;  %v1537_v3 = vld [vmem:[%s796_s11 + $0x10] sm:$0xff] }
 0x58d   : > { %v1615_v62 = vld [vmem:[%s2755_s18 + $0x10] sm:$0xff] }
 0x58e   : > { %1599 = vmatpush.msra.mxu1 %v1540_v1  ;;  %v1614_v1 = vld [vmem:[%s2755_s18 + $0x8] sm:$0xff] }
 0x591   : > { %v2121_v4 = vpop.eup %2120 }
 0x592   : > { %v1406_v5 = vsel %vm974_vm8, %v2121_v4, 0.0  ;;  %v2123_v41 = vpop.eup %2122 }
 0x593   : > { %1407 = vadd.xlane.f32.xlu2 %v1406_v5  ;;  %v1279_v6 = vsel %vm974_vm8, %v2123_v41, 0.0  ;;  %v1535_v5 = vld [vmem:[%s796_s11] sm:$0xff] }
 0x598   : > { %v1278_v12 = vpop.xlane.xlu0 %1277 }
 0x599   : > { %2124 = vrcp.f32 %v1278_v12  ;;  %v1644_v12 = vld [vmem:[%s2755_s18 + $0xf8] sm:$0xff] }
 0x59b   : > { %1280 = vadd.xlane.f32.xlu2 %v1279_v6 }
 0x59e   : > { %v2078_v8 = vpop.permute.xlu1 %2077 }
 0x59f   : > { %v2079_v9 = vunpack.i.l.bf16 %v2078_v8  ;;  %v2080_v11 = vunpack.i.h.bf16 %v2078_v8  ;;  %v2125_v16 = vpop.eup %2124 }
 0x5a0   : > { %v1284_v18 = vmul.f32 %v2125_v16, %v2117_v20  ;;  %v1549_v20 = vld [vmem:[%s796_s11 + $0x70] sm:$0xff] }
 0x5a1   : > { %1439 = vmatpush.msrb.mxu3 %v2079_v9  ;;  %1571 = vmatpush.msra.mxu0 %v1549_v20  ;;  %v1617_v20 = vld [vmem:[%s2755_s18 + $0x20] sm:$0xff] }
 0x5a3   : > { %1440 = vmatpush.msrb.mxu3 %v2080_v11  ;;  %1572 = vmatpush.msra.mxu0 %v1547_v24  ;;  %v1628_v11 = vld [vmem:[%s2755_s18 + $0x78] sm:$0xff] }
 0x5a5   : > { %1573 = vmatpush.msra.mxu0 %v1545_v57  ;;  %1645 = vmatpush.msra.mxu3 %v1628_v11  ;;  %v1632_v57 = vld [vmem:[%s2755_s18 + $0x98] sm:$0xff] }
 0x5a7   : > { %1574 = vmatpush.msra.mxu0 %v1543_v59 }
 0x5ab   : > { %v2083_v15 = vpop.permute.xlu0 %2082 }
 0x5ac   : > { %v2084_v17 = vunpack.i.l.bf16 %v2083_v15  ;;  %v2085_v13 = vunpack.i.h.bf16 %v2083_v15  ;;  %v1627_v15 = vld [vmem:[%s2755_s18 + $0x70] sm:$0xff] }
 0x5ad   : > { %1646 = vmatpush.msra.mxu3 %v1627_v15 }
 0x5ae   : > { %1312 = vmatpush.msrb.mxu2 %v2084_v17  ;;  %v1643_v17 = vld [vmem:[%s2755_s18 + $0xf0] sm:$0xff] }
 0x5b0   : > { %1313 = vmatpush.msrb.mxu2 %v2085_v13 }
 0x5b1   : > { %1980 = vmatmul.msk.f32.vlgmr.msrb.gmra.mxu2 %vm974_vm8, %v1284_v18  ;;  %v1626_v18 = vld [vmem:[%s2755_s18 + $0x68] sm:$0xff] }
 0x5b2   : > { %1468 = vmatpush.msra.mxu2 %v967_v28  ;;  %1647 = vmatpush.msra.mxu3 %v1626_v18  ;;  %v1640_v28 = vld [vmem:[%s2755_s18 + $0xd8] sm:$0xff] }
 0x5b4   : > { %1469 = vmatpush.msra.mxu2 %v966_v32  ;;  %v1622_v32 = vld [vmem:[%s2755_s18 + $0x48] sm:$0xff] }
 0x5b6   : > { %1668 = vmatpush.msrb.mxu2 %v1644_v12 }
 0x5b8   : > { %1669 = vmatpush.msrb.mxu2 %v1643_v17 }
 0x5ba   : > { %1670 = vmatpush.msrb.mxu2 %v1642_v19 }
 0x5fe   : > { %v1405_v7 = vpop.xlane.xlu2 %1404 }
 0x5ff   : > { %2126 = vrcp.f32 %v1405_v7 }
 0x605   : > { %v2127_v14 = vpop.eup %2126 }
 0x606   : > { %v1411_v21 = vmul.f32 %v2127_v14, %v2119_v61  ;;  %v1408_v22 = vpop.xlane.xlu2 %1407  ;;  %v1541_v61 = vld [vmem:[%s796_s11 + $0x30] sm:$0xff] }
 0x607   : > { %2128 = vrcp.f32 %v1408_v22  ;;  %1575 = vmatpush.msra.mxu0 %v1541_v61  ;;  %v1625_v22 = vld [vmem:[%s2755_s18 + $0x60] sm:$0xff] }
 0x608   : > { %1988 = vmatmul.msk.f32.vlgmr.msrb.gmra.mxu3 %vm974_vm8, %v1411_v21 }
 0x609   : > { %1576 = vmatpush.msra.mxu0 %v1539_v63  ;;  %1648 = vmatpush.msra.mxu3 %v1625_v22  ;;  %v1631_v63 = vld [vmem:[%s2755_s18 + $0x90] sm:$0xff] }
 0x60b   : > { %1577 = vmatpush.msra.mxu0 %v1537_v3  ;;  %1649 = vmatpush.msra.mxu3 %v1624_v27  ;;  %v1630_v3 = vld [vmem:[%s2755_s18 + $0x88] sm:$0xff] }
 0x60d   : > { %v2129_v23 = vpop.eup %2128  ;;  %1578 = vmatpush.msra.mxu0 %v1535_v5 }
 0x60e   : > { %v1281_v25 = vpop.xlane.xlu2 %1280  ;;  %v1412_v26 = vmul.f32 %v2129_v23, %v2121_v4  ;;  %v1538_v4 = vld [vmem:[%s796_s11 + $0x18] sm:$0xff]  ;;  %v1641_v23 = vld [vmem:[%s2755_s18 + $0xe0] sm:$0xff] }
 0x60f   : > { %2130 = vrcp.f32 %v1281_v25  ;;  %1600 = vmatpush.msra.mxu1 %v1538_v4  ;;  %1671 = vmatpush.msrb.mxu2 %v1641_v23  ;;  %v1613_v4 = vld [vmem:[%s2755_s18] sm:$0xff] }
 0x610   : > { %1989 = vmatmul.msk.f32.gmra.mxu3 %vm974_vm8, %v1412_v26 }
 0x611   : > { %1672 = vmatpush.msrb.mxu2 %v1640_v28 }
 0x615   : > { %v2131_v29 = vpop.eup %2130 }
 0x616   : > { %v1285_v30 = vmul.f32 %v2131_v29, %v2123_v41  ;;  %v1536_v41 = vld [vmem:[%s796_s11 + $0x8] sm:$0xff]  ;;  %s808_s11 = scalar_lea.vmem %s2882_s21, %s2890_s25 }
 0x617   : > { %1601 = vmatpush.msra.mxu1 %v1536_v41 }
 0x618   : > { %1981 = vmatmul.msk.f32.gmra.mxu2 %vm974_vm8, %v1285_v30  ;;  %v1623_v30 = vld [vmem:[%s2755_s18 + $0x50] sm:$0xff] }
 0x619   : > { %1650 = vmatpush.msra.mxu3 %v1623_v30 }
 0x61b   : > { %1651 = vmatpush.msra.mxu3 %v1622_v32 }
 0x634   : > { %v1315_v31 = vpop.f32.mrf.mxu2 }
 0x635   : > { %1982 = vmatmul.msk.f32.vlgmr.msrb.gmra.mxu0 %vm974_vm8, %v1315_v31 }
 0x68b   : > { %v1442_v33 = vpop.f32.mrf.mxu3 }
 0x68c   : > { %1990 = vmatmul.msk.f32.vlgmr.msra.gmra.mxu2 %vm974_vm8, %v1442_v33  ;;  %v1638_v33 = vld [vmem:[%s2755_s18 + $0xc8] sm:$0xff] }
 0x693   : > { %v1445_v34 = vpop.f32.mrf.mxu3 }
 0x694   : > { %1991 = vmatmul.msk.f32.gmra.mxu2 %vm974_vm8, %v1445_v34  ;;  %v2091_v34 = vld [vmem:[%s788_s28] ss:$0 sm:$0xff]  ;;  %s1951_s28 = sshll.u32 %s2890_s25, 1 }
 0x69b   : > { %v1318_v35 = vpop.f32.mrf.mxu2 }
 0x69c   : > { %1983 = vmatmul.msk.f32.gmra.mxu0 %vm974_vm8, %v1318_v35 }
 0x6b2   : > { %v1344_v36 = vpop.f32.mrf.mxu0 }
 0x6b3   : > { %v1350_v37 = vadd.f32 %v1344_v36, %v2685_v39  ;;  %v1621_v36 = vld [vmem:[%s2755_s18 + $0x40] sm:$0xff] }
 0x6b4   : > { %1652 = vmatpush.msra.mxu3 %v1621_v36 }
 0x70f   : > { %v1471_v38 = vpop.f32.mrf.mxu2 }
 0x710   : > { %v2715_v40 = vadd.f32 %v1471_v38, %v1350_v37  ;;  %v1637_v37 = vld [vmem:[%s2755_s18 + $0xc0] sm:$0xff] }
 0x712   : > { %v1481_v42 = vsel %vm818_vm0, %v2715_v40, 0.0 }
 0x713   : > { %1482 = vadd.xlane.f32.xlu2 %v1481_v42  ;;  %v2092_v42 = vld [vmem:[%s791_s15] ss:$0 sm:$0xff]  ;;  %s2881_s15 = sld [smem:[#allocation17_spill]] }
 0x717   : > { %v1474_v46 = vpop.f32.mrf.mxu2 }
 0x719   : > { %v1347_v43 = vpop.f32.mrf.mxu0  ;;  %s800_s10 = scalar_lea.vmem %s2881_s15, %s1951_s28 }
 0x71a   : > { %v1351_v45 = vadd.f32 %v1347_v43, %v2688_v44  ;;  %v1551_v5 = vld [vmem:[%s800_s10] sm:$0x3] }
 0x71b   : > { %v1553_v41 = vperm.slane %v1551_v5, 0 }
 0x71c   : > { %v2724_v47 = vadd.f32 %v1474_v46, %v1351_v45  ;;  %v1620_v45 = vld [vmem:[%s2755_s18 + $0x38] sm:$0xff] }
 0x71d   : > { %v1636_v46 = vld [vmem:[%s2755_s18 + $0xb8] sm:$0xff]  ;;  %1653 = vmatpush.msra.mxu3 %v1620_v45 }
 0x71e   : > { %v1484_v39 = vsel %vm818_vm0, %v2724_v47, 0.0 }
 0x71f   : > { %1485 = vadd.xlane.f32.xlu1 %v1484_v39 }
 0x786   : > { %v1483_v48 = vpop.xlane.xlu2 %1482 }
 0x787   : > { %v1487_v49 = vmul.f32 %v1483_v48, %v2523_v10 }
 0x789   : > { %v2730_v0 = vsub.f32 %v2715_v40, %v1487_v49 }
 0x78b   : > { %v1491_v44 = vmul.f32 %v2730_v0, %v2730_v0 }
 0x78d   : > { %v1493_v50 = vsel %vm818_vm0, %v1491_v44, 0.0  ;;  %v1619_v44 = vld [vmem:[%s2755_s18 + $0x30] sm:$0xff] }
 0x78e   : > { %1494 = vadd.xlane.f32.xlu0 %v1493_v50  ;;  %v1635_v50 = vld [vmem:[%s2755_s18 + $0xb0] sm:$0xff]  ;;  %1654 = vmatpush.msra.mxu3 %v1619_v44 }
 0x792   : > { %v1486_v51 = vpop.xlane.xlu1 %1485 }
 0x793   : > { %v1488_v2 = vmul.f32 %v1486_v51, %v2523_v10 }
 0x795   : > { %v2737_v52 = vsub.f32 %v2724_v47, %v1488_v2  ;;  %v1618_v2 = vld [vmem:[%s2755_s18 + $0x28] sm:$0xff] }
 0x796   : > { %1655 = vmatpush.msra.mxu3 %v1618_v2 }
 0x797   : > { %v1492_v53 = vmul.f32 %v2737_v52, %v2737_v52 }
 0x798   : > { %1656 = vmatpush.msra.mxu3 %v1617_v20 }
 0x799   : > { %v1496_v54 = vsel %vm818_vm0, %v1492_v53, 0.0  ;;  %v1634_v53 = vld [vmem:[%s2755_s18 + $0xa8] sm:$0xff] }
 0x79a   : > { %1497 = vadd.xlane.f32.xlu2 %v1496_v54  ;;  %1657 = vmatpush.msra.mxu3 %v1616_v56 }
 0x79c   : > { %1658 = vmatpush.msra.mxu3 %v1615_v62 }
 0x79e   : > { %1659 = vmatpush.msra.mxu3 %v1614_v1 }
 0x7a0   : > { %1660 = vmatpush.msra.mxu3 %v1613_v4 }
 0x801   : > { %v1495_v6 = vpop.xlane.xlu0 %1494 }
 0x802   : > { %v1499_v8 = vmul.f32 %v1495_v6, %v2523_v10  ;;  %v1554_v6 = vperm.slane %v1551_v5, 1 }
 0x804   : > { %v1501_v9 = vadd.f32 1e-05, %v1499_v8 }
 0x806   : > { %2132 = vrsqrt.f32 %v1501_v9  ;;  %vm1509_vm10 = vweird.f32 %v1501_v9 }
 0x80c   : > { %v2133_v16 = vpop.eup %2132 }
 0x80d   : > { %v1504_v13 = vmul.f32 %v2133_v16, %v1501_v9  ;;  %v1498_v7 = vpop.xlane.xlu2 %1497  ;;  %vm1510_vm9 = vweird.f32 %v2133_v16 }
 0x80e   : > { %v1500_v21 = vmul.f32 %v1498_v7, %v2523_v10  ;;  %v1639_v10 = vld [vmem:[%s2755_s18 + $0xd0] sm:$0xff]  ;;  %vm1511_vm11 = vmor %vm1509_vm10, %vm1510_vm9 }
 0x80f   : > { %v1505_v14 = vmul.f32 %v2133_v16, %v1504_v13  ;;  %1673 = vmatpush.msrb.mxu2 %v1639_v10 }
 0x810   : > { %v1502_v26 = vadd.f32 1e-05, %v1500_v21 }
 0x811   : > { %v1506_v25 = vmul.f32 0.5, %v1505_v14  ;;  %1674 = vmatpush.msrb.mxu2 %v1638_v33 }
 0x812   : > { %2134 = vrsqrt.f32 %v1502_v26  ;;  %vm1519_vm13 = vweird.f32 %v1502_v26 }
 0x813   : > { %v1507_v29 = vsub.f32 1.5, %v1506_v25  ;;  %1675 = vmatpush.msrb.mxu2 %v1637_v37  ;;  %v2093_v25 = vld [vmem:[%s808_s11] ss:$0 sm:$0xff] }
 0x815   : > { %v1508_v31 = vmul.f32 %v2133_v16, %v1507_v29  ;;  %1676 = vmatpush.msrb.mxu2 %v1636_v46 }
 0x817   : > { %v1512_v35 = vsel %vm1511_vm11, %v2133_v16, %v1508_v31  ;;  %1677 = vmatpush.msrb.mxu2 %v1635_v50 }
 0x818   : > { %v1523_v38 = vmul.f32 %v1512_v35, %v2730_v0  ;;  %v2135_v43 = vpop.eup %2134 }
 0x819   : > { %v1514_v48 = vmul.f32 %v2135_v43, %v1502_v26  ;;  %vm1520_vm12 = vweird.f32 %v2135_v43  ;;  %1678 = vmatpush.msrb.mxu2 %v1634_v53 }
 0x81a   : > { %v1528_v39 = vmul.f32 %v2091_v34, %v1523_v38  ;;  %vm1521_vm14 = vmor %vm1519_vm13, %vm1520_vm12 }
 0x81b   : > { %v1515_v49 = vmul.f32 %v2135_v43, %v1514_v48  ;;  %1679 = vmatpush.msrb.mxu2 %v1633_v55 }
 0x81c   : > { %v1533_v0 = vadd.f32 %v2092_v42, %v1528_v39 }
 0x81d   : > { %v1516_v51 = vmul.f32 0.5, %v1515_v49  ;;  %1680 = vmatpush.msrb.mxu2 %v1632_v57 }
 0x81e   : > { %1992 = vmatmul.msk.f32.vlgmr.msra.gmra.mxu0 %vm818_vm0, %v1533_v0  ;;  %1994 = vmatmul.msk.f32.vlgmr.msra.gmra.mxu1 %vm818_vm0, %v1533_v0 }
 0x81f   : > { %v1517_v54 = vsub.f32 1.5, %v1516_v51  ;;  %1681 = vmatpush.msrb.mxu2 %v1631_v63 }
 0x821   : > { %v1518_v24 = vmul.f32 %v2135_v43, %v1517_v54  ;;  %1682 = vmatpush.msrb.mxu2 %v1630_v3 }
 0x823   : > { %v1522_v58 = vsel %vm1521_vm14, %v2135_v43, %v1518_v24 }
 0x824   : > { %v1524_v59 = vmul.f32 %v1522_v58, %v2737_v52  ;;  %v1629_v52 = vld [vmem:[%s2755_s18 + $0x80] sm:$0xff] }
 0x825   : > { %1683 = vmatpush.msrb.mxu2 %v1629_v52 }
 0x826   : > { %v1529_v60 = vmul.f32 %v2091_v34, %v1524_v59 }
 0x828   : > { %v1534_v61 = vadd.f32 %v2092_v42, %v1529_v60 }
 0x82a   : > { %1993 = vmatmul.msk.f32.gmra.mxu0 %vm818_vm0, %v1534_v61  ;;  %1995 = vmatmul.msk.f32.gmra.mxu1 %vm818_vm0, %v1534_v61 }
 0x89b   : > { %v1580_v8 = vpop.f32.mrf.mxu0  ;;  %v1603_v9 = vpop.f32.mrf.mxu1 }
 0x89c   : > { %v1581_v11 = vadd.f32 %v1580_v8, %v1553_v41  ;;  %v1604_v12 = vadd.f32 %v1603_v9, %v1554_v6 }
 0x89e   : > { %v1609_v15 = vmax.f32 %v1581_v11, 0.0  ;;  %v1610_v16 = vmax.f32 %v1604_v12, 0.0 }
 0x8a0   : > { %1661 = vmatmul.f32.vlgmr.msra.gmra.mxu3 %v1609_v15  ;;  %1684 = vmatmul.f32.vlgmr.msrb.gmra.mxu2 %v1610_v16 }
 0x8a7   : > { %v1583_v17 = vpop.f32.mrf.mxu0  ;;  %v1606_v13 = vpop.f32.mrf.mxu1 }
 0x8a8   : > { %v1584_v18 = vadd.f32 %v1583_v17, %v1553_v41  ;;  %v1607_v19 = vadd.f32 %v1606_v13, %v1554_v6 }
 0x8aa   : > { %v1611_v7 = vmax.f32 %v1584_v18, 0.0  ;;  %v1612_v14 = vmax.f32 %v1607_v19, 0.0 }
 0x8ac   : > { %1664 = vmatmul.f32.gmra.mxu3 %v1611_v7  ;;  %1687 = vmatmul.f32.gmra.mxu2 %v1612_v14 }
 0x923   : > { %v1662_v21 = vpop.f32.mrf.mxu3  ;;  %v1685_v22 = vpop.f32.mrf.mxu2 }
 0x924   : > { %v1686_v23 = vadd.f32 %v1685_v22, %v1662_v21 }
 0x926   : > { %v1691_v26 = vadd.f32 %v1686_v23, %v2715_v40 }
 0x928   : > { %v1697_v27 = vadd.f32 %v2093_v25, %v1691_v26 }
 0x92a   : > { %1699 = vst.msk [vmem:[%s813_s4] sm:$0xff] %vm818_vm0, %v1697_v27 }
 0x92f   : > { %v1665_v28 = vpop.f32.mrf.mxu3  ;;  %v1688_v29 = vpop.f32.mrf.mxu2 }
 0x930   : > { %v1689_v30 = vadd.f32 %v1688_v29, %v1665_v28 }
 0x932   : > { %v1692_v10 = vadd.f32 %v1689_v30, %v2724_v47 }
 0x934   : > { %v1698_v31 = vadd.f32 %v2093_v25, %v1692_v10 }
 0x936   : > { %1700 = vst.msk [vmem:[%s813_s4 + $0x8] sm:$0xff] %vm818_vm0, %v1698_v31 }
 0x937 PF: > { %s2884_s24 = sld [smem:[#allocation9_spill]]  ;;  %s2886_s21 = smov %s2256_s22 }
 0x938   : > { %s2885_s25 = sld [smem:[#allocation10_spill]]  ;;  %s2887_s22 = smov %s2260_s23 }
 0x93d   : > { %p29_p7 = scmp.ge.s32.totalorder %s2884_s24, 5  }
 0x93e   : > { %s2888_s23 = smov %s2885_s25 }
 0x93f   :  { %31 = sbr.rel (!%p29_p7) target bundleno = 16 (0x10), region = 184 }
 0x944   :  { %1722 = vsyncpa [#allocation3], 1 }
 0x945   :  { %1724 = vsyncpa [#allocation3 + $0x1], 1 }
 0x946   :  { %1725 = vsyncpa [#allocation5], 1 }
 0x947   :  { %1727 = vsyncpa [#allocation5 + $0x1], 1 }

// kernel: forward.11
= control target key start
LH: loop header
LB: loop body
LE: loop exit
PB: predicated region body
PF: predicated region fallthrough
CT: control target
= control target key end

     0   :  { %vm48_vm0 = vcmask 517120   ;;  %s1161_s0 = inlined_call_operand.vmem [shape: f32[2,64], index: 0, kind: input, shape index: {}]   ;;  %s1162_s1 = inlined_call_operand.vmem [shape: f32[2,64], index: 1, kind: input, shape index: {}]   ;;  %s1163_s2 = inlined_call_operand.vmem [shape: f32[2,64], index: 2, kind: input, shape index: {}]   ;;  %s1164_s3 = inlined_call_operand.vmem [shape: f32[1,64], index: 3, kind: input, shape index: {}]   ;;  %s1165_s4 = inlined_call_operand.vmem [shape: f32[1,64], index: 4, kind: input, shape index: {}]   ;;  %s1166_s5 = inlined_call_operand.vmem [shape: f32[192,192], index: 5, kind: input, shape index: {}]   ;;  %s1167_s6 = inlined_call_operand.vmem [shape: f32[1,192], index: 6, kind: input, shape index: {}]   ;;  %s1168_s7 = inlined_call_operand.vmem [shape: f32[192,192], index: 7, kind: input, shape index: {}]   ;;  %s1169_s8 = inlined_call_operand.vmem [shape: f32[1,192], index: 8, kind: input, shape index: {}]   ;;  %s1170_s9 = inlined_call_operand.vmem [shape: f32[1,192], index: 9, kind: input, shape index: {}]   ;;  %s1171_s10 = inlined_call_operand.vmem [shape: f32[1,192], index: 10, kind: input, shape index: {}]   ;;  %s1172_s11 = inlined_call_operand.vmem [shape: f32[192,4], index: 11, kind: input, shape index: {}]   ;;  %s1173_s12 = inlined_call_operand.vmem [shape: f32[1,4], index: 12, kind: input, shape index: {}]   ;;  %s1174_s13 = inlined_call_operand.hbm [shape: f32[2,4], index: 13, kind: output, shape index: {}]  }
   0x1   :  { %v86_v0 = vld [vmem:[%s1162_s1] sm:$0x3] }
   0x2   :  { %v87_v1 = vsel %vm48_vm0, %v86_v0, 0.0  ;;  %v111_v2 = vld [vmem:[%s1163_s2] sm:$0x3] }
   0x3   :  { %88 = vadd.xlane.f32.xlu0 %v87_v1  ;;  %v112_v3 = vsel %vm48_vm0, %v111_v2, 0.0 }
   0x4   :  { %113 = vadd.xlane.f32.xlu1 %v112_v3 }
   0x5   :  { %18 = vsyncpa [#allocation3], 0  ;;  %v47_v4 = vld [vmem:[%s1161_s0] sm:$0x3]  ;;  %v614_v6 = vmov 64.0   ;;  %v188_v28 = vld [vmem:[%s1166_s5 + $0x170] sm:$0xff] }
   0x6   :  { %v49_v5 = vsel %vm48_vm0, %v47_v4, 0.0  ;;  %576 = vrcp.f32 %v614_v6  ;;  %v189_v29 = vld [vmem:[%s1166_s5 + $0x178] sm:$0xff]  ;;  %227 = vmatpush.msra.mxu1 %v188_v28  ;;  %v186_v30 = vld [vmem:[%s1166_s5 + $0x160] sm:$0xff]  ;;  %v187_v31 = vld [vmem:[%s1166_s5 + $0x168] sm:$0xff]  ;;  %s615_s21 = smov 64   ;;  %vm140_vm11 = vcmask 523264  }
   0x7   :  { %267 = vmatpush.msra.mxu3 %v189_v29  ;;  %v184_v34 = vld [vmem:[%s1166_s5 + $0x150] sm:$0xff]  ;;  %v185_v35 = vld [vmem:[%s1166_s5 + $0x158] sm:$0xff]  ;;  %v182_v37 = vld [vmem:[%s1166_s5 + $0x140] sm:$0xff]  ;;  %vm424_vm12 = vcmask 1041408   ;;  %s555_s14 = sshll.u32 %s1174_s13, 4  ;;  %s556_s14 = int_to_ptr.hbm [resolvable:$true] %s555_s14 }
   0x8   :  { %228 = vmatpush.msra.mxu1 %v186_v30  ;;  %v183_v38 = vld [vmem:[%s1166_s5 + $0x148] sm:$0xff]  ;;  %v180_v39 = vld [vmem:[%s1166_s5 + $0x130] sm:$0xff]  ;;  %v181_v40 = vld [vmem:[%s1166_s5 + $0x138] sm:$0xff] }
   0x9   :  { %268 = vmatpush.msra.mxu3 %v187_v31  ;;  %v178_v41 = vld [vmem:[%s1166_s5 + $0x120] sm:$0xff]  ;;  %v179_v42 = vld [vmem:[%s1166_s5 + $0x128] sm:$0xff]  ;;  %v176_v43 = vld [vmem:[%s1166_s5 + $0x110] sm:$0xff] }
   0xa   :  { %229 = vmatpush.msra.mxu1 %v184_v34  ;;  %v177_v44 = vld [vmem:[%s1166_s5 + $0x118] sm:$0xff]  ;;  %v174_v47 = vld [vmem:[%s1166_s5 + $0x100] sm:$0xff]  ;;  %v175_v48 = vld [vmem:[%s1166_s5 + $0x108] sm:$0xff] }
   0xb   :  { %50 = vadd.xlane.f32.xlu0 %v49_v5  ;;  %269 = vmatpush.msra.mxu3 %v185_v35  ;;  %v172_v52 = vld [vmem:[%s1166_s5 + $0xf0] sm:$0xff]  ;;  %v173_v53 = vld [vmem:[%s1166_s5 + $0xf8] sm:$0xff]  ;;  %v170_v55 = vld [vmem:[%s1166_s5 + $0xe0] sm:$0xff] }
   0xc   :  { %v577_v7 = vpop.eup %576  ;;  %230 = vmatpush.msra.mxu1 %v182_v37  ;;  %199 = vmatpush.msra.mxu0 %v172_v52  ;;  %v171_v56 = vld [vmem:[%s1166_s5 + $0xe8] sm:$0xff]  ;;  %v168_v57 = vld [vmem:[%s1166_s5 + $0xd0] sm:$0xff]  ;;  %v169_v58 = vld [vmem:[%s1166_s5 + $0xd8] sm:$0xff] }
   0xd   :  { %v53_v8 = vmul.f32 64.0, %v577_v7  ;;  %vm57_vm1 = vweird.f32 %v577_v7  ;;  %270 = vmatpush.msra.mxu3 %v183_v38  ;;  %239 = vmatpush.msra.mxu2 %v173_v53  ;;  %v166_v62 = vld [vmem:[%s1166_s5 + $0xc0] sm:$0xff]  ;;  %v167_v63 = vld [vmem:[%s1166_s5 + $0xc8] sm:$0xff]  ;;  %v164_v3 = vld [vmem:[%s1166_s5 + $0xb0] sm:$0xff] }
   0xe   :  { %231 = vmatpush.msra.mxu1 %v180_v39  ;;  %200 = vmatpush.msra.mxu0 %v170_v55  ;;  %v154_v30 = vld [vmem:[%s1166_s5 + $0x60] sm:$0xff]  ;;  %v155_v31 = vld [vmem:[%s1166_s5 + $0x68] sm:$0xff]  ;;  %v152_v35 = vld [vmem:[%s1166_s5 + $0x50] sm:$0xff] }
   0xf   :  { %v54_v9 = vsub.f32 1.0, %v53_v8  ;;  %271 = vmatpush.msra.mxu3 %v181_v40  ;;  %240 = vmatpush.msra.mxu2 %v171_v56  ;;  %v162_v8 = vld [vmem:[%s1166_s5 + $0xa0] sm:$0xff]  ;;  %v143_v53 = vld [vmem:[%s1166_s5 + $0x8] sm:$0xff]  ;;  %v311_v56 = vld [vmem:[%s1168_s7 + $0xf0] sm:$0xff] }
  0x10   :  { %232 = vmatpush.msra.mxu1 %v178_v41  ;;  %201 = vmatpush.msra.mxu0 %v168_v57  ;;  %v150_v38 = vld [vmem:[%s1166_s5 + $0x40] sm:$0xff]  ;;  %v148_v41 = vld [vmem:[%s1166_s5 + $0x30] sm:$0xff]  ;;  %v312_v57 = vld [vmem:[%s1168_s7 + $0xf8] sm:$0xff] }
  0x11   :  { %v55_v10 = vmul.f32 %v577_v7, %v54_v9  ;;  %272 = vmatpush.msra.mxu3 %v179_v42  ;;  %241 = vmatpush.msra.mxu2 %v169_v58  ;;  %v163_v9 = vld [vmem:[%s1166_s5 + $0xa8] sm:$0xff]  ;;  %v149_v42 = vld [vmem:[%s1166_s5 + $0x38] sm:$0xff]  ;;  %v309_v58 = vld [vmem:[%s1168_s7 + $0xe0] sm:$0xff] }
  0x12   :  { %233 = vmatpush.msra.mxu1 %v176_v43  ;;  %202 = vmatpush.msra.mxu0 %v166_v62  ;;  %v305_v62 = vld [vmem:[%s1168_s7 + $0xc0] sm:$0xff] }
  0x13   :  { %v56_v11 = vadd.f32 %v577_v7, %v55_v10  ;;  %273 = vmatpush.msra.mxu3 %v177_v44  ;;  %242 = vmatpush.msra.mxu2 %v167_v63  ;;  %v306_v63 = vld [vmem:[%s1168_s7 + $0xc8] sm:$0xff] }
  0x14   :  { %234 = vmatpush.msra.mxu1 %v174_v47  ;;  %203 = vmatpush.msra.mxu0 %v164_v3  ;;  %v328_v3 = vld [vmem:[%s1168_s7 + $0x178] sm:$0xff] }
  0x15   :  { %v700_v12 = vsel %vm57_vm1, %v577_v7, %v56_v11  ;;  %274 = vmatpush.msra.mxu3 %v175_v48  ;;  %v806_v7 = vld [vmem:[%s1164_s3] ss:$0 sm:$0xff]  ;;  %vm546_vm1 = vcmask 25600  }
  0x16   :  { %204 = vmatpush.msra.mxu0 %v162_v8  ;;  %332 = vmatpush.msrb.mxu1 %v311_v56  ;;  %v297_v8 = vld [vmem:[%s1168_s7 + $0x80] sm:$0xff] }
  0x18   :  { %333 = vmatpush.msrb.mxu1 %v309_v58 }
  0x76   :  { %v89_v13 = vpop.xlane.xlu0 %88 }
  0x77   :  { %v90_v14 = vmul.f32 %v89_v13, %v700_v12  ;;  %v114_v17 = vpop.xlane.xlu1 %113 }
  0x78   :  { %v115_v21 = vmul.f32 %v114_v17, %v700_v12 }
  0x79   :  { %v703_v15 = vsub.f32 %v86_v0, %v90_v14  ;;  %v160_v14 = vld [vmem:[%s1166_s5 + $0x90] sm:$0xff] }
  0x7a   :  { %v712_v23 = vsub.f32 %v111_v2, %v115_v21  ;;  %205 = vmatpush.msra.mxu0 %v160_v14  ;;  %v291_v14 = vld [vmem:[%s1168_s7 + $0x50] sm:$0xff] }
  0x7b   :  { %v92_v16 = vmul.f32 %v703_v15, %v703_v15 }
  0x7c   :  { %v117_v26 = vmul.f32 %v712_v23, %v712_v23 }
  0x7d   :  { %v93_v18 = vsel %vm48_vm0, %v92_v16, 0.0  ;;  %v161_v16 = vld [vmem:[%s1166_s5 + $0x98] sm:$0xff] }
  0x7e   :  { %94 = vadd.xlane.f32.xlu1 %v93_v18  ;;  %v51_v19 = vpop.xlane.xlu0 %50  ;;  %v118_v27 = vsel %vm48_vm0, %v117_v26, 0.0  ;;  %v156_v26 = vld [vmem:[%s1166_s5 + $0x70] sm:$0xff] }
  0x7f   :  { %v59_v20 = vmul.f32 %v700_v12, %v51_v19  ;;  %v158_v19 = vld [vmem:[%s1166_s5 + $0x80] sm:$0xff] }
  0x80   :  { %206 = vmatpush.msra.mxu0 %v158_v19  ;;  %v287_v19 = vld [vmem:[%s1168_s7 + $0x30] sm:$0xff] }
  0x81   :  { %v710_v22 = vsub.f32 %v47_v4, %v59_v20  ;;  %v165_v4 = vld [vmem:[%s1166_s5 + $0xb8] sm:$0xff] }
  0x82   :  { %243 = vmatpush.msra.mxu2 %v165_v4  ;;  %207 = vmatpush.msra.mxu0 %v156_v26  ;;  %v301_v4 = vld [vmem:[%s1168_s7 + $0xa0] sm:$0xff]  ;;  %v286_v26 = vld [vmem:[%s1168_s7 + $0x28] sm:$0xff] }
  0x83   :  { %v61_v24 = vmul.f32 %v710_v22, %v710_v22 }
  0x84   :  { %244 = vmatpush.msra.mxu2 %v163_v9  ;;  %208 = vmatpush.msra.mxu0 %v154_v30  ;;  %v298_v9 = vld [vmem:[%s1168_s7 + $0x88] sm:$0xff]  ;;  %v284_v30 = vld [vmem:[%s1168_s7 + $0x18] sm:$0xff] }
  0x85   :  { %v62_v25 = vsel %vm48_vm0, %v61_v24, 0.0  ;;  %v285_v24 = vld [vmem:[%s1168_s7 + $0x20] sm:$0xff] }
  0x86   :  { %63 = vadd.xlane.f32.xlu2 %v62_v25  ;;  %245 = vmatpush.msra.mxu2 %v161_v16  ;;  %v292_v16 = vld [vmem:[%s1168_s7 + $0x58] sm:$0xff] }
  0x87   :  { %209 = vmatpush.msra.mxu0 %v152_v35  ;;  %v320_v35 = vld [vmem:[%s1168_s7 + $0x138] sm:$0xff] }
  0x89   :  { %210 = vmatpush.msra.mxu0 %v150_v38  ;;  %v315_v38 = vld [vmem:[%s1168_s7 + $0x110] sm:$0xff] }
  0x8b   :  { %211 = vmatpush.msra.mxu0 %v148_v41  ;;  %v190_v41 = vld [vmem:[%s1167_s6] sm:$0x3] }
  0x8e   :  { %119 = vadd.xlane.f32.xlu2 %v118_v27  ;;  %v157_v27 = vld [vmem:[%s1166_s5 + $0x78] sm:$0xff] }
  0xf1   :  { %v95_v32 = vpop.xlane.xlu1 %94 }
  0xf2   :  { %v96_v33 = vmul.f32 %v95_v32, %v700_v12 }
  0xf4   :  { %v97_v36 = vadd.f32 1e-05, %v96_v33 }
  0xf6   :  { %578 = vrsqrt.f32 %v97_v36  ;;  %vm104_vm3 = vweird.f32 %v97_v36 }
  0xf9   :  { %v64_v45 = vpop.xlane.xlu2 %63 }
  0xfa   :  { %v65_v46 = vmul.f32 %v64_v45, %v700_v12  ;;  %v146_v45 = vld [vmem:[%s1166_s5 + $0x20] sm:$0xff] }
  0xfb   :  { %212 = vmatpush.msra.mxu0 %v146_v45 }
  0xfc   :  { %v579_v49 = vpop.eup %578  ;;  %v66_v50 = vadd.f32 1e-05, %v65_v46  ;;  %v147_v46 = vld [vmem:[%s1166_s5 + $0x28] sm:$0xff] }
  0xfd   :  { %v99_v51 = vmul.f32 %v579_v49, %v97_v36  ;;  %vm105_vm2 = vweird.f32 %v579_v49  ;;  %v153_v36 = vld [vmem:[%s1166_s5 + $0x58] sm:$0xff] }
  0xfe   :  { %580 = vrsqrt.f32 %v66_v50  ;;  %vm106_vm4 = vmor %vm104_vm3, %vm105_vm2  ;;  %vm73_vm5 = vweird.f32 %v66_v50 }
  0xff   :  { %v100_v54 = vmul.f32 %v579_v49, %v99_v51 }
 0x101   :  { %v101_v59 = vmul.f32 0.5, %v100_v54  ;;  %v120_v60 = vpop.xlane.xlu2 %119 }
 0x102   :  { %v121_v61 = vmul.f32 %v120_v60, %v700_v12  ;;  %v818_v12 = vld [vmem:[%s1165_s4] ss:$0 sm:$0xff]  ;;  %v307_v60 = vld [vmem:[%s1168_s7 + $0xd0] sm:$0xff] }
 0x103   :  { %v102_v0 = vsub.f32 1.5, %v101_v59  ;;  %v310_v59 = vld [vmem:[%s1168_s7 + $0xe8] sm:$0xff]  ;;  %334 = vmatpush.msrb.mxu1 %v307_v60 }
 0x104   :  { %v581_v1 = vpop.eup %580  ;;  %v795_v2 = vadd.f32 1e-05, %v121_v61  ;;  %v308_v61 = vld [vmem:[%s1168_s7 + $0xd8] sm:$0xff] }
 0x105   :  { %v103_v5 = vmul.f32 %v579_v49, %v102_v0  ;;  %v68_v6 = vmul.f32 %v581_v1, %v66_v50  ;;  %vm74_vm6 = vweird.f32 %v581_v1  ;;  %v145_v50 = vld [vmem:[%s1166_s5 + $0x18] sm:$0xff]  ;;  %v303_v0 = vld [vmem:[%s1168_s7 + $0xb0] sm:$0xff]  ;;  %335 = vmatpush.msrb.mxu1 %v305_v62 }
 0x106   :  { %582 = vrsqrt.f32 %v795_v2  ;;  %vm834_vm7 = vmor %vm73_vm5, %vm74_vm6  ;;  %vm129_vm8 = vweird.f32 %v795_v2 }
 0x107   :  { %v107_v10 = vsel %vm106_vm4, %v579_v49, %v103_v5  ;;  %v69_v11 = vmul.f32 %v581_v1, %v68_v6  ;;  %v144_v49 = vld [vmem:[%s1166_s5 + $0x10] sm:$0xff]  ;;  %v302_v5 = vld [vmem:[%s1168_s7 + $0xa8] sm:$0xff]  ;;  %336 = vmatpush.msrb.mxu1 %v303_v0 }
 0x108   :  { %v108_v13 = vmul.f32 %v107_v10, %v703_v15  ;;  %v159_v15 = vld [vmem:[%s1166_s5 + $0x88] sm:$0xff]  ;;  %213 = vmatpush.msra.mxu0 %v144_v49  ;;  %v299_v6 = vld [vmem:[%s1168_s7 + $0x90] sm:$0xff] }
 0x109   :  { %v70_v17 = vmul.f32 0.5, %v69_v11  ;;  %246 = vmatpush.msra.mxu2 %v159_v15  ;;  %337 = vmatpush.msrb.mxu1 %v301_v4  ;;  %v295_v10 = vld [vmem:[%s1168_s7 + $0x70] sm:$0xff]  ;;  %v296_v11 = vld [vmem:[%s1168_s7 + $0x78] sm:$0xff]  ;;  %v325_v15 = vld [vmem:[%s1168_s7 + $0x160] sm:$0xff] }
 0x10a   :  { %v109_v18 = vmul.f32 %v806_v7, %v108_v13  ;;  %v294_v13 = vld [vmem:[%s1168_s7 + $0x68] sm:$0xff] }
 0x10b   :  { %v71_v20 = vsub.f32 1.5, %v70_v17  ;;  %247 = vmatpush.msra.mxu2 %v157_v27  ;;  %338 = vmatpush.msrb.mxu1 %v299_v6  ;;  %v289_v17 = vld [vmem:[%s1168_s7 + $0x40] sm:$0xff]  ;;  %v324_v27 = vld [vmem:[%s1168_s7 + $0x158] sm:$0xff] }
 0x10c   :  { %v583_v21 = vpop.eup %582  ;;  %v110_v25 = vadd.f32 %v818_v12, %v109_v18  ;;  %v290_v18 = vld [vmem:[%s1168_s7 + $0x48] sm:$0xff] }
 0x10d   :  { %v72_v28 = vmul.f32 %v581_v1, %v71_v20  ;;  %v124_v29 = vmul.f32 %v583_v21, %v795_v2  ;;  %vm130_vm9 = vweird.f32 %v583_v21  ;;  %248 = vmatpush.msra.mxu2 %v155_v31  ;;  %v327_v2 = vld [vmem:[%s1168_s7 + $0x170] sm:$0xff]  ;;  %339 = vmatpush.msrb.mxu1 %v297_v8  ;;  %v288_v20 = vld [vmem:[%s1168_s7 + $0x38] sm:$0xff]  ;;  %v322_v31 = vld [vmem:[%s1168_s7 + $0x148] sm:$0xff] }
 0x10e   :  { %137 = vrot.lane.b32.xlu0 %v110_v25, %s615_s21  ;;  %vm131_vm10 = vmor %vm129_vm8, %vm130_vm9  ;;  %360 = vmatpush.msrb.mxu3 %v327_v2  ;;  %v323_v25 = vld [vmem:[%s1168_s7 + $0x150] sm:$0xff]  ;;  %v490_v8 = vld [vmem:[%s1172_s11 + $0x78] sm:$0xff] }
 0x10f   :  { %v76_v32 = vsel %vm834_vm7, %v581_v1, %v72_v28  ;;  %v125_v33 = vmul.f32 %v583_v21, %v124_v29  ;;  %249 = vmatpush.msra.mxu2 %v153_v36  ;;  %v304_v1 = vld [vmem:[%s1168_s7 + $0xb8] sm:$0xff]  ;;  %340 = vmatpush.msrb.mxu1 %v295_v10  ;;  %v283_v28 = vld [vmem:[%s1168_s7 + $0x10] sm:$0xff]  ;;  %v321_v29 = vld [vmem:[%s1168_s7 + $0x140] sm:$0xff] }
 0x110   :  { %v77_v34 = vmul.f32 %v76_v32, %v710_v22  ;;  %v151_v22 = vld [vmem:[%s1166_s5 + $0x48] sm:$0xff]  ;;  %361 = vmatpush.msrb.mxu3 %v325_v15  ;;  %v281_v32 = vld [vmem:[%s1168_s7] sm:$0xff] }
 0x111   :  { %v126_v37 = vmul.f32 0.5, %v125_v33  ;;  %250 = vmatpush.msra.mxu2 %v151_v22  ;;  %v319_v33 = vld [vmem:[%s1168_s7 + $0x130] sm:$0xff]  ;;  %v317_v36 = vld [vmem:[%s1168_s7 + $0x120] sm:$0xff]  ;;  %v316_v22 = vld [vmem:[%s1168_s7 + $0x118] sm:$0xff] }
 0x112   :  { %v81_v39 = vmul.f32 %v806_v7, %v77_v34  ;;  %362 = vmatpush.msrb.mxu3 %v323_v25  ;;  %v282_v34 = vld [vmem:[%s1168_s7 + $0x8] sm:$0xff] }
 0x113   :  { %v127_v40 = vsub.f32 1.5, %v126_v37  ;;  %251 = vmatpush.msra.mxu2 %v149_v42  ;;  %v318_v37 = vld [vmem:[%s1168_s7 + $0x128] sm:$0xff]  ;;  %v192_v42 = vperm.slane %v190_v41, 0 }
 0x114   :  { %v85_v43 = vadd.f32 %v818_v12, %v81_v39  ;;  %363 = vmatpush.msrb.mxu3 %v321_v29  ;;  %v313_v39 = vld [vmem:[%s1168_s7 + $0x100] sm:$0xff]  ;;  %v488_v25 = vld [vmem:[%s1172_s11 + $0x68] sm:$0xff] }
 0x115   :  { %v128_v44 = vmul.f32 %v583_v21, %v127_v40  ;;  %252 = vmatpush.msra.mxu2 %v147_v46  ;;  %v314_v40 = vld [vmem:[%s1168_s7 + $0x108] sm:$0xff] }
 0x116   :  { %364 = vmatpush.msrb.mxu3 %v319_v33  ;;  %v484_v29 = vld [vmem:[%s1172_s11 + $0x48] sm:$0xff]  ;;  %v481_v33 = vld [vmem:[%s1172_s11 + $0x30] sm:$0xff] }
 0x117   :  { %v132_v47 = vsel %vm131_vm10, %v583_v21, %v128_v44  ;;  %253 = vmatpush.msra.mxu2 %v145_v50  ;;  %v326_v21 = vld [vmem:[%s1168_s7 + $0x168] sm:$0xff] }
 0x118   :  { %v133_v48 = vmul.f32 %v132_v47, %v712_v23  ;;  %v142_v23 = vld [vmem:[%s1166_s5] sm:$0xff]  ;;  %365 = vmatpush.msrb.mxu3 %v317_v36  ;;  %v193_v47 = vperm.slane %v190_v41, 1  ;;  %v496_v36 = vld [vmem:[%s1172_s11 + $0xa8] sm:$0xff]  ;;  %v493_v41 = vld [vmem:[%s1172_s11 + $0x90] sm:$0xff] }
 0x119   :  { %214 = vmatpush.msra.mxu0 %v142_v23  ;;  %254 = vmatpush.msra.mxu2 %v143_v53 }
 0x11a   :  { %v134_v51 = vmul.f32 %v806_v7, %v133_v48  ;;  %v300_v7 = vld [vmem:[%s1168_s7 + $0x98] sm:$0xff]  ;;  %366 = vmatpush.msrb.mxu3 %v315_v38  ;;  %v495_v38 = vld [vmem:[%s1172_s11 + $0xa0] sm:$0xff] }
 0x11b   :  { %372 = vmatpush.msrb.mxu0 %v312_v57  ;;  %400 = vmatpush.msrb.mxu2 %v328_v3 }
 0x11c   :  { %v891_v52 = vadd.f32 %v818_v12, %v134_v51  ;;  %v293_v12 = vld [vmem:[%s1168_s7 + $0x60] sm:$0xff]  ;;  %367 = vmatpush.msrb.mxu3 %v313_v39  ;;  %v494_v39 = vld [vmem:[%s1172_s11 + $0x98] sm:$0xff] }
 0x11d   :  { %373 = vmatpush.msrb.mxu0 %v310_v59  ;;  %341 = vmatpush.msrb.mxu1 %v293_v12 }
 0x11e   :  { %564 = vmatmul.msk.f32.vlgmr.msra.gmra.mxu1 %vm140_vm11, %v891_v52  ;;  %565 = vmatmul.msk.f32.vlgmr.msra.gmra.mxu3 %vm140_vm11, %v891_v52 }
 0x11f   :  { %374 = vmatpush.msrb.mxu0 %v308_v61  ;;  %342 = vmatpush.msrb.mxu1 %v291_v14 }
 0x120   :  { %401 = vmatpush.msrb.mxu2 %v326_v21  ;;  %506 = vmatpush.msra.mxu3 %v490_v8 }
 0x121   :  { %375 = vmatpush.msrb.mxu0 %v306_v63  ;;  %343 = vmatpush.msrb.mxu1 %v289_v17 }
 0x122   :  { %402 = vmatpush.msrb.mxu2 %v324_v27  ;;  %v486_v27 = vld [vmem:[%s1172_s11 + $0x58] sm:$0xff] }
 0x123   :  { %376 = vmatpush.msrb.mxu0 %v304_v1  ;;  %344 = vmatpush.msrb.mxu1 %v287_v19 }
 0x124   :  { %403 = vmatpush.msrb.mxu2 %v322_v31  ;;  %v482_v31 = vld [vmem:[%s1172_s11 + $0x38] sm:$0xff] }
 0x125   :  { %377 = vmatpush.msrb.mxu0 %v302_v5  ;;  %345 = vmatpush.msrb.mxu1 %v285_v24 }
 0x126   :  { %404 = vmatpush.msrb.mxu2 %v320_v35  ;;  %v480_v35 = vld [vmem:[%s1172_s11 + $0x28] sm:$0xff] }
 0x127   :  { %378 = vmatpush.msrb.mxu0 %v300_v7  ;;  %346 = vmatpush.msrb.mxu1 %v283_v28  ;;  %v616_v7 = vmov 192.0   ;;  %v485_v28 = vld [vmem:[%s1172_s11 + $0x50] sm:$0xff] }
 0x128   :  { %405 = vmatpush.msrb.mxu2 %v318_v37  ;;  %584 = vrcp.f32 %v616_v7  ;;  %v479_v37 = vld [vmem:[%s1172_s11 + $0x20] sm:$0xff] }
 0x129   :  { %379 = vmatpush.msrb.mxu0 %v298_v9  ;;  %347 = vmatpush.msrb.mxu1 %v281_v32  ;;  %v498_v32 = vld [vmem:[%s1172_s11 + $0xb8] sm:$0xff] }
 0x12a   :  { %406 = vmatpush.msrb.mxu2 %v316_v22  ;;  %v478_v22 = vld [vmem:[%s1172_s11 + $0x18] sm:$0xff] }
 0x12b   :  { %380 = vmatpush.msrb.mxu0 %v296_v11  ;;  %534 = vmatpush.msra.mxu1 %v498_v32 }
 0x12c   :  { %407 = vmatpush.msrb.mxu2 %v314_v40  ;;  %v477_v40 = vld [vmem:[%s1172_s11 + $0x10] sm:$0xff] }
 0x12d   :  { %381 = vmatpush.msrb.mxu0 %v294_v13 }
 0x12f   :  { %382 = vmatpush.msrb.mxu0 %v292_v16 }
 0x131   :  { %383 = vmatpush.msrb.mxu0 %v290_v18 }
 0x133   :  { %384 = vmatpush.msrb.mxu0 %v288_v20 }
 0x135   :  { %385 = vmatpush.msrb.mxu0 %v286_v26  ;;  %v487_v26 = vld [vmem:[%s1172_s11 + $0x60] sm:$0xff] }
 0x137   :  { %386 = vmatpush.msrb.mxu0 %v284_v30  ;;  %v483_v30 = vld [vmem:[%s1172_s11 + $0x40] sm:$0xff] }
 0x139   :  { %387 = vmatpush.msrb.mxu0 %v282_v34  ;;  %v497_v34 = vld [vmem:[%s1172_s11 + $0xb0] sm:$0xff] }
 0x13a   :  { %535 = vmatpush.msra.mxu1 %v497_v34 }
 0x13c   :  { %536 = vmatpush.msra.mxu1 %v496_v36 }
 0x13e   :  { %537 = vmatpush.msra.mxu1 %v495_v38 }
 0x140   :  { %538 = vmatpush.msra.mxu1 %v494_v39 }
 0x142   :  { %539 = vmatpush.msra.mxu1 %v493_v41 }
 0x180   :  { %v138_v54 = vpop.permute.xlu0 %137 }
 0x181   :  { %v904_v55 = vsel %vm140_vm11, %v85_v43, %v138_v54  ;;  %v414_v54 = vld [vmem:[%s1169_s8] sm:$0x3] }
 0x182   :  { %215 = vmatmul.f32.vlgmr.msra.gmra.mxu0 %v904_v55  ;;  %255 = vmatmul.f32.vlgmr.msra.gmra.mxu2 %v904_v55  ;;  %v416_v62 = vperm.slane %v414_v54, 0  ;;  %v417_v63 = vperm.slane %v414_v54, 1 }
 0x19b   :  { %v236_v45 = vpop.f32.mrf.mxu1 }
 0x1a1   :  { %v276_v51 = vpop.f32.mrf.mxu3 }
 0x1ff   :  { %v216_v43 = vpop.f32.mrf.mxu0 }
 0x200   :  { %v217_v44 = vadd.f32 %v216_v43, %v192_v42  ;;  %v476_v42 = vld [vmem:[%s1172_s11 + $0x8] sm:$0xff] }
 0x201   :  { %v492_v43 = vld [vmem:[%s1172_s11 + $0x88] sm:$0xff] }
 0x202   :  { %v237_v46 = vadd.f32 %v236_v45, %v217_v44  ;;  %v475_v44 = vld [vmem:[%s1172_s11] sm:$0xff]  ;;  %540 = vmatpush.msra.mxu1 %v492_v43 }
 0x203   :  { %v491_v45 = vld [vmem:[%s1172_s11 + $0x80] sm:$0xff] }
 0x204   :  { %v279_v48 = vmax.f32 %v237_v46, 0.0  ;;  %541 = vmatpush.msra.mxu1 %v491_v45 }
 0x205   :  { %v256_v49 = vpop.f32.mrf.mxu2 }
 0x206   :  { %v257_v50 = vadd.f32 %v256_v49, %v193_v47  ;;  %348 = vmatmul.f32.vlgmr.msrb.gmra.mxu1 %v279_v48  ;;  %388 = vmatmul.f32.vlgmr.msrb.gmra.mxu0 %v279_v48 }
 0x208   :  { %v277_v23 = vadd.f32 %v276_v51, %v257_v50 }
 0x20a   :  { %v280_v53 = vmax.f32 %v277_v23, 0.0 }
 0x20c   :  { %566 = vmatmul.msk.f32.vlgmr.msrb.gmra.mxu3 %vm140_vm11, %v280_v53  ;;  %567 = vmatmul.msk.f32.vlgmr.msrb.gmra.mxu2 %vm140_vm11, %v280_v53  ;;  %v422_v53 = vld [vmem:[%s1170_s9] sm:$0x3] }
 0x283   :  { %v349_v56 = vpop.f32.mrf.mxu1  ;;  %v389_v57 = vpop.f32.mrf.mxu0 }
 0x28f   :  { %v369_v58 = vpop.f32.mrf.mxu3  ;;  %v409_v59 = vpop.f32.mrf.mxu2 }
 0x290   :  { %v370_v60 = vadd.f32 %v369_v58, %v349_v56  ;;  %v410_v61 = vadd.f32 %v409_v59, %v389_v57  ;;  %v423_v57 = vld [vmem:[%s1171_s10] sm:$0x3]  ;;  %v463_v58 = vperm.slane %v422_v53, 1  ;;  %v462_v59 = vperm.slane %v422_v53, 0  ;;  %s617_s10 = smov [#allocation2]  }
 0x291   :  { %s553_s8 = sshll.u32 %s617_s10, 4  ;;  %s554_s8 = int_to_ptr.vmem [resolvable:$true] %s553_s8 }
 0x292   :  { %v412_v0 = vadd.f32 %v370_v60, %v904_v55  ;;  %v413_v1 = vadd.f32 %v410_v61, %v891_v52  ;;  %v489_v55 = vld [vmem:[%s1172_s11 + $0x70] sm:$0xff]  ;;  %v585_v52 = vpop.eup %584 }
 0x293   :  { %507 = vmatpush.msra.mxu3 %v489_v55  ;;  %v431_v9 = vmul.f32 192.0, %v585_v52  ;;  %vm435_vm13 = vweird.f32 %v585_v52 }
 0x294   :  { %v420_v2 = vadd.f32 %v416_v62, %v412_v0  ;;  %v421_v3 = vadd.f32 %v417_v63, %v413_v1  ;;  %v469_v63 = vperm.slane %v423_v57, 0  ;;  %v470_v0 = vperm.slane %v423_v57, 1 }
 0x295   :  { %v432_v10 = vsub.f32 1.0, %v431_v9  ;;  %508 = vmatpush.msra.mxu3 %v488_v25 }
 0x296   :  { %v425_v4 = vsel %vm424_vm12, %v420_v2, 0.0  ;;  %v426_v5 = vsel %vm48_vm0, %v421_v3, 0.0 }
 0x297   :  { %v427_v6 = vadd.f32 %v426_v5, %v425_v4  ;;  %v433_v11 = vmul.f32 %v585_v52, %v432_v10  ;;  %509 = vmatpush.msra.mxu3 %v487_v26  ;;  %v575_v5 = vld [vmem:[%s1173_s12] ss:$0 sm:$0xff] }
 0x299   :  { %428 = vadd.xlane.f32.xlu1 %v427_v6  ;;  %v434_v12 = vadd.f32 %v585_v52, %v433_v11  ;;  %510 = vmatpush.msra.mxu3 %v486_v27 }
 0x29b   :  { %v436_v13 = vsel %vm435_vm13, %v585_v52, %v434_v12  ;;  %511 = vmatpush.msra.mxu3 %v485_v28 }
 0x29d   :  { %512 = vmatpush.msra.mxu3 %v484_v29 }
 0x29f   :  { %513 = vmatpush.msra.mxu3 %v483_v30 }
 0x2a1   :  { %514 = vmatpush.msra.mxu3 %v482_v31 }
 0x2a3   :  { %515 = vmatpush.msra.mxu3 %v481_v33 }
 0x2a5   :  { %516 = vmatpush.msra.mxu3 %v480_v35 }
 0x2a7   :  { %517 = vmatpush.msra.mxu3 %v479_v37 }
 0x2a9   :  { %518 = vmatpush.msra.mxu3 %v478_v22 }
 0x2ab   :  { %519 = vmatpush.msra.mxu3 %v477_v40 }
 0x2ad   :  { %520 = vmatpush.msra.mxu3 %v476_v42 }
 0x2af   :  { %521 = vmatpush.msra.mxu3 %v475_v44 }
 0x30c   :  { %v429_v14 = vpop.xlane.xlu1 %428 }
 0x30d   :  { %v437_v16 = vmul.f32 %v436_v13, %v429_v14 }
 0x30f   :  { %v1070_v17 = vsub.f32 %v420_v2, %v437_v16  ;;  %v1072_v18 = vsub.f32 %v421_v3, %v437_v16 }
 0x311   :  { %v440_v19 = vmul.f32 %v1070_v17, %v1070_v17  ;;  %v441_v15 = vmul.f32 %v1072_v18, %v1072_v18 }
 0x313   :  { %v442_v20 = vsel %vm424_vm12, %v440_v19, 0.0  ;;  %v443_v21 = vsel %vm48_vm0, %v441_v15, 0.0 }
 0x314   :  { %v444_v24 = vadd.f32 %v443_v21, %v442_v20 }
 0x316   :  { %445 = vadd.xlane.f32.xlu2 %v444_v24 }
 0x389   :  { %v446_v46 = vpop.xlane.xlu2 %445 }
 0x38a   :  { %v447_v47 = vmul.f32 %v446_v46, %v436_v13 }
 0x38c   :  { %v448_v48 = vadd.f32 1e-05, %v447_v47 }
 0x38e   :  { %586 = vrsqrt.f32 %v448_v48  ;;  %vm455_vm15 = vweird.f32 %v448_v48 }
 0x394   :  { %v587_v49 = vpop.eup %586 }
 0x395   :  { %v450_v50 = vmul.f32 %v587_v49, %v448_v48  ;;  %vm456_vm14 = vweird.f32 %v587_v49 }
 0x396   :  { %vm457_vm0 = vmor %vm455_vm15, %vm456_vm14 }
 0x397   :  { %v451_v51 = vmul.f32 %v587_v49, %v450_v50 }
 0x399   :  { %v452_v23 = vmul.f32 0.5, %v451_v51 }
 0x39b   :  { %v453_v54 = vsub.f32 1.5, %v452_v23 }
 0x39d   :  { %v454_v56 = vmul.f32 %v587_v49, %v453_v54 }
 0x39f   :  { %v458_v60 = vsel %vm457_vm0, %v587_v49, %v454_v56 }
 0x3a0   :  { %v459_v61 = vmul.f32 %v458_v60, %v1070_v17  ;;  %v460_v62 = vmul.f32 %v458_v60, %v1072_v18 }
 0x3a2   :  { %v467_v1 = vmul.f32 %v463_v58, %v460_v62  ;;  %v466_v2 = vmul.f32 %v462_v59, %v459_v61 }
 0x3a4   :  { %v473_v3 = vadd.f32 %v469_v63, %v466_v2  ;;  %v474_v4 = vadd.f32 %v470_v0, %v467_v1 }
 0x3a6   :  { %522 = vmatmul.f32.vlgmr.msra.gmra.mxu3 %v473_v3  ;;  %568 = vmatmul.msk.f32.vlgmr.msra.gmra.mxu1 %vm140_vm11, %v474_v4 }
 0x423   :  { %v543_v8 = vpop.f32.mrf.mxu1 }
 0x429   :  { %v523_v6 = vpop.f32.mrf.mxu3 }
 0x42a   :  { %v524_v7 = vadd.f32 %v575_v5, %v523_v6 }
 0x42c   :  { %v544_v55 = vadd.f32 %v543_v8, %v524_v7 }
 0x42e   :  { %547 = vst.msk [vmem:[#allocation2] sm:$0x3] %vm546_vm1, %v544_v55 }
 0x42f   :  { %558 = dma.vmem_to_hbm [thread:$0]  %s554_s8, 32, %s556_s14, [#allocation3]  }
 0x430   :  { %612 = dma.done.wait [#allocation3], 32  }
 0x431   :  { %613 = vsyncadd [#allocation3], 4294967264 }
 0x432   :  { %563 = vsyncpa [#allocation3], 1 }

</bundles_post_ra>
